<compile_context>
chip_gen: v7x
topology: tpu7x:2x2x1
jax: 0.10.0
libtpu: 0.0.40
codegen_flags: <defaults>
</compile_context>

<pallas_src>
from functools import partial

import numpy as np
import jax
import jax.numpy as jnp
from jax.experimental import pallas as pl
from jax.experimental.pallas import tpu as pltpu

DTYPE = jnp.float32
LN_EPS = 1e-5
SQRT_HALF = np.float32(0.7071067811865476)


# ---------------------------------------------------------------------------
# In-kernel math helpers (operate on VMEM/vreg-resident values)
# ---------------------------------------------------------------------------

def _ln(x, g, b, eps=LN_EPS):
    mu = jnp.mean(x, axis=-1, keepdims=True)
    xc = x - mu
    var = jnp.mean(xc * xc, axis=-1, keepdims=True)
    return xc * jax.lax.rsqrt(var + eps) * g + b


def _gelu(x):
    # exact (erf) GELU, matching torch.nn.GELU() default
    return 0.5 * x * (1.0 + jax.lax.erf(x * SQRT_HALF))


def _softmax_lastdim(s):
    s = s - jnp.max(s, axis=-1, keepdims=True)
    p = jnp.exp(s)
    return p * pl.reciprocal(jnp.sum(p, axis=-1, keepdims=True), approx=True)


# ---------------------------------------------------------------------------
# The single fused TPSBT kernel (one grid step == one batch element)
# ---------------------------------------------------------------------------

def _tpsbt_kernel(xp_ref, pe_w_ref, pe_add_ref,
                  blk_qkv_ref, blk_proj_ref, blk_fc1_ref, blk_fc2_ref,
                  blk_bfc1_ref, blk_vec_ref,
                  cs_q_ref, cs_kv_ref, cs_proj_ref,
                  td_w_ref, td_b_ref,
                  sp_norm_ref, sp_w1_ref, sp_b1_ref, sp_w2_ref, sp_b2_ref,
                  fcn_ref, head_w_ref, head_b_ref,
                  o_ref, scr_ref, *,
                  num_heads, stage_depths, tsl, tk):
    f32 = jnp.float32

    # ---- PatchEmbed: patchified pixels @ W  +  (conv bias + sinusoid pos-embed) ----
    x = (jnp.dot(xp_ref[0].astype(f32), pe_w_ref[...],
                 preferred_element_type=f32) + pe_add_ref[...])        # [Np, C]
    C = x.shape[-1]
    dh = C // num_heads
    scale = dh ** -0.5

    # blk_vec rows: 0 n1_g, 1 n1_b, 2 n2_g, 3 n2_b, 4 b_proj, 5 b_fc2,
    #               6 cn1_g, 7 cn1_b, 8 cn2_g, 9 cn2_b, 10 b_cproj

    def mha(q_all, k_all, v_all, wproj, bproj):
        # per-head attention; no k.T (dot_general contracts last dims); the output
        # projection is folded per head so no narrow [T, dh] tiles are materialized.
        out = bproj                                                    # [1, C]
        for h in range(num_heads):
            sl = slice(h * dh, (h + 1) * dh)
            q = q_all[:, sl] * scale
            k = k_all[:, sl]
            v = v_all[:, sl]
            s = jax.lax.dot_general(q, k, (((1,), (1,)), ((), ())),
                                    preferred_element_type=f32)        # [T1, T2]
            p = _softmax_lastdim(s)
            oh = jnp.dot(p, v, preferred_element_type=f32)             # [T1, dh]
            out = out + jnp.dot(oh, wproj[sl, :], preferred_element_type=f32)
        return out

    def self_attn(x, bi, vec):
        qkv = jnp.dot(_ln(x, vec[0:1], vec[1:2]), blk_qkv_ref[bi],
                      preferred_element_type=f32)                      # [T, 3C]
        return mha(qkv[:, :C], qkv[:, C:2 * C], qkv[:, 2 * C:],
                   blk_proj_ref[bi], vec[4:5])

    def mlp_part(x, bi, vec):
        h = _gelu(jnp.dot(_ln(x, vec[2:3], vec[3:4]), blk_fc1_ref[bi],
                          preferred_element_type=f32) + blk_bfc1_ref[bi])
        return jnp.dot(h, blk_fc2_ref[bi], preferred_element_type=f32) + vec[5:6]

    def cross_attn(x, ctx, bi, vec):
        q_all = jnp.dot(_ln(x, vec[6:7], vec[7:8]), cs_q_ref[bi],
                        preferred_element_type=f32)                    # [T1, C]
        kv = jnp.dot(_ln(ctx, vec[8:9], vec[9:10]), cs_kv_ref[bi],
                     preferred_element_type=f32)                       # [T2, 2C]
        return mha(q_all, kv[:, :C], kv[:, C:], cs_proj_ref[bi], vec[10:11])

    def block_body(x, bi):
        vec = blk_vec_ref[bi]                                          # [11, C]
        x = x + self_attn(x, bi, vec)
        x = x + mlp_part(x, bi, vec)
        return x

    def csblock_body(x, ctx, bi):
        vec = blk_vec_ref[bi]
        x = x + cross_attn(x, ctx, bi, vec)
        x = x + self_attn(x, bi, vec)
        x = x + mlp_part(x, bi, vec)
        return x

    def temporal_ds(x, si, t):
        # Conv1d(C, C, kernel=tk, stride=tk) along time, tap-major (tk matmuls).
        hw = x.shape[0] // t
        tout = t // tk
        rows = tout * hw
        out = td_b_ref[si]                                             # [1, C]
        for j in range(tk):
            if tout == 1:
                xj = x[j * hw:(j + 1) * hw, :]
            else:
                # gather the tap-j rows of every output time step into scratch
                for to in range(tout):
                    scr_ref[to * hw:(to + 1) * hw, :] = (
                        x[(to * tk + j) * hw:(to * tk + j + 1) * hw, :])
                xj = scr_ref[0:rows, :]
            out = out + jnp.dot(xj, td_w_ref[si * tk + j],
                                preferred_element_type=f32)
        return out                                                     # [rows, C]

    def spatial_pool(x, si, t):
        # SpatialAttention: attn = MLP(LN(x)); softmax over n1 per time step; y = attn @ x
        hw = x.shape[0] // t
        norm = sp_norm_ref[si]                                         # [2, C]
        h = _gelu(jnp.dot(_ln(x, norm[0:1], norm[1:2]), sp_w1_ref[si],
                          preferred_element_type=f32) + sp_b1_ref[si])
        logits = (jnp.dot(h, sp_w2_ref[si], preferred_element_type=f32)
                  + sp_b2_ref[si])                                     # [t*hw, n_tok]
        n_tok = logits.shape[-1]
        ys = []
        for ti in range(t):
            a = logits[ti * hw:(ti + 1) * hw, :].T                     # [n_tok, hw]
            p = _softmax_lastdim(a)
            xt = x[ti * hw:(ti + 1) * hw, :]                           # [hw, C]
            ys.append(jnp.dot(p, xt, preferred_element_type=f32))      # [n_tok, C]
        if t == 1:
            return ys[0]
        for ti, y in enumerate(ys):
            scr_ref[ti * n_tok:(ti + 1) * n_tok, :] = y
        return scr_ref[0:t * n_tok, :]

    # ---- stage structure identical to the PyTorch module ----
    bi = 0
    for stage_idx, depth in enumerate(stage_depths):
        if stage_idx == 0:
            for _ in range(depth):
                x = block_body(x, bi)
                bi += 1
        else:
            si = stage_idx - 1
            cur_t = tsl // tk ** si
            x = temporal_ds(x, si, cur_t)
            x_before = x
            x = spatial_pool(x, si, cur_t // tk)
            for _ in range(depth - 1):
                x = csblock_body(x, x_before, bi)
                bi += 1
            x = csblock_body(x_before, x, bi)
            bi += 1

    # ---- use_mean_pooling=True: fc_norm(x.mean(tokens)) then head ----
    m = jnp.mean(x, axis=0, keepdims=True)                             # [1, C]
    fcn = fcn_ref[...]                                                 # [2, C]
    y = _ln(m, fcn[0:1], fcn[1:2])
    o_ref[0] = (jnp.dot(y, head_w_ref[...], preferred_element_type=f32)
                + head_b_ref[...]).astype(o_ref.dtype)


# ---------------------------------------------------------------------------
# Wrapper: one pallas_call for the whole network
# ---------------------------------------------------------------------------

PARAM_ORDER = ("pe_w", "pe_add",
               "blk_qkv", "blk_proj", "blk_fc1", "blk_fc2", "blk_bfc1", "blk_vec",
               "cs_q", "cs_kv", "cs_proj",
               "td_w", "td_b",
               "sp_norm", "sp_w1", "sp_b1", "sp_w2", "sp_b2",
               "fcn", "head_w", "head_b")


def _full_spec(a):
    zeros = (0,) * a.ndim
    return pl.BlockSpec(tuple(a.shape), lambda b, _z=zeros: _z)


def tpsbt_forward(x, params, cfg):
    ts, ps, tk = cfg["tubelet_size"], cfg["patch_size"], cfg["temporal_kernel_size"]
    tsl = cfg["all_frames"] // ts
    B, Cin, T, H, W = x.shape
    t_, h_, w_ = T // ts, H // ps, W // ps
    Np = t_ * h_ * w_
    K = Cin * ts * ps * ps
    D = cfg["embed_dim"]
    ncls = cfg["num_classes"]

    # one-time patchify (Conv3d with kernel==stride == gather of disjoint patches);
    # flatten order (Cin, dt, dh, dw) matches the patch-embed weight layout.
    xp = x.reshape(B, Cin, t_, ts, h_, ps, w_, ps)
    xp = xp.transpose(0, 2, 4, 6, 1, 3, 5, 7).reshape(B, Np, K).astype(DTYPE)

    plist = [params[name] for name in PARAM_ORDER]
    kernel = partial(_tpsbt_kernel,
                     num_heads=cfg["num_heads"],
                     stage_depths=tuple(cfg["stage_depths"]),
                     tsl=tsl, tk=tk)

    # Total parameters << 1 MiB: everything is VMEM-resident on v5e/v6e/v7x; no
    # explicit vmem_limit needed at this size (re-check if the model is scaled up).
    out = pl.pallas_call(
        kernel,
        out_shape=jax.ShapeDtypeStruct((B, 1, ncls), DTYPE),
        grid=(B,),
        in_specs=[pl.BlockSpec((1, Np, K), lambda b: (b, 0, 0))]
                 + [_full_spec(a) for a in plist],
        out_specs=pl.BlockSpec((1, 1, ncls), lambda b: (b, 0, 0)),
        scratch_shapes=[pltpu.VMEM((Np, D), jnp.float32)],
        compiler_params=pltpu.CompilerParams(dimension_semantics=("parallel",)),
    )(xp, *plist)
    return out[:, 0, :]


# ---------------------------------------------------------------------------
# Deterministic parameter initialization (weights pre-transposed to [K, N],
# tiny per-block vectors packed into stacked arrays)
# ---------------------------------------------------------------------------

def get_sinusoid_encoding_table(n_position, d_hid):
    def angle_vec(pos):
        return [pos / np.power(10000, 2 * (j // 2) / d_hid) for j in range(d_hid)]
    tbl = np.array([angle_vec(p) for p in range(n_position)], dtype=np.float64)
    tbl[:, 0::2] = np.sin(tbl[:, 0::2])
    tbl[:, 1::2] = np.cos(tbl[:, 1::2])
    return jnp.asarray(tbl, DTYPE)                                     # [N, D]


def _trunc_normal(key, shape, std=0.02):
    return std * jax.random.truncated_normal(key, -2.0, 2.0, shape, DTYPE)


def init_params(key, cfg):
    D = cfg["embed_dim"]
    Hm = int(D * cfg["mlp_ratio"])
    ts, ps, tk = cfg["tubelet_size"], cfg["patch_size"], cfg["temporal_kernel_size"]
    tsl = cfg["all_frames"] // ts
    n_spatial = (cfg["img_size"] // ps) ** 2
    Np = tsl * n_spatial
    K = cfg["in_chans"] * ts * ps * ps
    depths = tuple(cfg["stage_depths"])
    n_blk = sum(depths)
    n_ds = len(depths) - 1
    n_tok = cfg["num_bottleneck_tokens"][0]
    bnd = cfg["bottleneck_dim"]
    ncls = cfg["num_classes"]

    keys = iter(jax.random.split(key, 16 + 8 * n_blk))

    # PatchEmbed: Conv3d(kernel==stride) weight flattened & transposed to [K, D];
    # conv bias (zero-init) and the sinusoid pos-embed are folded into one additive term.
    pe_w = _trunc_normal(next(keys), (K, D))
    pe_add = get_sinusoid_encoding_table(Np, D) + jnp.zeros((1, D), DTYPE)

    blk_qkv = jnp.stack([_trunc_normal(next(keys), (D, 3 * D)) for _ in range(n_blk)])
    blk_proj = jnp.stack([_trunc_normal(next(keys), (D, D)) for _ in range(n_blk)])
    blk_fc1 = jnp.stack([_trunc_normal(next(keys), (D, Hm)) for _ in range(n_blk)])
    blk_fc2 = jnp.stack([_trunc_normal(next(keys), (Hm, D)) for _ in range(n_blk)])
    blk_bfc1 = jnp.zeros((n_blk, 1, Hm), DTYPE)

    # cross-attention weights only exist for CSBlocks (stages >= 1); zeros otherwise
    is_cs = [0] * depths[0] + [1] * (n_blk - depths[0])
    cs_q = jnp.stack([_trunc_normal(next(keys), (D, D)) * c for c in is_cs])
    cs_kv = jnp.stack([_trunc_normal(next(keys), (D, 2 * D)) * c for c in is_cs])
    cs_proj = jnp.stack([_trunc_normal(next(keys), (D, D)) * c for c in is_cs])

    # packed tiny per-block vectors: [n1_g, n1_b, n2_g, n2_b, b_proj, b_fc2,
    #                                 cn1_g, cn1_b, cn2_g, cn2_b, b_cproj]
    ones, zeros = jnp.ones((D,), DTYPE), jnp.zeros((D,), DTYPE)
    vec_one = jnp.stack([ones, zeros, ones, zeros, zeros, zeros,
                         ones, zeros, ones, zeros, zeros])             # [11, D]
    blk_vec = jnp.tile(vec_one[None], (n_blk, 1, 1))

    # temporal Conv1d(D, D, tk, stride=tk): per-tap [Cin, Cout] matrices, packed
    # flat in (stage, tap) order; bias zero-init.
    td_w = jnp.stack([_trunc_normal(next(keys), (D, D)) for _ in range(n_ds * tk)])
    td_b = jnp.zeros((n_ds, 1, D), DTYPE)

    # SpatialAttention bottleneck MLP (bottleneck_dim hard-coded to 128 in TPSBT)
    sp_norm = jnp.tile(jnp.stack([ones, zeros])[None], (n_ds, 1, 1))   # [S, 2, D]
    sp_w1 = jnp.stack([_trunc_normal(next(keys), (D, bnd)) for _ in range(n_ds)])
    sp_b1 = jnp.zeros((n_ds, 1, bnd), DTYPE)
    sp_w2 = jnp.stack([_trunc_normal(next(keys), (bnd, n_tok)) for _ in range(n_ds)])
    sp_b2 = jnp.zeros((n_ds, 1, n_tok), DTYPE)

    fcn = jnp.stack([ones, zeros])                                     # [2, D]
    # NOTE: PyTorch default init_scale=0.0 would zero the head; kept non-zero here.
    head_w = _trunc_normal(next(keys), (D, ncls))
    head_b = jnp.zeros((1, ncls), DTYPE)

    return dict(pe_w=pe_w, pe_add=pe_add,
                blk_qkv=blk_qkv, blk_proj=blk_proj, blk_fc1=blk_fc1, blk_fc2=blk_fc2,
                blk_bfc1=blk_bfc1, blk_vec=blk_vec,
                cs_q=cs_q, cs_kv=cs_kv, cs_proj=cs_proj,
                td_w=td_w, td_b=td_b,
                sp_norm=sp_norm, sp_w1=sp_w1, sp_b1=sp_b1, sp_w2=sp_w2, sp_b2=sp_b2,
                fcn=fcn, head_w=head_w, head_b=head_b)


# ---------------------------------------------------------------------------
# Demo
# ---------------------------------------------------------------------------

if __name__ == "__main__":
    cfg = dict(
        img_size=16, patch_size=8, in_chans=3, num_classes=10,
        embed_dim=32, num_heads=4, mlp_ratio=4.0,
        all_frames=8, tubelet_size=2,
        stage_depths=(2, 2, 2),
        num_bottleneck_tokens=(4, 4),      # module expands (4,) to one per non-first stage
        temporal_kernel_size=2,
        bottleneck_dim=128,                # hard-coded in TPSBT's SpatialAttention
    )
    key = jax.random.PRNGKey(0)
    kp, kx = jax.random.split(key)
    params = init_params(kp, cfg)

    # video input, NCTHW
    x = jax.random.normal(kx, (2, cfg["in_chans"], cfg["all_frames"],
                               cfg["img_size"], cfg["img_size"]), DTYPE)

    fwd = jax.jit(lambda xx, pp: tpsbt_forward(xx, pp, cfg))
    out = jax.block_until_ready(fwd(x, params))

    assert out.shape == (2, cfg["num_classes"]), out.shape
    assert out.dtype == jnp.float32
    assert bool(jnp.all(jnp.isfinite(out)))
    print("KERNEL_OK")
</pallas_src>

<mosaic_0001>
module attributes {stable_mosaic.version = 11 : i64} {
  func.func @_tpsbt_kernel(%arg0: i32, %arg1: memref<1x16x384xf32, #tpu.memory_space<vmem>>, %arg2: memref<384x32xf32, #tpu.memory_space<vmem>>, %arg3: memref<16x32xf32, #tpu.memory_space<vmem>>, %arg4: memref<6x32x96xf32, #tpu.memory_space<vmem>>, %arg5: memref<6x32x32xf32, #tpu.memory_space<vmem>>, %arg6: memref<6x32x128xf32, #tpu.memory_space<vmem>>, %arg7: memref<6x128x32xf32, #tpu.memory_space<vmem>>, %arg8: memref<6x1x128xf32, #tpu.memory_space<vmem>>, %arg9: memref<6x11x32xf32, #tpu.memory_space<vmem>>, %arg10: memref<6x32x32xf32, #tpu.memory_space<vmem>>, %arg11: memref<6x32x64xf32, #tpu.memory_space<vmem>>, %arg12: memref<6x32x32xf32, #tpu.memory_space<vmem>>, %arg13: memref<4x32x32xf32, #tpu.memory_space<vmem>>, %arg14: memref<2x1x32xf32, #tpu.memory_space<vmem>>, %arg15: memref<2x2x32xf32, #tpu.memory_space<vmem>>, %arg16: memref<2x32x128xf32, #tpu.memory_space<vmem>>, %arg17: memref<2x1x128xf32, #tpu.memory_space<vmem>>, %arg18: memref<2x128x4xf32, #tpu.memory_space<vmem>>, %arg19: memref<2x1x4xf32, #tpu.memory_space<vmem>>, %arg20: memref<2x32xf32, #tpu.memory_space<vmem>>, %arg21: memref<32x10xf32, #tpu.memory_space<vmem>>, %arg22: memref<1x10xf32, #tpu.memory_space<vmem>>, %arg23: memref<1x1x10xf32, #tpu.memory_space<vmem>>, %arg24: memref<16x32xf32, #tpu.memory_space<vmem>>) attributes {dimension_semantics = [#tpu.dimension_semantics<parallel>], iteration_bounds = array<i64: 2>, scalar_prefetch = 0 : i64, scratch_operands = 1 : i64, tpu.core_type = #tpu.core_type<tc>, window_params = [{transform_indices = @transform_0, window_bounds = array<i64: 1, 16, 384>}, {pipeline_mode = #tpu.pipeline_mode<synchronous>, transform_indices = @transform_1, window_bounds = array<i64: 384, 32>}, {pipeline_mode = #tpu.pipeline_mode<synchronous>, transform_indices = @transform_2, window_bounds = array<i64: 16, 32>}, {pipeline_mode = #tpu.pipeline_mode<synchronous>, transform_indices = @transform_3, window_bounds = array<i64: 6, 32, 96>}, {pipeline_mode = #tpu.pipeline_mode<synchronous>, transform_indices = @transform_4, window_bounds = array<i64: 6, 32, 32>}, {pipeline_mode = #tpu.pipeline_mode<synchronous>, transform_indices = @transform_5, window_bounds = array<i64: 6, 32, 128>}, {pipeline_mode = #tpu.pipeline_mode<synchronous>, transform_indices = @transform_6, window_bounds = array<i64: 6, 128, 32>}, {pipeline_mode = #tpu.pipeline_mode<synchronous>, transform_indices = @transform_7, window_bounds = array<i64: 6, 1, 128>}, {pipeline_mode = #tpu.pipeline_mode<synchronous>, transform_indices = @transform_8, window_bounds = array<i64: 6, 11, 32>}, {pipeline_mode = #tpu.pipeline_mode<synchronous>, transform_indices = @transform_9, window_bounds = array<i64: 6, 32, 32>}, {pipeline_mode = #tpu.pipeline_mode<synchronous>, transform_indices = @transform_10, window_bounds = array<i64: 6, 32, 64>}, {pipeline_mode = #tpu.pipeline_mode<synchronous>, transform_indices = @transform_11, window_bounds = array<i64: 6, 32, 32>}, {pipeline_mode = #tpu.pipeline_mode<synchronous>, transform_indices = @transform_12, window_bounds = array<i64: 4, 32, 32>}, {pipeline_mode = #tpu.pipeline_mode<synchronous>, transform_indices = @transform_13, window_bounds = array<i64: 2, 1, 32>}, {pipeline_mode = #tpu.pipeline_mode<synchronous>, transform_indices = @transform_14, window_bounds = array<i64: 2, 2, 32>}, {pipeline_mode = #tpu.pipeline_mode<synchronous>, transform_indices = @transform_15, window_bounds = array<i64: 2, 32, 128>}, {pipeline_mode = #tpu.pipeline_mode<synchronous>, transform_indices = @transform_16, window_bounds = array<i64: 2, 1, 128>}, {pipeline_mode = #tpu.pipeline_mode<synchronous>, transform_indices = @transform_17, window_bounds = array<i64: 2, 128, 4>}, {pipeline_mode = #tpu.pipeline_mode<synchronous>, transform_indices = @transform_18, window_bounds = array<i64: 2, 1, 4>}, {pipeline_mode = #tpu.pipeline_mode<synchronous>, transform_indices = @transform_19, window_bounds = array<i64: 2, 32>}, {pipeline_mode = #tpu.pipeline_mode<synchronous>, transform_indices = @transform_20, window_bounds = array<i64: 32, 10>}, {pipeline_mode = #tpu.pipeline_mode<synchronous>, transform_indices = @transform_21, window_bounds = array<i64: 1, 10>}, {transform_indices = @transform_22, window_bounds = array<i64: 1, 1, 10>}]} {
    %c0 = arith.constant 0 : index
    %c0_0 = arith.constant 0 : index
    %c0_1 = arith.constant 0 : index
    %0 = vector.load %arg1[%c0, %c0_0, %c0_1] : memref<1x16x384xf32, #tpu.memory_space<vmem>>, vector<1x16x384xf32>
    %1 = vector.shape_cast %0 : vector<1x16x384xf32> to vector<16x384xf32>
    %c0_2 = arith.constant 0 : index
    %c0_3 = arith.constant 0 : index
    %2 = vector.load %arg2[%c0_2, %c0_3] : memref<384x32xf32, #tpu.memory_space<vmem>>, vector<384x32xf32>
    %cst = arith.constant dense<0.000000e+00> : vector<16x32xf32>
    %3 = tpu.matmul %1, %2, %cst {dimension_numbers = #tpu.dot_dimension_numbers<[1], [0], [0], [1], [0, 0, 1, 1], [], []>} : vector<16x384xf32>, vector<384x32xf32>, vector<16x32xf32> -> vector<16x32xf32>
    %c0_4 = arith.constant 0 : index
    %c0_5 = arith.constant 0 : index
    %4 = vector.load %arg3[%c0_4, %c0_5] : memref<16x32xf32, #tpu.memory_space<vmem>>, vector<16x32xf32>
    %5 = arith.addf %3, %4 : vector<16x32xf32>
    %c0_6 = arith.constant 0 : index
    %c0_7 = arith.constant 0 : index
    %c0_8 = arith.constant 0 : index
    %6 = vector.load %arg9[%c0_6, %c0_7, %c0_8] : memref<6x11x32xf32, #tpu.memory_space<vmem>>, vector<1x11x32xf32>
    %7 = vector.shape_cast %6 : vector<1x11x32xf32> to vector<11x32xf32>
    %8 = vector.extract_strided_slice %7 {offsets = [0, 0], sizes = [1, 32], strides = [1, 1]} : vector<11x32xf32> to vector<1x32xf32>
    %9 = vector.extract_strided_slice %7 {offsets = [1, 0], sizes = [1, 32], strides = [1, 1]} : vector<11x32xf32> to vector<1x32xf32>
    %cst_9 = arith.constant dense<0.000000e+00> : vector<16xf32>
    %10 = vector.multi_reduction <add>, %5, %cst_9 [1] : vector<16x32xf32> to vector<16xf32>
    %11 = vector.shape_cast %10 : vector<16xf32> to vector<16x1xf32>
    %cst_10 = arith.constant 3.200000e+01 : f32
    %12 = vector.broadcast %cst_10 : f32 to vector<16x1xf32>
    %13 = arith.divf %11, %12 : vector<16x1xf32>
    %14 = vector.broadcast %13 : vector<16x1xf32> to vector<16x32xf32>
    %15 = arith.subf %5, %14 : vector<16x32xf32>
    %16 = arith.mulf %15, %15 : vector<16x32xf32>
    %cst_11 = arith.constant dense<0.000000e+00> : vector<16xf32>
    %17 = vector.multi_reduction <add>, %16, %cst_11 [1] : vector<16x32xf32> to vector<16xf32>
    %18 = vector.shape_cast %17 : vector<16xf32> to vector<16x1xf32>
    %cst_12 = arith.constant 3.200000e+01 : f32
    %19 = vector.broadcast %cst_12 : f32 to vector<16x1xf32>
    %20 = arith.divf %18, %19 : vector<16x1xf32>
    %cst_13 = arith.constant 9.99999974E-6 : f32
    %21 = vector.broadcast %cst_13 : f32 to vector<16x1xf32>
    %22 = arith.addf %20, %21 : vector<16x1xf32>
    %23 = math.rsqrt %22 : vector<16x1xf32>
    %24 = vector.broadcast %23 : vector<16x1xf32> to vector<16x32xf32>
    %25 = arith.mulf %15, %24 : vector<16x32xf32>
    %26 = vector.broadcast %8 : vector<1x32xf32> to vector<16x32xf32>
    %27 = arith.mulf %25, %26 : vector<16x32xf32>
    %28 = vector.broadcast %9 : vector<1x32xf32> to vector<16x32xf32>
    %29 = arith.addf %27, %28 : vector<16x32xf32>
    %c0_14 = arith.constant 0 : index
    %c0_15 = arith.constant 0 : index
    %c0_16 = arith.constant 0 : index
    %30 = vector.load %arg4[%c0_14, %c0_15, %c0_16] : memref<6x32x96xf32, #tpu.memory_space<vmem>>, vector<1x32x96xf32>
    %31 = vector.shape_cast %30 : vector<1x32x96xf32> to vector<32x96xf32>
    %cst_17 = arith.constant dense<0.000000e+00> : vector<16x96xf32>
    %32 = tpu.matmul %29, %31, %cst_17 {dimension_numbers = #tpu.dot_dimension_numbers<[1], [0], [0], [1], [0, 0, 1, 1], [], []>} : vector<16x32xf32>, vector<32x96xf32>, vector<16x96xf32> -> vector<16x96xf32>
    %33 = vector.extract_strided_slice %32 {offsets = [0, 0], sizes = [16, 32], strides = [1, 1]} : vector<16x96xf32> to vector<16x32xf32>
    %34 = vector.extract_strided_slice %32 {offsets = [0, 32], sizes = [16, 32], strides = [1, 1]} : vector<16x96xf32> to vector<16x32xf32>
    %35 = vector.extract_strided_slice %32 {offsets = [0, 64], sizes = [16, 32], strides = [1, 1]} : vector<16x96xf32> to vector<16x32xf32>
    %c0_18 = arith.constant 0 : index
    %c0_19 = arith.constant 0 : index
    %c0_20 = arith.constant 0 : index
    %36 = vector.load %arg5[%c0_18, %c0_19, %c0_20] : memref<6x32x32xf32, #tpu.memory_space<vmem>>, vector<1x32x32xf32>
    %37 = vector.shape_cast %36 : vector<1x32x32xf32> to vector<32x32xf32>
    %38 = vector.extract_strided_slice %7 {offsets = [4, 0], sizes = [1, 32], strides = [1, 1]} : vector<11x32xf32> to vector<1x32xf32>
    %39 = vector.extract_strided_slice %33 {offsets = [0, 0], sizes = [16, 8], strides = [1, 1]} : vector<16x32xf32> to vector<16x8xf32>
    %cst_21 = arith.constant 0.353553385 : f32
    %40 = vector.broadcast %cst_21 : f32 to vector<16x8xf32>
    %41 = arith.mulf %39, %40 : vector<16x8xf32>
    %42 = vector.extract_strided_slice %34 {offsets = [0, 0], sizes = [16, 8], strides = [1, 1]} : vector<16x32xf32> to vector<16x8xf32>
    %43 = vector.extract_strided_slice %35 {offsets = [0, 0], sizes = [16, 8], strides = [1, 1]} : vector<16x32xf32> to vector<16x8xf32>
    %cst_22 = arith.constant dense<0.000000e+00> : vector<16x16xf32>
    %44 = tpu.matmul %41, %42, %cst_22 {dimension_numbers = #tpu.dot_dimension_numbers<[1], [1], [0], [0], [0, 0, 1, 0], [], []>} : vector<16x8xf32>, vector<16x8xf32>, vector<16x16xf32> -> vector<16x16xf32>
    %cst_23 = arith.constant dense<0xFF800000> : vector<16xf32>
    %45 = vector.multi_reduction <maximumf>, %44, %cst_23 [1] : vector<16x16xf32> to vector<16xf32>
    %46 = vector.shape_cast %45 : vector<16xf32> to vector<16x1xf32>
    %47 = vector.broadcast %46 : vector<16x1xf32> to vector<16x16xf32>
    %48 = arith.subf %44, %47 : vector<16x16xf32>
    %49 = math.exp %48 : vector<16x16xf32>
    %cst_24 = arith.constant dense<0.000000e+00> : vector<16xf32>
    %50 = vector.multi_reduction <add>, %49, %cst_24 [1] : vector<16x16xf32> to vector<16xf32>
    %51 = vector.shape_cast %50 : vector<16xf32> to vector<16x1xf32>
    %52 = tpu.reciprocal %51 {approx = true} : vector<16x1xf32> -> vector<16x1xf32>
    %53 = vector.broadcast %52 : vector<16x1xf32> to vector<16x16xf32>
    %54 = arith.mulf %49, %53 : vector<16x16xf32>
    %cst_25 = arith.constant dense<0.000000e+00> : vector<16x8xf32>
    %55 = tpu.matmul %54, %43, %cst_25 {dimension_numbers = #tpu.dot_dimension_numbers<[1], [0], [0], [1], [0, 0, 1, 1], [], []>} : vector<16x16xf32>, vector<16x8xf32>, vector<16x8xf32> -> vector<16x8xf32>
    %56 = vector.extract_strided_slice %37 {offsets = [0, 0], sizes = [8, 32], strides = [1, 1]} : vector<32x32xf32> to vector<8x32xf32>
    %cst_26 = arith.constant dense<0.000000e+00> : vector<16x32xf32>
    %57 = tpu.matmul %55, %56, %cst_26 {dimension_numbers = #tpu.dot_dimension_numbers<[1], [0], [0], [1], [0, 0, 1, 1], [], []>} : vector<16x8xf32>, vector<8x32xf32>, vector<16x32xf32> -> vector<16x32xf32>
    %58 = vector.broadcast %38 : vector<1x32xf32> to vector<16x32xf32>
    %59 = arith.addf %58, %57 : vector<16x32xf32>
    %60 = vector.extract_strided_slice %33 {offsets = [0, 8], sizes = [16, 8], strides = [1, 1]} : vector<16x32xf32> to vector<16x8xf32>
    %cst_27 = arith.constant 0.353553385 : f32
    %61 = vector.broadcast %cst_27 : f32 to vector<16x8xf32>
    %62 = arith.mulf %60, %61 : vector<16x8xf32>
    %63 = vector.extract_strided_slice %34 {offsets = [0, 8], sizes = [16, 8], strides = [1, 1]} : vector<16x32xf32> to vector<16x8xf32>
    %64 = vector.extract_strided_slice %35 {offsets = [0, 8], sizes = [16, 8], strides = [1, 1]} : vector<16x32xf32> to vector<16x8xf32>
    %cst_28 = arith.constant dense<0.000000e+00> : vector<16x16xf32>
    %65 = tpu.matmul %62, %63, %cst_28 {dimension_numbers = #tpu.dot_dimension_numbers<[1], [1], [0], [0], [0, 0, 1, 0], [], []>} : vector<16x8xf32>, vector<16x8xf32>, vector<16x16xf32> -> vector<16x16xf32>
    %cst_29 = arith.constant dense<0xFF800000> : vector<16xf32>
    %66 = vector.multi_reduction <maximumf>, %65, %cst_29 [1] : vector<16x16xf32> to vector<16xf32>
    %67 = vector.shape_cast %66 : vector<16xf32> to vector<16x1xf32>
    %68 = vector.broadcast %67 : vector<16x1xf32> to vector<16x16xf32>
    %69 = arith.subf %65, %68 : vector<16x16xf32>
    %70 = math.exp %69 : vector<16x16xf32>
    %cst_30 = arith.constant dense<0.000000e+00> : vector<16xf32>
    %71 = vector.multi_reduction <add>, %70, %cst_30 [1] : vector<16x16xf32> to vector<16xf32>
    %72 = vector.shape_cast %71 : vector<16xf32> to vector<16x1xf32>
    %73 = tpu.reciprocal %72 {approx = true} : vector<16x1xf32> -> vector<16x1xf32>
    %74 = vector.broadcast %73 : vector<16x1xf32> to vector<16x16xf32>
    %75 = arith.mulf %70, %74 : vector<16x16xf32>
    %cst_31 = arith.constant dense<0.000000e+00> : vector<16x8xf32>
    %76 = tpu.matmul %75, %64, %cst_31 {dimension_numbers = #tpu.dot_dimension_numbers<[1], [0], [0], [1], [0, 0, 1, 1], [], []>} : vector<16x16xf32>, vector<16x8xf32>, vector<16x8xf32> -> vector<16x8xf32>
    %77 = vector.extract_strided_slice %37 {offsets = [8, 0], sizes = [8, 32], strides = [1, 1]} : vector<32x32xf32> to vector<8x32xf32>
    %cst_32 = arith.constant dense<0.000000e+00> : vector<16x32xf32>
    %78 = tpu.matmul %76, %77, %cst_32 {dimension_numbers = #tpu.dot_dimension_numbers<[1], [0], [0], [1], [0, 0, 1, 1], [], []>} : vector<16x8xf32>, vector<8x32xf32>, vector<16x32xf32> -> vector<16x32xf32>
    %79 = arith.addf %59, %78 : vector<16x32xf32>
    %80 = vector.extract_strided_slice %33 {offsets = [0, 16], sizes = [16, 8], strides = [1, 1]} : vector<16x32xf32> to vector<16x8xf32>
    %cst_33 = arith.constant 0.353553385 : f32
    %81 = vector.broadcast %cst_33 : f32 to vector<16x8xf32>
    %82 = arith.mulf %80, %81 : vector<16x8xf32>
    %83 = vector.extract_strided_slice %34 {offsets = [0, 16], sizes = [16, 8], strides = [1, 1]} : vector<16x32xf32> to vector<16x8xf32>
    %84 = vector.extract_strided_slice %35 {offsets = [0, 16], sizes = [16, 8], strides = [1, 1]} : vector<16x32xf32> to vector<16x8xf32>
    %cst_34 = arith.constant dense<0.000000e+00> : vector<16x16xf32>
    %85 = tpu.matmul %82, %83, %cst_34 {dimension_numbers = #tpu.dot_dimension_numbers<[1], [1], [0], [0], [0, 0, 1, 0], [], []>} : vector<16x8xf32>, vector<16x8xf32>, vector<16x16xf32> -> vector<16x16xf32>
    %cst_35 = arith.constant dense<0xFF800000> : vector<16xf32>
    %86 = vector.multi_reduction <maximumf>, %85, %cst_35 [1] : vector<16x16xf32> to vector<16xf32>
    %87 = vector.shape_cast %86 : vector<16xf32> to vector<16x1xf32>
    %88 = vector.broadcast %87 : vector<16x1xf32> to vector<16x16xf32>
    %89 = arith.subf %85, %88 : vector<16x16xf32>
    %90 = math.exp %89 : vector<16x16xf32>
    %cst_36 = arith.constant dense<0.000000e+00> : vector<16xf32>
    %91 = vector.multi_reduction <add>, %90, %cst_36 [1] : vector<16x16xf32> to vector<16xf32>
    %92 = vector.shape_cast %91 : vector<16xf32> to vector<16x1xf32>
    %93 = tpu.reciprocal %92 {approx = true} : vector<16x1xf32> -> vector<16x1xf32>
    %94 = vector.broadcast %93 : vector<16x1xf32> to vector<16x16xf32>
    %95 = arith.mulf %90, %94 : vector<16x16xf32>
    %cst_37 = arith.constant dense<0.000000e+00> : vector<16x8xf32>
    %96 = tpu.matmul %95, %84, %cst_37 {dimension_numbers = #tpu.dot_dimension_numbers<[1], [0], [0], [1], [0, 0, 1, 1], [], []>} : vector<16x16xf32>, vector<16x8xf32>, vector<16x8xf32> -> vector<16x8xf32>
    %97 = vector.extract_strided_slice %37 {offsets = [16, 0], sizes = [8, 32], strides = [1, 1]} : vector<32x32xf32> to vector<8x32xf32>
    %cst_38 = arith.constant dense<0.000000e+00> : vector<16x32xf32>
    %98 = tpu.matmul %96, %97, %cst_38 {dimension_numbers = #tpu.dot_dimension_numbers<[1], [0], [0], [1], [0, 0, 1, 1], [], []>} : vector<16x8xf32>, vector<8x32xf32>, vector<16x32xf32> -> vector<16x32xf32>
    %99 = arith.addf %79, %98 : vector<16x32xf32>
    %100 = vector.extract_strided_slice %33 {offsets = [0, 24], sizes = [16, 8], strides = [1, 1]} : vector<16x32xf32> to vector<16x8xf32>
    %cst_39 = arith.constant 0.353553385 : f32
    %101 = vector.broadcast %cst_39 : f32 to vector<16x8xf32>
    %102 = arith.mulf %100, %101 : vector<16x8xf32>
    %103 = vector.extract_strided_slice %34 {offsets = [0, 24], sizes = [16, 8], strides = [1, 1]} : vector<16x32xf32> to vector<16x8xf32>
    %104 = vector.extract_strided_slice %35 {offsets = [0, 24], sizes = [16, 8], strides = [1, 1]} : vector<16x32xf32> to vector<16x8xf32>
    %cst_40 = arith.constant dense<0.000000e+00> : vector<16x16xf32>
    %105 = tpu.matmul %102, %103, %cst_40 {dimension_numbers = #tpu.dot_dimension_numbers<[1], [1], [0], [0], [0, 0, 1, 0], [], []>} : vector<16x8xf32>, vector<16x8xf32>, vector<16x16xf32> -> vector<16x16xf32>
    %cst_41 = arith.constant dense<0xFF800000> : vector<16xf32>
    %106 = vector.multi_reduction <maximumf>, %105, %cst_41 [1] : vector<16x16xf32> to vector<16xf32>
    %107 = vector.shape_cast %106 : vector<16xf32> to vector<16x1xf32>
    %108 = vector.broadcast %107 : vector<16x1xf32> to vector<16x16xf32>
    %109 = arith.subf %105, %108 : vector<16x16xf32>
    %110 = math.exp %109 : vector<16x16xf32>
    %cst_42 = arith.constant dense<0.000000e+00> : vector<16xf32>
    %111 = vector.multi_reduction <add>, %110, %cst_42 [1] : vector<16x16xf32> to vector<16xf32>
    %112 = vector.shape_cast %111 : vector<16xf32> to vector<16x1xf32>
    %113 = tpu.reciprocal %112 {approx = true} : vector<16x1xf32> -> vector<16x1xf32>
    %114 = vector.broadcast %113 : vector<16x1xf32> to vector<16x16xf32>
    %115 = arith.mulf %110, %114 : vector<16x16xf32>
    %cst_43 = arith.constant dense<0.000000e+00> : vector<16x8xf32>
    %116 = tpu.matmul %115, %104, %cst_43 {dimension_numbers = #tpu.dot_dimension_numbers<[1], [0], [0], [1], [0, 0, 1, 1], [], []>} : vector<16x16xf32>, vector<16x8xf32>, vector<16x8xf32> -> vector<16x8xf32>
    %117 = vector.extract_strided_slice %37 {offsets = [24, 0], sizes = [8, 32], strides = [1, 1]} : vector<32x32xf32> to vector<8x32xf32>
    %cst_44 = arith.constant dense<0.000000e+00> : vector<16x32xf32>
    %118 = tpu.matmul %116, %117, %cst_44 {dimension_numbers = #tpu.dot_dimension_numbers<[1], [0], [0], [1], [0, 0, 1, 1], [], []>} : vector<16x8xf32>, vector<8x32xf32>, vector<16x32xf32> -> vector<16x32xf32>
    %119 = arith.addf %99, %118 : vector<16x32xf32>
    %120 = arith.addf %5, %119 : vector<16x32xf32>
    %121 = vector.extract_strided_slice %7 {offsets = [2, 0], sizes = [1, 32], strides = [1, 1]} : vector<11x32xf32> to vector<1x32xf32>
    %122 = vector.extract_strided_slice %7 {offsets = [3, 0], sizes = [1, 32], strides = [1, 1]} : vector<11x32xf32> to vector<1x32xf32>
    %cst_45 = arith.constant dense<0.000000e+00> : vector<16xf32>
    %123 = vector.multi_reduction <add>, %120, %cst_45 [1] : vector<16x32xf32> to vector<16xf32>
    %124 = vector.shape_cast %123 : vector<16xf32> to vector<16x1xf32>
    %cst_46 = arith.constant 3.200000e+01 : f32
    %125 = vector.broadcast %cst_46 : f32 to vector<16x1xf32>
    %126 = arith.divf %124, %125 : vector<16x1xf32>
    %127 = vector.broadcast %126 : vector<16x1xf32> to vector<16x32xf32>
    %128 = arith.subf %120, %127 : vector<16x32xf32>
    %129 = arith.mulf %128, %128 : vector<16x32xf32>
    %cst_47 = arith.constant dense<0.000000e+00> : vector<16xf32>
    %130 = vector.multi_reduction <add>, %129, %cst_47 [1] : vector<16x32xf32> to vector<16xf32>
    %131 = vector.shape_cast %130 : vector<16xf32> to vector<16x1xf32>
    %cst_48 = arith.constant 3.200000e+01 : f32
    %132 = vector.broadcast %cst_48 : f32 to vector<16x1xf32>
    %133 = arith.divf %131, %132 : vector<16x1xf32>
    %cst_49 = arith.constant 9.99999974E-6 : f32
    %134 = vector.broadcast %cst_49 : f32 to vector<16x1xf32>
    %135 = arith.addf %133, %134 : vector<16x1xf32>
    %136 = math.rsqrt %135 : vector<16x1xf32>
    %137 = vector.broadcast %136 : vector<16x1xf32> to vector<16x32xf32>
    %138 = arith.mulf %128, %137 : vector<16x32xf32>
    %139 = vector.broadcast %121 : vector<1x32xf32> to vector<16x32xf32>
    %140 = arith.mulf %138, %139 : vector<16x32xf32>
    %141 = vector.broadcast %122 : vector<1x32xf32> to vector<16x32xf32>
    %142 = arith.addf %140, %141 : vector<16x32xf32>
    %c0_50 = arith.constant 0 : index
    %c0_51 = arith.constant 0 : index
    %c0_52 = arith.constant 0 : index
    %143 = vector.load %arg6[%c0_50, %c0_51, %c0_52] : memref<6x32x128xf32, #tpu.memory_space<vmem>>, vector<1x32x128xf32>
    %144 = vector.shape_cast %143 : vector<1x32x128xf32> to vector<32x128xf32>
    %cst_53 = arith.constant dense<0.000000e+00> : vector<16x128xf32>
    %145 = tpu.matmul %142, %144, %cst_53 {dimension_numbers = #tpu.dot_dimension_numbers<[1], [0], [0], [1], [0, 0, 1, 1], [], []>} : vector<16x32xf32>, vector<32x128xf32>, vector<16x128xf32> -> vector<16x128xf32>
    %c0_54 = arith.constant 0 : index
    %c0_55 = arith.constant 0 : index
    %c0_56 = arith.constant 0 : index
    %146 = vector.load %arg8[%c0_54, %c0_55, %c0_56] : memref<6x1x128xf32, #tpu.memory_space<vmem>>, vector<1x1x128xf32>
    %147 = vector.shape_cast %146 : vector<1x1x128xf32> to vector<1x128xf32>
    %148 = vector.broadcast %147 : vector<1x128xf32> to vector<16x128xf32>
    %149 = arith.addf %145, %148 : vector<16x128xf32>
    %cst_57 = arith.constant 5.000000e-01 : f32
    %150 = vector.broadcast %cst_57 : f32 to vector<16x128xf32>
    %151 = arith.mulf %150, %149 : vector<16x128xf32>
    %cst_58 = arith.constant 0.707106769 : f32
    %152 = vector.broadcast %cst_58 : f32 to vector<16x128xf32>
    %153 = arith.mulf %149, %152 : vector<16x128xf32>
    %154 = math.erf %153 : vector<16x128xf32>
    %cst_59 = arith.constant 1.000000e+00 : f32
    %155 = vector.broadcast %cst_59 : f32 to vector<16x128xf32>
    %156 = arith.addf %155, %154 : vector<16x128xf32>
    %157 = arith.mulf %151, %156 : vector<16x128xf32>
    %c0_60 = arith.constant 0 : index
    %c0_61 = arith.constant 0 : index
    %c0_62 = arith.constant 0 : index
    %158 = vector.load %arg7[%c0_60, %c0_61, %c0_62] : memref<6x128x32xf32, #tpu.memory_space<vmem>>, vector<1x128x32xf32>
    %159 = vector.shape_cast %158 : vector<1x128x32xf32> to vector<128x32xf32>
    %cst_63 = arith.constant dense<0.000000e+00> : vector<16x32xf32>
    %160 = tpu.matmul %157, %159, %cst_63 {dimension_numbers = #tpu.dot_dimension_numbers<[1], [0], [0], [1], [0, 0, 1, 1], [], []>} : vector<16x128xf32>, vector<128x32xf32>, vector<16x32xf32> -> vector<16x32xf32>
    %161 = vector.extract_strided_slice %7 {offsets = [5, 0], sizes = [1, 32], strides = [1, 1]} : vector<11x32xf32> to vector<1x32xf32>
    %162 = vector.broadcast %161 : vector<1x32xf32> to vector<16x32xf32>
    %163 = arith.addf %160, %162 : vector<16x32xf32>
    %164 = arith.addf %120, %163 : vector<16x32xf32>
    %c1 = arith.constant 1 : index
    %c0_64 = arith.constant 0 : index
    %c0_65 = arith.constant 0 : index
    %165 = vector.load %arg9[%c1, %c0_64, %c0_65] : memref<6x11x32xf32, #tpu.memory_space<vmem>>, vector<1x11x32xf32>
    %166 = vector.shape_cast %165 : vector<1x11x32xf32> to vector<11x32xf32>
    %167 = vector.extract_strided_slice %166 {offsets = [0, 0], sizes = [1, 32], strides = [1, 1]} : vector<11x32xf32> to vector<1x32xf32>
    %168 = vector.extract_strided_slice %166 {offsets = [1, 0], sizes = [1, 32], strides = [1, 1]} : vector<11x32xf32> to vector<1x32xf32>
    %cst_66 = arith.constant dense<0.000000e+00> : vector<16xf32>
    %169 = vector.multi_reduction <add>, %164, %cst_66 [1] : vector<16x32xf32> to vector<16xf32>
    %170 = vector.shape_cast %169 : vector<16xf32> to vector<16x1xf32>
    %cst_67 = arith.constant 3.200000e+01 : f32
    %171 = vector.broadcast %cst_67 : f32 to vector<16x1xf32>
    %172 = arith.divf %170, %171 : vector<16x1xf32>
    %173 = vector.broadcast %172 : vector<16x1xf32> to vector<16x32xf32>
    %174 = arith.subf %164, %173 : vector<16x32xf32>
    %175 = arith.mulf %174, %174 : vector<16x32xf32>
    %cst_68 = arith.constant dense<0.000000e+00> : vector<16xf32>
    %176 = vector.multi_reduction <add>, %175, %cst_68 [1] : vector<16x32xf32> to vector<16xf32>
    %177 = vector.shape_cast %176 : vector<16xf32> to vector<16x1xf32>
    %cst_69 = arith.constant 3.200000e+01 : f32
    %178 = vector.broadcast %cst_69 : f32 to vector<16x1xf32>
    %179 = arith.divf %177, %178 : vector<16x1xf32>
    %cst_70 = arith.constant 9.99999974E-6 : f32
    %180 = vector.broadcast %cst_70 : f32 to vector<16x1xf32>
    %181 = arith.addf %179, %180 : vector<16x1xf32>
    %182 = math.rsqrt %181 : vector<16x1xf32>
    %183 = vector.broadcast %182 : vector<16x1xf32> to vector<16x32xf32>
    %184 = arith.mulf %174, %183 : vector<16x32xf32>
    %185 = vector.broadcast %167 : vector<1x32xf32> to vector<16x32xf32>
    %186 = arith.mulf %184, %185 : vector<16x32xf32>
    %187 = vector.broadcast %168 : vector<1x32xf32> to vector<16x32xf32>
    %188 = arith.addf %186, %187 : vector<16x32xf32>
    %c1_71 = arith.constant 1 : index
    %c0_72 = arith.constant 0 : index
    %c0_73 = arith.constant 0 : index
    %189 = vector.load %arg4[%c1_71, %c0_72, %c0_73] : memref<6x32x96xf32, #tpu.memory_space<vmem>>, vector<1x32x96xf32>
    %190 = vector.shape_cast %189 : vector<1x32x96xf32> to vector<32x96xf32>
    %cst_74 = arith.constant dense<0.000000e+00> : vector<16x96xf32>
    %191 = tpu.matmul %188, %190, %cst_74 {dimension_numbers = #tpu.dot_dimension_numbers<[1], [0], [0], [1], [0, 0, 1, 1], [], []>} : vector<16x32xf32>, vector<32x96xf32>, vector<16x96xf32> -> vector<16x96xf32>
    %192 = vector.extract_strided_slice %191 {offsets = [0, 0], sizes = [16, 32], strides = [1, 1]} : vector<16x96xf32> to vector<16x32xf32>
    %193 = vector.extract_strided_slice %191 {offsets = [0, 32], sizes = [16, 32], strides = [1, 1]} : vector<16x96xf32> to vector<16x32xf32>
    %194 = vector.extract_strided_slice %191 {offsets = [0, 64], sizes = [16, 32], strides = [1, 1]} : vector<16x96xf32> to vector<16x32xf32>
    %c1_75 = arith.constant 1 : index
    %c0_76 = arith.constant 0 : index
    %c0_77 = arith.constant 0 : index
    %195 = vector.load %arg5[%c1_75, %c0_76, %c0_77] : memref<6x32x32xf32, #tpu.memory_space<vmem>>, vector<1x32x32xf32>
    %196 = vector.shape_cast %195 : vector<1x32x32xf32> to vector<32x32xf32>
    %197 = vector.extract_strided_slice %166 {offsets = [4, 0], sizes = [1, 32], strides = [1, 1]} : vector<11x32xf32> to vector<1x32xf32>
    %198 = vector.extract_strided_slice %192 {offsets = [0, 0], sizes = [16, 8], strides = [1, 1]} : vector<16x32xf32> to vector<16x8xf32>
    %cst_78 = arith.constant 0.353553385 : f32
    %199 = vector.broadcast %cst_78 : f32 to vector<16x8xf32>
    %200 = arith.mulf %198, %199 : vector<16x8xf32>
    %201 = vector.extract_strided_slice %193 {offsets = [0, 0], sizes = [16, 8], strides = [1, 1]} : vector<16x32xf32> to vector<16x8xf32>
    %202 = vector.extract_strided_slice %194 {offsets = [0, 0], sizes = [16, 8], strides = [1, 1]} : vector<16x32xf32> to vector<16x8xf32>
    %cst_79 = arith.constant dense<0.000000e+00> : vector<16x16xf32>
    %203 = tpu.matmul %200, %201, %cst_79 {dimension_numbers = #tpu.dot_dimension_numbers<[1], [1], [0], [0], [0, 0, 1, 0], [], []>} : vector<16x8xf32>, vector<16x8xf32>, vector<16x16xf32> -> vector<16x16xf32>
    %cst_80 = arith.constant dense<0xFF800000> : vector<16xf32>
    %204 = vector.multi_reduction <maximumf>, %203, %cst_80 [1] : vector<16x16xf32> to vector<16xf32>
    %205 = vector.shape_cast %204 : vector<16xf32> to vector<16x1xf32>
    %206 = vector.broadcast %205 : vector<16x1xf32> to vector<16x16xf32>
    %207 = arith.subf %203, %206 : vector<16x16xf32>
    %208 = math.exp %207 : vector<16x16xf32>
    %cst_81 = arith.constant dense<0.000000e+00> : vector<16xf32>
    %209 = vector.multi_reduction <add>, %208, %cst_81 [1] : vector<16x16xf32> to vector<16xf32>
    %210 = vector.shape_cast %209 : vector<16xf32> to vector<16x1xf32>
    %211 = tpu.reciprocal %210 {approx = true} : vector<16x1xf32> -> vector<16x1xf32>
    %212 = vector.broadcast %211 : vector<16x1xf32> to vector<16x16xf32>
    %213 = arith.mulf %208, %212 : vector<16x16xf32>
    %cst_82 = arith.constant dense<0.000000e+00> : vector<16x8xf32>
    %214 = tpu.matmul %213, %202, %cst_82 {dimension_numbers = #tpu.dot_dimension_numbers<[1], [0], [0], [1], [0, 0, 1, 1], [], []>} : vector<16x16xf32>, vector<16x8xf32>, vector<16x8xf32> -> vector<16x8xf32>
    %215 = vector.extract_strided_slice %196 {offsets = [0, 0], sizes = [8, 32], strides = [1, 1]} : vector<32x32xf32> to vector<8x32xf32>
    %cst_83 = arith.constant dense<0.000000e+00> : vector<16x32xf32>
    %216 = tpu.matmul %214, %215, %cst_83 {dimension_numbers = #tpu.dot_dimension_numbers<[1], [0], [0], [1], [0, 0, 1, 1], [], []>} : vector<16x8xf32>, vector<8x32xf32>, vector<16x32xf32> -> vector<16x32xf32>
    %217 = vector.broadcast %197 : vector<1x32xf32> to vector<16x32xf32>
    %218 = arith.addf %217, %216 : vector<16x32xf32>
    %219 = vector.extract_strided_slice %192 {offsets = [0, 8], sizes = [16, 8], strides = [1, 1]} : vector<16x32xf32> to vector<16x8xf32>
    %cst_84 = arith.constant 0.353553385 : f32
    %220 = vector.broadcast %cst_84 : f32 to vector<16x8xf32>
    %221 = arith.mulf %219, %220 : vector<16x8xf32>
    %222 = vector.extract_strided_slice %193 {offsets = [0, 8], sizes = [16, 8], strides = [1, 1]} : vector<16x32xf32> to vector<16x8xf32>
    %223 = vector.extract_strided_slice %194 {offsets = [0, 8], sizes = [16, 8], strides = [1, 1]} : vector<16x32xf32> to vector<16x8xf32>
    %cst_85 = arith.constant dense<0.000000e+00> : vector<16x16xf32>
    %224 = tpu.matmul %221, %222, %cst_85 {dimension_numbers = #tpu.dot_dimension_numbers<[1], [1], [0], [0], [0, 0, 1, 0], [], []>} : vector<16x8xf32>, vector<16x8xf32>, vector<16x16xf32> -> vector<16x16xf32>
    %cst_86 = arith.constant dense<0xFF800000> : vector<16xf32>
    %225 = vector.multi_reduction <maximumf>, %224, %cst_86 [1] : vector<16x16xf32> to vector<16xf32>
    %226 = vector.shape_cast %225 : vector<16xf32> to vector<16x1xf32>
    %227 = vector.broadcast %226 : vector<16x1xf32> to vector<16x16xf32>
    %228 = arith.subf %224, %227 : vector<16x16xf32>
    %229 = math.exp %228 : vector<16x16xf32>
    %cst_87 = arith.constant dense<0.000000e+00> : vector<16xf32>
    %230 = vector.multi_reduction <add>, %229, %cst_87 [1] : vector<16x16xf32> to vector<16xf32>
    %231 = vector.shape_cast %230 : vector<16xf32> to vector<16x1xf32>
    %232 = tpu.reciprocal %231 {approx = true} : vector<16x1xf32> -> vector<16x1xf32>
    %233 = vector.broadcast %232 : vector<16x1xf32> to vector<16x16xf32>
    %234 = arith.mulf %229, %233 : vector<16x16xf32>
    %cst_88 = arith.constant dense<0.000000e+00> : vector<16x8xf32>
    %235 = tpu.matmul %234, %223, %cst_88 {dimension_numbers = #tpu.dot_dimension_numbers<[1], [0], [0], [1], [0, 0, 1, 1], [], []>} : vector<16x16xf32>, vector<16x8xf32>, vector<16x8xf32> -> vector<16x8xf32>
    %236 = vector.extract_strided_slice %196 {offsets = [8, 0], sizes = [8, 32], strides = [1, 1]} : vector<32x32xf32> to vector<8x32xf32>
    %cst_89 = arith.constant dense<0.000000e+00> : vector<16x32xf32>
    %237 = tpu.matmul %235, %236, %cst_89 {dimension_numbers = #tpu.dot_dimension_numbers<[1], [0], [0], [1], [0, 0, 1, 1], [], []>} : vector<16x8xf32>, vector<8x32xf32>, vector<16x32xf32> -> vector<16x32xf32>
    %238 = arith.addf %218, %237 : vector<16x32xf32>
    %239 = vector.extract_strided_slice %192 {offsets = [0, 16], sizes = [16, 8], strides = [1, 1]} : vector<16x32xf32> to vector<16x8xf32>
    %cst_90 = arith.constant 0.353553385 : f32
    %240 = vector.broadcast %cst_90 : f32 to vector<16x8xf32>
    %241 = arith.mulf %239, %240 : vector<16x8xf32>
    %242 = vector.extract_strided_slice %193 {offsets = [0, 16], sizes = [16, 8], strides = [1, 1]} : vector<16x32xf32> to vector<16x8xf32>
    %243 = vector.extract_strided_slice %194 {offsets = [0, 16], sizes = [16, 8], strides = [1, 1]} : vector<16x32xf32> to vector<16x8xf32>
    %cst_91 = arith.constant dense<0.000000e+00> : vector<16x16xf32>
    %244 = tpu.matmul %241, %242, %cst_91 {dimension_numbers = #tpu.dot_dimension_numbers<[1], [1], [0], [0], [0, 0, 1, 0], [], []>} : vector<16x8xf32>, vector<16x8xf32>, vector<16x16xf32> -> vector<16x16xf32>
    %cst_92 = arith.constant dense<0xFF800000> : vector<16xf32>
    %245 = vector.multi_reduction <maximumf>, %244, %cst_92 [1] : vector<16x16xf32> to vector<16xf32>
    %246 = vector.shape_cast %245 : vector<16xf32> to vector<16x1xf32>
    %247 = vector.broadcast %246 : vector<16x1xf32> to vector<16x16xf32>
    %248 = arith.subf %244, %247 : vector<16x16xf32>
    %249 = math.exp %248 : vector<16x16xf32>
    %cst_93 = arith.constant dense<0.000000e+00> : vector<16xf32>
    %250 = vector.multi_reduction <add>, %249, %cst_93 [1] : vector<16x16xf32> to vector<16xf32>
    %251 = vector.shape_cast %250 : vector<16xf32> to vector<16x1xf32>
    %252 = tpu.reciprocal %251 {approx = true} : vector<16x1xf32> -> vector<16x1xf32>
    %253 = vector.broadcast %252 : vector<16x1xf32> to vector<16x16xf32>
    %254 = arith.mulf %249, %253 : vector<16x16xf32>
    %cst_94 = arith.constant dense<0.000000e+00> : vector<16x8xf32>
    %255 = tpu.matmul %254, %243, %cst_94 {dimension_numbers = #tpu.dot_dimension_numbers<[1], [0], [0], [1], [0, 0, 1, 1], [], []>} : vector<16x16xf32>, vector<16x8xf32>, vector<16x8xf32> -> vector<16x8xf32>
    %256 = vector.extract_strided_slice %196 {offsets = [16, 0], sizes = [8, 32], strides = [1, 1]} : vector<32x32xf32> to vector<8x32xf32>
    %cst_95 = arith.constant dense<0.000000e+00> : vector<16x32xf32>
    %257 = tpu.matmul %255, %256, %cst_95 {dimension_numbers = #tpu.dot_dimension_numbers<[1], [0], [0], [1], [0, 0, 1, 1], [], []>} : vector<16x8xf32>, vector<8x32xf32>, vector<16x32xf32> -> vector<16x32xf32>
    %258 = arith.addf %238, %257 : vector<16x32xf32>
    %259 = vector.extract_strided_slice %192 {offsets = [0, 24], sizes = [16, 8], strides = [1, 1]} : vector<16x32xf32> to vector<16x8xf32>
    %cst_96 = arith.constant 0.353553385 : f32
    %260 = vector.broadcast %cst_96 : f32 to vector<16x8xf32>
    %261 = arith.mulf %259, %260 : vector<16x8xf32>
    %262 = vector.extract_strided_slice %193 {offsets = [0, 24], sizes = [16, 8], strides = [1, 1]} : vector<16x32xf32> to vector<16x8xf32>
    %263 = vector.extract_strided_slice %194 {offsets = [0, 24], sizes = [16, 8], strides = [1, 1]} : vector<16x32xf32> to vector<16x8xf32>
    %cst_97 = arith.constant dense<0.000000e+00> : vector<16x16xf32>
    %264 = tpu.matmul %261, %262, %cst_97 {dimension_numbers = #tpu.dot_dimension_numbers<[1], [1], [0], [0], [0, 0, 1, 0], [], []>} : vector<16x8xf32>, vector<16x8xf32>, vector<16x16xf32> -> vector<16x16xf32>
    %cst_98 = arith.constant dense<0xFF800000> : vector<16xf32>
    %265 = vector.multi_reduction <maximumf>, %264, %cst_98 [1] : vector<16x16xf32> to vector<16xf32>
    %266 = vector.shape_cast %265 : vector<16xf32> to vector<16x1xf32>
    %267 = vector.broadcast %266 : vector<16x1xf32> to vector<16x16xf32>
    %268 = arith.subf %264, %267 : vector<16x16xf32>
    %269 = math.exp %268 : vector<16x16xf32>
    %cst_99 = arith.constant dense<0.000000e+00> : vector<16xf32>
    %270 = vector.multi_reduction <add>, %269, %cst_99 [1] : vector<16x16xf32> to vector<16xf32>
    %271 = vector.shape_cast %270 : vector<16xf32> to vector<16x1xf32>
    %272 = tpu.reciprocal %271 {approx = true} : vector<16x1xf32> -> vector<16x1xf32>
    %273 = vector.broadcast %272 : vector<16x1xf32> to vector<16x16xf32>
    %274 = arith.mulf %269, %273 : vector<16x16xf32>
    %cst_100 = arith.constant dense<0.000000e+00> : vector<16x8xf32>
    %275 = tpu.matmul %274, %263, %cst_100 {dimension_numbers = #tpu.dot_dimension_numbers<[1], [0], [0], [1], [0, 0, 1, 1], [], []>} : vector<16x16xf32>, vector<16x8xf32>, vector<16x8xf32> -> vector<16x8xf32>
    %276 = vector.extract_strided_slice %196 {offsets = [24, 0], sizes = [8, 32], strides = [1, 1]} : vector<32x32xf32> to vector<8x32xf32>
    %cst_101 = arith.constant dense<0.000000e+00> : vector<16x32xf32>
    %277 = tpu.matmul %275, %276, %cst_101 {dimension_numbers = #tpu.dot_dimension_numbers<[1], [0], [0], [1], [0, 0, 1, 1], [], []>} : vector<16x8xf32>, vector<8x32xf32>, vector<16x32xf32> -> vector<16x32xf32>
    %278 = arith.addf %258, %277 : vector<16x32xf32>
    %279 = arith.addf %164, %278 : vector<16x32xf32>
    %280 = vector.extract_strided_slice %166 {offsets = [2, 0], sizes = [1, 32], strides = [1, 1]} : vector<11x32xf32> to vector<1x32xf32>
    %281 = vector.extract_strided_slice %166 {offsets = [3, 0], sizes = [1, 32], strides = [1, 1]} : vector<11x32xf32> to vector<1x32xf32>
    %cst_102 = arith.constant dense<0.000000e+00> : vector<16xf32>
    %282 = vector.multi_reduction <add>, %279, %cst_102 [1] : vector<16x32xf32> to vector<16xf32>
    %283 = vector.shape_cast %282 : vector<16xf32> to vector<16x1xf32>
    %cst_103 = arith.constant 3.200000e+01 : f32
    %284 = vector.broadcast %cst_103 : f32 to vector<16x1xf32>
    %285 = arith.divf %283, %284 : vector<16x1xf32>
    %286 = vector.broadcast %285 : vector<16x1xf32> to vector<16x32xf32>
    %287 = arith.subf %279, %286 : vector<16x32xf32>
    %288 = arith.mulf %287, %287 : vector<16x32xf32>
    %cst_104 = arith.constant dense<0.000000e+00> : vector<16xf32>
    %289 = vector.multi_reduction <add>, %288, %cst_104 [1] : vector<16x32xf32> to vector<16xf32>
    %290 = vector.shape_cast %289 : vector<16xf32> to vector<16x1xf32>
    %cst_105 = arith.constant 3.200000e+01 : f32
    %291 = vector.broadcast %cst_105 : f32 to vector<16x1xf32>
    %292 = arith.divf %290, %291 : vector<16x1xf32>
    %cst_106 = arith.constant 9.99999974E-6 : f32
    %293 = vector.broadcast %cst_106 : f32 to vector<16x1xf32>
    %294 = arith.addf %292, %293 : vector<16x1xf32>
    %295 = math.rsqrt %294 : vector<16x1xf32>
    %296 = vector.broadcast %295 : vector<16x1xf32> to vector<16x32xf32>
    %297 = arith.mulf %287, %296 : vector<16x32xf32>
    %298 = vector.broadcast %280 : vector<1x32xf32> to vector<16x32xf32>
    %299 = arith.mulf %297, %298 : vector<16x32xf32>
    %300 = vector.broadcast %281 : vector<1x32xf32> to vector<16x32xf32>
    %301 = arith.addf %299, %300 : vector<16x32xf32>
    %c1_107 = arith.constant 1 : index
    %c0_108 = arith.constant 0 : index
    %c0_109 = arith.constant 0 : index
    %302 = vector.load %arg6[%c1_107, %c0_108, %c0_109] : memref<6x32x128xf32, #tpu.memory_space<vmem>>, vector<1x32x128xf32>
    %303 = vector.shape_cast %302 : vector<1x32x128xf32> to vector<32x128xf32>
    %cst_110 = arith.constant dense<0.000000e+00> : vector<16x128xf32>
    %304 = tpu.matmul %301, %303, %cst_110 {dimension_numbers = #tpu.dot_dimension_numbers<[1], [0], [0], [1], [0, 0, 1, 1], [], []>} : vector<16x32xf32>, vector<32x128xf32>, vector<16x128xf32> -> vector<16x128xf32>
    %c1_111 = arith.constant 1 : index
    %c0_112 = arith.constant 0 : index
    %c0_113 = arith.constant 0 : index
    %305 = vector.load %arg8[%c1_111, %c0_112, %c0_113] : memref<6x1x128xf32, #tpu.memory_space<vmem>>, vector<1x1x128xf32>
    %306 = vector.shape_cast %305 : vector<1x1x128xf32> to vector<1x128xf32>
    %307 = vector.broadcast %306 : vector<1x128xf32> to vector<16x128xf32>
    %308 = arith.addf %304, %307 : vector<16x128xf32>
    %cst_114 = arith.constant 5.000000e-01 : f32
    %309 = vector.broadcast %cst_114 : f32 to vector<16x128xf32>
    %310 = arith.mulf %309, %308 : vector<16x128xf32>
    %cst_115 = arith.constant 0.707106769 : f32
    %311 = vector.broadcast %cst_115 : f32 to vector<16x128xf32>
    %312 = arith.mulf %308, %311 : vector<16x128xf32>
    %313 = math.erf %312 : vector<16x128xf32>
    %cst_116 = arith.constant 1.000000e+00 : f32
    %314 = vector.broadcast %cst_116 : f32 to vector<16x128xf32>
    %315 = arith.addf %314, %313 : vector<16x128xf32>
    %316 = arith.mulf %310, %315 : vector<16x128xf32>
    %c1_117 = arith.constant 1 : index
    %c0_118 = arith.constant 0 : index
    %c0_119 = arith.constant 0 : index
    %317 = vector.load %arg7[%c1_117, %c0_118, %c0_119] : memref<6x128x32xf32, #tpu.memory_space<vmem>>, vector<1x128x32xf32>
    %318 = vector.shape_cast %317 : vector<1x128x32xf32> to vector<128x32xf32>
    %cst_120 = arith.constant dense<0.000000e+00> : vector<16x32xf32>
    %319 = tpu.matmul %316, %318, %cst_120 {dimension_numbers = #tpu.dot_dimension_numbers<[1], [0], [0], [1], [0, 0, 1, 1], [], []>} : vector<16x128xf32>, vector<128x32xf32>, vector<16x32xf32> -> vector<16x32xf32>
    %320 = vector.extract_strided_slice %166 {offsets = [5, 0], sizes = [1, 32], strides = [1, 1]} : vector<11x32xf32> to vector<1x32xf32>
    %321 = vector.broadcast %320 : vector<1x32xf32> to vector<16x32xf32>
    %322 = arith.addf %319, %321 : vector<16x32xf32>
    %323 = arith.addf %279, %322 : vector<16x32xf32>
    %c0_121 = arith.constant 0 : index
    %c0_122 = arith.constant 0 : index
    %c0_123 = arith.constant 0 : index
    %324 = vector.load %arg14[%c0_121, %c0_122, %c0_123] : memref<2x1x32xf32, #tpu.memory_space<vmem>>, vector<1x1x32xf32>
    %325 = vector.shape_cast %324 : vector<1x1x32xf32> to vector<1x32xf32>
    %326 = vector.extract_strided_slice %323 {offsets = [0, 0], sizes = [4, 32], strides = [1, 1]} : vector<16x32xf32> to vector<4x32xf32>
    %c0_124 = arith.constant 0 : index
    %c0_125 = arith.constant 0 : index
    %327 = vector.load %arg24[%c0_124, %c0_125] : memref<16x32xf32, #tpu.memory_space<vmem>>, vector<4x32xf32>
    tpu.vector_store %arg24[%c0_124, %c0_125], %326 {strides = array<i32>} : memref<16x32xf32, #tpu.memory_space<vmem>>, vector<4x32xf32>,
    %328 = vector.extract_strided_slice %323 {offsets = [8, 0], sizes = [4, 32], strides = [1, 1]} : vector<16x32xf32> to vector<4x32xf32>
    %c4 = arith.constant 4 : index
    %c0_126 = arith.constant 0 : index
    %329 = vector.load %arg24[%c4, %c0_126] : memref<16x32xf32, #tpu.memory_space<vmem>>, vector<4x32xf32>
    tpu.vector_store %arg24[%c4, %c0_126], %328 {strides = array<i32>} : memref<16x32xf32, #tpu.memory_space<vmem>>, vector<4x32xf32>,
    %c0_127 = arith.constant 0 : index
    %c0_128 = arith.constant 0 : index
    %330 = vector.load %arg24[%c0_127, %c0_128] : memref<16x32xf32, #tpu.memory_space<vmem>>, vector<8x32xf32>
    %c0_129 = arith.constant 0 : index
    %c0_130 = arith.constant 0 : index
    %c0_131 = arith.constant 0 : index
    %331 = vector.load %arg13[%c0_129, %c0_130, %c0_131] : memref<4x32x32xf32, #tpu.memory_space<vmem>>, vector<1x32x32xf32>
    %332 = vector.shape_cast %331 : vector<1x32x32xf32> to vector<32x32xf32>
    %cst_132 = arith.constant dense<0.000000e+00> : vector<8x32xf32>
    %333 = tpu.matmul %330, %332, %cst_132 {dimension_numbers = #tpu.dot_dimension_numbers<[1], [0], [0], [1], [0, 0, 1, 1], [], []>} : vector<8x32xf32>, vector<32x32xf32>, vector<8x32xf32> -> vector<8x32xf32>
    %334 = vector.broadcast %325 : vector<1x32xf32> to vector<8x32xf32>
    %335 = arith.addf %334, %333 : vector<8x32xf32>
    %336 = vector.extract_strided_slice %323 {offsets = [4, 0], sizes = [4, 32], strides = [1, 1]} : vector<16x32xf32> to vector<4x32xf32>
    %c0_133 = arith.constant 0 : index
    %c0_134 = arith.constant 0 : index
    %337 = vector.load %arg24[%c0_133, %c0_134] : memref<16x32xf32, #tpu.memory_space<vmem>>, vector<4x32xf32>
    tpu.vector_store %arg24[%c0_133, %c0_134], %336 {strides = array<i32>} : memref<16x32xf32, #tpu.memory_space<vmem>>, vector<4x32xf32>,
    %338 = vector.extract_strided_slice %323 {offsets = [12, 0], sizes = [4, 32], strides = [1, 1]} : vector<16x32xf32> to vector<4x32xf32>
    %c4_135 = arith.constant 4 : index
    %c0_136 = arith.constant 0 : index
    %339 = vector.load %arg24[%c4_135, %c0_136] : memref<16x32xf32, #tpu.memory_space<vmem>>, vector<4x32xf32>
    tpu.vector_store %arg24[%c4_135, %c0_136], %338 {strides = array<i32>} : memref<16x32xf32, #tpu.memory_space<vmem>>, vector<4x32xf32>,
    %c0_137 = arith.constant 0 : index
    %c0_138 = arith.constant 0 : index
    %340 = vector.load %arg24[%c0_137, %c0_138] : memref<16x32xf32, #tpu.memory_space<vmem>>, vector<8x32xf32>
    %c1_139 = arith.constant 1 : index
    %c0_140 = arith.constant 0 : index
    %c0_141 = arith.constant 0 : index
    %341 = vector.load %arg13[%c1_139, %c0_140, %c0_141] : memref<4x32x32xf32, #tpu.memory_space<vmem>>, vector<1x32x32xf32>
    %342 = vector.shape_cast %341 : vector<1x32x32xf32> to vector<32x32xf32>
    %cst_142 = arith.constant dense<0.000000e+00> : vector<8x32xf32>
    %343 = tpu.matmul %340, %342, %cst_142 {dimension_numbers = #tpu.dot_dimension_numbers<[1], [0], [0], [1], [0, 0, 1, 1], [], []>} : vector<8x32xf32>, vector<32x32xf32>, vector<8x32xf32> -> vector<8x32xf32>
    %344 = arith.addf %335, %343 : vector<8x32xf32>
    %c0_143 = arith.constant 0 : index
    %c0_144 = arith.constant 0 : index
    %c0_145 = arith.constant 0 : index
    %345 = vector.load %arg15[%c0_143, %c0_144, %c0_145] : memref<2x2x32xf32, #tpu.memory_space<vmem>>, vector<1x2x32xf32>
    %346 = vector.shape_cast %345 : vector<1x2x32xf32> to vector<2x32xf32>
    %347 = vector.extract_strided_slice %346 {offsets = [0, 0], sizes = [1, 32], strides = [1, 1]} : vector<2x32xf32> to vector<1x32xf32>
    %348 = vector.extract_strided_slice %346 {offsets = [1, 0], sizes = [1, 32], strides = [1, 1]} : vector<2x32xf32> to vector<1x32xf32>
    %cst_146 = arith.constant dense<0.000000e+00> : vector<8xf32>
    %349 = vector.multi_reduction <add>, %344, %cst_146 [1] : vector<8x32xf32> to vector<8xf32>
    %350 = vector.shape_cast %349 : vector<8xf32> to vector<8x1xf32>
    %cst_147 = arith.constant 3.200000e+01 : f32
    %351 = vector.broadcast %cst_147 : f32 to vector<8x1xf32>
    %352 = arith.divf %350, %351 : vector<8x1xf32>
    %353 = vector.broadcast %352 : vector<8x1xf32> to vector<8x32xf32>
    %354 = arith.subf %344, %353 : vector<8x32xf32>
    %355 = arith.mulf %354, %354 : vector<8x32xf32>
    %cst_148 = arith.constant dense<0.000000e+00> : vector<8xf32>
    %356 = vector.multi_reduction <add>, %355, %cst_148 [1] : vector<8x32xf32> to vector<8xf32>
    %357 = vector.shape_cast %356 : vector<8xf32> to vector<8x1xf32>
    %cst_149 = arith.constant 3.200000e+01 : f32
    %358 = vector.broadcast %cst_149 : f32 to vector<8x1xf32>
    %359 = arith.divf %357, %358 : vector<8x1xf32>
    %cst_150 = arith.constant 9.99999974E-6 : f32
    %360 = vector.broadcast %cst_150 : f32 to vector<8x1xf32>
    %361 = arith.addf %359, %360 : vector<8x1xf32>
    %362 = math.rsqrt %361 : vector<8x1xf32>
    %363 = vector.broadcast %362 : vector<8x1xf32> to vector<8x32xf32>
    %364 = arith.mulf %354, %363 : vector<8x32xf32>
    %365 = vector.broadcast %347 : vector<1x32xf32> to vector<8x32xf32>
    %366 = arith.mulf %364, %365 : vector<8x32xf32>
    %367 = vector.broadcast %348 : vector<1x32xf32> to vector<8x32xf32>
    %368 = arith.addf %366, %367 : vector<8x32xf32>
    %c0_151 = arith.constant 0 : index
    %c0_152 = arith.constant 0 : index
    %c0_153 = arith.constant 0 : index
    %369 = vector.load %arg16[%c0_151, %c0_152, %c0_153] : memref<2x32x128xf32, #tpu.memory_space<vmem>>, vector<1x32x128xf32>
    %370 = vector.shape_cast %369 : vector<1x32x128xf32> to vector<32x128xf32>
    %cst_154 = arith.constant dense<0.000000e+00> : vector<8x128xf32>
    %371 = tpu.matmul %368, %370, %cst_154 {dimension_numbers = #tpu.dot_dimension_numbers<[1], [0], [0], [1], [0, 0, 1, 1], [], []>} : vector<8x32xf32>, vector<32x128xf32>, vector<8x128xf32> -> vector<8x128xf32>
    %c0_155 = arith.constant 0 : index
    %c0_156 = arith.constant 0 : index
    %c0_157 = arith.constant 0 : index
    %372 = vector.load %arg17[%c0_155, %c0_156, %c0_157] : memref<2x1x128xf32, #tpu.memory_space<vmem>>, vector<1x1x128xf32>
    %373 = vector.shape_cast %372 : vector<1x1x128xf32> to vector<1x128xf32>
    %374 = vector.broadcast %373 : vector<1x128xf32> to vector<8x128xf32>
    %375 = arith.addf %371, %374 : vector<8x128xf32>
    %cst_158 = arith.constant 5.000000e-01 : f32
    %376 = vector.broadcast %cst_158 : f32 to vector<8x128xf32>
    %377 = arith.mulf %376, %375 : vector<8x128xf32>
    %cst_159 = arith.constant 0.707106769 : f32
    %378 = vector.broadcast %cst_159 : f32 to vector<8x128xf32>
    %379 = arith.mulf %375, %378 : vector<8x128xf32>
    %380 = math.erf %379 : vector<8x128xf32>
    %cst_160 = arith.constant 1.000000e+00 : f32
    %381 = vector.broadcast %cst_160 : f32 to vector<8x128xf32>
    %382 = arith.addf %381, %380 : vector<8x128xf32>
    %383 = arith.mulf %377, %382 : vector<8x128xf32>
    %c0_161 = arith.constant 0 : index
    %c0_162 = arith.constant 0 : index
    %c0_163 = arith.constant 0 : index
    %384 = vector.load %arg18[%c0_161, %c0_162, %c0_163] : memref<2x128x4xf32, #tpu.memory_space<vmem>>, vector<1x128x4xf32>
    %385 = vector.shape_cast %384 : vector<1x128x4xf32> to vector<128x4xf32>
    %cst_164 = arith.constant dense<0.000000e+00> : vector<8x4xf32>
    %386 = tpu.matmul %383, %385, %cst_164 {dimension_numbers = #tpu.dot_dimension_numbers<[1], [0], [0], [1], [0, 0, 1, 1], [], []>} : vector<8x128xf32>, vector<128x4xf32>, vector<8x4xf32> -> vector<8x4xf32>
    %c0_165 = arith.constant 0 : index
    %c0_166 = arith.constant 0 : index
    %c0_167 = arith.constant 0 : index
    %387 = vector.load %arg19[%c0_165, %c0_166, %c0_167] : memref<2x1x4xf32, #tpu.memory_space<vmem>>, vector<1x1x4xf32>
    %388 = vector.shape_cast %387 : vector<1x1x4xf32> to vector<1x4xf32>
    %389 = vector.broadcast %388 : vector<1x4xf32> to vector<8x4xf32>
    %390 = arith.addf %386, %389 : vector<8x4xf32>
    %391 = vector.extract_strided_slice %390 {offsets = [0, 0], sizes = [4, 4], strides = [1, 1]} : vector<8x4xf32> to vector<4x4xf32>
    %392 = tpu.transpose %391, [1, 0] : vector<4x4xf32> -> vector<4x4xf32>
    %cst_168 = arith.constant dense<0xFF800000> : vector<4xf32>
    %393 = vector.multi_reduction <maximumf>, %392, %cst_168 [1] : vector<4x4xf32> to vector<4xf32>
    %394 = vector.shape_cast %393 : vector<4xf32> to vector<4x1xf32>
    %395 = vector.broadcast %394 : vector<4x1xf32> to vector<4x4xf32>
    %396 = arith.subf %392, %395 : vector<4x4xf32>
    %397 = math.exp %396 : vector<4x4xf32>
    %cst_169 = arith.constant dense<0.000000e+00> : vector<4xf32>
    %398 = vector.multi_reduction <add>, %397, %cst_169 [1] : vector<4x4xf32> to vector<4xf32>
    %399 = vector.shape_cast %398 : vector<4xf32> to vector<4x1xf32>
    %400 = tpu.reciprocal %399 {approx = true} : vector<4x1xf32> -> vector<4x1xf32>
    %401 = vector.broadcast %400 : vector<4x1xf32> to vector<4x4xf32>
    %402 = arith.mulf %397, %401 : vector<4x4xf32>
    %403 = vector.extract_strided_slice %344 {offsets = [0, 0], sizes = [4, 32], strides = [1, 1]} : vector<8x32xf32> to vector<4x32xf32>
    %cst_170 = arith.constant dense<0.000000e+00> : vector<4x32xf32>
    %404 = tpu.matmul %402, %403, %cst_170 {dimension_numbers = #tpu.dot_dimension_numbers<[1], [0], [0], [1], [0, 0, 1, 1], [], []>} : vector<4x4xf32>, vector<4x32xf32>, vector<4x32xf32> -> vector<4x32xf32>
    %405 = vector.extract_strided_slice %390 {offsets = [4, 0], sizes = [4, 4], strides = [1, 1]} : vector<8x4xf32> to vector<4x4xf32>
    %406 = tpu.transpose %405, [1, 0] : vector<4x4xf32> -> vector<4x4xf32>
    %cst_171 = arith.constant dense<0xFF800000> : vector<4xf32>
    %407 = vector.multi_reduction <maximumf>, %406, %cst_171 [1] : vector<4x4xf32> to vector<4xf32>
    %408 = vector.shape_cast %407 : vector<4xf32> to vector<4x1xf32>
    %409 = vector.broadcast %408 : vector<4x1xf32> to vector<4x4xf32>
    %410 = arith.subf %406, %409 : vector<4x4xf32>
    %411 = math.exp %410 : vector<4x4xf32>
    %cst_172 = arith.constant dense<0.000000e+00> : vector<4xf32>
    %412 = vector.multi_reduction <add>, %411, %cst_172 [1] : vector<4x4xf32> to vector<4xf32>
    %413 = vector.shape_cast %412 : vector<4xf32> to vector<4x1xf32>
    %414 = tpu.reciprocal %413 {approx = true} : vector<4x1xf32> -> vector<4x1xf32>
    %415 = vector.broadcast %414 : vector<4x1xf32> to vector<4x4xf32>
    %416 = arith.mulf %411, %415 : vector<4x4xf32>
    %417 = vector.extract_strided_slice %344 {offsets = [4, 0], sizes = [4, 32], strides = [1, 1]} : vector<8x32xf32> to vector<4x32xf32>
    %cst_173 = arith.constant dense<0.000000e+00> : vector<4x32xf32>
    %418 = tpu.matmul %416, %417, %cst_173 {dimension_numbers = #tpu.dot_dimension_numbers<[1], [0], [0], [1], [0, 0, 1, 1], [], []>} : vector<4x4xf32>, vector<4x32xf32>, vector<4x32xf32> -> vector<4x32xf32>
    %c0_174 = arith.constant 0 : index
    %c0_175 = arith.constant 0 : index
    %419 = vector.load %arg24[%c0_174, %c0_175] : memref<16x32xf32, #tpu.memory_space<vmem>>, vector<4x32xf32>
    tpu.vector_store %arg24[%c0_174, %c0_175], %404 {strides = array<i32>} : memref<16x32xf32, #tpu.memory_space<vmem>>, vector<4x32xf32>,
    %c4_176 = arith.constant 4 : index
    %c0_177 = arith.constant 0 : index
    %420 = vector.load %arg24[%c4_176, %c0_177] : memref<16x32xf32, #tpu.memory_space<vmem>>, vector<4x32xf32>
    tpu.vector_store %arg24[%c4_176, %c0_177], %418 {strides = array<i32>} : memref<16x32xf32, #tpu.memory_space<vmem>>, vector<4x32xf32>,
    %c0_178 = arith.constant 0 : index
    %c0_179 = arith.constant 0 : index
    %421 = vector.load %arg24[%c0_178, %c0_179] : memref<16x32xf32, #tpu.memory_space<vmem>>, vector<8x32xf32>
    %c2 = arith.constant 2 : index
    %c0_180 = arith.constant 0 : index
    %c0_181 = arith.constant 0 : index
    %422 = vector.load %arg9[%c2, %c0_180, %c0_181] : memref<6x11x32xf32, #tpu.memory_space<vmem>>, vector<1x11x32xf32>
    %423 = vector.shape_cast %422 : vector<1x11x32xf32> to vector<11x32xf32>
    %424 = vector.extract_strided_slice %423 {offsets = [6, 0], sizes = [1, 32], strides = [1, 1]} : vector<11x32xf32> to vector<1x32xf32>
    %425 = vector.extract_strided_slice %423 {offsets = [7, 0], sizes = [1, 32], strides = [1, 1]} : vector<11x32xf32> to vector<1x32xf32>
    %cst_182 = arith.constant dense<0.000000e+00> : vector<8xf32>
    %426 = vector.multi_reduction <add>, %421, %cst_182 [1] : vector<8x32xf32> to vector<8xf32>
    %427 = vector.shape_cast %426 : vector<8xf32> to vector<8x1xf32>
    %cst_183 = arith.constant 3.200000e+01 : f32
    %428 = vector.broadcast %cst_183 : f32 to vector<8x1xf32>
    %429 = arith.divf %427, %428 : vector<8x1xf32>
    %430 = vector.broadcast %429 : vector<8x1xf32> to vector<8x32xf32>
    %431 = arith.subf %421, %430 : vector<8x32xf32>
    %432 = arith.mulf %431, %431 : vector<8x32xf32>
    %cst_184 = arith.constant dense<0.000000e+00> : vector<8xf32>
    %433 = vector.multi_reduction <add>, %432, %cst_184 [1] : vector<8x32xf32> to vector<8xf32>
    %434 = vector.shape_cast %433 : vector<8xf32> to vector<8x1xf32>
    %cst_185 = arith.constant 3.200000e+01 : f32
    %435 = vector.broadcast %cst_185 : f32 to vector<8x1xf32>
    %436 = arith.divf %434, %435 : vector<8x1xf32>
    %cst_186 = arith.constant 9.99999974E-6 : f32
    %437 = vector.broadcast %cst_186 : f32 to vector<8x1xf32>
    %438 = arith.addf %436, %437 : vector<8x1xf32>
    %439 = math.rsqrt %438 : vector<8x1xf32>
    %440 = vector.broadcast %439 : vector<8x1xf32> to vector<8x32xf32>
    %441 = arith.mulf %431, %440 : vector<8x32xf32>
    %442 = vector.broadcast %424 : vector<1x32xf32> to vector<8x32xf32>
    %443 = arith.mulf %441, %442 : vector<8x32xf32>
    %444 = vector.broadcast %425 : vector<1x32xf32> to vector<8x32xf32>
    %445 = arith.addf %443, %444 : vector<8x32xf32>
    %c2_187 = arith.constant 2 : index
    %c0_188 = arith.constant 0 : index
    %c0_189 = arith.constant 0 : index
    %446 = vector.load %arg10[%c2_187, %c0_188, %c0_189] : memref<6x32x32xf32, #tpu.memory_space<vmem>>, vector<1x32x32xf32>
    %447 = vector.shape_cast %446 : vector<1x32x32xf32> to vector<32x32xf32>
    %cst_190 = arith.constant dense<0.000000e+00> : vector<8x32xf32>
    %448 = tpu.matmul %445, %447, %cst_190 {dimension_numbers = #tpu.dot_dimension_numbers<[1], [0], [0], [1], [0, 0, 1, 1], [], []>} : vector<8x32xf32>, vector<32x32xf32>, vector<8x32xf32> -> vector<8x32xf32>
    %449 = vector.extract_strided_slice %423 {offsets = [8, 0], sizes = [1, 32], strides = [1, 1]} : vector<11x32xf32> to vector<1x32xf32>
    %450 = vector.extract_strided_slice %423 {offsets = [9, 0], sizes = [1, 32], strides = [1, 1]} : vector<11x32xf32> to vector<1x32xf32>
    %cst_191 = arith.constant dense<0.000000e+00> : vector<8xf32>
    %451 = vector.multi_reduction <add>, %344, %cst_191 [1] : vector<8x32xf32> to vector<8xf32>
    %452 = vector.shape_cast %451 : vector<8xf32> to vector<8x1xf32>
    %cst_192 = arith.constant 3.200000e+01 : f32
    %453 = vector.broadcast %cst_192 : f32 to vector<8x1xf32>
    %454 = arith.divf %452, %453 : vector<8x1xf32>
    %455 = vector.broadcast %454 : vector<8x1xf32> to vector<8x32xf32>
    %456 = arith.subf %344, %455 : vector<8x32xf32>
    %457 = arith.mulf %456, %456 : vector<8x32xf32>
    %cst_193 = arith.constant dense<0.000000e+00> : vector<8xf32>
    %458 = vector.multi_reduction <add>, %457, %cst_193 [1] : vector<8x32xf32> to vector<8xf32>
    %459 = vector.shape_cast %458 : vector<8xf32> to vector<8x1xf32>
    %cst_194 = arith.constant 3.200000e+01 : f32
    %460 = vector.broadcast %cst_194 : f32 to vector<8x1xf32>
    %461 = arith.divf %459, %460 : vector<8x1xf32>
    %cst_195 = arith.constant 9.99999974E-6 : f32
    %462 = vector.broadcast %cst_195 : f32 to vector<8x1xf32>
    %463 = arith.addf %461, %462 : vector<8x1xf32>
    %464 = math.rsqrt %463 : vector<8x1xf32>
    %465 = vector.broadcast %464 : vector<8x1xf32> to vector<8x32xf32>
    %466 = arith.mulf %456, %465 : vector<8x32xf32>
    %467 = vector.broadcast %449 : vector<1x32xf32> to vector<8x32xf32>
    %468 = arith.mulf %466, %467 : vector<8x32xf32>
    %469 = vector.broadcast %450 : vector<1x32xf32> to vector<8x32xf32>
    %470 = arith.addf %468, %469 : vector<8x32xf32>
    %c2_196 = arith.constant 2 : index
    %c0_197 = arith.constant 0 : index
    %c0_198 = arith.constant 0 : index
    %471 = vector.load %arg11[%c2_196, %c0_197, %c0_198] : memref<6x32x64xf32, #tpu.memory_space<vmem>>, vector<1x32x64xf32>
    %472 = vector.shape_cast %471 : vector<1x32x64xf32> to vector<32x64xf32>
    %cst_199 = arith.constant dense<0.000000e+00> : vector<8x64xf32>
    %473 = tpu.matmul %470, %472, %cst_199 {dimension_numbers = #tpu.dot_dimension_numbers<[1], [0], [0], [1], [0, 0, 1, 1], [], []>} : vector<8x32xf32>, vector<32x64xf32>, vector<8x64xf32> -> vector<8x64xf32>
    %474 = vector.extract_strided_slice %473 {offsets = [0, 0], sizes = [8, 32], strides = [1, 1]} : vector<8x64xf32> to vector<8x32xf32>
    %475 = vector.extract_strided_slice %473 {offsets = [0, 32], sizes = [8, 32], strides = [1, 1]} : vector<8x64xf32> to vector<8x32xf32>
    %c2_200 = arith.constant 2 : index
    %c0_201 = arith.constant 0 : index
    %c0_202 = arith.constant 0 : index
    %476 = vector.load %arg12[%c2_200, %c0_201, %c0_202] : memref<6x32x32xf32, #tpu.memory_space<vmem>>, vector<1x32x32xf32>
    %477 = vector.shape_cast %476 : vector<1x32x32xf32> to vector<32x32xf32>
    %478 = vector.extract_strided_slice %423 {offsets = [10, 0], sizes = [1, 32], strides = [1, 1]} : vector<11x32xf32> to vector<1x32xf32>
    %479 = vector.extract_strided_slice %448 {offsets = [0, 0], sizes = [8, 8], strides = [1, 1]} : vector<8x32xf32> to vector<8x8xf32>
    %cst_203 = arith.constant 0.353553385 : f32
    %480 = vector.broadcast %cst_203 : f32 to vector<8x8xf32>
    %481 = arith.mulf %479, %480 : vector<8x8xf32>
    %482 = vector.extract_strided_slice %474 {offsets = [0, 0], sizes = [8, 8], strides = [1, 1]} : vector<8x32xf32> to vector<8x8xf32>
    %483 = vector.extract_strided_slice %475 {offsets = [0, 0], sizes = [8, 8], strides = [1, 1]} : vector<8x32xf32> to vector<8x8xf32>
    %cst_204 = arith.constant dense<0.000000e+00> : vector<8x8xf32>
    %484 = tpu.matmul %481, %482, %cst_204 {dimension_numbers = #tpu.dot_dimension_numbers<[1], [1], [0], [0], [0, 0, 1, 0], [], []>} : vector<8x8xf32>, vector<8x8xf32>, vector<8x8xf32> -> vector<8x8xf32>
    %cst_205 = arith.constant dense<0xFF800000> : vector<8xf32>
    %485 = vector.multi_reduction <maximumf>, %484, %cst_205 [1] : vector<8x8xf32> to vector<8xf32>
    %486 = vector.shape_cast %485 : vector<8xf32> to vector<8x1xf32>
    %487 = vector.broadcast %486 : vector<8x1xf32> to vector<8x8xf32>
    %488 = arith.subf %484, %487 : vector<8x8xf32>
    %489 = math.exp %488 : vector<8x8xf32>
    %cst_206 = arith.constant dense<0.000000e+00> : vector<8xf32>
    %490 = vector.multi_reduction <add>, %489, %cst_206 [1] : vector<8x8xf32> to vector<8xf32>
    %491 = vector.shape_cast %490 : vector<8xf32> to vector<8x1xf32>
    %492 = tpu.reciprocal %491 {approx = true} : vector<8x1xf32> -> vector<8x1xf32>
    %493 = vector.broadcast %492 : vector<8x1xf32> to vector<8x8xf32>
    %494 = arith.mulf %489, %493 : vector<8x8xf32>
    %cst_207 = arith.constant dense<0.000000e+00> : vector<8x8xf32>
    %495 = tpu.matmul %494, %483, %cst_207 {dimension_numbers = #tpu.dot_dimension_numbers<[1], [0], [0], [1], [0, 0, 1, 1], [], []>} : vector<8x8xf32>, vector<8x8xf32>, vector<8x8xf32> -> vector<8x8xf32>
    %496 = vector.extract_strided_slice %477 {offsets = [0, 0], sizes = [8, 32], strides = [1, 1]} : vector<32x32xf32> to vector<8x32xf32>
    %cst_208 = arith.constant dense<0.000000e+00> : vector<8x32xf32>
    %497 = tpu.matmul %495, %496, %cst_208 {dimension_numbers = #tpu.dot_dimension_numbers<[1], [0], [0], [1], [0, 0, 1, 1], [], []>} : vector<8x8xf32>, vector<8x32xf32>, vector<8x32xf32> -> vector<8x32xf32>
    %498 = vector.broadcast %478 : vector<1x32xf32> to vector<8x32xf32>
    %499 = arith.addf %498, %497 : vector<8x32xf32>
    %500 = vector.extract_strided_slice %448 {offsets = [0, 8], sizes = [8, 8], strides = [1, 1]} : vector<8x32xf32> to vector<8x8xf32>
    %cst_209 = arith.constant 0.353553385 : f32
    %501 = vector.broadcast %cst_209 : f32 to vector<8x8xf32>
    %502 = arith.mulf %500, %501 : vector<8x8xf32>
    %503 = vector.extract_strided_slice %474 {offsets = [0, 8], sizes = [8, 8], strides = [1, 1]} : vector<8x32xf32> to vector<8x8xf32>
    %504 = vector.extract_strided_slice %475 {offsets = [0, 8], sizes = [8, 8], strides = [1, 1]} : vector<8x32xf32> to vector<8x8xf32>
    %cst_210 = arith.constant dense<0.000000e+00> : vector<8x8xf32>
    %505 = tpu.matmul %502, %503, %cst_210 {dimension_numbers = #tpu.dot_dimension_numbers<[1], [1], [0], [0], [0, 0, 1, 0], [], []>} : vector<8x8xf32>, vector<8x8xf32>, vector<8x8xf32> -> vector<8x8xf32>
    %cst_211 = arith.constant dense<0xFF800000> : vector<8xf32>
    %506 = vector.multi_reduction <maximumf>, %505, %cst_211 [1] : vector<8x8xf32> to vector<8xf32>
    %507 = vector.shape_cast %506 : vector<8xf32> to vector<8x1xf32>
    %508 = vector.broadcast %507 : vector<8x1xf32> to vector<8x8xf32>
    %509 = arith.subf %505, %508 : vector<8x8xf32>
    %510 = math.exp %509 : vector<8x8xf32>
    %cst_212 = arith.constant dense<0.000000e+00> : vector<8xf32>
    %511 = vector.multi_reduction <add>, %510, %cst_212 [1] : vector<8x8xf32> to vector<8xf32>
    %512 = vector.shape_cast %511 : vector<8xf32> to vector<8x1xf32>
    %513 = tpu.reciprocal %512 {approx = true} : vector<8x1xf32> -> vector<8x1xf32>
    %514 = vector.broadcast %513 : vector<8x1xf32> to vector<8x8xf32>
    %515 = arith.mulf %510, %514 : vector<8x8xf32>
    %cst_213 = arith.constant dense<0.000000e+00> : vector<8x8xf32>
    %516 = tpu.matmul %515, %504, %cst_213 {dimension_numbers = #tpu.dot_dimension_numbers<[1], [0], [0], [1], [0, 0, 1, 1], [], []>} : vector<8x8xf32>, vector<8x8xf32>, vector<8x8xf32> -> vector<8x8xf32>
    %517 = vector.extract_strided_slice %477 {offsets = [8, 0], sizes = [8, 32], strides = [1, 1]} : vector<32x32xf32> to vector<8x32xf32>
    %cst_214 = arith.constant dense<0.000000e+00> : vector<8x32xf32>
    %518 = tpu.matmul %516, %517, %cst_214 {dimension_numbers = #tpu.dot_dimension_numbers<[1], [0], [0], [1], [0, 0, 1, 1], [], []>} : vector<8x8xf32>, vector<8x32xf32>, vector<8x32xf32> -> vector<8x32xf32>
    %519 = arith.addf %499, %518 : vector<8x32xf32>
    %520 = vector.extract_strided_slice %448 {offsets = [0, 16], sizes = [8, 8], strides = [1, 1]} : vector<8x32xf32> to vector<8x8xf32>
    %cst_215 = arith.constant 0.353553385 : f32
    %521 = vector.broadcast %cst_215 : f32 to vector<8x8xf32>
    %522 = arith.mulf %520, %521 : vector<8x8xf32>
    %523 = vector.extract_strided_slice %474 {offsets = [0, 16], sizes = [8, 8], strides = [1, 1]} : vector<8x32xf32> to vector<8x8xf32>
    %524 = vector.extract_strided_slice %475 {offsets = [0, 16], sizes = [8, 8], strides = [1, 1]} : vector<8x32xf32> to vector<8x8xf32>
    %cst_216 = arith.constant dense<0.000000e+00> : vector<8x8xf32>
    %525 = tpu.matmul %522, %523, %cst_216 {dimension_numbers = #tpu.dot_dimension_numbers<[1], [1], [0], [0], [0, 0, 1, 0], [], []>} : vector<8x8xf32>, vector<8x8xf32>, vector<8x8xf32> -> vector<8x8xf32>
    %cst_217 = arith.constant dense<0xFF800000> : vector<8xf32>
    %526 = vector.multi_reduction <maximumf>, %525, %cst_217 [1] : vector<8x8xf32> to vector<8xf32>
    %527 = vector.shape_cast %526 : vector<8xf32> to vector<8x1xf32>
    %528 = vector.broadcast %527 : vector<8x1xf32> to vector<8x8xf32>
    %529 = arith.subf %525, %528 : vector<8x8xf32>
    %530 = math.exp %529 : vector<8x8xf32>
    %cst_218 = arith.constant dense<0.000000e+00> : vector<8xf32>
    %531 = vector.multi_reduction <add>, %530, %cst_218 [1] : vector<8x8xf32> to vector<8xf32>
    %532 = vector.shape_cast %531 : vector<8xf32> to vector<8x1xf32>
    %533 = tpu.reciprocal %532 {approx = true} : vector<8x1xf32> -> vector<8x1xf32>
    %534 = vector.broadcast %533 : vector<8x1xf32> to vector<8x8xf32>
    %535 = arith.mulf %530, %534 : vector<8x8xf32>
    %cst_219 = arith.constant dense<0.000000e+00> : vector<8x8xf32>
    %536 = tpu.matmul %535, %524, %cst_219 {dimension_numbers = #tpu.dot_dimension_numbers<[1], [0], [0], [1], [0, 0, 1, 1], [], []>} : vector<8x8xf32>, vector<8x8xf32>, vector<8x8xf32> -> vector<8x8xf32>
    %537 = vector.extract_strided_slice %477 {offsets = [16, 0], sizes = [8, 32], strides = [1, 1]} : vector<32x32xf32> to vector<8x32xf32>
    %cst_220 = arith.constant dense<0.000000e+00> : vector<8x32xf32>
    %538 = tpu.matmul %536, %537, %cst_220 {dimension_numbers = #tpu.dot_dimension_numbers<[1], [0], [0], [1], [0, 0, 1, 1], [], []>} : vector<8x8xf32>, vector<8x32xf32>, vector<8x32xf32> -> vector<8x32xf32>
    %539 = arith.addf %519, %538 : vector<8x32xf32>
    %540 = vector.extract_strided_slice %448 {offsets = [0, 24], sizes = [8, 8], strides = [1, 1]} : vector<8x32xf32> to vector<8x8xf32>
    %cst_221 = arith.constant 0.353553385 : f32
    %541 = vector.broadcast %cst_221 : f32 to vector<8x8xf32>
    %542 = arith.mulf %540, %541 : vector<8x8xf32>
    %543 = vector.extract_strided_slice %474 {offsets = [0, 24], sizes = [8, 8], strides = [1, 1]} : vector<8x32xf32> to vector<8x8xf32>
    %544 = vector.extract_strided_slice %475 {offsets = [0, 24], sizes = [8, 8], strides = [1, 1]} : vector<8x32xf32> to vector<8x8xf32>
    %cst_222 = arith.constant dense<0.000000e+00> : vector<8x8xf32>
    %545 = tpu.matmul %542, %543, %cst_222 {dimension_numbers = #tpu.dot_dimension_numbers<[1], [1], [0], [0], [0, 0, 1, 0], [], []>} : vector<8x8xf32>, vector<8x8xf32>, vector<8x8xf32> -> vector<8x8xf32>
    %cst_223 = arith.constant dense<0xFF800000> : vector<8xf32>
    %546 = vector.multi_reduction <maximumf>, %545, %cst_223 [1] : vector<8x8xf32> to vector<8xf32>
    %547 = vector.shape_cast %546 : vector<8xf32> to vector<8x1xf32>
    %548 = vector.broadcast %547 : vector<8x1xf32> to vector<8x8xf32>
    %549 = arith.subf %545, %548 : vector<8x8xf32>
    %550 = math.exp %549 : vector<8x8xf32>
    %cst_224 = arith.constant dense<0.000000e+00> : vector<8xf32>
    %551 = vector.multi_reduction <add>, %550, %cst_224 [1] : vector<8x8xf32> to vector<8xf32>
    %552 = vector.shape_cast %551 : vector<8xf32> to vector<8x1xf32>
    %553 = tpu.reciprocal %552 {approx = true} : vector<8x1xf32> -> vector<8x1xf32>
    %554 = vector.broadcast %553 : vector<8x1xf32> to vector<8x8xf32>
    %555 = arith.mulf %550, %554 : vector<8x8xf32>
    %cst_225 = arith.constant dense<0.000000e+00> : vector<8x8xf32>
    %556 = tpu.matmul %555, %544, %cst_225 {dimension_numbers = #tpu.dot_dimension_numbers<[1], [0], [0], [1], [0, 0, 1, 1], [], []>} : vector<8x8xf32>, vector<8x8xf32>, vector<8x8xf32> -> vector<8x8xf32>
    %557 = vector.extract_strided_slice %477 {offsets = [24, 0], sizes = [8, 32], strides = [1, 1]} : vector<32x32xf32> to vector<8x32xf32>
    %cst_226 = arith.constant dense<0.000000e+00> : vector<8x32xf32>
    %558 = tpu.matmul %556, %557, %cst_226 {dimension_numbers = #tpu.dot_dimension_numbers<[1], [0], [0], [1], [0, 0, 1, 1], [], []>} : vector<8x8xf32>, vector<8x32xf32>, vector<8x32xf32> -> vector<8x32xf32>
    %559 = arith.addf %539, %558 : vector<8x32xf32>
    %560 = arith.addf %421, %559 : vector<8x32xf32>
    %561 = vector.extract_strided_slice %423 {offsets = [0, 0], sizes = [1, 32], strides = [1, 1]} : vector<11x32xf32> to vector<1x32xf32>
    %562 = vector.extract_strided_slice %423 {offsets = [1, 0], sizes = [1, 32], strides = [1, 1]} : vector<11x32xf32> to vector<1x32xf32>
    %cst_227 = arith.constant dense<0.000000e+00> : vector<8xf32>
    %563 = vector.multi_reduction <add>, %560, %cst_227 [1] : vector<8x32xf32> to vector<8xf32>
    %564 = vector.shape_cast %563 : vector<8xf32> to vector<8x1xf32>
    %cst_228 = arith.constant 3.200000e+01 : f32
    %565 = vector.broadcast %cst_228 : f32 to vector<8x1xf32>
    %566 = arith.divf %564, %565 : vector<8x1xf32>
    %567 = vector.broadcast %566 : vector<8x1xf32> to vector<8x32xf32>
    %568 = arith.subf %560, %567 : vector<8x32xf32>
    %569 = arith.mulf %568, %568 : vector<8x32xf32>
    %cst_229 = arith.constant dense<0.000000e+00> : vector<8xf32>
    %570 = vector.multi_reduction <add>, %569, %cst_229 [1] : vector<8x32xf32> to vector<8xf32>
    %571 = vector.shape_cast %570 : vector<8xf32> to vector<8x1xf32>
    %cst_230 = arith.constant 3.200000e+01 : f32
    %572 = vector.broadcast %cst_230 : f32 to vector<8x1xf32>
    %573 = arith.divf %571, %572 : vector<8x1xf32>
    %cst_231 = arith.constant 9.99999974E-6 : f32
    %574 = vector.broadcast %cst_231 : f32 to vector<8x1xf32>
    %575 = arith.addf %573, %574 : vector<8x1xf32>
    %576 = math.rsqrt %575 : vector<8x1xf32>
    %577 = vector.broadcast %576 : vector<8x1xf32> to vector<8x32xf32>
    %578 = arith.mulf %568, %577 : vector<8x32xf32>
    %579 = vector.broadcast %561 : vector<1x32xf32> to vector<8x32xf32>
    %580 = arith.mulf %578, %579 : vector<8x32xf32>
    %581 = vector.broadcast %562 : vector<1x32xf32> to vector<8x32xf32>
    %582 = arith.addf %580, %581 : vector<8x32xf32>
    %c2_232 = arith.constant 2 : index
    %c0_233 = arith.constant 0 : index
    %c0_234 = arith.constant 0 : index
    %583 = vector.load %arg4[%c2_232, %c0_233, %c0_234] : memref<6x32x96xf32, #tpu.memory_space<vmem>>, vector<1x32x96xf32>
    %584 = vector.shape_cast %583 : vector<1x32x96xf32> to vector<32x96xf32>
    %cst_235 = arith.constant dense<0.000000e+00> : vector<8x96xf32>
    %585 = tpu.matmul %582, %584, %cst_235 {dimension_numbers = #tpu.dot_dimension_numbers<[1], [0], [0], [1], [0, 0, 1, 1], [], []>} : vector<8x32xf32>, vector<32x96xf32>, vector<8x96xf32> -> vector<8x96xf32>
    %586 = vector.extract_strided_slice %585 {offsets = [0, 0], sizes = [8, 32], strides = [1, 1]} : vector<8x96xf32> to vector<8x32xf32>
    %587 = vector.extract_strided_slice %585 {offsets = [0, 32], sizes = [8, 32], strides = [1, 1]} : vector<8x96xf32> to vector<8x32xf32>
    %588 = vector.extract_strided_slice %585 {offsets = [0, 64], sizes = [8, 32], strides = [1, 1]} : vector<8x96xf32> to vector<8x32xf32>
    %c2_236 = arith.constant 2 : index
    %c0_237 = arith.constant 0 : index
    %c0_238 = arith.constant 0 : index
    %589 = vector.load %arg5[%c2_236, %c0_237, %c0_238] : memref<6x32x32xf32, #tpu.memory_space<vmem>>, vector<1x32x32xf32>
    %590 = vector.shape_cast %589 : vector<1x32x32xf32> to vector<32x32xf32>
    %591 = vector.extract_strided_slice %423 {offsets = [4, 0], sizes = [1, 32], strides = [1, 1]} : vector<11x32xf32> to vector<1x32xf32>
    %592 = vector.extract_strided_slice %586 {offsets = [0, 0], sizes = [8, 8], strides = [1, 1]} : vector<8x32xf32> to vector<8x8xf32>
    %cst_239 = arith.constant 0.353553385 : f32
    %593 = vector.broadcast %cst_239 : f32 to vector<8x8xf32>
    %594 = arith.mulf %592, %593 : vector<8x8xf32>
    %595 = vector.extract_strided_slice %587 {offsets = [0, 0], sizes = [8, 8], strides = [1, 1]} : vector<8x32xf32> to vector<8x8xf32>
    %596 = vector.extract_strided_slice %588 {offsets = [0, 0], sizes = [8, 8], strides = [1, 1]} : vector<8x32xf32> to vector<8x8xf32>
    %cst_240 = arith.constant dense<0.000000e+00> : vector<8x8xf32>
    %597 = tpu.matmul %594, %595, %cst_240 {dimension_numbers = #tpu.dot_dimension_numbers<[1], [1], [0], [0], [0, 0, 1, 0], [], []>} : vector<8x8xf32>, vector<8x8xf32>, vector<8x8xf32> -> vector<8x8xf32>
    %cst_241 = arith.constant dense<0xFF800000> : vector<8xf32>
    %598 = vector.multi_reduction <maximumf>, %597, %cst_241 [1] : vector<8x8xf32> to vector<8xf32>
    %599 = vector.shape_cast %598 : vector<8xf32> to vector<8x1xf32>
    %600 = vector.broadcast %599 : vector<8x1xf32> to vector<8x8xf32>
    %601 = arith.subf %597, %600 : vector<8x8xf32>
    %602 = math.exp %601 : vector<8x8xf32>
    %cst_242 = arith.constant dense<0.000000e+00> : vector<8xf32>
    %603 = vector.multi_reduction <add>, %602, %cst_242 [1] : vector<8x8xf32> to vector<8xf32>
    %604 = vector.shape_cast %603 : vector<8xf32> to vector<8x1xf32>
    %605 = tpu.reciprocal %604 {approx = true} : vector<8x1xf32> -> vector<8x1xf32>
    %606 = vector.broadcast %605 : vector<8x1xf32> to vector<8x8xf32>
    %607 = arith.mulf %602, %606 : vector<8x8xf32>
    %cst_243 = arith.constant dense<0.000000e+00> : vector<8x8xf32>
    %608 = tpu.matmul %607, %596, %cst_243 {dimension_numbers = #tpu.dot_dimension_numbers<[1], [0], [0], [1], [0, 0, 1, 1], [], []>} : vector<8x8xf32>, vector<8x8xf32>, vector<8x8xf32> -> vector<8x8xf32>
    %609 = vector.extract_strided_slice %590 {offsets = [0, 0], sizes = [8, 32], strides = [1, 1]} : vector<32x32xf32> to vector<8x32xf32>
    %cst_244 = arith.constant dense<0.000000e+00> : vector<8x32xf32>
    %610 = tpu.matmul %608, %609, %cst_244 {dimension_numbers = #tpu.dot_dimension_numbers<[1], [0], [0], [1], [0, 0, 1, 1], [], []>} : vector<8x8xf32>, vector<8x32xf32>, vector<8x32xf32> -> vector<8x32xf32>
    %611 = vector.broadcast %591 : vector<1x32xf32> to vector<8x32xf32>
    %612 = arith.addf %611, %610 : vector<8x32xf32>
    %613 = vector.extract_strided_slice %586 {offsets = [0, 8], sizes = [8, 8], strides = [1, 1]} : vector<8x32xf32> to vector<8x8xf32>
    %cst_245 = arith.constant 0.353553385 : f32
    %614 = vector.broadcast %cst_245 : f32 to vector<8x8xf32>
    %615 = arith.mulf %613, %614 : vector<8x8xf32>
    %616 = vector.extract_strided_slice %587 {offsets = [0, 8], sizes = [8, 8], strides = [1, 1]} : vector<8x32xf32> to vector<8x8xf32>
    %617 = vector.extract_strided_slice %588 {offsets = [0, 8], sizes = [8, 8], strides = [1, 1]} : vector<8x32xf32> to vector<8x8xf32>
    %cst_246 = arith.constant dense<0.000000e+00> : vector<8x8xf32>
    %618 = tpu.matmul %615, %616, %cst_246 {dimension_numbers = #tpu.dot_dimension_numbers<[1], [1], [0], [0], [0, 0, 1, 0], [], []>} : vector<8x8xf32>, vector<8x8xf32>, vector<8x8xf32> -> vector<8x8xf32>
    %cst_247 = arith.constant dense<0xFF800000> : vector<8xf32>
    %619 = vector.multi_reduction <maximumf>, %618, %cst_247 [1] : vector<8x8xf32> to vector<8xf32>
    %620 = vector.shape_cast %619 : vector<8xf32> to vector<8x1xf32>
    %621 = vector.broadcast %620 : vector<8x1xf32> to vector<8x8xf32>
    %622 = arith.subf %618, %621 : vector<8x8xf32>
    %623 = math.exp %622 : vector<8x8xf32>
    %cst_248 = arith.constant dense<0.000000e+00> : vector<8xf32>
    %624 = vector.multi_reduction <add>, %623, %cst_248 [1] : vector<8x8xf32> to vector<8xf32>
    %625 = vector.shape_cast %624 : vector<8xf32> to vector<8x1xf32>
    %626 = tpu.reciprocal %625 {approx = true} : vector<8x1xf32> -> vector<8x1xf32>
    %627 = vector.broadcast %626 : vector<8x1xf32> to vector<8x8xf32>
    %628 = arith.mulf %623, %627 : vector<8x8xf32>
    %cst_249 = arith.constant dense<0.000000e+00> : vector<8x8xf32>
    %629 = tpu.matmul %628, %617, %cst_249 {dimension_numbers = #tpu.dot_dimension_numbers<[1], [0], [0], [1], [0, 0, 1, 1], [], []>} : vector<8x8xf32>, vector<8x8xf32>, vector<8x8xf32> -> vector<8x8xf32>
    %630 = vector.extract_strided_slice %590 {offsets = [8, 0], sizes = [8, 32], strides = [1, 1]} : vector<32x32xf32> to vector<8x32xf32>
    %cst_250 = arith.constant dense<0.000000e+00> : vector<8x32xf32>
    %631 = tpu.matmul %629, %630, %cst_250 {dimension_numbers = #tpu.dot_dimension_numbers<[1], [0], [0], [1], [0, 0, 1, 1], [], []>} : vector<8x8xf32>, vector<8x32xf32>, vector<8x32xf32> -> vector<8x32xf32>
    %632 = arith.addf %612, %631 : vector<8x32xf32>
    %633 = vector.extract_strided_slice %586 {offsets = [0, 16], sizes = [8, 8], strides = [1, 1]} : vector<8x32xf32> to vector<8x8xf32>
    %cst_251 = arith.constant 0.353553385 : f32
    %634 = vector.broadcast %cst_251 : f32 to vector<8x8xf32>
    %635 = arith.mulf %633, %634 : vector<8x8xf32>
    %636 = vector.extract_strided_slice %587 {offsets = [0, 16], sizes = [8, 8], strides = [1, 1]} : vector<8x32xf32> to vector<8x8xf32>
    %637 = vector.extract_strided_slice %588 {offsets = [0, 16], sizes = [8, 8], strides = [1, 1]} : vector<8x32xf32> to vector<8x8xf32>
    %cst_252 = arith.constant dense<0.000000e+00> : vector<8x8xf32>
    %638 = tpu.matmul %635, %636, %cst_252 {dimension_numbers = #tpu.dot_dimension_numbers<[1], [1], [0], [0], [0, 0, 1, 0], [], []>} : vector<8x8xf32>, vector<8x8xf32>, vector<8x8xf32> -> vector<8x8xf32>
    %cst_253 = arith.constant dense<0xFF800000> : vector<8xf32>
    %639 = vector.multi_reduction <maximumf>, %638, %cst_253 [1] : vector<8x8xf32> to vector<8xf32>
    %640 = vector.shape_cast %639 : vector<8xf32> to vector<8x1xf32>
    %641 = vector.broadcast %640 : vector<8x1xf32> to vector<8x8xf32>
    %642 = arith.subf %638, %641 : vector<8x8xf32>
    %643 = math.exp %642 : vector<8x8xf32>
    %cst_254 = arith.constant dense<0.000000e+00> : vector<8xf32>
    %644 = vector.multi_reduction <add>, %643, %cst_254 [1] : vector<8x8xf32> to vector<8xf32>
    %645 = vector.shape_cast %644 : vector<8xf32> to vector<8x1xf32>
    %646 = tpu.reciprocal %645 {approx = true} : vector<8x1xf32> -> vector<8x1xf32>
    %647 = vector.broadcast %646 : vector<8x1xf32> to vector<8x8xf32>
    %648 = arith.mulf %643, %647 : vector<8x8xf32>
    %cst_255 = arith.constant dense<0.000000e+00> : vector<8x8xf32>
    %649 = tpu.matmul %648, %637, %cst_255 {dimension_numbers = #tpu.dot_dimension_numbers<[1], [0], [0], [1], [0, 0, 1, 1], [], []>} : vector<8x8xf32>, vector<8x8xf32>, vector<8x8xf32> -> vector<8x8xf32>
    %650 = vector.extract_strided_slice %590 {offsets = [16, 0], sizes = [8, 32], strides = [1, 1]} : vector<32x32xf32> to vector<8x32xf32>
    %cst_256 = arith.constant dense<0.000000e+00> : vector<8x32xf32>
    %651 = tpu.matmul %649, %650, %cst_256 {dimension_numbers = #tpu.dot_dimension_numbers<[1], [0], [0], [1], [0, 0, 1, 1], [], []>} : vector<8x8xf32>, vector<8x32xf32>, vector<8x32xf32> -> vector<8x32xf32>
    %652 = arith.addf %632, %651 : vector<8x32xf32>
    %653 = vector.extract_strided_slice %586 {offsets = [0, 24], sizes = [8, 8], strides = [1, 1]} : vector<8x32xf32> to vector<8x8xf32>
    %cst_257 = arith.constant 0.353553385 : f32
    %654 = vector.broadcast %cst_257 : f32 to vector<8x8xf32>
    %655 = arith.mulf %653, %654 : vector<8x8xf32>
    %656 = vector.extract_strided_slice %587 {offsets = [0, 24], sizes = [8, 8], strides = [1, 1]} : vector<8x32xf32> to vector<8x8xf32>
    %657 = vector.extract_strided_slice %588 {offsets = [0, 24], sizes = [8, 8], strides = [1, 1]} : vector<8x32xf32> to vector<8x8xf32>
    %cst_258 = arith.constant dense<0.000000e+00> : vector<8x8xf32>
    %658 = tpu.matmul %655, %656, %cst_258 {dimension_numbers = #tpu.dot_dimension_numbers<[1], [1], [0], [0], [0, 0, 1, 0], [], []>} : vector<8x8xf32>, vector<8x8xf32>, vector<8x8xf32> -> vector<8x8xf32>
    %cst_259 = arith.constant dense<0xFF800000> : vector<8xf32>
    %659 = vector.multi_reduction <maximumf>, %658, %cst_259 [1] : vector<8x8xf32> to vector<8xf32>
    %660 = vector.shape_cast %659 : vector<8xf32> to vector<8x1xf32>
    %661 = vector.broadcast %660 : vector<8x1xf32> to vector<8x8xf32>
    %662 = arith.subf %658, %661 : vector<8x8xf32>
    %663 = math.exp %662 : vector<8x8xf32>
    %cst_260 = arith.constant dense<0.000000e+00> : vector<8xf32>
    %664 = vector.multi_reduction <add>, %663, %cst_260 [1] : vector<8x8xf32> to vector<8xf32>
    %665 = vector.shape_cast %664 : vector<8xf32> to vector<8x1xf32>
    %666 = tpu.reciprocal %665 {approx = true} : vector<8x1xf32> -> vector<8x1xf32>
    %667 = vector.broadcast %666 : vector<8x1xf32> to vector<8x8xf32>
    %668 = arith.mulf %663, %667 : vector<8x8xf32>
    %cst_261 = arith.constant dense<0.000000e+00> : vector<8x8xf32>
    %669 = tpu.matmul %668, %657, %cst_261 {dimension_numbers = #tpu.dot_dimension_numbers<[1], [0], [0], [1], [0, 0, 1, 1], [], []>} : vector<8x8xf32>, vector<8x8xf32>, vector<8x8xf32> -> vector<8x8xf32>
    %670 = vector.extract_strided_slice %590 {offsets = [24, 0], sizes = [8, 32], strides = [1, 1]} : vector<32x32xf32> to vector<8x32xf32>
    %cst_262 = arith.constant dense<0.000000e+00> : vector<8x32xf32>
    %671 = tpu.matmul %669, %670, %cst_262 {dimension_numbers = #tpu.dot_dimension_numbers<[1], [0], [0], [1], [0, 0, 1, 1], [], []>} : vector<8x8xf32>, vector<8x32xf32>, vector<8x32xf32> -> vector<8x32xf32>
    %672 = arith.addf %652, %671 : vector<8x32xf32>
    %673 = arith.addf %560, %672 : vector<8x32xf32>
    %674 = vector.extract_strided_slice %423 {offsets = [2, 0], sizes = [1, 32], strides = [1, 1]} : vector<11x32xf32> to vector<1x32xf32>
    %675 = vector.extract_strided_slice %423 {offsets = [3, 0], sizes = [1, 32], strides = [1, 1]} : vector<11x32xf32> to vector<1x32xf32>
    %cst_263 = arith.constant dense<0.000000e+00> : vector<8xf32>
    %676 = vector.multi_reduction <add>, %673, %cst_263 [1] : vector<8x32xf32> to vector<8xf32>
    %677 = vector.shape_cast %676 : vector<8xf32> to vector<8x1xf32>
    %cst_264 = arith.constant 3.200000e+01 : f32
    %678 = vector.broadcast %cst_264 : f32 to vector<8x1xf32>
    %679 = arith.divf %677, %678 : vector<8x1xf32>
    %680 = vector.broadcast %679 : vector<8x1xf32> to vector<8x32xf32>
    %681 = arith.subf %673, %680 : vector<8x32xf32>
    %682 = arith.mulf %681, %681 : vector<8x32xf32>
    %cst_265 = arith.constant dense<0.000000e+00> : vector<8xf32>
    %683 = vector.multi_reduction <add>, %682, %cst_265 [1] : vector<8x32xf32> to vector<8xf32>
    %684 = vector.shape_cast %683 : vector<8xf32> to vector<8x1xf32>
    %cst_266 = arith.constant 3.200000e+01 : f32
    %685 = vector.broadcast %cst_266 : f32 to vector<8x1xf32>
    %686 = arith.divf %684, %685 : vector<8x1xf32>
    %cst_267 = arith.constant 9.99999974E-6 : f32
    %687 = vector.broadcast %cst_267 : f32 to vector<8x1xf32>
    %688 = arith.addf %686, %687 : vector<8x1xf32>
    %689 = math.rsqrt %688 : vector<8x1xf32>
    %690 = vector.broadcast %689 : vector<8x1xf32> to vector<8x32xf32>
    %691 = arith.mulf %681, %690 : vector<8x32xf32>
    %692 = vector.broadcast %674 : vector<1x32xf32> to vector<8x32xf32>
    %693 = arith.mulf %691, %692 : vector<8x32xf32>
    %694 = vector.broadcast %675 : vector<1x32xf32> to vector<8x32xf32>
    %695 = arith.addf %693, %694 : vector<8x32xf32>
    %c2_268 = arith.constant 2 : index
    %c0_269 = arith.constant 0 : index
    %c0_270 = arith.constant 0 : index
    %696 = vector.load %arg6[%c2_268, %c0_269, %c0_270] : memref<6x32x128xf32, #tpu.memory_space<vmem>>, vector<1x32x128xf32>
    %697 = vector.shape_cast %696 : vector<1x32x128xf32> to vector<32x128xf32>
    %cst_271 = arith.constant dense<0.000000e+00> : vector<8x128xf32>
    %698 = tpu.matmul %695, %697, %cst_271 {dimension_numbers = #tpu.dot_dimension_numbers<[1], [0], [0], [1], [0, 0, 1, 1], [], []>} : vector<8x32xf32>, vector<32x128xf32>, vector<8x128xf32> -> vector<8x128xf32>
    %c2_272 = arith.constant 2 : index
    %c0_273 = arith.constant 0 : index
    %c0_274 = arith.constant 0 : index
    %699 = vector.load %arg8[%c2_272, %c0_273, %c0_274] : memref<6x1x128xf32, #tpu.memory_space<vmem>>, vector<1x1x128xf32>
    %700 = vector.shape_cast %699 : vector<1x1x128xf32> to vector<1x128xf32>
    %701 = vector.broadcast %700 : vector<1x128xf32> to vector<8x128xf32>
    %702 = arith.addf %698, %701 : vector<8x128xf32>
    %cst_275 = arith.constant 5.000000e-01 : f32
    %703 = vector.broadcast %cst_275 : f32 to vector<8x128xf32>
    %704 = arith.mulf %703, %702 : vector<8x128xf32>
    %cst_276 = arith.constant 0.707106769 : f32
    %705 = vector.broadcast %cst_276 : f32 to vector<8x128xf32>
    %706 = arith.mulf %702, %705 : vector<8x128xf32>
    %707 = math.erf %706 : vector<8x128xf32>
    %cst_277 = arith.constant 1.000000e+00 : f32
    %708 = vector.broadcast %cst_277 : f32 to vector<8x128xf32>
    %709 = arith.addf %708, %707 : vector<8x128xf32>
    %710 = arith.mulf %704, %709 : vector<8x128xf32>
    %c2_278 = arith.constant 2 : index
    %c0_279 = arith.constant 0 : index
    %c0_280 = arith.constant 0 : index
    %711 = vector.load %arg7[%c2_278, %c0_279, %c0_280] : memref<6x128x32xf32, #tpu.memory_space<vmem>>, vector<1x128x32xf32>
    %712 = vector.shape_cast %711 : vector<1x128x32xf32> to vector<128x32xf32>
    %cst_281 = arith.constant dense<0.000000e+00> : vector<8x32xf32>
    %713 = tpu.matmul %710, %712, %cst_281 {dimension_numbers = #tpu.dot_dimension_numbers<[1], [0], [0], [1], [0, 0, 1, 1], [], []>} : vector<8x128xf32>, vector<128x32xf32>, vector<8x32xf32> -> vector<8x32xf32>
    %714 = vector.extract_strided_slice %423 {offsets = [5, 0], sizes = [1, 32], strides = [1, 1]} : vector<11x32xf32> to vector<1x32xf32>
    %715 = vector.broadcast %714 : vector<1x32xf32> to vector<8x32xf32>
    %716 = arith.addf %713, %715 : vector<8x32xf32>
    %717 = arith.addf %673, %716 : vector<8x32xf32>
    %c3 = arith.constant 3 : index
    %c0_282 = arith.constant 0 : index
    %c0_283 = arith.constant 0 : index
    %718 = vector.load %arg9[%c3, %c0_282, %c0_283] : memref<6x11x32xf32, #tpu.memory_space<vmem>>, vector<1x11x32xf32>
    %719 = vector.shape_cast %718 : vector<1x11x32xf32> to vector<11x32xf32>
    %720 = vector.extract_strided_slice %719 {offsets = [6, 0], sizes = [1, 32], strides = [1, 1]} : vector<11x32xf32> to vector<1x32xf32>
    %721 = vector.extract_strided_slice %719 {offsets = [7, 0], sizes = [1, 32], strides = [1, 1]} : vector<11x32xf32> to vector<1x32xf32>
    %cst_284 = arith.constant dense<0.000000e+00> : vector<8xf32>
    %722 = vector.multi_reduction <add>, %344, %cst_284 [1] : vector<8x32xf32> to vector<8xf32>
    %723 = vector.shape_cast %722 : vector<8xf32> to vector<8x1xf32>
    %cst_285 = arith.constant 3.200000e+01 : f32
    %724 = vector.broadcast %cst_285 : f32 to vector<8x1xf32>
    %725 = arith.divf %723, %724 : vector<8x1xf32>
    %726 = vector.broadcast %725 : vector<8x1xf32> to vector<8x32xf32>
    %727 = arith.subf %344, %726 : vector<8x32xf32>
    %728 = arith.mulf %727, %727 : vector<8x32xf32>
    %cst_286 = arith.constant dense<0.000000e+00> : vector<8xf32>
    %729 = vector.multi_reduction <add>, %728, %cst_286 [1] : vector<8x32xf32> to vector<8xf32>
    %730 = vector.shape_cast %729 : vector<8xf32> to vector<8x1xf32>
    %cst_287 = arith.constant 3.200000e+01 : f32
    %731 = vector.broadcast %cst_287 : f32 to vector<8x1xf32>
    %732 = arith.divf %730, %731 : vector<8x1xf32>
    %cst_288 = arith.constant 9.99999974E-6 : f32
    %733 = vector.broadcast %cst_288 : f32 to vector<8x1xf32>
    %734 = arith.addf %732, %733 : vector<8x1xf32>
    %735 = math.rsqrt %734 : vector<8x1xf32>
    %736 = vector.broadcast %735 : vector<8x1xf32> to vector<8x32xf32>
    %737 = arith.mulf %727, %736 : vector<8x32xf32>
    %738 = vector.broadcast %720 : vector<1x32xf32> to vector<8x32xf32>
    %739 = arith.mulf %737, %738 : vector<8x32xf32>
    %740 = vector.broadcast %721 : vector<1x32xf32> to vector<8x32xf32>
    %741 = arith.addf %739, %740 : vector<8x32xf32>
    %c3_289 = arith.constant 3 : index
    %c0_290 = arith.constant 0 : index
    %c0_291 = arith.constant 0 : index
    %742 = vector.load %arg10[%c3_289, %c0_290, %c0_291] : memref<6x32x32xf32, #tpu.memory_space<vmem>>, vector<1x32x32xf32>
    %743 = vector.shape_cast %742 : vector<1x32x32xf32> to vector<32x32xf32>
    %cst_292 = arith.constant dense<0.000000e+00> : vector<8x32xf32>
    %744 = tpu.matmul %741, %743, %cst_292 {dimension_numbers = #tpu.dot_dimension_numbers<[1], [0], [0], [1], [0, 0, 1, 1], [], []>} : vector<8x32xf32>, vector<32x32xf32>, vector<8x32xf32> -> vector<8x32xf32>
    %745 = vector.extract_strided_slice %719 {offsets = [8, 0], sizes = [1, 32], strides = [1, 1]} : vector<11x32xf32> to vector<1x32xf32>
    %746 = vector.extract_strided_slice %719 {offsets = [9, 0], sizes = [1, 32], strides = [1, 1]} : vector<11x32xf32> to vector<1x32xf32>
    %cst_293 = arith.constant dense<0.000000e+00> : vector<8xf32>
    %747 = vector.multi_reduction <add>, %717, %cst_293 [1] : vector<8x32xf32> to vector<8xf32>
    %748 = vector.shape_cast %747 : vector<8xf32> to vector<8x1xf32>
    %cst_294 = arith.constant 3.200000e+01 : f32
    %749 = vector.broadcast %cst_294 : f32 to vector<8x1xf32>
    %750 = arith.divf %748, %749 : vector<8x1xf32>
    %751 = vector.broadcast %750 : vector<8x1xf32> to vector<8x32xf32>
    %752 = arith.subf %717, %751 : vector<8x32xf32>
    %753 = arith.mulf %752, %752 : vector<8x32xf32>
    %cst_295 = arith.constant dense<0.000000e+00> : vector<8xf32>
    %754 = vector.multi_reduction <add>, %753, %cst_295 [1] : vector<8x32xf32> to vector<8xf32>
    %755 = vector.shape_cast %754 : vector<8xf32> to vector<8x1xf32>
    %cst_296 = arith.constant 3.200000e+01 : f32
    %756 = vector.broadcast %cst_296 : f32 to vector<8x1xf32>
    %757 = arith.divf %755, %756 : vector<8x1xf32>
    %cst_297 = arith.constant 9.99999974E-6 : f32
    %758 = vector.broadcast %cst_297 : f32 to vector<8x1xf32>
    %759 = arith.addf %757, %758 : vector<8x1xf32>
    %760 = math.rsqrt %759 : vector<8x1xf32>
    %761 = vector.broadcast %760 : vector<8x1xf32> to vector<8x32xf32>
    %762 = arith.mulf %752, %761 : vector<8x32xf32>
    %763 = vector.broadcast %745 : vector<1x32xf32> to vector<8x32xf32>
    %764 = arith.mulf %762, %763 : vector<8x32xf32>
    %765 = vector.broadcast %746 : vector<1x32xf32> to vector<8x32xf32>
    %766 = arith.addf %764, %765 : vector<8x32xf32>
    %c3_298 = arith.constant 3 : index
    %c0_299 = arith.constant 0 : index
    %c0_300 = arith.constant 0 : index
    %767 = vector.load %arg11[%c3_298, %c0_299, %c0_300] : memref<6x32x64xf32, #tpu.memory_space<vmem>>, vector<1x32x64xf32>
    %768 = vector.shape_cast %767 : vector<1x32x64xf32> to vector<32x64xf32>
    %cst_301 = arith.constant dense<0.000000e+00> : vector<8x64xf32>
    %769 = tpu.matmul %766, %768, %cst_301 {dimension_numbers = #tpu.dot_dimension_numbers<[1], [0], [0], [1], [0, 0, 1, 1], [], []>} : vector<8x32xf32>, vector<32x64xf32>, vector<8x64xf32> -> vector<8x64xf32>
    %770 = vector.extract_strided_slice %769 {offsets = [0, 0], sizes = [8, 32], strides = [1, 1]} : vector<8x64xf32> to vector<8x32xf32>
    %771 = vector.extract_strided_slice %769 {offsets = [0, 32], sizes = [8, 32], strides = [1, 1]} : vector<8x64xf32> to vector<8x32xf32>
    %c3_302 = arith.constant 3 : index
    %c0_303 = arith.constant 0 : index
    %c0_304 = arith.constant 0 : index
    %772 = vector.load %arg12[%c3_302, %c0_303, %c0_304] : memref<6x32x32xf32, #tpu.memory_space<vmem>>, vector<1x32x32xf32>
    %773 = vector.shape_cast %772 : vector<1x32x32xf32> to vector<32x32xf32>
    %774 = vector.extract_strided_slice %719 {offsets = [10, 0], sizes = [1, 32], strides = [1, 1]} : vector<11x32xf32> to vector<1x32xf32>
    %775 = vector.extract_strided_slice %744 {offsets = [0, 0], sizes = [8, 8], strides = [1, 1]} : vector<8x32xf32> to vector<8x8xf32>
    %cst_305 = arith.constant 0.353553385 : f32
    %776 = vector.broadcast %cst_305 : f32 to vector<8x8xf32>
    %777 = arith.mulf %775, %776 : vector<8x8xf32>
    %778 = vector.extract_strided_slice %770 {offsets = [0, 0], sizes = [8, 8], strides = [1, 1]} : vector<8x32xf32> to vector<8x8xf32>
    %779 = vector.extract_strided_slice %771 {offsets = [0, 0], sizes = [8, 8], strides = [1, 1]} : vector<8x32xf32> to vector<8x8xf32>
    %cst_306 = arith.constant dense<0.000000e+00> : vector<8x8xf32>
    %780 = tpu.matmul %777, %778, %cst_306 {dimension_numbers = #tpu.dot_dimension_numbers<[1], [1], [0], [0], [0, 0, 1, 0], [], []>} : vector<8x8xf32>, vector<8x8xf32>, vector<8x8xf32> -> vector<8x8xf32>
    %cst_307 = arith.constant dense<0xFF800000> : vector<8xf32>
    %781 = vector.multi_reduction <maximumf>, %780, %cst_307 [1] : vector<8x8xf32> to vector<8xf32>
    %782 = vector.shape_cast %781 : vector<8xf32> to vector<8x1xf32>
    %783 = vector.broadcast %782 : vector<8x1xf32> to vector<8x8xf32>
    %784 = arith.subf %780, %783 : vector<8x8xf32>
    %785 = math.exp %784 : vector<8x8xf32>
    %cst_308 = arith.constant dense<0.000000e+00> : vector<8xf32>
    %786 = vector.multi_reduction <add>, %785, %cst_308 [1] : vector<8x8xf32> to vector<8xf32>
    %787 = vector.shape_cast %786 : vector<8xf32> to vector<8x1xf32>
    %788 = tpu.reciprocal %787 {approx = true} : vector<8x1xf32> -> vector<8x1xf32>
    %789 = vector.broadcast %788 : vector<8x1xf32> to vector<8x8xf32>
    %790 = arith.mulf %785, %789 : vector<8x8xf32>
    %cst_309 = arith.constant dense<0.000000e+00> : vector<8x8xf32>
    %791 = tpu.matmul %790, %779, %cst_309 {dimension_numbers = #tpu.dot_dimension_numbers<[1], [0], [0], [1], [0, 0, 1, 1], [], []>} : vector<8x8xf32>, vector<8x8xf32>, vector<8x8xf32> -> vector<8x8xf32>
    %792 = vector.extract_strided_slice %773 {offsets = [0, 0], sizes = [8, 32], strides = [1, 1]} : vector<32x32xf32> to vector<8x32xf32>
    %cst_310 = arith.constant dense<0.000000e+00> : vector<8x32xf32>
    %793 = tpu.matmul %791, %792, %cst_310 {dimension_numbers = #tpu.dot_dimension_numbers<[1], [0], [0], [1], [0, 0, 1, 1], [], []>} : vector<8x8xf32>, vector<8x32xf32>, vector<8x32xf32> -> vector<8x32xf32>
    %794 = vector.broadcast %774 : vector<1x32xf32> to vector<8x32xf32>
    %795 = arith.addf %794, %793 : vector<8x32xf32>
    %796 = vector.extract_strided_slice %744 {offsets = [0, 8], sizes = [8, 8], strides = [1, 1]} : vector<8x32xf32> to vector<8x8xf32>
    %cst_311 = arith.constant 0.353553385 : f32
    %797 = vector.broadcast %cst_311 : f32 to vector<8x8xf32>
    %798 = arith.mulf %796, %797 : vector<8x8xf32>
    %799 = vector.extract_strided_slice %770 {offsets = [0, 8], sizes = [8, 8], strides = [1, 1]} : vector<8x32xf32> to vector<8x8xf32>
    %800 = vector.extract_strided_slice %771 {offsets = [0, 8], sizes = [8, 8], strides = [1, 1]} : vector<8x32xf32> to vector<8x8xf32>
    %cst_312 = arith.constant dense<0.000000e+00> : vector<8x8xf32>
    %801 = tpu.matmul %798, %799, %cst_312 {dimension_numbers = #tpu.dot_dimension_numbers<[1], [1], [0], [0], [0, 0, 1, 0], [], []>} : vector<8x8xf32>, vector<8x8xf32>, vector<8x8xf32> -> vector<8x8xf32>
    %cst_313 = arith.constant dense<0xFF800000> : vector<8xf32>
    %802 = vector.multi_reduction <maximumf>, %801, %cst_313 [1] : vector<8x8xf32> to vector<8xf32>
    %803 = vector.shape_cast %802 : vector<8xf32> to vector<8x1xf32>
    %804 = vector.broadcast %803 : vector<8x1xf32> to vector<8x8xf32>
    %805 = arith.subf %801, %804 : vector<8x8xf32>
    %806 = math.exp %805 : vector<8x8xf32>
    %cst_314 = arith.constant dense<0.000000e+00> : vector<8xf32>
    %807 = vector.multi_reduction <add>, %806, %cst_314 [1] : vector<8x8xf32> to vector<8xf32>
    %808 = vector.shape_cast %807 : vector<8xf32> to vector<8x1xf32>
    %809 = tpu.reciprocal %808 {approx = true} : vector<8x1xf32> -> vector<8x1xf32>
    %810 = vector.broadcast %809 : vector<8x1xf32> to vector<8x8xf32>
    %811 = arith.mulf %806, %810 : vector<8x8xf32>
    %cst_315 = arith.constant dense<0.000000e+00> : vector<8x8xf32>
    %812 = tpu.matmul %811, %800, %cst_315 {dimension_numbers = #tpu.dot_dimension_numbers<[1], [0], [0], [1], [0, 0, 1, 1], [], []>} : vector<8x8xf32>, vector<8x8xf32>, vector<8x8xf32> -> vector<8x8xf32>
    %813 = vector.extract_strided_slice %773 {offsets = [8, 0], sizes = [8, 32], strides = [1, 1]} : vector<32x32xf32> to vector<8x32xf32>
    %cst_316 = arith.constant dense<0.000000e+00> : vector<8x32xf32>
    %814 = tpu.matmul %812, %813, %cst_316 {dimension_numbers = #tpu.dot_dimension_numbers<[1], [0], [0], [1], [0, 0, 1, 1], [], []>} : vector<8x8xf32>, vector<8x32xf32>, vector<8x32xf32> -> vector<8x32xf32>
    %815 = arith.addf %795, %814 : vector<8x32xf32>
    %816 = vector.extract_strided_slice %744 {offsets = [0, 16], sizes = [8, 8], strides = [1, 1]} : vector<8x32xf32> to vector<8x8xf32>
    %cst_317 = arith.constant 0.353553385 : f32
    %817 = vector.broadcast %cst_317 : f32 to vector<8x8xf32>
    %818 = arith.mulf %816, %817 : vector<8x8xf32>
    %819 = vector.extract_strided_slice %770 {offsets = [0, 16], sizes = [8, 8], strides = [1, 1]} : vector<8x32xf32> to vector<8x8xf32>
    %820 = vector.extract_strided_slice %771 {offsets = [0, 16], sizes = [8, 8], strides = [1, 1]} : vector<8x32xf32> to vector<8x8xf32>
    %cst_318 = arith.constant dense<0.000000e+00> : vector<8x8xf32>
    %821 = tpu.matmul %818, %819, %cst_318 {dimension_numbers = #tpu.dot_dimension_numbers<[1], [1], [0], [0], [0, 0, 1, 0], [], []>} : vector<8x8xf32>, vector<8x8xf32>, vector<8x8xf32> -> vector<8x8xf32>
    %cst_319 = arith.constant dense<0xFF800000> : vector<8xf32>
    %822 = vector.multi_reduction <maximumf>, %821, %cst_319 [1] : vector<8x8xf32> to vector<8xf32>
    %823 = vector.shape_cast %822 : vector<8xf32> to vector<8x1xf32>
    %824 = vector.broadcast %823 : vector<8x1xf32> to vector<8x8xf32>
    %825 = arith.subf %821, %824 : vector<8x8xf32>
    %826 = math.exp %825 : vector<8x8xf32>
    %cst_320 = arith.constant dense<0.000000e+00> : vector<8xf32>
    %827 = vector.multi_reduction <add>, %826, %cst_320 [1] : vector<8x8xf32> to vector<8xf32>
    %828 = vector.shape_cast %827 : vector<8xf32> to vector<8x1xf32>
    %829 = tpu.reciprocal %828 {approx = true} : vector<8x1xf32> -> vector<8x1xf32>
    %830 = vector.broadcast %829 : vector<8x1xf32> to vector<8x8xf32>
    %831 = arith.mulf %826, %830 : vector<8x8xf32>
    %cst_321 = arith.constant dense<0.000000e+00> : vector<8x8xf32>
    %832 = tpu.matmul %831, %820, %cst_321 {dimension_numbers = #tpu.dot_dimension_numbers<[1], [0], [0], [1], [0, 0, 1, 1], [], []>} : vector<8x8xf32>, vector<8x8xf32>, vector<8x8xf32> -> vector<8x8xf32>
    %833 = vector.extract_strided_slice %773 {offsets = [16, 0], sizes = [8, 32], strides = [1, 1]} : vector<32x32xf32> to vector<8x32xf32>
    %cst_322 = arith.constant dense<0.000000e+00> : vector<8x32xf32>
    %834 = tpu.matmul %832, %833, %cst_322 {dimension_numbers = #tpu.dot_dimension_numbers<[1], [0], [0], [1], [0, 0, 1, 1], [], []>} : vector<8x8xf32>, vector<8x32xf32>, vector<8x32xf32> -> vector<8x32xf32>
    %835 = arith.addf %815, %834 : vector<8x32xf32>
    %836 = vector.extract_strided_slice %744 {offsets = [0, 24], sizes = [8, 8], strides = [1, 1]} : vector<8x32xf32> to vector<8x8xf32>
    %cst_323 = arith.constant 0.353553385 : f32
    %837 = vector.broadcast %cst_323 : f32 to vector<8x8xf32>
    %838 = arith.mulf %836, %837 : vector<8x8xf32>
    %839 = vector.extract_strided_slice %770 {offsets = [0, 24], sizes = [8, 8], strides = [1, 1]} : vector<8x32xf32> to vector<8x8xf32>
    %840 = vector.extract_strided_slice %771 {offsets = [0, 24], sizes = [8, 8], strides = [1, 1]} : vector<8x32xf32> to vector<8x8xf32>
    %cst_324 = arith.constant dense<0.000000e+00> : vector<8x8xf32>
    %841 = tpu.matmul %838, %839, %cst_324 {dimension_numbers = #tpu.dot_dimension_numbers<[1], [1], [0], [0], [0, 0, 1, 0], [], []>} : vector<8x8xf32>, vector<8x8xf32>, vector<8x8xf32> -> vector<8x8xf32>
    %cst_325 = arith.constant dense<0xFF800000> : vector<8xf32>
    %842 = vector.multi_reduction <maximumf>, %841, %cst_325 [1] : vector<8x8xf32> to vector<8xf32>
    %843 = vector.shape_cast %842 : vector<8xf32> to vector<8x1xf32>
    %844 = vector.broadcast %843 : vector<8x1xf32> to vector<8x8xf32>
    %845 = arith.subf %841, %844 : vector<8x8xf32>
    %846 = math.exp %845 : vector<8x8xf32>
    %cst_326 = arith.constant dense<0.000000e+00> : vector<8xf32>
    %847 = vector.multi_reduction <add>, %846, %cst_326 [1] : vector<8x8xf32> to vector<8xf32>
    %848 = vector.shape_cast %847 : vector<8xf32> to vector<8x1xf32>
    %849 = tpu.reciprocal %848 {approx = true} : vector<8x1xf32> -> vector<8x1xf32>
    %850 = vector.broadcast %849 : vector<8x1xf32> to vector<8x8xf32>
    %851 = arith.mulf %846, %850 : vector<8x8xf32>
    %cst_327 = arith.constant dense<0.000000e+00> : vector<8x8xf32>
    %852 = tpu.matmul %851, %840, %cst_327 {dimension_numbers = #tpu.dot_dimension_numbers<[1], [0], [0], [1], [0, 0, 1, 1], [], []>} : vector<8x8xf32>, vector<8x8xf32>, vector<8x8xf32> -> vector<8x8xf32>
    %853 = vector.extract_strided_slice %773 {offsets = [24, 0], sizes = [8, 32], strides = [1, 1]} : vector<32x32xf32> to vector<8x32xf32>
    %cst_328 = arith.constant dense<0.000000e+00> : vector<8x32xf32>
    %854 = tpu.matmul %852, %853, %cst_328 {dimension_numbers = #tpu.dot_dimension_numbers<[1], [0], [0], [1], [0, 0, 1, 1], [], []>} : vector<8x8xf32>, vector<8x32xf32>, vector<8x32xf32> -> vector<8x32xf32>
    %855 = arith.addf %835, %854 : vector<8x32xf32>
    %856 = arith.addf %344, %855 : vector<8x32xf32>
    %857 = vector.extract_strided_slice %719 {offsets = [0, 0], sizes = [1, 32], strides = [1, 1]} : vector<11x32xf32> to vector<1x32xf32>
    %858 = vector.extract_strided_slice %719 {offsets = [1, 0], sizes = [1, 32], strides = [1, 1]} : vector<11x32xf32> to vector<1x32xf32>
    %cst_329 = arith.constant dense<0.000000e+00> : vector<8xf32>
    %859 = vector.multi_reduction <add>, %856, %cst_329 [1] : vector<8x32xf32> to vector<8xf32>
    %860 = vector.shape_cast %859 : vector<8xf32> to vector<8x1xf32>
    %cst_330 = arith.constant 3.200000e+01 : f32
    %861 = vector.broadcast %cst_330 : f32 to vector<8x1xf32>
    %862 = arith.divf %860, %861 : vector<8x1xf32>
    %863 = vector.broadcast %862 : vector<8x1xf32> to vector<8x32xf32>
    %864 = arith.subf %856, %863 : vector<8x32xf32>
    %865 = arith.mulf %864, %864 : vector<8x32xf32>
    %cst_331 = arith.constant dense<0.000000e+00> : vector<8xf32>
    %866 = vector.multi_reduction <add>, %865, %cst_331 [1] : vector<8x32xf32> to vector<8xf32>
    %867 = vector.shape_cast %866 : vector<8xf32> to vector<8x1xf32>
    %cst_332 = arith.constant 3.200000e+01 : f32
    %868 = vector.broadcast %cst_332 : f32 to vector<8x1xf32>
    %869 = arith.divf %867, %868 : vector<8x1xf32>
    %cst_333 = arith.constant 9.99999974E-6 : f32
    %870 = vector.broadcast %cst_333 : f32 to vector<8x1xf32>
    %871 = arith.addf %869, %870 : vector<8x1xf32>
    %872 = math.rsqrt %871 : vector<8x1xf32>
    %873 = vector.broadcast %872 : vector<8x1xf32> to vector<8x32xf32>
    %874 = arith.mulf %864, %873 : vector<8x32xf32>
    %875 = vector.broadcast %857 : vector<1x32xf32> to vector<8x32xf32>
    %876 = arith.mulf %874, %875 : vector<8x32xf32>
    %877 = vector.broadcast %858 : vector<1x32xf32> to vector<8x32xf32>
    %878 = arith.addf %876, %877 : vector<8x32xf32>
    %c3_334 = arith.constant 3 : index
    %c0_335 = arith.constant 0 : index
    %c0_336 = arith.constant 0 : index
    %879 = vector.load %arg4[%c3_334, %c0_335, %c0_336] : memref<6x32x96xf32, #tpu.memory_space<vmem>>, vector<1x32x96xf32>
    %880 = vector.shape_cast %879 : vector<1x32x96xf32> to vector<32x96xf32>
    %cst_337 = arith.constant dense<0.000000e+00> : vector<8x96xf32>
    %881 = tpu.matmul %878, %880, %cst_337 {dimension_numbers = #tpu.dot_dimension_numbers<[1], [0], [0], [1], [0, 0, 1, 1], [], []>} : vector<8x32xf32>, vector<32x96xf32>, vector<8x96xf32> -> vector<8x96xf32>
    %882 = vector.extract_strided_slice %881 {offsets = [0, 0], sizes = [8, 32], strides = [1, 1]} : vector<8x96xf32> to vector<8x32xf32>
    %883 = vector.extract_strided_slice %881 {offsets = [0, 32], sizes = [8, 32], strides = [1, 1]} : vector<8x96xf32> to vector<8x32xf32>
    %884 = vector.extract_strided_slice %881 {offsets = [0, 64], sizes = [8, 32], strides = [1, 1]} : vector<8x96xf32> to vector<8x32xf32>
    %c3_338 = arith.constant 3 : index
    %c0_339 = arith.constant 0 : index
    %c0_340 = arith.constant 0 : index
    %885 = vector.load %arg5[%c3_338, %c0_339, %c0_340] : memref<6x32x32xf32, #tpu.memory_space<vmem>>, vector<1x32x32xf32>
    %886 = vector.shape_cast %885 : vector<1x32x32xf32> to vector<32x32xf32>
    %887 = vector.extract_strided_slice %719 {offsets = [4, 0], sizes = [1, 32], strides = [1, 1]} : vector<11x32xf32> to vector<1x32xf32>
    %888 = vector.extract_strided_slice %882 {offsets = [0, 0], sizes = [8, 8], strides = [1, 1]} : vector<8x32xf32> to vector<8x8xf32>
    %cst_341 = arith.constant 0.353553385 : f32
    %889 = vector.broadcast %cst_341 : f32 to vector<8x8xf32>
    %890 = arith.mulf %888, %889 : vector<8x8xf32>
    %891 = vector.extract_strided_slice %883 {offsets = [0, 0], sizes = [8, 8], strides = [1, 1]} : vector<8x32xf32> to vector<8x8xf32>
    %892 = vector.extract_strided_slice %884 {offsets = [0, 0], sizes = [8, 8], strides = [1, 1]} : vector<8x32xf32> to vector<8x8xf32>
    %cst_342 = arith.constant dense<0.000000e+00> : vector<8x8xf32>
    %893 = tpu.matmul %890, %891, %cst_342 {dimension_numbers = #tpu.dot_dimension_numbers<[1], [1], [0], [0], [0, 0, 1, 0], [], []>} : vector<8x8xf32>, vector<8x8xf32>, vector<8x8xf32> -> vector<8x8xf32>
    %cst_343 = arith.constant dense<0xFF800000> : vector<8xf32>
    %894 = vector.multi_reduction <maximumf>, %893, %cst_343 [1] : vector<8x8xf32> to vector<8xf32>
    %895 = vector.shape_cast %894 : vector<8xf32> to vector<8x1xf32>
    %896 = vector.broadcast %895 : vector<8x1xf32> to vector<8x8xf32>
    %897 = arith.subf %893, %896 : vector<8x8xf32>
    %898 = math.exp %897 : vector<8x8xf32>
    %cst_344 = arith.constant dense<0.000000e+00> : vector<8xf32>
    %899 = vector.multi_reduction <add>, %898, %cst_344 [1] : vector<8x8xf32> to vector<8xf32>
    %900 = vector.shape_cast %899 : vector<8xf32> to vector<8x1xf32>
    %901 = tpu.reciprocal %900 {approx = true} : vector<8x1xf32> -> vector<8x1xf32>
    %902 = vector.broadcast %901 : vector<8x1xf32> to vector<8x8xf32>
    %903 = arith.mulf %898, %902 : vector<8x8xf32>
    %cst_345 = arith.constant dense<0.000000e+00> : vector<8x8xf32>
    %904 = tpu.matmul %903, %892, %cst_345 {dimension_numbers = #tpu.dot_dimension_numbers<[1], [0], [0], [1], [0, 0, 1, 1], [], []>} : vector<8x8xf32>, vector<8x8xf32>, vector<8x8xf32> -> vector<8x8xf32>
    %905 = vector.extract_strided_slice %886 {offsets = [0, 0], sizes = [8, 32], strides = [1, 1]} : vector<32x32xf32> to vector<8x32xf32>
    %cst_346 = arith.constant dense<0.000000e+00> : vector<8x32xf32>
    %906 = tpu.matmul %904, %905, %cst_346 {dimension_numbers = #tpu.dot_dimension_numbers<[1], [0], [0], [1], [0, 0, 1, 1], [], []>} : vector<8x8xf32>, vector<8x32xf32>, vector<8x32xf32> -> vector<8x32xf32>
    %907 = vector.broadcast %887 : vector<1x32xf32> to vector<8x32xf32>
    %908 = arith.addf %907, %906 : vector<8x32xf32>
    %909 = vector.extract_strided_slice %882 {offsets = [0, 8], sizes = [8, 8], strides = [1, 1]} : vector<8x32xf32> to vector<8x8xf32>
    %cst_347 = arith.constant 0.353553385 : f32
    %910 = vector.broadcast %cst_347 : f32 to vector<8x8xf32>
    %911 = arith.mulf %909, %910 : vector<8x8xf32>
    %912 = vector.extract_strided_slice %883 {offsets = [0, 8], sizes = [8, 8], strides = [1, 1]} : vector<8x32xf32> to vector<8x8xf32>
    %913 = vector.extract_strided_slice %884 {offsets = [0, 8], sizes = [8, 8], strides = [1, 1]} : vector<8x32xf32> to vector<8x8xf32>
    %cst_348 = arith.constant dense<0.000000e+00> : vector<8x8xf32>
    %914 = tpu.matmul %911, %912, %cst_348 {dimension_numbers = #tpu.dot_dimension_numbers<[1], [1], [0], [0], [0, 0, 1, 0], [], []>} : vector<8x8xf32>, vector<8x8xf32>, vector<8x8xf32> -> vector<8x8xf32>
    %cst_349 = arith.constant dense<0xFF800000> : vector<8xf32>
    %915 = vector.multi_reduction <maximumf>, %914, %cst_349 [1] : vector<8x8xf32> to vector<8xf32>
    %916 = vector.shape_cast %915 : vector<8xf32> to vector<8x1xf32>
    %917 = vector.broadcast %916 : vector<8x1xf32> to vector<8x8xf32>
    %918 = arith.subf %914, %917 : vector<8x8xf32>
    %919 = math.exp %918 : vector<8x8xf32>
    %cst_350 = arith.constant dense<0.000000e+00> : vector<8xf32>
    %920 = vector.multi_reduction <add>, %919, %cst_350 [1] : vector<8x8xf32> to vector<8xf32>
    %921 = vector.shape_cast %920 : vector<8xf32> to vector<8x1xf32>
    %922 = tpu.reciprocal %921 {approx = true} : vector<8x1xf32> -> vector<8x1xf32>
    %923 = vector.broadcast %922 : vector<8x1xf32> to vector<8x8xf32>
    %924 = arith.mulf %919, %923 : vector<8x8xf32>
    %cst_351 = arith.constant dense<0.000000e+00> : vector<8x8xf32>
    %925 = tpu.matmul %924, %913, %cst_351 {dimension_numbers = #tpu.dot_dimension_numbers<[1], [0], [0], [1], [0, 0, 1, 1], [], []>} : vector<8x8xf32>, vector<8x8xf32>, vector<8x8xf32> -> vector<8x8xf32>
    %926 = vector.extract_strided_slice %886 {offsets = [8, 0], sizes = [8, 32], strides = [1, 1]} : vector<32x32xf32> to vector<8x32xf32>
    %cst_352 = arith.constant dense<0.000000e+00> : vector<8x32xf32>
    %927 = tpu.matmul %925, %926, %cst_352 {dimension_numbers = #tpu.dot_dimension_numbers<[1], [0], [0], [1], [0, 0, 1, 1], [], []>} : vector<8x8xf32>, vector<8x32xf32>, vector<8x32xf32> -> vector<8x32xf32>
    %928 = arith.addf %908, %927 : vector<8x32xf32>
    %929 = vector.extract_strided_slice %882 {offsets = [0, 16], sizes = [8, 8], strides = [1, 1]} : vector<8x32xf32> to vector<8x8xf32>
    %cst_353 = arith.constant 0.353553385 : f32
    %930 = vector.broadcast %cst_353 : f32 to vector<8x8xf32>
    %931 = arith.mulf %929, %930 : vector<8x8xf32>
    %932 = vector.extract_strided_slice %883 {offsets = [0, 16], sizes = [8, 8], strides = [1, 1]} : vector<8x32xf32> to vector<8x8xf32>
    %933 = vector.extract_strided_slice %884 {offsets = [0, 16], sizes = [8, 8], strides = [1, 1]} : vector<8x32xf32> to vector<8x8xf32>
    %cst_354 = arith.constant dense<0.000000e+00> : vector<8x8xf32>
    %934 = tpu.matmul %931, %932, %cst_354 {dimension_numbers = #tpu.dot_dimension_numbers<[1], [1], [0], [0], [0, 0, 1, 0], [], []>} : vector<8x8xf32>, vector<8x8xf32>, vector<8x8xf32> -> vector<8x8xf32>
    %cst_355 = arith.constant dense<0xFF800000> : vector<8xf32>
    %935 = vector.multi_reduction <maximumf>, %934, %cst_355 [1] : vector<8x8xf32> to vector<8xf32>
    %936 = vector.shape_cast %935 : vector<8xf32> to vector<8x1xf32>
    %937 = vector.broadcast %936 : vector<8x1xf32> to vector<8x8xf32>
    %938 = arith.subf %934, %937 : vector<8x8xf32>
    %939 = math.exp %938 : vector<8x8xf32>
    %cst_356 = arith.constant dense<0.000000e+00> : vector<8xf32>
    %940 = vector.multi_reduction <add>, %939, %cst_356 [1] : vector<8x8xf32> to vector<8xf32>
    %941 = vector.shape_cast %940 : vector<8xf32> to vector<8x1xf32>
    %942 = tpu.reciprocal %941 {approx = true} : vector<8x1xf32> -> vector<8x1xf32>
    %943 = vector.broadcast %942 : vector<8x1xf32> to vector<8x8xf32>
    %944 = arith.mulf %939, %943 : vector<8x8xf32>
    %cst_357 = arith.constant dense<0.000000e+00> : vector<8x8xf32>
    %945 = tpu.matmul %944, %933, %cst_357 {dimension_numbers = #tpu.dot_dimension_numbers<[1], [0], [0], [1], [0, 0, 1, 1], [], []>} : vector<8x8xf32>, vector<8x8xf32>, vector<8x8xf32> -> vector<8x8xf32>
    %946 = vector.extract_strided_slice %886 {offsets = [16, 0], sizes = [8, 32], strides = [1, 1]} : vector<32x32xf32> to vector<8x32xf32>
    %cst_358 = arith.constant dense<0.000000e+00> : vector<8x32xf32>
    %947 = tpu.matmul %945, %946, %cst_358 {dimension_numbers = #tpu.dot_dimension_numbers<[1], [0], [0], [1], [0, 0, 1, 1], [], []>} : vector<8x8xf32>, vector<8x32xf32>, vector<8x32xf32> -> vector<8x32xf32>
    %948 = arith.addf %928, %947 : vector<8x32xf32>
    %949 = vector.extract_strided_slice %882 {offsets = [0, 24], sizes = [8, 8], strides = [1, 1]} : vector<8x32xf32> to vector<8x8xf32>
    %cst_359 = arith.constant 0.353553385 : f32
    %950 = vector.broadcast %cst_359 : f32 to vector<8x8xf32>
    %951 = arith.mulf %949, %950 : vector<8x8xf32>
    %952 = vector.extract_strided_slice %883 {offsets = [0, 24], sizes = [8, 8], strides = [1, 1]} : vector<8x32xf32> to vector<8x8xf32>
    %953 = vector.extract_strided_slice %884 {offsets = [0, 24], sizes = [8, 8], strides = [1, 1]} : vector<8x32xf32> to vector<8x8xf32>
    %cst_360 = arith.constant dense<0.000000e+00> : vector<8x8xf32>
    %954 = tpu.matmul %951, %952, %cst_360 {dimension_numbers = #tpu.dot_dimension_numbers<[1], [1], [0], [0], [0, 0, 1, 0], [], []>} : vector<8x8xf32>, vector<8x8xf32>, vector<8x8xf32> -> vector<8x8xf32>
    %cst_361 = arith.constant dense<0xFF800000> : vector<8xf32>
    %955 = vector.multi_reduction <maximumf>, %954, %cst_361 [1] : vector<8x8xf32> to vector<8xf32>
    %956 = vector.shape_cast %955 : vector<8xf32> to vector<8x1xf32>
    %957 = vector.broadcast %956 : vector<8x1xf32> to vector<8x8xf32>
    %958 = arith.subf %954, %957 : vector<8x8xf32>
    %959 = math.exp %958 : vector<8x8xf32>
    %cst_362 = arith.constant dense<0.000000e+00> : vector<8xf32>
    %960 = vector.multi_reduction <add>, %959, %cst_362 [1] : vector<8x8xf32> to vector<8xf32>
    %961 = vector.shape_cast %960 : vector<8xf32> to vector<8x1xf32>
    %962 = tpu.reciprocal %961 {approx = true} : vector<8x1xf32> -> vector<8x1xf32>
    %963 = vector.broadcast %962 : vector<8x1xf32> to vector<8x8xf32>
    %964 = arith.mulf %959, %963 : vector<8x8xf32>
    %cst_363 = arith.constant dense<0.000000e+00> : vector<8x8xf32>
    %965 = tpu.matmul %964, %953, %cst_363 {dimension_numbers = #tpu.dot_dimension_numbers<[1], [0], [0], [1], [0, 0, 1, 1], [], []>} : vector<8x8xf32>, vector<8x8xf32>, vector<8x8xf32> -> vector<8x8xf32>
    %966 = vector.extract_strided_slice %886 {offsets = [24, 0], sizes = [8, 32], strides = [1, 1]} : vector<32x32xf32> to vector<8x32xf32>
    %cst_364 = arith.constant dense<0.000000e+00> : vector<8x32xf32>
    %967 = tpu.matmul %965, %966, %cst_364 {dimension_numbers = #tpu.dot_dimension_numbers<[1], [0], [0], [1], [0, 0, 1, 1], [], []>} : vector<8x8xf32>, vector<8x32xf32>, vector<8x32xf32> -> vector<8x32xf32>
    %968 = arith.addf %948, %967 : vector<8x32xf32>
    %969 = arith.addf %856, %968 : vector<8x32xf32>
    %970 = vector.extract_strided_slice %719 {offsets = [2, 0], sizes = [1, 32], strides = [1, 1]} : vector<11x32xf32> to vector<1x32xf32>
    %971 = vector.extract_strided_slice %719 {offsets = [3, 0], sizes = [1, 32], strides = [1, 1]} : vector<11x32xf32> to vector<1x32xf32>
    %cst_365 = arith.constant dense<0.000000e+00> : vector<8xf32>
    %972 = vector.multi_reduction <add>, %969, %cst_365 [1] : vector<8x32xf32> to vector<8xf32>
    %973 = vector.shape_cast %972 : vector<8xf32> to vector<8x1xf32>
    %cst_366 = arith.constant 3.200000e+01 : f32
    %974 = vector.broadcast %cst_366 : f32 to vector<8x1xf32>
    %975 = arith.divf %973, %974 : vector<8x1xf32>
    %976 = vector.broadcast %975 : vector<8x1xf32> to vector<8x32xf32>
    %977 = arith.subf %969, %976 : vector<8x32xf32>
    %978 = arith.mulf %977, %977 : vector<8x32xf32>
    %cst_367 = arith.constant dense<0.000000e+00> : vector<8xf32>
    %979 = vector.multi_reduction <add>, %978, %cst_367 [1] : vector<8x32xf32> to vector<8xf32>
    %980 = vector.shape_cast %979 : vector<8xf32> to vector<8x1xf32>
    %cst_368 = arith.constant 3.200000e+01 : f32
    %981 = vector.broadcast %cst_368 : f32 to vector<8x1xf32>
    %982 = arith.divf %980, %981 : vector<8x1xf32>
    %cst_369 = arith.constant 9.99999974E-6 : f32
    %983 = vector.broadcast %cst_369 : f32 to vector<8x1xf32>
    %984 = arith.addf %982, %983 : vector<8x1xf32>
    %985 = math.rsqrt %984 : vector<8x1xf32>
    %986 = vector.broadcast %985 : vector<8x1xf32> to vector<8x32xf32>
    %987 = arith.mulf %977, %986 : vector<8x32xf32>
    %988 = vector.broadcast %970 : vector<1x32xf32> to vector<8x32xf32>
    %989 = arith.mulf %987, %988 : vector<8x32xf32>
    %990 = vector.broadcast %971 : vector<1x32xf32> to vector<8x32xf32>
    %991 = arith.addf %989, %990 : vector<8x32xf32>
    %c3_370 = arith.constant 3 : index
    %c0_371 = arith.constant 0 : index
    %c0_372 = arith.constant 0 : index
    %992 = vector.load %arg6[%c3_370, %c0_371, %c0_372] : memref<6x32x128xf32, #tpu.memory_space<vmem>>, vector<1x32x128xf32>
    %993 = vector.shape_cast %992 : vector<1x32x128xf32> to vector<32x128xf32>
    %cst_373 = arith.constant dense<0.000000e+00> : vector<8x128xf32>
    %994 = tpu.matmul %991, %993, %cst_373 {dimension_numbers = #tpu.dot_dimension_numbers<[1], [0], [0], [1], [0, 0, 1, 1], [], []>} : vector<8x32xf32>, vector<32x128xf32>, vector<8x128xf32> -> vector<8x128xf32>
    %c3_374 = arith.constant 3 : index
    %c0_375 = arith.constant 0 : index
    %c0_376 = arith.constant 0 : index
    %995 = vector.load %arg8[%c3_374, %c0_375, %c0_376] : memref<6x1x128xf32, #tpu.memory_space<vmem>>, vector<1x1x128xf32>
    %996 = vector.shape_cast %995 : vector<1x1x128xf32> to vector<1x128xf32>
    %997 = vector.broadcast %996 : vector<1x128xf32> to vector<8x128xf32>
    %998 = arith.addf %994, %997 : vector<8x128xf32>
    %cst_377 = arith.constant 5.000000e-01 : f32
    %999 = vector.broadcast %cst_377 : f32 to vector<8x128xf32>
    %1000 = arith.mulf %999, %998 : vector<8x128xf32>
    %cst_378 = arith.constant 0.707106769 : f32
    %1001 = vector.broadcast %cst_378 : f32 to vector<8x128xf32>
    %1002 = arith.mulf %998, %1001 : vector<8x128xf32>
    %1003 = math.erf %1002 : vector<8x128xf32>
    %cst_379 = arith.constant 1.000000e+00 : f32
    %1004 = vector.broadcast %cst_379 : f32 to vector<8x128xf32>
    %1005 = arith.addf %1004, %1003 : vector<8x128xf32>
    %1006 = arith.mulf %1000, %1005 : vector<8x128xf32>
    %c3_380 = arith.constant 3 : index
    %c0_381 = arith.constant 0 : index
    %c0_382 = arith.constant 0 : index
    %1007 = vector.load %arg7[%c3_380, %c0_381, %c0_382] : memref<6x128x32xf32, #tpu.memory_space<vmem>>, vector<1x128x32xf32>
    %1008 = vector.shape_cast %1007 : vector<1x128x32xf32> to vector<128x32xf32>
    %cst_383 = arith.constant dense<0.000000e+00> : vector<8x32xf32>
    %1009 = tpu.matmul %1006, %1008, %cst_383 {dimension_numbers = #tpu.dot_dimension_numbers<[1], [0], [0], [1], [0, 0, 1, 1], [], []>} : vector<8x128xf32>, vector<128x32xf32>, vector<8x32xf32> -> vector<8x32xf32>
    %1010 = vector.extract_strided_slice %719 {offsets = [5, 0], sizes = [1, 32], strides = [1, 1]} : vector<11x32xf32> to vector<1x32xf32>
    %1011 = vector.broadcast %1010 : vector<1x32xf32> to vector<8x32xf32>
    %1012 = arith.addf %1009, %1011 : vector<8x32xf32>
    %1013 = arith.addf %969, %1012 : vector<8x32xf32>
    %c1_384 = arith.constant 1 : index
    %c0_385 = arith.constant 0 : index
    %c0_386 = arith.constant 0 : index
    %1014 = vector.load %arg14[%c1_384, %c0_385, %c0_386] : memref<2x1x32xf32, #tpu.memory_space<vmem>>, vector<1x1x32xf32>
    %1015 = vector.shape_cast %1014 : vector<1x1x32xf32> to vector<1x32xf32>
    %1016 = vector.extract_strided_slice %1013 {offsets = [0, 0], sizes = [4, 32], strides = [1, 1]} : vector<8x32xf32> to vector<4x32xf32>
    %c2_387 = arith.constant 2 : index
    %c0_388 = arith.constant 0 : index
    %c0_389 = arith.constant 0 : index
    %1017 = vector.load %arg13[%c2_387, %c0_388, %c0_389] : memref<4x32x32xf32, #tpu.memory_space<vmem>>, vector<1x32x32xf32>
    %1018 = vector.shape_cast %1017 : vector<1x32x32xf32> to vector<32x32xf32>
    %cst_390 = arith.constant dense<0.000000e+00> : vector<4x32xf32>
    %1019 = tpu.matmul %1016, %1018, %cst_390 {dimension_numbers = #tpu.dot_dimension_numbers<[1], [0], [0], [1], [0, 0, 1, 1], [], []>} : vector<4x32xf32>, vector<32x32xf32>, vector<4x32xf32> -> vector<4x32xf32>
    %1020 = vector.broadcast %1015 : vector<1x32xf32> to vector<4x32xf32>
    %1021 = arith.addf %1020, %1019 : vector<4x32xf32>
    %1022 = vector.extract_strided_slice %1013 {offsets = [4, 0], sizes = [4, 32], strides = [1, 1]} : vector<8x32xf32> to vector<4x32xf32>
    %c3_391 = arith.constant 3 : index
    %c0_392 = arith.constant 0 : index
    %c0_393 = arith.constant 0 : index
    %1023 = vector.load %arg13[%c3_391, %c0_392, %c0_393] : memref<4x32x32xf32, #tpu.memory_space<vmem>>, vector<1x32x32xf32>
    %1024 = vector.shape_cast %1023 : vector<1x32x32xf32> to vector<32x32xf32>
    %cst_394 = arith.constant dense<0.000000e+00> : vector<4x32xf32>
    %1025 = tpu.matmul %1022, %1024, %cst_394 {dimension_numbers = #tpu.dot_dimension_numbers<[1], [0], [0], [1], [0, 0, 1, 1], [], []>} : vector<4x32xf32>, vector<32x32xf32>, vector<4x32xf32> -> vector<4x32xf32>
    %1026 = arith.addf %1021, %1025 : vector<4x32xf32>
    %c1_395 = arith.constant 1 : index
    %c0_396 = arith.constant 0 : index
    %c0_397 = arith.constant 0 : index
    %1027 = vector.load %arg15[%c1_395, %c0_396, %c0_397] : memref<2x2x32xf32, #tpu.memory_space<vmem>>, vector<1x2x32xf32>
    %1028 = vector.shape_cast %1027 : vector<1x2x32xf32> to vector<2x32xf32>
    %1029 = vector.extract_strided_slice %1028 {offsets = [0, 0], sizes = [1, 32], strides = [1, 1]} : vector<2x32xf32> to vector<1x32xf32>
    %1030 = vector.extract_strided_slice %1028 {offsets = [1, 0], sizes = [1, 32], strides = [1, 1]} : vector<2x32xf32> to vector<1x32xf32>
    %cst_398 = arith.constant dense<0.000000e+00> : vector<4xf32>
    %1031 = vector.multi_reduction <add>, %1026, %cst_398 [1] : vector<4x32xf32> to vector<4xf32>
    %1032 = vector.shape_cast %1031 : vector<4xf32> to vector<4x1xf32>
    %cst_399 = arith.constant 3.200000e+01 : f32
    %1033 = vector.broadcast %cst_399 : f32 to vector<4x1xf32>
    %1034 = arith.divf %1032, %1033 : vector<4x1xf32>
    %1035 = vector.broadcast %1034 : vector<4x1xf32> to vector<4x32xf32>
    %1036 = arith.subf %1026, %1035 : vector<4x32xf32>
    %1037 = arith.mulf %1036, %1036 : vector<4x32xf32>
    %cst_400 = arith.constant dense<0.000000e+00> : vector<4xf32>
    %1038 = vector.multi_reduction <add>, %1037, %cst_400 [1] : vector<4x32xf32> to vector<4xf32>
    %1039 = vector.shape_cast %1038 : vector<4xf32> to vector<4x1xf32>
    %cst_401 = arith.constant 3.200000e+01 : f32
    %1040 = vector.broadcast %cst_401 : f32 to vector<4x1xf32>
    %1041 = arith.divf %1039, %1040 : vector<4x1xf32>
    %cst_402 = arith.constant 9.99999974E-6 : f32
    %1042 = vector.broadcast %cst_402 : f32 to vector<4x1xf32>
    %1043 = arith.addf %1041, %1042 : vector<4x1xf32>
    %1044 = math.rsqrt %1043 : vector<4x1xf32>
    %1045 = vector.broadcast %1044 : vector<4x1xf32> to vector<4x32xf32>
    %1046 = arith.mulf %1036, %1045 : vector<4x32xf32>
    %1047 = vector.broadcast %1029 : vector<1x32xf32> to vector<4x32xf32>
    %1048 = arith.mulf %1046, %1047 : vector<4x32xf32>
    %1049 = vector.broadcast %1030 : vector<1x32xf32> to vector<4x32xf32>
    %1050 = arith.addf %1048, %1049 : vector<4x32xf32>
    %c1_403 = arith.constant 1 : index
    %c0_404 = arith.constant 0 : index
    %c0_405 = arith.constant 0 : index
    %1051 = vector.load %arg16[%c1_403, %c0_404, %c0_405] : memref<2x32x128xf32, #tpu.memory_space<vmem>>, vector<1x32x128xf32>
    %1052 = vector.shape_cast %1051 : vector<1x32x128xf32> to vector<32x128xf32>
    %cst_406 = arith.constant dense<0.000000e+00> : vector<4x128xf32>
    %1053 = tpu.matmul %1050, %1052, %cst_406 {dimension_numbers = #tpu.dot_dimension_numbers<[1], [0], [0], [1], [0, 0, 1, 1], [], []>} : vector<4x32xf32>, vector<32x128xf32>, vector<4x128xf32> -> vector<4x128xf32>
    %c1_407 = arith.constant 1 : index
    %c0_408 = arith.constant 0 : index
    %c0_409 = arith.constant 0 : index
    %1054 = vector.load %arg17[%c1_407, %c0_408, %c0_409] : memref<2x1x128xf32, #tpu.memory_space<vmem>>, vector<1x1x128xf32>
    %1055 = vector.shape_cast %1054 : vector<1x1x128xf32> to vector<1x128xf32>
    %1056 = vector.broadcast %1055 : vector<1x128xf32> to vector<4x128xf32>
    %1057 = arith.addf %1053, %1056 : vector<4x128xf32>
    %cst_410 = arith.constant 5.000000e-01 : f32
    %1058 = vector.broadcast %cst_410 : f32 to vector<4x128xf32>
    %1059 = arith.mulf %1058, %1057 : vector<4x128xf32>
    %cst_411 = arith.constant 0.707106769 : f32
    %1060 = vector.broadcast %cst_411 : f32 to vector<4x128xf32>
    %1061 = arith.mulf %1057, %1060 : vector<4x128xf32>
    %1062 = math.erf %1061 : vector<4x128xf32>
    %cst_412 = arith.constant 1.000000e+00 : f32
    %1063 = vector.broadcast %cst_412 : f32 to vector<4x128xf32>
    %1064 = arith.addf %1063, %1062 : vector<4x128xf32>
    %1065 = arith.mulf %1059, %1064 : vector<4x128xf32>
    %c1_413 = arith.constant 1 : index
    %c0_414 = arith.constant 0 : index
    %c0_415 = arith.constant 0 : index
    %1066 = vector.load %arg18[%c1_413, %c0_414, %c0_415] : memref<2x128x4xf32, #tpu.memory_space<vmem>>, vector<1x128x4xf32>
    %1067 = vector.shape_cast %1066 : vector<1x128x4xf32> to vector<128x4xf32>
    %cst_416 = arith.constant dense<0.000000e+00> : vector<4x4xf32>
    %1068 = tpu.matmul %1065, %1067, %cst_416 {dimension_numbers = #tpu.dot_dimension_numbers<[1], [0], [0], [1], [0, 0, 1, 1], [], []>} : vector<4x128xf32>, vector<128x4xf32>, vector<4x4xf32> -> vector<4x4xf32>
    %c1_417 = arith.constant 1 : index
    %c0_418 = arith.constant 0 : index
    %c0_419 = arith.constant 0 : index
    %1069 = vector.load %arg19[%c1_417, %c0_418, %c0_419] : memref<2x1x4xf32, #tpu.memory_space<vmem>>, vector<1x1x4xf32>
    %1070 = vector.shape_cast %1069 : vector<1x1x4xf32> to vector<1x4xf32>
    %1071 = vector.broadcast %1070 : vector<1x4xf32> to vector<4x4xf32>
    %1072 = arith.addf %1068, %1071 : vector<4x4xf32>
    %1073 = tpu.transpose %1072, [1, 0] : vector<4x4xf32> -> vector<4x4xf32>
    %cst_420 = arith.constant dense<0xFF800000> : vector<4xf32>
    %1074 = vector.multi_reduction <maximumf>, %1073, %cst_420 [1] : vector<4x4xf32> to vector<4xf32>
    %1075 = vector.shape_cast %1074 : vector<4xf32> to vector<4x1xf32>
    %1076 = vector.broadcast %1075 : vector<4x1xf32> to vector<4x4xf32>
    %1077 = arith.subf %1073, %1076 : vector<4x4xf32>
    %1078 = math.exp %1077 : vector<4x4xf32>
    %cst_421 = arith.constant dense<0.000000e+00> : vector<4xf32>
    %1079 = vector.multi_reduction <add>, %1078, %cst_421 [1] : vector<4x4xf32> to vector<4xf32>
    %1080 = vector.shape_cast %1079 : vector<4xf32> to vector<4x1xf32>
    %1081 = tpu.reciprocal %1080 {approx = true} : vector<4x1xf32> -> vector<4x1xf32>
    %1082 = vector.broadcast %1081 : vector<4x1xf32> to vector<4x4xf32>
    %1083 = arith.mulf %1078, %1082 : vector<4x4xf32>
    %cst_422 = arith.constant dense<0.000000e+00> : vector<4x32xf32>
    %1084 = tpu.matmul %1083, %1026, %cst_422 {dimension_numbers = #tpu.dot_dimension_numbers<[1], [0], [0], [1], [0, 0, 1, 1], [], []>} : vector<4x4xf32>, vector<4x32xf32>, vector<4x32xf32> -> vector<4x32xf32>
    %c4_423 = arith.constant 4 : index
    %c0_424 = arith.constant 0 : index
    %c0_425 = arith.constant 0 : index
    %1085 = vector.load %arg9[%c4_423, %c0_424, %c0_425] : memref<6x11x32xf32, #tpu.memory_space<vmem>>, vector<1x11x32xf32>
    %1086 = vector.shape_cast %1085 : vector<1x11x32xf32> to vector<11x32xf32>
    %1087 = vector.extract_strided_slice %1086 {offsets = [6, 0], sizes = [1, 32], strides = [1, 1]} : vector<11x32xf32> to vector<1x32xf32>
    %1088 = vector.extract_strided_slice %1086 {offsets = [7, 0], sizes = [1, 32], strides = [1, 1]} : vector<11x32xf32> to vector<1x32xf32>
    %cst_426 = arith.constant dense<0.000000e+00> : vector<4xf32>
    %1089 = vector.multi_reduction <add>, %1084, %cst_426 [1] : vector<4x32xf32> to vector<4xf32>
    %1090 = vector.shape_cast %1089 : vector<4xf32> to vector<4x1xf32>
    %cst_427 = arith.constant 3.200000e+01 : f32
    %1091 = vector.broadcast %cst_427 : f32 to vector<4x1xf32>
    %1092 = arith.divf %1090, %1091 : vector<4x1xf32>
    %1093 = vector.broadcast %1092 : vector<4x1xf32> to vector<4x32xf32>
    %1094 = arith.subf %1084, %1093 : vector<4x32xf32>
    %1095 = arith.mulf %1094, %1094 : vector<4x32xf32>
    %cst_428 = arith.constant dense<0.000000e+00> : vector<4xf32>
    %1096 = vector.multi_reduction <add>, %1095, %cst_428 [1] : vector<4x32xf32> to vector<4xf32>
    %1097 = vector.shape_cast %1096 : vector<4xf32> to vector<4x1xf32>
    %cst_429 = arith.constant 3.200000e+01 : f32
    %1098 = vector.broadcast %cst_429 : f32 to vector<4x1xf32>
    %1099 = arith.divf %1097, %1098 : vector<4x1xf32>
    %cst_430 = arith.constant 9.99999974E-6 : f32
    %1100 = vector.broadcast %cst_430 : f32 to vector<4x1xf32>
    %1101 = arith.addf %1099, %1100 : vector<4x1xf32>
    %1102 = math.rsqrt %1101 : vector<4x1xf32>
    %1103 = vector.broadcast %1102 : vector<4x1xf32> to vector<4x32xf32>
    %1104 = arith.mulf %1094, %1103 : vector<4x32xf32>
    %1105 = vector.broadcast %1087 : vector<1x32xf32> to vector<4x32xf32>
    %1106 = arith.mulf %1104, %1105 : vector<4x32xf32>
    %1107 = vector.broadcast %1088 : vector<1x32xf32> to vector<4x32xf32>
    %1108 = arith.addf %1106, %1107 : vector<4x32xf32>
    %c4_431 = arith.constant 4 : index
    %c0_432 = arith.constant 0 : index
    %c0_433 = arith.constant 0 : index
    %1109 = vector.load %arg10[%c4_431, %c0_432, %c0_433] : memref<6x32x32xf32, #tpu.memory_space<vmem>>, vector<1x32x32xf32>
    %1110 = vector.shape_cast %1109 : vector<1x32x32xf32> to vector<32x32xf32>
    %cst_434 = arith.constant dense<0.000000e+00> : vector<4x32xf32>
    %1111 = tpu.matmul %1108, %1110, %cst_434 {dimension_numbers = #tpu.dot_dimension_numbers<[1], [0], [0], [1], [0, 0, 1, 1], [], []>} : vector<4x32xf32>, vector<32x32xf32>, vector<4x32xf32> -> vector<4x32xf32>
    %1112 = vector.extract_strided_slice %1086 {offsets = [8, 0], sizes = [1, 32], strides = [1, 1]} : vector<11x32xf32> to vector<1x32xf32>
    %1113 = vector.extract_strided_slice %1086 {offsets = [9, 0], sizes = [1, 32], strides = [1, 1]} : vector<11x32xf32> to vector<1x32xf32>
    %cst_435 = arith.constant dense<0.000000e+00> : vector<4xf32>
    %1114 = vector.multi_reduction <add>, %1026, %cst_435 [1] : vector<4x32xf32> to vector<4xf32>
    %1115 = vector.shape_cast %1114 : vector<4xf32> to vector<4x1xf32>
    %cst_436 = arith.constant 3.200000e+01 : f32
    %1116 = vector.broadcast %cst_436 : f32 to vector<4x1xf32>
    %1117 = arith.divf %1115, %1116 : vector<4x1xf32>
    %1118 = vector.broadcast %1117 : vector<4x1xf32> to vector<4x32xf32>
    %1119 = arith.subf %1026, %1118 : vector<4x32xf32>
    %1120 = arith.mulf %1119, %1119 : vector<4x32xf32>
    %cst_437 = arith.constant dense<0.000000e+00> : vector<4xf32>
    %1121 = vector.multi_reduction <add>, %1120, %cst_437 [1] : vector<4x32xf32> to vector<4xf32>
    %1122 = vector.shape_cast %1121 : vector<4xf32> to vector<4x1xf32>
    %cst_438 = arith.constant 3.200000e+01 : f32
    %1123 = vector.broadcast %cst_438 : f32 to vector<4x1xf32>
    %1124 = arith.divf %1122, %1123 : vector<4x1xf32>
    %cst_439 = arith.constant 9.99999974E-6 : f32
    %1125 = vector.broadcast %cst_439 : f32 to vector<4x1xf32>
    %1126 = arith.addf %1124, %1125 : vector<4x1xf32>
    %1127 = math.rsqrt %1126 : vector<4x1xf32>
    %1128 = vector.broadcast %1127 : vector<4x1xf32> to vector<4x32xf32>
    %1129 = arith.mulf %1119, %1128 : vector<4x32xf32>
    %1130 = vector.broadcast %1112 : vector<1x32xf32> to vector<4x32xf32>
    %1131 = arith.mulf %1129, %1130 : vector<4x32xf32>
    %1132 = vector.broadcast %1113 : vector<1x32xf32> to vector<4x32xf32>
    %1133 = arith.addf %1131, %1132 : vector<4x32xf32>
    %c4_440 = arith.constant 4 : index
    %c0_441 = arith.constant 0 : index
    %c0_442 = arith.constant 0 : index
    %1134 = vector.load %arg11[%c4_440, %c0_441, %c0_442] : memref<6x32x64xf32, #tpu.memory_space<vmem>>, vector<1x32x64xf32>
    %1135 = vector.shape_cast %1134 : vector<1x32x64xf32> to vector<32x64xf32>
    %cst_443 = arith.constant dense<0.000000e+00> : vector<4x64xf32>
    %1136 = tpu.matmul %1133, %1135, %cst_443 {dimension_numbers = #tpu.dot_dimension_numbers<[1], [0], [0], [1], [0, 0, 1, 1], [], []>} : vector<4x32xf32>, vector<32x64xf32>, vector<4x64xf32> -> vector<4x64xf32>
    %1137 = vector.extract_strided_slice %1136 {offsets = [0, 0], sizes = [4, 32], strides = [1, 1]} : vector<4x64xf32> to vector<4x32xf32>
    %1138 = vector.extract_strided_slice %1136 {offsets = [0, 32], sizes = [4, 32], strides = [1, 1]} : vector<4x64xf32> to vector<4x32xf32>
    %c4_444 = arith.constant 4 : index
    %c0_445 = arith.constant 0 : index
    %c0_446 = arith.constant 0 : index
    %1139 = vector.load %arg12[%c4_444, %c0_445, %c0_446] : memref<6x32x32xf32, #tpu.memory_space<vmem>>, vector<1x32x32xf32>
    %1140 = vector.shape_cast %1139 : vector<1x32x32xf32> to vector<32x32xf32>
    %1141 = vector.extract_strided_slice %1086 {offsets = [10, 0], sizes = [1, 32], strides = [1, 1]} : vector<11x32xf32> to vector<1x32xf32>
    %1142 = vector.extract_strided_slice %1111 {offsets = [0, 0], sizes = [4, 8], strides = [1, 1]} : vector<4x32xf32> to vector<4x8xf32>
    %cst_447 = arith.constant 0.353553385 : f32
    %1143 = vector.broadcast %cst_447 : f32 to vector<4x8xf32>
    %1144 = arith.mulf %1142, %1143 : vector<4x8xf32>
    %1145 = vector.extract_strided_slice %1137 {offsets = [0, 0], sizes = [4, 8], strides = [1, 1]} : vector<4x32xf32> to vector<4x8xf32>
    %1146 = vector.extract_strided_slice %1138 {offsets = [0, 0], sizes = [4, 8], strides = [1, 1]} : vector<4x32xf32> to vector<4x8xf32>
    %cst_448 = arith.constant dense<0.000000e+00> : vector<4x4xf32>
    %1147 = tpu.matmul %1144, %1145, %cst_448 {dimension_numbers = #tpu.dot_dimension_numbers<[1], [1], [0], [0], [0, 0, 1, 0], [], []>} : vector<4x8xf32>, vector<4x8xf32>, vector<4x4xf32> -> vector<4x4xf32>
    %cst_449 = arith.constant dense<0xFF800000> : vector<4xf32>
    %1148 = vector.multi_reduction <maximumf>, %1147, %cst_449 [1] : vector<4x4xf32> to vector<4xf32>
    %1149 = vector.shape_cast %1148 : vector<4xf32> to vector<4x1xf32>
    %1150 = vector.broadcast %1149 : vector<4x1xf32> to vector<4x4xf32>
    %1151 = arith.subf %1147, %1150 : vector<4x4xf32>
    %1152 = math.exp %1151 : vector<4x4xf32>
    %cst_450 = arith.constant dense<0.000000e+00> : vector<4xf32>
    %1153 = vector.multi_reduction <add>, %1152, %cst_450 [1] : vector<4x4xf32> to vector<4xf32>
    %1154 = vector.shape_cast %1153 : vector<4xf32> to vector<4x1xf32>
    %1155 = tpu.reciprocal %1154 {approx = true} : vector<4x1xf32> -> vector<4x1xf32>
    %1156 = vector.broadcast %1155 : vector<4x1xf32> to vector<4x4xf32>
    %1157 = arith.mulf %1152, %1156 : vector<4x4xf32>
    %cst_451 = arith.constant dense<0.000000e+00> : vector<4x8xf32>
    %1158 = tpu.matmul %1157, %1146, %cst_451 {dimension_numbers = #tpu.dot_dimension_numbers<[1], [0], [0], [1], [0, 0, 1, 1], [], []>} : vector<4x4xf32>, vector<4x8xf32>, vector<4x8xf32> -> vector<4x8xf32>
    %1159 = vector.extract_strided_slice %1140 {offsets = [0, 0], sizes = [8, 32], strides = [1, 1]} : vector<32x32xf32> to vector<8x32xf32>
    %cst_452 = arith.constant dense<0.000000e+00> : vector<4x32xf32>
    %1160 = tpu.matmul %1158, %1159, %cst_452 {dimension_numbers = #tpu.dot_dimension_numbers<[1], [0], [0], [1], [0, 0, 1, 1], [], []>} : vector<4x8xf32>, vector<8x32xf32>, vector<4x32xf32> -> vector<4x32xf32>
    %1161 = vector.broadcast %1141 : vector<1x32xf32> to vector<4x32xf32>
    %1162 = arith.addf %1161, %1160 : vector<4x32xf32>
    %1163 = vector.extract_strided_slice %1111 {offsets = [0, 8], sizes = [4, 8], strides = [1, 1]} : vector<4x32xf32> to vector<4x8xf32>
    %cst_453 = arith.constant 0.353553385 : f32
    %1164 = vector.broadcast %cst_453 : f32 to vector<4x8xf32>
    %1165 = arith.mulf %1163, %1164 : vector<4x8xf32>
    %1166 = vector.extract_strided_slice %1137 {offsets = [0, 8], sizes = [4, 8], strides = [1, 1]} : vector<4x32xf32> to vector<4x8xf32>
    %1167 = vector.extract_strided_slice %1138 {offsets = [0, 8], sizes = [4, 8], strides = [1, 1]} : vector<4x32xf32> to vector<4x8xf32>
    %cst_454 = arith.constant dense<0.000000e+00> : vector<4x4xf32>
    %1168 = tpu.matmul %1165, %1166, %cst_454 {dimension_numbers = #tpu.dot_dimension_numbers<[1], [1], [0], [0], [0, 0, 1, 0], [], []>} : vector<4x8xf32>, vector<4x8xf32>, vector<4x4xf32> -> vector<4x4xf32>
    %cst_455 = arith.constant dense<0xFF800000> : vector<4xf32>
    %1169 = vector.multi_reduction <maximumf>, %1168, %cst_455 [1] : vector<4x4xf32> to vector<4xf32>
    %1170 = vector.shape_cast %1169 : vector<4xf32> to vector<4x1xf32>
    %1171 = vector.broadcast %1170 : vector<4x1xf32> to vector<4x4xf32>
    %1172 = arith.subf %1168, %1171 : vector<4x4xf32>
    %1173 = math.exp %1172 : vector<4x4xf32>
    %cst_456 = arith.constant dense<0.000000e+00> : vector<4xf32>
    %1174 = vector.multi_reduction <add>, %1173, %cst_456 [1] : vector<4x4xf32> to vector<4xf32>
    %1175 = vector.shape_cast %1174 : vector<4xf32> to vector<4x1xf32>
    %1176 = tpu.reciprocal %1175 {approx = true} : vector<4x1xf32> -> vector<4x1xf32>
    %1177 = vector.broadcast %1176 : vector<4x1xf32> to vector<4x4xf32>
    %1178 = arith.mulf %1173, %1177 : vector<4x4xf32>
    %cst_457 = arith.constant dense<0.000000e+00> : vector<4x8xf32>
    %1179 = tpu.matmul %1178, %1167, %cst_457 {dimension_numbers = #tpu.dot_dimension_numbers<[1], [0], [0], [1], [0, 0, 1, 1], [], []>} : vector<4x4xf32>, vector<4x8xf32>, vector<4x8xf32> -> vector<4x8xf32>
    %1180 = vector.extract_strided_slice %1140 {offsets = [8, 0], sizes = [8, 32], strides = [1, 1]} : vector<32x32xf32> to vector<8x32xf32>
    %cst_458 = arith.constant dense<0.000000e+00> : vector<4x32xf32>
    %1181 = tpu.matmul %1179, %1180, %cst_458 {dimension_numbers = #tpu.dot_dimension_numbers<[1], [0], [0], [1], [0, 0, 1, 1], [], []>} : vector<4x8xf32>, vector<8x32xf32>, vector<4x32xf32> -> vector<4x32xf32>
    %1182 = arith.addf %1162, %1181 : vector<4x32xf32>
    %1183 = vector.extract_strided_slice %1111 {offsets = [0, 16], sizes = [4, 8], strides = [1, 1]} : vector<4x32xf32> to vector<4x8xf32>
    %cst_459 = arith.constant 0.353553385 : f32
    %1184 = vector.broadcast %cst_459 : f32 to vector<4x8xf32>
    %1185 = arith.mulf %1183, %1184 : vector<4x8xf32>
    %1186 = vector.extract_strided_slice %1137 {offsets = [0, 16], sizes = [4, 8], strides = [1, 1]} : vector<4x32xf32> to vector<4x8xf32>
    %1187 = vector.extract_strided_slice %1138 {offsets = [0, 16], sizes = [4, 8], strides = [1, 1]} : vector<4x32xf32> to vector<4x8xf32>
    %cst_460 = arith.constant dense<0.000000e+00> : vector<4x4xf32>
    %1188 = tpu.matmul %1185, %1186, %cst_460 {dimension_numbers = #tpu.dot_dimension_numbers<[1], [1], [0], [0], [0, 0, 1, 0], [], []>} : vector<4x8xf32>, vector<4x8xf32>, vector<4x4xf32> -> vector<4x4xf32>
    %cst_461 = arith.constant dense<0xFF800000> : vector<4xf32>
    %1189 = vector.multi_reduction <maximumf>, %1188, %cst_461 [1] : vector<4x4xf32> to vector<4xf32>
    %1190 = vector.shape_cast %1189 : vector<4xf32> to vector<4x1xf32>
    %1191 = vector.broadcast %1190 : vector<4x1xf32> to vector<4x4xf32>
    %1192 = arith.subf %1188, %1191 : vector<4x4xf32>
    %1193 = math.exp %1192 : vector<4x4xf32>
    %cst_462 = arith.constant dense<0.000000e+00> : vector<4xf32>
    %1194 = vector.multi_reduction <add>, %1193, %cst_462 [1] : vector<4x4xf32> to vector<4xf32>
    %1195 = vector.shape_cast %1194 : vector<4xf32> to vector<4x1xf32>
    %1196 = tpu.reciprocal %1195 {approx = true} : vector<4x1xf32> -> vector<4x1xf32>
    %1197 = vector.broadcast %1196 : vector<4x1xf32> to vector<4x4xf32>
    %1198 = arith.mulf %1193, %1197 : vector<4x4xf32>
    %cst_463 = arith.constant dense<0.000000e+00> : vector<4x8xf32>
    %1199 = tpu.matmul %1198, %1187, %cst_463 {dimension_numbers = #tpu.dot_dimension_numbers<[1], [0], [0], [1], [0, 0, 1, 1], [], []>} : vector<4x4xf32>, vector<4x8xf32>, vector<4x8xf32> -> vector<4x8xf32>
    %1200 = vector.extract_strided_slice %1140 {offsets = [16, 0], sizes = [8, 32], strides = [1, 1]} : vector<32x32xf32> to vector<8x32xf32>
    %cst_464 = arith.constant dense<0.000000e+00> : vector<4x32xf32>
    %1201 = tpu.matmul %1199, %1200, %cst_464 {dimension_numbers = #tpu.dot_dimension_numbers<[1], [0], [0], [1], [0, 0, 1, 1], [], []>} : vector<4x8xf32>, vector<8x32xf32>, vector<4x32xf32> -> vector<4x32xf32>
    %1202 = arith.addf %1182, %1201 : vector<4x32xf32>
    %1203 = vector.extract_strided_slice %1111 {offsets = [0, 24], sizes = [4, 8], strides = [1, 1]} : vector<4x32xf32> to vector<4x8xf32>
    %cst_465 = arith.constant 0.353553385 : f32
    %1204 = vector.broadcast %cst_465 : f32 to vector<4x8xf32>
    %1205 = arith.mulf %1203, %1204 : vector<4x8xf32>
    %1206 = vector.extract_strided_slice %1137 {offsets = [0, 24], sizes = [4, 8], strides = [1, 1]} : vector<4x32xf32> to vector<4x8xf32>
    %1207 = vector.extract_strided_slice %1138 {offsets = [0, 24], sizes = [4, 8], strides = [1, 1]} : vector<4x32xf32> to vector<4x8xf32>
    %cst_466 = arith.constant dense<0.000000e+00> : vector<4x4xf32>
    %1208 = tpu.matmul %1205, %1206, %cst_466 {dimension_numbers = #tpu.dot_dimension_numbers<[1], [1], [0], [0], [0, 0, 1, 0], [], []>} : vector<4x8xf32>, vector<4x8xf32>, vector<4x4xf32> -> vector<4x4xf32>
    %cst_467 = arith.constant dense<0xFF800000> : vector<4xf32>
    %1209 = vector.multi_reduction <maximumf>, %1208, %cst_467 [1] : vector<4x4xf32> to vector<4xf32>
    %1210 = vector.shape_cast %1209 : vector<4xf32> to vector<4x1xf32>
    %1211 = vector.broadcast %1210 : vector<4x1xf32> to vector<4x4xf32>
    %1212 = arith.subf %1208, %1211 : vector<4x4xf32>
    %1213 = math.exp %1212 : vector<4x4xf32>
    %cst_468 = arith.constant dense<0.000000e+00> : vector<4xf32>
    %1214 = vector.multi_reduction <add>, %1213, %cst_468 [1] : vector<4x4xf32> to vector<4xf32>
    %1215 = vector.shape_cast %1214 : vector<4xf32> to vector<4x1xf32>
    %1216 = tpu.reciprocal %1215 {approx = true} : vector<4x1xf32> -> vector<4x1xf32>
    %1217 = vector.broadcast %1216 : vector<4x1xf32> to vector<4x4xf32>
    %1218 = arith.mulf %1213, %1217 : vector<4x4xf32>
    %cst_469 = arith.constant dense<0.000000e+00> : vector<4x8xf32>
    %1219 = tpu.matmul %1218, %1207, %cst_469 {dimension_numbers = #tpu.dot_dimension_numbers<[1], [0], [0], [1], [0, 0, 1, 1], [], []>} : vector<4x4xf32>, vector<4x8xf32>, vector<4x8xf32> -> vector<4x8xf32>
    %1220 = vector.extract_strided_slice %1140 {offsets = [24, 0], sizes = [8, 32], strides = [1, 1]} : vector<32x32xf32> to vector<8x32xf32>
    %cst_470 = arith.constant dense<0.000000e+00> : vector<4x32xf32>
    %1221 = tpu.matmul %1219, %1220, %cst_470 {dimension_numbers = #tpu.dot_dimension_numbers<[1], [0], [0], [1], [0, 0, 1, 1], [], []>} : vector<4x8xf32>, vector<8x32xf32>, vector<4x32xf32> -> vector<4x32xf32>
    %1222 = arith.addf %1202, %1221 : vector<4x32xf32>
    %1223 = arith.addf %1084, %1222 : vector<4x32xf32>
    %1224 = vector.extract_strided_slice %1086 {offsets = [0, 0], sizes = [1, 32], strides = [1, 1]} : vector<11x32xf32> to vector<1x32xf32>
    %1225 = vector.extract_strided_slice %1086 {offsets = [1, 0], sizes = [1, 32], strides = [1, 1]} : vector<11x32xf32> to vector<1x32xf32>
    %cst_471 = arith.constant dense<0.000000e+00> : vector<4xf32>
    %1226 = vector.multi_reduction <add>, %1223, %cst_471 [1] : vector<4x32xf32> to vector<4xf32>
    %1227 = vector.shape_cast %1226 : vector<4xf32> to vector<4x1xf32>
    %cst_472 = arith.constant 3.200000e+01 : f32
    %1228 = vector.broadcast %cst_472 : f32 to vector<4x1xf32>
    %1229 = arith.divf %1227, %1228 : vector<4x1xf32>
    %1230 = vector.broadcast %1229 : vector<4x1xf32> to vector<4x32xf32>
    %1231 = arith.subf %1223, %1230 : vector<4x32xf32>
    %1232 = arith.mulf %1231, %1231 : vector<4x32xf32>
    %cst_473 = arith.constant dense<0.000000e+00> : vector<4xf32>
    %1233 = vector.multi_reduction <add>, %1232, %cst_473 [1] : vector<4x32xf32> to vector<4xf32>
    %1234 = vector.shape_cast %1233 : vector<4xf32> to vector<4x1xf32>
    %cst_474 = arith.constant 3.200000e+01 : f32
    %1235 = vector.broadcast %cst_474 : f32 to vector<4x1xf32>
    %1236 = arith.divf %1234, %1235 : vector<4x1xf32>
    %cst_475 = arith.constant 9.99999974E-6 : f32
    %1237 = vector.broadcast %cst_475 : f32 to vector<4x1xf32>
    %1238 = arith.addf %1236, %1237 : vector<4x1xf32>
    %1239 = math.rsqrt %1238 : vector<4x1xf32>
    %1240 = vector.broadcast %1239 : vector<4x1xf32> to vector<4x32xf32>
    %1241 = arith.mulf %1231, %1240 : vector<4x32xf32>
    %1242 = vector.broadcast %1224 : vector<1x32xf32> to vector<4x32xf32>
    %1243 = arith.mulf %1241, %1242 : vector<4x32xf32>
    %1244 = vector.broadcast %1225 : vector<1x32xf32> to vector<4x32xf32>
    %1245 = arith.addf %1243, %1244 : vector<4x32xf32>
    %c4_476 = arith.constant 4 : index
    %c0_477 = arith.constant 0 : index
    %c0_478 = arith.constant 0 : index
    %1246 = vector.load %arg4[%c4_476, %c0_477, %c0_478] : memref<6x32x96xf32, #tpu.memory_space<vmem>>, vector<1x32x96xf32>
    %1247 = vector.shape_cast %1246 : vector<1x32x96xf32> to vector<32x96xf32>
    %cst_479 = arith.constant dense<0.000000e+00> : vector<4x96xf32>
    %1248 = tpu.matmul %1245, %1247, %cst_479 {dimension_numbers = #tpu.dot_dimension_numbers<[1], [0], [0], [1], [0, 0, 1, 1], [], []>} : vector<4x32xf32>, vector<32x96xf32>, vector<4x96xf32> -> vector<4x96xf32>
    %1249 = vector.extract_strided_slice %1248 {offsets = [0, 0], sizes = [4, 32], strides = [1, 1]} : vector<4x96xf32> to vector<4x32xf32>
    %1250 = vector.extract_strided_slice %1248 {offsets = [0, 32], sizes = [4, 32], strides = [1, 1]} : vector<4x96xf32> to vector<4x32xf32>
    %1251 = vector.extract_strided_slice %1248 {offsets = [0, 64], sizes = [4, 32], strides = [1, 1]} : vector<4x96xf32> to vector<4x32xf32>
    %c4_480 = arith.constant 4 : index
    %c0_481 = arith.constant 0 : index
    %c0_482 = arith.constant 0 : index
    %1252 = vector.load %arg5[%c4_480, %c0_481, %c0_482] : memref<6x32x32xf32, #tpu.memory_space<vmem>>, vector<1x32x32xf32>
    %1253 = vector.shape_cast %1252 : vector<1x32x32xf32> to vector<32x32xf32>
    %1254 = vector.extract_strided_slice %1086 {offsets = [4, 0], sizes = [1, 32], strides = [1, 1]} : vector<11x32xf32> to vector<1x32xf32>
    %1255 = vector.extract_strided_slice %1249 {offsets = [0, 0], sizes = [4, 8], strides = [1, 1]} : vector<4x32xf32> to vector<4x8xf32>
    %cst_483 = arith.constant 0.353553385 : f32
    %1256 = vector.broadcast %cst_483 : f32 to vector<4x8xf32>
    %1257 = arith.mulf %1255, %1256 : vector<4x8xf32>
    %1258 = vector.extract_strided_slice %1250 {offsets = [0, 0], sizes = [4, 8], strides = [1, 1]} : vector<4x32xf32> to vector<4x8xf32>
    %1259 = vector.extract_strided_slice %1251 {offsets = [0, 0], sizes = [4, 8], strides = [1, 1]} : vector<4x32xf32> to vector<4x8xf32>
    %cst_484 = arith.constant dense<0.000000e+00> : vector<4x4xf32>
    %1260 = tpu.matmul %1257, %1258, %cst_484 {dimension_numbers = #tpu.dot_dimension_numbers<[1], [1], [0], [0], [0, 0, 1, 0], [], []>} : vector<4x8xf32>, vector<4x8xf32>, vector<4x4xf32> -> vector<4x4xf32>
    %cst_485 = arith.constant dense<0xFF800000> : vector<4xf32>
    %1261 = vector.multi_reduction <maximumf>, %1260, %cst_485 [1] : vector<4x4xf32> to vector<4xf32>
    %1262 = vector.shape_cast %1261 : vector<4xf32> to vector<4x1xf32>
    %1263 = vector.broadcast %1262 : vector<4x1xf32> to vector<4x4xf32>
    %1264 = arith.subf %1260, %1263 : vector<4x4xf32>
    %1265 = math.exp %1264 : vector<4x4xf32>
    %cst_486 = arith.constant dense<0.000000e+00> : vector<4xf32>
    %1266 = vector.multi_reduction <add>, %1265, %cst_486 [1] : vector<4x4xf32> to vector<4xf32>
    %1267 = vector.shape_cast %1266 : vector<4xf32> to vector<4x1xf32>
    %1268 = tpu.reciprocal %1267 {approx = true} : vector<4x1xf32> -> vector<4x1xf32>
    %1269 = vector.broadcast %1268 : vector<4x1xf32> to vector<4x4xf32>
    %1270 = arith.mulf %1265, %1269 : vector<4x4xf32>
    %cst_487 = arith.constant dense<0.000000e+00> : vector<4x8xf32>
    %1271 = tpu.matmul %1270, %1259, %cst_487 {dimension_numbers = #tpu.dot_dimension_numbers<[1], [0], [0], [1], [0, 0, 1, 1], [], []>} : vector<4x4xf32>, vector<4x8xf32>, vector<4x8xf32> -> vector<4x8xf32>
    %1272 = vector.extract_strided_slice %1253 {offsets = [0, 0], sizes = [8, 32], strides = [1, 1]} : vector<32x32xf32> to vector<8x32xf32>
    %cst_488 = arith.constant dense<0.000000e+00> : vector<4x32xf32>
    %1273 = tpu.matmul %1271, %1272, %cst_488 {dimension_numbers = #tpu.dot_dimension_numbers<[1], [0], [0], [1], [0, 0, 1, 1], [], []>} : vector<4x8xf32>, vector<8x32xf32>, vector<4x32xf32> -> vector<4x32xf32>
    %1274 = vector.broadcast %1254 : vector<1x32xf32> to vector<4x32xf32>
    %1275 = arith.addf %1274, %1273 : vector<4x32xf32>
    %1276 = vector.extract_strided_slice %1249 {offsets = [0, 8], sizes = [4, 8], strides = [1, 1]} : vector<4x32xf32> to vector<4x8xf32>
    %cst_489 = arith.constant 0.353553385 : f32
    %1277 = vector.broadcast %cst_489 : f32 to vector<4x8xf32>
    %1278 = arith.mulf %1276, %1277 : vector<4x8xf32>
    %1279 = vector.extract_strided_slice %1250 {offsets = [0, 8], sizes = [4, 8], strides = [1, 1]} : vector<4x32xf32> to vector<4x8xf32>
    %1280 = vector.extract_strided_slice %1251 {offsets = [0, 8], sizes = [4, 8], strides = [1, 1]} : vector<4x32xf32> to vector<4x8xf32>
    %cst_490 = arith.constant dense<0.000000e+00> : vector<4x4xf32>
    %1281 = tpu.matmul %1278, %1279, %cst_490 {dimension_numbers = #tpu.dot_dimension_numbers<[1], [1], [0], [0], [0, 0, 1, 0], [], []>} : vector<4x8xf32>, vector<4x8xf32>, vector<4x4xf32> -> vector<4x4xf32>
    %cst_491 = arith.constant dense<0xFF800000> : vector<4xf32>
    %1282 = vector.multi_reduction <maximumf>, %1281, %cst_491 [1] : vector<4x4xf32> to vector<4xf32>
    %1283 = vector.shape_cast %1282 : vector<4xf32> to vector<4x1xf32>
    %1284 = vector.broadcast %1283 : vector<4x1xf32> to vector<4x4xf32>
    %1285 = arith.subf %1281, %1284 : vector<4x4xf32>
    %1286 = math.exp %1285 : vector<4x4xf32>
    %cst_492 = arith.constant dense<0.000000e+00> : vector<4xf32>
    %1287 = vector.multi_reduction <add>, %1286, %cst_492 [1] : vector<4x4xf32> to vector<4xf32>
    %1288 = vector.shape_cast %1287 : vector<4xf32> to vector<4x1xf32>
    %1289 = tpu.reciprocal %1288 {approx = true} : vector<4x1xf32> -> vector<4x1xf32>
    %1290 = vector.broadcast %1289 : vector<4x1xf32> to vector<4x4xf32>
    %1291 = arith.mulf %1286, %1290 : vector<4x4xf32>
    %cst_493 = arith.constant dense<0.000000e+00> : vector<4x8xf32>
    %1292 = tpu.matmul %1291, %1280, %cst_493 {dimension_numbers = #tpu.dot_dimension_numbers<[1], [0], [0], [1], [0, 0, 1, 1], [], []>} : vector<4x4xf32>, vector<4x8xf32>, vector<4x8xf32> -> vector<4x8xf32>
    %1293 = vector.extract_strided_slice %1253 {offsets = [8, 0], sizes = [8, 32], strides = [1, 1]} : vector<32x32xf32> to vector<8x32xf32>
    %cst_494 = arith.constant dense<0.000000e+00> : vector<4x32xf32>
    %1294 = tpu.matmul %1292, %1293, %cst_494 {dimension_numbers = #tpu.dot_dimension_numbers<[1], [0], [0], [1], [0, 0, 1, 1], [], []>} : vector<4x8xf32>, vector<8x32xf32>, vector<4x32xf32> -> vector<4x32xf32>
    %1295 = arith.addf %1275, %1294 : vector<4x32xf32>
    %1296 = vector.extract_strided_slice %1249 {offsets = [0, 16], sizes = [4, 8], strides = [1, 1]} : vector<4x32xf32> to vector<4x8xf32>
    %cst_495 = arith.constant 0.353553385 : f32
    %1297 = vector.broadcast %cst_495 : f32 to vector<4x8xf32>
    %1298 = arith.mulf %1296, %1297 : vector<4x8xf32>
    %1299 = vector.extract_strided_slice %1250 {offsets = [0, 16], sizes = [4, 8], strides = [1, 1]} : vector<4x32xf32> to vector<4x8xf32>
    %1300 = vector.extract_strided_slice %1251 {offsets = [0, 16], sizes = [4, 8], strides = [1, 1]} : vector<4x32xf32> to vector<4x8xf32>
    %cst_496 = arith.constant dense<0.000000e+00> : vector<4x4xf32>
    %1301 = tpu.matmul %1298, %1299, %cst_496 {dimension_numbers = #tpu.dot_dimension_numbers<[1], [1], [0], [0], [0, 0, 1, 0], [], []>} : vector<4x8xf32>, vector<4x8xf32>, vector<4x4xf32> -> vector<4x4xf32>
    %cst_497 = arith.constant dense<0xFF800000> : vector<4xf32>
    %1302 = vector.multi_reduction <maximumf>, %1301, %cst_497 [1] : vector<4x4xf32> to vector<4xf32>
    %1303 = vector.shape_cast %1302 : vector<4xf32> to vector<4x1xf32>
    %1304 = vector.broadcast %1303 : vector<4x1xf32> to vector<4x4xf32>
    %1305 = arith.subf %1301, %1304 : vector<4x4xf32>
    %1306 = math.exp %1305 : vector<4x4xf32>
    %cst_498 = arith.constant dense<0.000000e+00> : vector<4xf32>
    %1307 = vector.multi_reduction <add>, %1306, %cst_498 [1] : vector<4x4xf32> to vector<4xf32>
    %1308 = vector.shape_cast %1307 : vector<4xf32> to vector<4x1xf32>
    %1309 = tpu.reciprocal %1308 {approx = true} : vector<4x1xf32> -> vector<4x1xf32>
    %1310 = vector.broadcast %1309 : vector<4x1xf32> to vector<4x4xf32>
    %1311 = arith.mulf %1306, %1310 : vector<4x4xf32>
    %cst_499 = arith.constant dense<0.000000e+00> : vector<4x8xf32>
    %1312 = tpu.matmul %1311, %1300, %cst_499 {dimension_numbers = #tpu.dot_dimension_numbers<[1], [0], [0], [1], [0, 0, 1, 1], [], []>} : vector<4x4xf32>, vector<4x8xf32>, vector<4x8xf32> -> vector<4x8xf32>
    %1313 = vector.extract_strided_slice %1253 {offsets = [16, 0], sizes = [8, 32], strides = [1, 1]} : vector<32x32xf32> to vector<8x32xf32>
    %cst_500 = arith.constant dense<0.000000e+00> : vector<4x32xf32>
    %1314 = tpu.matmul %1312, %1313, %cst_500 {dimension_numbers = #tpu.dot_dimension_numbers<[1], [0], [0], [1], [0, 0, 1, 1], [], []>} : vector<4x8xf32>, vector<8x32xf32>, vector<4x32xf32> -> vector<4x32xf32>
    %1315 = arith.addf %1295, %1314 : vector<4x32xf32>
    %1316 = vector.extract_strided_slice %1249 {offsets = [0, 24], sizes = [4, 8], strides = [1, 1]} : vector<4x32xf32> to vector<4x8xf32>
    %cst_501 = arith.constant 0.353553385 : f32
    %1317 = vector.broadcast %cst_501 : f32 to vector<4x8xf32>
    %1318 = arith.mulf %1316, %1317 : vector<4x8xf32>
    %1319 = vector.extract_strided_slice %1250 {offsets = [0, 24], sizes = [4, 8], strides = [1, 1]} : vector<4x32xf32> to vector<4x8xf32>
    %1320 = vector.extract_strided_slice %1251 {offsets = [0, 24], sizes = [4, 8], strides = [1, 1]} : vector<4x32xf32> to vector<4x8xf32>
    %cst_502 = arith.constant dense<0.000000e+00> : vector<4x4xf32>
    %1321 = tpu.matmul %1318, %1319, %cst_502 {dimension_numbers = #tpu.dot_dimension_numbers<[1], [1], [0], [0], [0, 0, 1, 0], [], []>} : vector<4x8xf32>, vector<4x8xf32>, vector<4x4xf32> -> vector<4x4xf32>
    %cst_503 = arith.constant dense<0xFF800000> : vector<4xf32>
    %1322 = vector.multi_reduction <maximumf>, %1321, %cst_503 [1] : vector<4x4xf32> to vector<4xf32>
    %1323 = vector.shape_cast %1322 : vector<4xf32> to vector<4x1xf32>
    %1324 = vector.broadcast %1323 : vector<4x1xf32> to vector<4x4xf32>
    %1325 = arith.subf %1321, %1324 : vector<4x4xf32>
    %1326 = math.exp %1325 : vector<4x4xf32>
    %cst_504 = arith.constant dense<0.000000e+00> : vector<4xf32>
    %1327 = vector.multi_reduction <add>, %1326, %cst_504 [1] : vector<4x4xf32> to vector<4xf32>
    %1328 = vector.shape_cast %1327 : vector<4xf32> to vector<4x1xf32>
    %1329 = tpu.reciprocal %1328 {approx = true} : vector<4x1xf32> -> vector<4x1xf32>
    %1330 = vector.broadcast %1329 : vector<4x1xf32> to vector<4x4xf32>
    %1331 = arith.mulf %1326, %1330 : vector<4x4xf32>
    %cst_505 = arith.constant dense<0.000000e+00> : vector<4x8xf32>
    %1332 = tpu.matmul %1331, %1320, %cst_505 {dimension_numbers = #tpu.dot_dimension_numbers<[1], [0], [0], [1], [0, 0, 1, 1], [], []>} : vector<4x4xf32>, vector<4x8xf32>, vector<4x8xf32> -> vector<4x8xf32>
    %1333 = vector.extract_strided_slice %1253 {offsets = [24, 0], sizes = [8, 32], strides = [1, 1]} : vector<32x32xf32> to vector<8x32xf32>
    %cst_506 = arith.constant dense<0.000000e+00> : vector<4x32xf32>
    %1334 = tpu.matmul %1332, %1333, %cst_506 {dimension_numbers = #tpu.dot_dimension_numbers<[1], [0], [0], [1], [0, 0, 1, 1], [], []>} : vector<4x8xf32>, vector<8x32xf32>, vector<4x32xf32> -> vector<4x32xf32>
    %1335 = arith.addf %1315, %1334 : vector<4x32xf32>
    %1336 = arith.addf %1223, %1335 : vector<4x32xf32>
    %1337 = vector.extract_strided_slice %1086 {offsets = [2, 0], sizes = [1, 32], strides = [1, 1]} : vector<11x32xf32> to vector<1x32xf32>
    %1338 = vector.extract_strided_slice %1086 {offsets = [3, 0], sizes = [1, 32], strides = [1, 1]} : vector<11x32xf32> to vector<1x32xf32>
    %cst_507 = arith.constant dense<0.000000e+00> : vector<4xf32>
    %1339 = vector.multi_reduction <add>, %1336, %cst_507 [1] : vector<4x32xf32> to vector<4xf32>
    %1340 = vector.shape_cast %1339 : vector<4xf32> to vector<4x1xf32>
    %cst_508 = arith.constant 3.200000e+01 : f32
    %1341 = vector.broadcast %cst_508 : f32 to vector<4x1xf32>
    %1342 = arith.divf %1340, %1341 : vector<4x1xf32>
    %1343 = vector.broadcast %1342 : vector<4x1xf32> to vector<4x32xf32>
    %1344 = arith.subf %1336, %1343 : vector<4x32xf32>
    %1345 = arith.mulf %1344, %1344 : vector<4x32xf32>
    %cst_509 = arith.constant dense<0.000000e+00> : vector<4xf32>
    %1346 = vector.multi_reduction <add>, %1345, %cst_509 [1] : vector<4x32xf32> to vector<4xf32>
    %1347 = vector.shape_cast %1346 : vector<4xf32> to vector<4x1xf32>
    %cst_510 = arith.constant 3.200000e+01 : f32
    %1348 = vector.broadcast %cst_510 : f32 to vector<4x1xf32>
    %1349 = arith.divf %1347, %1348 : vector<4x1xf32>
    %cst_511 = arith.constant 9.99999974E-6 : f32
    %1350 = vector.broadcast %cst_511 : f32 to vector<4x1xf32>
    %1351 = arith.addf %1349, %1350 : vector<4x1xf32>
    %1352 = math.rsqrt %1351 : vector<4x1xf32>
    %1353 = vector.broadcast %1352 : vector<4x1xf32> to vector<4x32xf32>
    %1354 = arith.mulf %1344, %1353 : vector<4x32xf32>
    %1355 = vector.broadcast %1337 : vector<1x32xf32> to vector<4x32xf32>
    %1356 = arith.mulf %1354, %1355 : vector<4x32xf32>
    %1357 = vector.broadcast %1338 : vector<1x32xf32> to vector<4x32xf32>
    %1358 = arith.addf %1356, %1357 : vector<4x32xf32>
    %c4_512 = arith.constant 4 : index
    %c0_513 = arith.constant 0 : index
    %c0_514 = arith.constant 0 : index
    %1359 = vector.load %arg6[%c4_512, %c0_513, %c0_514] : memref<6x32x128xf32, #tpu.memory_space<vmem>>, vector<1x32x128xf32>
    %1360 = vector.shape_cast %1359 : vector<1x32x128xf32> to vector<32x128xf32>
    %cst_515 = arith.constant dense<0.000000e+00> : vector<4x128xf32>
    %1361 = tpu.matmul %1358, %1360, %cst_515 {dimension_numbers = #tpu.dot_dimension_numbers<[1], [0], [0], [1], [0, 0, 1, 1], [], []>} : vector<4x32xf32>, vector<32x128xf32>, vector<4x128xf32> -> vector<4x128xf32>
    %c4_516 = arith.constant 4 : index
    %c0_517 = arith.constant 0 : index
    %c0_518 = arith.constant 0 : index
    %1362 = vector.load %arg8[%c4_516, %c0_517, %c0_518] : memref<6x1x128xf32, #tpu.memory_space<vmem>>, vector<1x1x128xf32>
    %1363 = vector.shape_cast %1362 : vector<1x1x128xf32> to vector<1x128xf32>
    %1364 = vector.broadcast %1363 : vector<1x128xf32> to vector<4x128xf32>
    %1365 = arith.addf %1361, %1364 : vector<4x128xf32>
    %cst_519 = arith.constant 5.000000e-01 : f32
    %1366 = vector.broadcast %cst_519 : f32 to vector<4x128xf32>
    %1367 = arith.mulf %1366, %1365 : vector<4x128xf32>
    %cst_520 = arith.constant 0.707106769 : f32
    %1368 = vector.broadcast %cst_520 : f32 to vector<4x128xf32>
    %1369 = arith.mulf %1365, %1368 : vector<4x128xf32>
    %1370 = math.erf %1369 : vector<4x128xf32>
    %cst_521 = arith.constant 1.000000e+00 : f32
    %1371 = vector.broadcast %cst_521 : f32 to vector<4x128xf32>
    %1372 = arith.addf %1371, %1370 : vector<4x128xf32>
    %1373 = arith.mulf %1367, %1372 : vector<4x128xf32>
    %c4_522 = arith.constant 4 : index
    %c0_523 = arith.constant 0 : index
    %c0_524 = arith.constant 0 : index
    %1374 = vector.load %arg7[%c4_522, %c0_523, %c0_524] : memref<6x128x32xf32, #tpu.memory_space<vmem>>, vector<1x128x32xf32>
    %1375 = vector.shape_cast %1374 : vector<1x128x32xf32> to vector<128x32xf32>
    %cst_525 = arith.constant dense<0.000000e+00> : vector<4x32xf32>
    %1376 = tpu.matmul %1373, %1375, %cst_525 {dimension_numbers = #tpu.dot_dimension_numbers<[1], [0], [0], [1], [0, 0, 1, 1], [], []>} : vector<4x128xf32>, vector<128x32xf32>, vector<4x32xf32> -> vector<4x32xf32>
    %1377 = vector.extract_strided_slice %1086 {offsets = [5, 0], sizes = [1, 32], strides = [1, 1]} : vector<11x32xf32> to vector<1x32xf32>
    %1378 = vector.broadcast %1377 : vector<1x32xf32> to vector<4x32xf32>
    %1379 = arith.addf %1376, %1378 : vector<4x32xf32>
    %1380 = arith.addf %1336, %1379 : vector<4x32xf32>
    %c5 = arith.constant 5 : index
    %c0_526 = arith.constant 0 : index
    %c0_527 = arith.constant 0 : index
    %1381 = vector.load %arg9[%c5, %c0_526, %c0_527] : memref<6x11x32xf32, #tpu.memory_space<vmem>>, vector<1x11x32xf32>
    %1382 = vector.shape_cast %1381 : vector<1x11x32xf32> to vector<11x32xf32>
    %1383 = vector.extract_strided_slice %1382 {offsets = [6, 0], sizes = [1, 32], strides = [1, 1]} : vector<11x32xf32> to vector<1x32xf32>
    %1384 = vector.extract_strided_slice %1382 {offsets = [7, 0], sizes = [1, 32], strides = [1, 1]} : vector<11x32xf32> to vector<1x32xf32>
    %cst_528 = arith.constant dense<0.000000e+00> : vector<4xf32>
    %1385 = vector.multi_reduction <add>, %1026, %cst_528 [1] : vector<4x32xf32> to vector<4xf32>
    %1386 = vector.shape_cast %1385 : vector<4xf32> to vector<4x1xf32>
    %cst_529 = arith.constant 3.200000e+01 : f32
    %1387 = vector.broadcast %cst_529 : f32 to vector<4x1xf32>
    %1388 = arith.divf %1386, %1387 : vector<4x1xf32>
    %1389 = vector.broadcast %1388 : vector<4x1xf32> to vector<4x32xf32>
    %1390 = arith.subf %1026, %1389 : vector<4x32xf32>
    %1391 = arith.mulf %1390, %1390 : vector<4x32xf32>
    %cst_530 = arith.constant dense<0.000000e+00> : vector<4xf32>
    %1392 = vector.multi_reduction <add>, %1391, %cst_530 [1] : vector<4x32xf32> to vector<4xf32>
    %1393 = vector.shape_cast %1392 : vector<4xf32> to vector<4x1xf32>
    %cst_531 = arith.constant 3.200000e+01 : f32
    %1394 = vector.broadcast %cst_531 : f32 to vector<4x1xf32>
    %1395 = arith.divf %1393, %1394 : vector<4x1xf32>
    %cst_532 = arith.constant 9.99999974E-6 : f32
    %1396 = vector.broadcast %cst_532 : f32 to vector<4x1xf32>
    %1397 = arith.addf %1395, %1396 : vector<4x1xf32>
    %1398 = math.rsqrt %1397 : vector<4x1xf32>
    %1399 = vector.broadcast %1398 : vector<4x1xf32> to vector<4x32xf32>
    %1400 = arith.mulf %1390, %1399 : vector<4x32xf32>
    %1401 = vector.broadcast %1383 : vector<1x32xf32> to vector<4x32xf32>
    %1402 = arith.mulf %1400, %1401 : vector<4x32xf32>
    %1403 = vector.broadcast %1384 : vector<1x32xf32> to vector<4x32xf32>
    %1404 = arith.addf %1402, %1403 : vector<4x32xf32>
    %c5_533 = arith.constant 5 : index
    %c0_534 = arith.constant 0 : index
    %c0_535 = arith.constant 0 : index
    %1405 = vector.load %arg10[%c5_533, %c0_534, %c0_535] : memref<6x32x32xf32, #tpu.memory_space<vmem>>, vector<1x32x32xf32>
    %1406 = vector.shape_cast %1405 : vector<1x32x32xf32> to vector<32x32xf32>
    %cst_536 = arith.constant dense<0.000000e+00> : vector<4x32xf32>
    %1407 = tpu.matmul %1404, %1406, %cst_536 {dimension_numbers = #tpu.dot_dimension_numbers<[1], [0], [0], [1], [0, 0, 1, 1], [], []>} : vector<4x32xf32>, vector<32x32xf32>, vector<4x32xf32> -> vector<4x32xf32>
    %1408 = vector.extract_strided_slice %1382 {offsets = [8, 0], sizes = [1, 32], strides = [1, 1]} : vector<11x32xf32> to vector<1x32xf32>
    %1409 = vector.extract_strided_slice %1382 {offsets = [9, 0], sizes = [1, 32], strides = [1, 1]} : vector<11x32xf32> to vector<1x32xf32>
    %cst_537 = arith.constant dense<0.000000e+00> : vector<4xf32>
    %1410 = vector.multi_reduction <add>, %1380, %cst_537 [1] : vector<4x32xf32> to vector<4xf32>
    %1411 = vector.shape_cast %1410 : vector<4xf32> to vector<4x1xf32>
    %cst_538 = arith.constant 3.200000e+01 : f32
    %1412 = vector.broadcast %cst_538 : f32 to vector<4x1xf32>
    %1413 = arith.divf %1411, %1412 : vector<4x1xf32>
    %1414 = vector.broadcast %1413 : vector<4x1xf32> to vector<4x32xf32>
    %1415 = arith.subf %1380, %1414 : vector<4x32xf32>
    %1416 = arith.mulf %1415, %1415 : vector<4x32xf32>
    %cst_539 = arith.constant dense<0.000000e+00> : vector<4xf32>
    %1417 = vector.multi_reduction <add>, %1416, %cst_539 [1] : vector<4x32xf32> to vector<4xf32>
    %1418 = vector.shape_cast %1417 : vector<4xf32> to vector<4x1xf32>
    %cst_540 = arith.constant 3.200000e+01 : f32
    %1419 = vector.broadcast %cst_540 : f32 to vector<4x1xf32>
    %1420 = arith.divf %1418, %1419 : vector<4x1xf32>
    %cst_541 = arith.constant 9.99999974E-6 : f32
    %1421 = vector.broadcast %cst_541 : f32 to vector<4x1xf32>
    %1422 = arith.addf %1420, %1421 : vector<4x1xf32>
    %1423 = math.rsqrt %1422 : vector<4x1xf32>
    %1424 = vector.broadcast %1423 : vector<4x1xf32> to vector<4x32xf32>
    %1425 = arith.mulf %1415, %1424 : vector<4x32xf32>
    %1426 = vector.broadcast %1408 : vector<1x32xf32> to vector<4x32xf32>
    %1427 = arith.mulf %1425, %1426 : vector<4x32xf32>
    %1428 = vector.broadcast %1409 : vector<1x32xf32> to vector<4x32xf32>
    %1429 = arith.addf %1427, %1428 : vector<4x32xf32>
    %c5_542 = arith.constant 5 : index
    %c0_543 = arith.constant 0 : index
    %c0_544 = arith.constant 0 : index
    %1430 = vector.load %arg11[%c5_542, %c0_543, %c0_544] : memref<6x32x64xf32, #tpu.memory_space<vmem>>, vector<1x32x64xf32>
    %1431 = vector.shape_cast %1430 : vector<1x32x64xf32> to vector<32x64xf32>
    %cst_545 = arith.constant dense<0.000000e+00> : vector<4x64xf32>
    %1432 = tpu.matmul %1429, %1431, %cst_545 {dimension_numbers = #tpu.dot_dimension_numbers<[1], [0], [0], [1], [0, 0, 1, 1], [], []>} : vector<4x32xf32>, vector<32x64xf32>, vector<4x64xf32> -> vector<4x64xf32>
    %1433 = vector.extract_strided_slice %1432 {offsets = [0, 0], sizes = [4, 32], strides = [1, 1]} : vector<4x64xf32> to vector<4x32xf32>
    %1434 = vector.extract_strided_slice %1432 {offsets = [0, 32], sizes = [4, 32], strides = [1, 1]} : vector<4x64xf32> to vector<4x32xf32>
    %c5_546 = arith.constant 5 : index
    %c0_547 = arith.constant 0 : index
    %c0_548 = arith.constant 0 : index
    %1435 = vector.load %arg12[%c5_546, %c0_547, %c0_548] : memref<6x32x32xf32, #tpu.memory_space<vmem>>, vector<1x32x32xf32>
    %1436 = vector.shape_cast %1435 : vector<1x32x32xf32> to vector<32x32xf32>
    %1437 = vector.extract_strided_slice %1382 {offsets = [10, 0], sizes = [1, 32], strides = [1, 1]} : vector<11x32xf32> to vector<1x32xf32>
    %1438 = vector.extract_strided_slice %1407 {offsets = [0, 0], sizes = [4, 8], strides = [1, 1]} : vector<4x32xf32> to vector<4x8xf32>
    %cst_549 = arith.constant 0.353553385 : f32
    %1439 = vector.broadcast %cst_549 : f32 to vector<4x8xf32>
    %1440 = arith.mulf %1438, %1439 : vector<4x8xf32>
    %1441 = vector.extract_strided_slice %1433 {offsets = [0, 0], sizes = [4, 8], strides = [1, 1]} : vector<4x32xf32> to vector<4x8xf32>
    %1442 = vector.extract_strided_slice %1434 {offsets = [0, 0], sizes = [4, 8], strides = [1, 1]} : vector<4x32xf32> to vector<4x8xf32>
    %cst_550 = arith.constant dense<0.000000e+00> : vector<4x4xf32>
    %1443 = tpu.matmul %1440, %1441, %cst_550 {dimension_numbers = #tpu.dot_dimension_numbers<[1], [1], [0], [0], [0, 0, 1, 0], [], []>} : vector<4x8xf32>, vector<4x8xf32>, vector<4x4xf32> -> vector<4x4xf32>
    %cst_551 = arith.constant dense<0xFF800000> : vector<4xf32>
    %1444 = vector.multi_reduction <maximumf>, %1443, %cst_551 [1] : vector<4x4xf32> to vector<4xf32>
    %1445 = vector.shape_cast %1444 : vector<4xf32> to vector<4x1xf32>
    %1446 = vector.broadcast %1445 : vector<4x1xf32> to vector<4x4xf32>
    %1447 = arith.subf %1443, %1446 : vector<4x4xf32>
    %1448 = math.exp %1447 : vector<4x4xf32>
    %cst_552 = arith.constant dense<0.000000e+00> : vector<4xf32>
    %1449 = vector.multi_reduction <add>, %1448, %cst_552 [1] : vector<4x4xf32> to vector<4xf32>
    %1450 = vector.shape_cast %1449 : vector<4xf32> to vector<4x1xf32>
    %1451 = tpu.reciprocal %1450 {approx = true} : vector<4x1xf32> -> vector<4x1xf32>
    %1452 = vector.broadcast %1451 : vector<4x1xf32> to vector<4x4xf32>
    %1453 = arith.mulf %1448, %1452 : vector<4x4xf32>
    %cst_553 = arith.constant dense<0.000000e+00> : vector<4x8xf32>
    %1454 = tpu.matmul %1453, %1442, %cst_553 {dimension_numbers = #tpu.dot_dimension_numbers<[1], [0], [0], [1], [0, 0, 1, 1], [], []>} : vector<4x4xf32>, vector<4x8xf32>, vector<4x8xf32> -> vector<4x8xf32>
    %1455 = vector.extract_strided_slice %1436 {offsets = [0, 0], sizes = [8, 32], strides = [1, 1]} : vector<32x32xf32> to vector<8x32xf32>
    %cst_554 = arith.constant dense<0.000000e+00> : vector<4x32xf32>
    %1456 = tpu.matmul %1454, %1455, %cst_554 {dimension_numbers = #tpu.dot_dimension_numbers<[1], [0], [0], [1], [0, 0, 1, 1], [], []>} : vector<4x8xf32>, vector<8x32xf32>, vector<4x32xf32> -> vector<4x32xf32>
    %1457 = vector.broadcast %1437 : vector<1x32xf32> to vector<4x32xf32>
    %1458 = arith.addf %1457, %1456 : vector<4x32xf32>
    %1459 = vector.extract_strided_slice %1407 {offsets = [0, 8], sizes = [4, 8], strides = [1, 1]} : vector<4x32xf32> to vector<4x8xf32>
    %cst_555 = arith.constant 0.353553385 : f32
    %1460 = vector.broadcast %cst_555 : f32 to vector<4x8xf32>
    %1461 = arith.mulf %1459, %1460 : vector<4x8xf32>
    %1462 = vector.extract_strided_slice %1433 {offsets = [0, 8], sizes = [4, 8], strides = [1, 1]} : vector<4x32xf32> to vector<4x8xf32>
    %1463 = vector.extract_strided_slice %1434 {offsets = [0, 8], sizes = [4, 8], strides = [1, 1]} : vector<4x32xf32> to vector<4x8xf32>
    %cst_556 = arith.constant dense<0.000000e+00> : vector<4x4xf32>
    %1464 = tpu.matmul %1461, %1462, %cst_556 {dimension_numbers = #tpu.dot_dimension_numbers<[1], [1], [0], [0], [0, 0, 1, 0], [], []>} : vector<4x8xf32>, vector<4x8xf32>, vector<4x4xf32> -> vector<4x4xf32>
    %cst_557 = arith.constant dense<0xFF800000> : vector<4xf32>
    %1465 = vector.multi_reduction <maximumf>, %1464, %cst_557 [1] : vector<4x4xf32> to vector<4xf32>
    %1466 = vector.shape_cast %1465 : vector<4xf32> to vector<4x1xf32>
    %1467 = vector.broadcast %1466 : vector<4x1xf32> to vector<4x4xf32>
    %1468 = arith.subf %1464, %1467 : vector<4x4xf32>
    %1469 = math.exp %1468 : vector<4x4xf32>
    %cst_558 = arith.constant dense<0.000000e+00> : vector<4xf32>
    %1470 = vector.multi_reduction <add>, %1469, %cst_558 [1] : vector<4x4xf32> to vector<4xf32>
    %1471 = vector.shape_cast %1470 : vector<4xf32> to vector<4x1xf32>
    %1472 = tpu.reciprocal %1471 {approx = true} : vector<4x1xf32> -> vector<4x1xf32>
    %1473 = vector.broadcast %1472 : vector<4x1xf32> to vector<4x4xf32>
    %1474 = arith.mulf %1469, %1473 : vector<4x4xf32>
    %cst_559 = arith.constant dense<0.000000e+00> : vector<4x8xf32>
    %1475 = tpu.matmul %1474, %1463, %cst_559 {dimension_numbers = #tpu.dot_dimension_numbers<[1], [0], [0], [1], [0, 0, 1, 1], [], []>} : vector<4x4xf32>, vector<4x8xf32>, vector<4x8xf32> -> vector<4x8xf32>
    %1476 = vector.extract_strided_slice %1436 {offsets = [8, 0], sizes = [8, 32], strides = [1, 1]} : vector<32x32xf32> to vector<8x32xf32>
    %cst_560 = arith.constant dense<0.000000e+00> : vector<4x32xf32>
    %1477 = tpu.matmul %1475, %1476, %cst_560 {dimension_numbers = #tpu.dot_dimension_numbers<[1], [0], [0], [1], [0, 0, 1, 1], [], []>} : vector<4x8xf32>, vector<8x32xf32>, vector<4x32xf32> -> vector<4x32xf32>
    %1478 = arith.addf %1458, %1477 : vector<4x32xf32>
    %1479 = vector.extract_strided_slice %1407 {offsets = [0, 16], sizes = [4, 8], strides = [1, 1]} : vector<4x32xf32> to vector<4x8xf32>
    %cst_561 = arith.constant 0.353553385 : f32
    %1480 = vector.broadcast %cst_561 : f32 to vector<4x8xf32>
    %1481 = arith.mulf %1479, %1480 : vector<4x8xf32>
    %1482 = vector.extract_strided_slice %1433 {offsets = [0, 16], sizes = [4, 8], strides = [1, 1]} : vector<4x32xf32> to vector<4x8xf32>
    %1483 = vector.extract_strided_slice %1434 {offsets = [0, 16], sizes = [4, 8], strides = [1, 1]} : vector<4x32xf32> to vector<4x8xf32>
    %cst_562 = arith.constant dense<0.000000e+00> : vector<4x4xf32>
    %1484 = tpu.matmul %1481, %1482, %cst_562 {dimension_numbers = #tpu.dot_dimension_numbers<[1], [1], [0], [0], [0, 0, 1, 0], [], []>} : vector<4x8xf32>, vector<4x8xf32>, vector<4x4xf32> -> vector<4x4xf32>
    %cst_563 = arith.constant dense<0xFF800000> : vector<4xf32>
    %1485 = vector.multi_reduction <maximumf>, %1484, %cst_563 [1] : vector<4x4xf32> to vector<4xf32>
    %1486 = vector.shape_cast %1485 : vector<4xf32> to vector<4x1xf32>
    %1487 = vector.broadcast %1486 : vector<4x1xf32> to vector<4x4xf32>
    %1488 = arith.subf %1484, %1487 : vector<4x4xf32>
    %1489 = math.exp %1488 : vector<4x4xf32>
    %cst_564 = arith.constant dense<0.000000e+00> : vector<4xf32>
    %1490 = vector.multi_reduction <add>, %1489, %cst_564 [1] : vector<4x4xf32> to vector<4xf32>
    %1491 = vector.shape_cast %1490 : vector<4xf32> to vector<4x1xf32>
    %1492 = tpu.reciprocal %1491 {approx = true} : vector<4x1xf32> -> vector<4x1xf32>
    %1493 = vector.broadcast %1492 : vector<4x1xf32> to vector<4x4xf32>
    %1494 = arith.mulf %1489, %1493 : vector<4x4xf32>
    %cst_565 = arith.constant dense<0.000000e+00> : vector<4x8xf32>
    %1495 = tpu.matmul %1494, %1483, %cst_565 {dimension_numbers = #tpu.dot_dimension_numbers<[1], [0], [0], [1], [0, 0, 1, 1], [], []>} : vector<4x4xf32>, vector<4x8xf32>, vector<4x8xf32> -> vector<4x8xf32>
    %1496 = vector.extract_strided_slice %1436 {offsets = [16, 0], sizes = [8, 32], strides = [1, 1]} : vector<32x32xf32> to vector<8x32xf32>
    %cst_566 = arith.constant dense<0.000000e+00> : vector<4x32xf32>
    %1497 = tpu.matmul %1495, %1496, %cst_566 {dimension_numbers = #tpu.dot_dimension_numbers<[1], [0], [0], [1], [0, 0, 1, 1], [], []>} : vector<4x8xf32>, vector<8x32xf32>, vector<4x32xf32> -> vector<4x32xf32>
    %1498 = arith.addf %1478, %1497 : vector<4x32xf32>
    %1499 = vector.extract_strided_slice %1407 {offsets = [0, 24], sizes = [4, 8], strides = [1, 1]} : vector<4x32xf32> to vector<4x8xf32>
    %cst_567 = arith.constant 0.353553385 : f32
    %1500 = vector.broadcast %cst_567 : f32 to vector<4x8xf32>
    %1501 = arith.mulf %1499, %1500 : vector<4x8xf32>
    %1502 = vector.extract_strided_slice %1433 {offsets = [0, 24], sizes = [4, 8], strides = [1, 1]} : vector<4x32xf32> to vector<4x8xf32>
    %1503 = vector.extract_strided_slice %1434 {offsets = [0, 24], sizes = [4, 8], strides = [1, 1]} : vector<4x32xf32> to vector<4x8xf32>
    %cst_568 = arith.constant dense<0.000000e+00> : vector<4x4xf32>
    %1504 = tpu.matmul %1501, %1502, %cst_568 {dimension_numbers = #tpu.dot_dimension_numbers<[1], [1], [0], [0], [0, 0, 1, 0], [], []>} : vector<4x8xf32>, vector<4x8xf32>, vector<4x4xf32> -> vector<4x4xf32>
    %cst_569 = arith.constant dense<0xFF800000> : vector<4xf32>
    %1505 = vector.multi_reduction <maximumf>, %1504, %cst_569 [1] : vector<4x4xf32> to vector<4xf32>
    %1506 = vector.shape_cast %1505 : vector<4xf32> to vector<4x1xf32>
    %1507 = vector.broadcast %1506 : vector<4x1xf32> to vector<4x4xf32>
    %1508 = arith.subf %1504, %1507 : vector<4x4xf32>
    %1509 = math.exp %1508 : vector<4x4xf32>
    %cst_570 = arith.constant dense<0.000000e+00> : vector<4xf32>
    %1510 = vector.multi_reduction <add>, %1509, %cst_570 [1] : vector<4x4xf32> to vector<4xf32>
    %1511 = vector.shape_cast %1510 : vector<4xf32> to vector<4x1xf32>
    %1512 = tpu.reciprocal %1511 {approx = true} : vector<4x1xf32> -> vector<4x1xf32>
    %1513 = vector.broadcast %1512 : vector<4x1xf32> to vector<4x4xf32>
    %1514 = arith.mulf %1509, %1513 : vector<4x4xf32>
    %cst_571 = arith.constant dense<0.000000e+00> : vector<4x8xf32>
    %1515 = tpu.matmul %1514, %1503, %cst_571 {dimension_numbers = #tpu.dot_dimension_numbers<[1], [0], [0], [1], [0, 0, 1, 1], [], []>} : vector<4x4xf32>, vector<4x8xf32>, vector<4x8xf32> -> vector<4x8xf32>
    %1516 = vector.extract_strided_slice %1436 {offsets = [24, 0], sizes = [8, 32], strides = [1, 1]} : vector<32x32xf32> to vector<8x32xf32>
    %cst_572 = arith.constant dense<0.000000e+00> : vector<4x32xf32>
    %1517 = tpu.matmul %1515, %1516, %cst_572 {dimension_numbers = #tpu.dot_dimension_numbers<[1], [0], [0], [1], [0, 0, 1, 1], [], []>} : vector<4x8xf32>, vector<8x32xf32>, vector<4x32xf32> -> vector<4x32xf32>
    %1518 = arith.addf %1498, %1517 : vector<4x32xf32>
    %1519 = arith.addf %1026, %1518 : vector<4x32xf32>
    %1520 = vector.extract_strided_slice %1382 {offsets = [0, 0], sizes = [1, 32], strides = [1, 1]} : vector<11x32xf32> to vector<1x32xf32>
    %1521 = vector.extract_strided_slice %1382 {offsets = [1, 0], sizes = [1, 32], strides = [1, 1]} : vector<11x32xf32> to vector<1x32xf32>
    %cst_573 = arith.constant dense<0.000000e+00> : vector<4xf32>
    %1522 = vector.multi_reduction <add>, %1519, %cst_573 [1] : vector<4x32xf32> to vector<4xf32>
    %1523 = vector.shape_cast %1522 : vector<4xf32> to vector<4x1xf32>
    %cst_574 = arith.constant 3.200000e+01 : f32
    %1524 = vector.broadcast %cst_574 : f32 to vector<4x1xf32>
    %1525 = arith.divf %1523, %1524 : vector<4x1xf32>
    %1526 = vector.broadcast %1525 : vector<4x1xf32> to vector<4x32xf32>
    %1527 = arith.subf %1519, %1526 : vector<4x32xf32>
    %1528 = arith.mulf %1527, %1527 : vector<4x32xf32>
    %cst_575 = arith.constant dense<0.000000e+00> : vector<4xf32>
    %1529 = vector.multi_reduction <add>, %1528, %cst_575 [1] : vector<4x32xf32> to vector<4xf32>
    %1530 = vector.shape_cast %1529 : vector<4xf32> to vector<4x1xf32>
    %cst_576 = arith.constant 3.200000e+01 : f32
    %1531 = vector.broadcast %cst_576 : f32 to vector<4x1xf32>
    %1532 = arith.divf %1530, %1531 : vector<4x1xf32>
    %cst_577 = arith.constant 9.99999974E-6 : f32
    %1533 = vector.broadcast %cst_577 : f32 to vector<4x1xf32>
    %1534 = arith.addf %1532, %1533 : vector<4x1xf32>
    %1535 = math.rsqrt %1534 : vector<4x1xf32>
    %1536 = vector.broadcast %1535 : vector<4x1xf32> to vector<4x32xf32>
    %1537 = arith.mulf %1527, %1536 : vector<4x32xf32>
    %1538 = vector.broadcast %1520 : vector<1x32xf32> to vector<4x32xf32>
    %1539 = arith.mulf %1537, %1538 : vector<4x32xf32>
    %1540 = vector.broadcast %1521 : vector<1x32xf32> to vector<4x32xf32>
    %1541 = arith.addf %1539, %1540 : vector<4x32xf32>
    %c5_578 = arith.constant 5 : index
    %c0_579 = arith.constant 0 : index
    %c0_580 = arith.constant 0 : index
    %1542 = vector.load %arg4[%c5_578, %c0_579, %c0_580] : memref<6x32x96xf32, #tpu.memory_space<vmem>>, vector<1x32x96xf32>
    %1543 = vector.shape_cast %1542 : vector<1x32x96xf32> to vector<32x96xf32>
    %cst_581 = arith.constant dense<0.000000e+00> : vector<4x96xf32>
    %1544 = tpu.matmul %1541, %1543, %cst_581 {dimension_numbers = #tpu.dot_dimension_numbers<[1], [0], [0], [1], [0, 0, 1, 1], [], []>} : vector<4x32xf32>, vector<32x96xf32>, vector<4x96xf32> -> vector<4x96xf32>
    %1545 = vector.extract_strided_slice %1544 {offsets = [0, 0], sizes = [4, 32], strides = [1, 1]} : vector<4x96xf32> to vector<4x32xf32>
    %1546 = vector.extract_strided_slice %1544 {offsets = [0, 32], sizes = [4, 32], strides = [1, 1]} : vector<4x96xf32> to vector<4x32xf32>
    %1547 = vector.extract_strided_slice %1544 {offsets = [0, 64], sizes = [4, 32], strides = [1, 1]} : vector<4x96xf32> to vector<4x32xf32>
    %c5_582 = arith.constant 5 : index
    %c0_583 = arith.constant 0 : index
    %c0_584 = arith.constant 0 : index
    %1548 = vector.load %arg5[%c5_582, %c0_583, %c0_584] : memref<6x32x32xf32, #tpu.memory_space<vmem>>, vector<1x32x32xf32>
    %1549 = vector.shape_cast %1548 : vector<1x32x32xf32> to vector<32x32xf32>
    %1550 = vector.extract_strided_slice %1382 {offsets = [4, 0], sizes = [1, 32], strides = [1, 1]} : vector<11x32xf32> to vector<1x32xf32>
    %1551 = vector.extract_strided_slice %1545 {offsets = [0, 0], sizes = [4, 8], strides = [1, 1]} : vector<4x32xf32> to vector<4x8xf32>
    %cst_585 = arith.constant 0.353553385 : f32
    %1552 = vector.broadcast %cst_585 : f32 to vector<4x8xf32>
    %1553 = arith.mulf %1551, %1552 : vector<4x8xf32>
    %1554 = vector.extract_strided_slice %1546 {offsets = [0, 0], sizes = [4, 8], strides = [1, 1]} : vector<4x32xf32> to vector<4x8xf32>
    %1555 = vector.extract_strided_slice %1547 {offsets = [0, 0], sizes = [4, 8], strides = [1, 1]} : vector<4x32xf32> to vector<4x8xf32>
    %cst_586 = arith.constant dense<0.000000e+00> : vector<4x4xf32>
    %1556 = tpu.matmul %1553, %1554, %cst_586 {dimension_numbers = #tpu.dot_dimension_numbers<[1], [1], [0], [0], [0, 0, 1, 0], [], []>} : vector<4x8xf32>, vector<4x8xf32>, vector<4x4xf32> -> vector<4x4xf32>
    %cst_587 = arith.constant dense<0xFF800000> : vector<4xf32>
    %1557 = vector.multi_reduction <maximumf>, %1556, %cst_587 [1] : vector<4x4xf32> to vector<4xf32>
    %1558 = vector.shape_cast %1557 : vector<4xf32> to vector<4x1xf32>
    %1559 = vector.broadcast %1558 : vector<4x1xf32> to vector<4x4xf32>
    %1560 = arith.subf %1556, %1559 : vector<4x4xf32>
    %1561 = math.exp %1560 : vector<4x4xf32>
    %cst_588 = arith.constant dense<0.000000e+00> : vector<4xf32>
    %1562 = vector.multi_reduction <add>, %1561, %cst_588 [1] : vector<4x4xf32> to vector<4xf32>
    %1563 = vector.shape_cast %1562 : vector<4xf32> to vector<4x1xf32>
    %1564 = tpu.reciprocal %1563 {approx = true} : vector<4x1xf32> -> vector<4x1xf32>
    %1565 = vector.broadcast %1564 : vector<4x1xf32> to vector<4x4xf32>
    %1566 = arith.mulf %1561, %1565 : vector<4x4xf32>
    %cst_589 = arith.constant dense<0.000000e+00> : vector<4x8xf32>
    %1567 = tpu.matmul %1566, %1555, %cst_589 {dimension_numbers = #tpu.dot_dimension_numbers<[1], [0], [0], [1], [0, 0, 1, 1], [], []>} : vector<4x4xf32>, vector<4x8xf32>, vector<4x8xf32> -> vector<4x8xf32>
    %1568 = vector.extract_strided_slice %1549 {offsets = [0, 0], sizes = [8, 32], strides = [1, 1]} : vector<32x32xf32> to vector<8x32xf32>
    %cst_590 = arith.constant dense<0.000000e+00> : vector<4x32xf32>
    %1569 = tpu.matmul %1567, %1568, %cst_590 {dimension_numbers = #tpu.dot_dimension_numbers<[1], [0], [0], [1], [0, 0, 1, 1], [], []>} : vector<4x8xf32>, vector<8x32xf32>, vector<4x32xf32> -> vector<4x32xf32>
    %1570 = vector.broadcast %1550 : vector<1x32xf32> to vector<4x32xf32>
    %1571 = arith.addf %1570, %1569 : vector<4x32xf32>
    %1572 = vector.extract_strided_slice %1545 {offsets = [0, 8], sizes = [4, 8], strides = [1, 1]} : vector<4x32xf32> to vector<4x8xf32>
    %cst_591 = arith.constant 0.353553385 : f32
    %1573 = vector.broadcast %cst_591 : f32 to vector<4x8xf32>
    %1574 = arith.mulf %1572, %1573 : vector<4x8xf32>
    %1575 = vector.extract_strided_slice %1546 {offsets = [0, 8], sizes = [4, 8], strides = [1, 1]} : vector<4x32xf32> to vector<4x8xf32>
    %1576 = vector.extract_strided_slice %1547 {offsets = [0, 8], sizes = [4, 8], strides = [1, 1]} : vector<4x32xf32> to vector<4x8xf32>
    %cst_592 = arith.constant dense<0.000000e+00> : vector<4x4xf32>
    %1577 = tpu.matmul %1574, %1575, %cst_592 {dimension_numbers = #tpu.dot_dimension_numbers<[1], [1], [0], [0], [0, 0, 1, 0], [], []>} : vector<4x8xf32>, vector<4x8xf32>, vector<4x4xf32> -> vector<4x4xf32>
    %cst_593 = arith.constant dense<0xFF800000> : vector<4xf32>
    %1578 = vector.multi_reduction <maximumf>, %1577, %cst_593 [1] : vector<4x4xf32> to vector<4xf32>
    %1579 = vector.shape_cast %1578 : vector<4xf32> to vector<4x1xf32>
    %1580 = vector.broadcast %1579 : vector<4x1xf32> to vector<4x4xf32>
    %1581 = arith.subf %1577, %1580 : vector<4x4xf32>
    %1582 = math.exp %1581 : vector<4x4xf32>
    %cst_594 = arith.constant dense<0.000000e+00> : vector<4xf32>
    %1583 = vector.multi_reduction <add>, %1582, %cst_594 [1] : vector<4x4xf32> to vector<4xf32>
    %1584 = vector.shape_cast %1583 : vector<4xf32> to vector<4x1xf32>
    %1585 = tpu.reciprocal %1584 {approx = true} : vector<4x1xf32> -> vector<4x1xf32>
    %1586 = vector.broadcast %1585 : vector<4x1xf32> to vector<4x4xf32>
    %1587 = arith.mulf %1582, %1586 : vector<4x4xf32>
    %cst_595 = arith.constant dense<0.000000e+00> : vector<4x8xf32>
    %1588 = tpu.matmul %1587, %1576, %cst_595 {dimension_numbers = #tpu.dot_dimension_numbers<[1], [0], [0], [1], [0, 0, 1, 1], [], []>} : vector<4x4xf32>, vector<4x8xf32>, vector<4x8xf32> -> vector<4x8xf32>
    %1589 = vector.extract_strided_slice %1549 {offsets = [8, 0], sizes = [8, 32], strides = [1, 1]} : vector<32x32xf32> to vector<8x32xf32>
    %cst_596 = arith.constant dense<0.000000e+00> : vector<4x32xf32>
    %1590 = tpu.matmul %1588, %1589, %cst_596 {dimension_numbers = #tpu.dot_dimension_numbers<[1], [0], [0], [1], [0, 0, 1, 1], [], []>} : vector<4x8xf32>, vector<8x32xf32>, vector<4x32xf32> -> vector<4x32xf32>
    %1591 = arith.addf %1571, %1590 : vector<4x32xf32>
    %1592 = vector.extract_strided_slice %1545 {offsets = [0, 16], sizes = [4, 8], strides = [1, 1]} : vector<4x32xf32> to vector<4x8xf32>
    %cst_597 = arith.constant 0.353553385 : f32
    %1593 = vector.broadcast %cst_597 : f32 to vector<4x8xf32>
    %1594 = arith.mulf %1592, %1593 : vector<4x8xf32>
    %1595 = vector.extract_strided_slice %1546 {offsets = [0, 16], sizes = [4, 8], strides = [1, 1]} : vector<4x32xf32> to vector<4x8xf32>
    %1596 = vector.extract_strided_slice %1547 {offsets = [0, 16], sizes = [4, 8], strides = [1, 1]} : vector<4x32xf32> to vector<4x8xf32>
    %cst_598 = arith.constant dense<0.000000e+00> : vector<4x4xf32>
    %1597 = tpu.matmul %1594, %1595, %cst_598 {dimension_numbers = #tpu.dot_dimension_numbers<[1], [1], [0], [0], [0, 0, 1, 0], [], []>} : vector<4x8xf32>, vector<4x8xf32>, vector<4x4xf32> -> vector<4x4xf32>
    %cst_599 = arith.constant dense<0xFF800000> : vector<4xf32>
    %1598 = vector.multi_reduction <maximumf>, %1597, %cst_599 [1] : vector<4x4xf32> to vector<4xf32>
    %1599 = vector.shape_cast %1598 : vector<4xf32> to vector<4x1xf32>
    %1600 = vector.broadcast %1599 : vector<4x1xf32> to vector<4x4xf32>
    %1601 = arith.subf %1597, %1600 : vector<4x4xf32>
    %1602 = math.exp %1601 : vector<4x4xf32>
    %cst_600 = arith.constant dense<0.000000e+00> : vector<4xf32>
    %1603 = vector.multi_reduction <add>, %1602, %cst_600 [1] : vector<4x4xf32> to vector<4xf32>
    %1604 = vector.shape_cast %1603 : vector<4xf32> to vector<4x1xf32>
    %1605 = tpu.reciprocal %1604 {approx = true} : vector<4x1xf32> -> vector<4x1xf32>
    %1606 = vector.broadcast %1605 : vector<4x1xf32> to vector<4x4xf32>
    %1607 = arith.mulf %1602, %1606 : vector<4x4xf32>
    %cst_601 = arith.constant dense<0.000000e+00> : vector<4x8xf32>
    %1608 = tpu.matmul %1607, %1596, %cst_601 {dimension_numbers = #tpu.dot_dimension_numbers<[1], [0], [0], [1], [0, 0, 1, 1], [], []>} : vector<4x4xf32>, vector<4x8xf32>, vector<4x8xf32> -> vector<4x8xf32>
    %1609 = vector.extract_strided_slice %1549 {offsets = [16, 0], sizes = [8, 32], strides = [1, 1]} : vector<32x32xf32> to vector<8x32xf32>
    %cst_602 = arith.constant dense<0.000000e+00> : vector<4x32xf32>
    %1610 = tpu.matmul %1608, %1609, %cst_602 {dimension_numbers = #tpu.dot_dimension_numbers<[1], [0], [0], [1], [0, 0, 1, 1], [], []>} : vector<4x8xf32>, vector<8x32xf32>, vector<4x32xf32> -> vector<4x32xf32>
    %1611 = arith.addf %1591, %1610 : vector<4x32xf32>
    %1612 = vector.extract_strided_slice %1545 {offsets = [0, 24], sizes = [4, 8], strides = [1, 1]} : vector<4x32xf32> to vector<4x8xf32>
    %cst_603 = arith.constant 0.353553385 : f32
    %1613 = vector.broadcast %cst_603 : f32 to vector<4x8xf32>
    %1614 = arith.mulf %1612, %1613 : vector<4x8xf32>
    %1615 = vector.extract_strided_slice %1546 {offsets = [0, 24], sizes = [4, 8], strides = [1, 1]} : vector<4x32xf32> to vector<4x8xf32>
    %1616 = vector.extract_strided_slice %1547 {offsets = [0, 24], sizes = [4, 8], strides = [1, 1]} : vector<4x32xf32> to vector<4x8xf32>
    %cst_604 = arith.constant dense<0.000000e+00> : vector<4x4xf32>
    %1617 = tpu.matmul %1614, %1615, %cst_604 {dimension_numbers = #tpu.dot_dimension_numbers<[1], [1], [0], [0], [0, 0, 1, 0], [], []>} : vector<4x8xf32>, vector<4x8xf32>, vector<4x4xf32> -> vector<4x4xf32>
    %cst_605 = arith.constant dense<0xFF800000> : vector<4xf32>
    %1618 = vector.multi_reduction <maximumf>, %1617, %cst_605 [1] : vector<4x4xf32> to vector<4xf32>
    %1619 = vector.shape_cast %1618 : vector<4xf32> to vector<4x1xf32>
    %1620 = vector.broadcast %1619 : vector<4x1xf32> to vector<4x4xf32>
    %1621 = arith.subf %1617, %1620 : vector<4x4xf32>
    %1622 = math.exp %1621 : vector<4x4xf32>
    %cst_606 = arith.constant dense<0.000000e+00> : vector<4xf32>
    %1623 = vector.multi_reduction <add>, %1622, %cst_606 [1] : vector<4x4xf32> to vector<4xf32>
    %1624 = vector.shape_cast %1623 : vector<4xf32> to vector<4x1xf32>
    %1625 = tpu.reciprocal %1624 {approx = true} : vector<4x1xf32> -> vector<4x1xf32>
    %1626 = vector.broadcast %1625 : vector<4x1xf32> to vector<4x4xf32>
    %1627 = arith.mulf %1622, %1626 : vector<4x4xf32>
    %cst_607 = arith.constant dense<0.000000e+00> : vector<4x8xf32>
    %1628 = tpu.matmul %1627, %1616, %cst_607 {dimension_numbers = #tpu.dot_dimension_numbers<[1], [0], [0], [1], [0, 0, 1, 1], [], []>} : vector<4x4xf32>, vector<4x8xf32>, vector<4x8xf32> -> vector<4x8xf32>
    %1629 = vector.extract_strided_slice %1549 {offsets = [24, 0], sizes = [8, 32], strides = [1, 1]} : vector<32x32xf32> to vector<8x32xf32>
    %cst_608 = arith.constant dense<0.000000e+00> : vector<4x32xf32>
    %1630 = tpu.matmul %1628, %1629, %cst_608 {dimension_numbers = #tpu.dot_dimension_numbers<[1], [0], [0], [1], [0, 0, 1, 1], [], []>} : vector<4x8xf32>, vector<8x32xf32>, vector<4x32xf32> -> vector<4x32xf32>
    %1631 = arith.addf %1611, %1630 : vector<4x32xf32>
    %1632 = arith.addf %1519, %1631 : vector<4x32xf32>
    %1633 = vector.extract_strided_slice %1382 {offsets = [2, 0], sizes = [1, 32], strides = [1, 1]} : vector<11x32xf32> to vector<1x32xf32>
    %1634 = vector.extract_strided_slice %1382 {offsets = [3, 0], sizes = [1, 32], strides = [1, 1]} : vector<11x32xf32> to vector<1x32xf32>
    %cst_609 = arith.constant dense<0.000000e+00> : vector<4xf32>
    %1635 = vector.multi_reduction <add>, %1632, %cst_609 [1] : vector<4x32xf32> to vector<4xf32>
    %1636 = vector.shape_cast %1635 : vector<4xf32> to vector<4x1xf32>
    %cst_610 = arith.constant 3.200000e+01 : f32
    %1637 = vector.broadcast %cst_610 : f32 to vector<4x1xf32>
    %1638 = arith.divf %1636, %1637 : vector<4x1xf32>
    %1639 = vector.broadcast %1638 : vector<4x1xf32> to vector<4x32xf32>
    %1640 = arith.subf %1632, %1639 : vector<4x32xf32>
    %1641 = arith.mulf %1640, %1640 : vector<4x32xf32>
    %cst_611 = arith.constant dense<0.000000e+00> : vector<4xf32>
    %1642 = vector.multi_reduction <add>, %1641, %cst_611 [1] : vector<4x32xf32> to vector<4xf32>
    %1643 = vector.shape_cast %1642 : vector<4xf32> to vector<4x1xf32>
    %cst_612 = arith.constant 3.200000e+01 : f32
    %1644 = vector.broadcast %cst_612 : f32 to vector<4x1xf32>
    %1645 = arith.divf %1643, %1644 : vector<4x1xf32>
    %cst_613 = arith.constant 9.99999974E-6 : f32
    %1646 = vector.broadcast %cst_613 : f32 to vector<4x1xf32>
    %1647 = arith.addf %1645, %1646 : vector<4x1xf32>
    %1648 = math.rsqrt %1647 : vector<4x1xf32>
    %1649 = vector.broadcast %1648 : vector<4x1xf32> to vector<4x32xf32>
    %1650 = arith.mulf %1640, %1649 : vector<4x32xf32>
    %1651 = vector.broadcast %1633 : vector<1x32xf32> to vector<4x32xf32>
    %1652 = arith.mulf %1650, %1651 : vector<4x32xf32>
    %1653 = vector.broadcast %1634 : vector<1x32xf32> to vector<4x32xf32>
    %1654 = arith.addf %1652, %1653 : vector<4x32xf32>
    %c5_614 = arith.constant 5 : index
    %c0_615 = arith.constant 0 : index
    %c0_616 = arith.constant 0 : index
    %1655 = vector.load %arg6[%c5_614, %c0_615, %c0_616] : memref<6x32x128xf32, #tpu.memory_space<vmem>>, vector<1x32x128xf32>
    %1656 = vector.shape_cast %1655 : vector<1x32x128xf32> to vector<32x128xf32>
    %cst_617 = arith.constant dense<0.000000e+00> : vector<4x128xf32>
    %1657 = tpu.matmul %1654, %1656, %cst_617 {dimension_numbers = #tpu.dot_dimension_numbers<[1], [0], [0], [1], [0, 0, 1, 1], [], []>} : vector<4x32xf32>, vector<32x128xf32>, vector<4x128xf32> -> vector<4x128xf32>
    %c5_618 = arith.constant 5 : index
    %c0_619 = arith.constant 0 : index
    %c0_620 = arith.constant 0 : index
    %1658 = vector.load %arg8[%c5_618, %c0_619, %c0_620] : memref<6x1x128xf32, #tpu.memory_space<vmem>>, vector<1x1x128xf32>
    %1659 = vector.shape_cast %1658 : vector<1x1x128xf32> to vector<1x128xf32>
    %1660 = vector.broadcast %1659 : vector<1x128xf32> to vector<4x128xf32>
    %1661 = arith.addf %1657, %1660 : vector<4x128xf32>
    %cst_621 = arith.constant 5.000000e-01 : f32
    %1662 = vector.broadcast %cst_621 : f32 to vector<4x128xf32>
    %1663 = arith.mulf %1662, %1661 : vector<4x128xf32>
    %cst_622 = arith.constant 0.707106769 : f32
    %1664 = vector.broadcast %cst_622 : f32 to vector<4x128xf32>
    %1665 = arith.mulf %1661, %1664 : vector<4x128xf32>
    %1666 = math.erf %1665 : vector<4x128xf32>
    %cst_623 = arith.constant 1.000000e+00 : f32
    %1667 = vector.broadcast %cst_623 : f32 to vector<4x128xf32>
    %1668 = arith.addf %1667, %1666 : vector<4x128xf32>
    %1669 = arith.mulf %1663, %1668 : vector<4x128xf32>
    %c5_624 = arith.constant 5 : index
    %c0_625 = arith.constant 0 : index
    %c0_626 = arith.constant 0 : index
    %1670 = vector.load %arg7[%c5_624, %c0_625, %c0_626] : memref<6x128x32xf32, #tpu.memory_space<vmem>>, vector<1x128x32xf32>
    %1671 = vector.shape_cast %1670 : vector<1x128x32xf32> to vector<128x32xf32>
    %cst_627 = arith.constant dense<0.000000e+00> : vector<4x32xf32>
    %1672 = tpu.matmul %1669, %1671, %cst_627 {dimension_numbers = #tpu.dot_dimension_numbers<[1], [0], [0], [1], [0, 0, 1, 1], [], []>} : vector<4x128xf32>, vector<128x32xf32>, vector<4x32xf32> -> vector<4x32xf32>
    %1673 = vector.extract_strided_slice %1382 {offsets = [5, 0], sizes = [1, 32], strides = [1, 1]} : vector<11x32xf32> to vector<1x32xf32>
    %1674 = vector.broadcast %1673 : vector<1x32xf32> to vector<4x32xf32>
    %1675 = arith.addf %1672, %1674 : vector<4x32xf32>
    %1676 = arith.addf %1632, %1675 : vector<4x32xf32>
    %cst_628 = arith.constant dense<0.000000e+00> : vector<32xf32>
    %1677 = vector.multi_reduction <add>, %1676, %cst_628 [0] : vector<4x32xf32> to vector<32xf32>
    %1678 = vector.shape_cast %1677 : vector<32xf32> to vector<1x32xf32>
    %cst_629 = arith.constant 4.000000e+00 : f32
    %1679 = vector.broadcast %cst_629 : f32 to vector<1x32xf32>
    %1680 = arith.divf %1678, %1679 : vector<1x32xf32>
    %c0_630 = arith.constant 0 : index
    %c0_631 = arith.constant 0 : index
    %1681 = vector.load %arg20[%c0_630, %c0_631] : memref<2x32xf32, #tpu.memory_space<vmem>>, vector<2x32xf32>
    %1682 = vector.extract_strided_slice %1681 {offsets = [0, 0], sizes = [1, 32], strides = [1, 1]} : vector<2x32xf32> to vector<1x32xf32>
    %1683 = vector.extract_strided_slice %1681 {offsets = [1, 0], sizes = [1, 32], strides = [1, 1]} : vector<2x32xf32> to vector<1x32xf32>
    %cst_632 = arith.constant dense<0.000000e+00> : vector<1xf32>
    %1684 = vector.multi_reduction <add>, %1680, %cst_632 [1] : vector<1x32xf32> to vector<1xf32>
    %1685 = vector.shape_cast %1684 : vector<1xf32> to vector<1x1xf32>
    %cst_633 = arith.constant 3.200000e+01 : f32
    %1686 = vector.broadcast %cst_633 : f32 to vector<1x1xf32>
    %1687 = arith.divf %1685, %1686 : vector<1x1xf32>
    %1688 = vector.broadcast %1687 : vector<1x1xf32> to vector<1x32xf32>
    %1689 = arith.subf %1680, %1688 : vector<1x32xf32>
    %1690 = arith.mulf %1689, %1689 : vector<1x32xf32>
    %cst_634 = arith.constant dense<0.000000e+00> : vector<1xf32>
    %1691 = vector.multi_reduction <add>, %1690, %cst_634 [1] : vector<1x32xf32> to vector<1xf32>
    %1692 = vector.shape_cast %1691 : vector<1xf32> to vector<1x1xf32>
    %cst_635 = arith.constant 3.200000e+01 : f32
    %1693 = vector.broadcast %cst_635 : f32 to vector<1x1xf32>
    %1694 = arith.divf %1692, %1693 : vector<1x1xf32>
    %cst_636 = arith.constant 9.99999974E-6 : f32
    %1695 = vector.broadcast %cst_636 : f32 to vector<1x1xf32>
    %1696 = arith.addf %1694, %1695 : vector<1x1xf32>
    %1697 = math.rsqrt %1696 : vector<1x1xf32>
    %1698 = vector.broadcast %1697 : vector<1x1xf32> to vector<1x32xf32>
    %1699 = arith.mulf %1689, %1698 : vector<1x32xf32>
    %1700 = arith.mulf %1699, %1682 : vector<1x32xf32>
    %1701 = arith.addf %1700, %1683 : vector<1x32xf32>
    %c0_637 = arith.constant 0 : index
    %c0_638 = arith.constant 0 : index
    %1702 = vector.load %arg21[%c0_637, %c0_638] : memref<32x10xf32, #tpu.memory_space<vmem>>, vector<32x10xf32>
    %cst_639 = arith.constant dense<0.000000e+00> : vector<1x10xf32>
    %1703 = tpu.matmul %1701, %1702, %cst_639 {dimension_numbers = #tpu.dot_dimension_numbers<[1], [0], [0], [1], [0, 0, 1, 1], [], []>} : vector<1x32xf32>, vector<32x10xf32>, vector<1x10xf32> -> vector<1x10xf32>
    %c0_640 = arith.constant 0 : index
    %c0_641 = arith.constant 0 : index
    %1704 = vector.load %arg22[%c0_640, %c0_641] : memref<1x10xf32, #tpu.memory_space<vmem>>, vector<1x10xf32>
    %1705 = arith.addf %1703, %1704 : vector<1x10xf32>
    %c0_642 = arith.constant 0 : index
    %c0_643 = arith.constant 0 : index
    %c0_644 = arith.constant 0 : index
    %1706 = vector.load %arg23[%c0_642, %c0_643, %c0_644] : memref<1x1x10xf32, #tpu.memory_space<vmem>>, vector<1x1x10xf32>
    %1707 = vector.shape_cast %1706 : vector<1x1x10xf32> to vector<1x10xf32>
    %1708 = vector.shape_cast %1705 : vector<1x10xf32> to vector<1x1x10xf32>
    tpu.vector_store %arg23[%c0_642, %c0_643, %c0_644], %1708 {strides = array<i32>} : memref<1x1x10xf32, #tpu.memory_space<vmem>>, vector<1x1x10xf32>,
    return
  }
  func.func @transform_0(%arg0: i32) -> (i32, i32, i32) {
    %c0_i32 = arith.constant 0 : i32
    %c0_i32_0 = arith.constant 0 : i32
    %c0_i32_1 = arith.constant 0 : i32
    return %arg0, %c0_i32, %c0_i32_0 : i32, i32, i32
  }
  func.func @transform_1(%arg0: i32) -> (i32, i32) {
    %c0_i32 = arith.constant 0 : i32
    %c0_i32_0 = arith.constant 0 : i32
    %c0_i32_1 = arith.constant 0 : i32
    return %c0_i32, %c0_i32_0 : i32, i32
  }
  func.func @transform_2(%arg0: i32) -> (i32, i32) {
    %c0_i32 = arith.constant 0 : i32
    %c0_i32_0 = arith.constant 0 : i32
    %c0_i32_1 = arith.constant 0 : i32
    return %c0_i32, %c0_i32_0 : i32, i32
  }
  func.func @transform_3(%arg0: i32) -> (i32, i32, i32) {
    %c0_i32 = arith.constant 0 : i32
    %c0_i32_0 = arith.constant 0 : i32
    %c0_i32_1 = arith.constant 0 : i32
    %c0_i32_2 = arith.constant 0 : i32
    return %c0_i32, %c0_i32_0, %c0_i32_1 : i32, i32, i32
  }
  func.func @transform_4(%arg0: i32) -> (i32, i32, i32) {
    %c0_i32 = arith.constant 0 : i32
    %c0_i32_0 = arith.constant 0 : i32
    %c0_i32_1 = arith.constant 0 : i32
    %c0_i32_2 = arith.constant 0 : i32
    return %c0_i32, %c0_i32_0, %c0_i32_1 : i32, i32, i32
  }
  func.func @transform_5(%arg0: i32) -> (i32, i32, i32) {
    %c0_i32 = arith.constant 0 : i32
    %c0_i32_0 = arith.constant 0 : i32
    %c0_i32_1 = arith.constant 0 : i32
    %c0_i32_2 = arith.constant 0 : i32
    return %c0_i32, %c0_i32_0, %c0_i32_1 : i32, i32, i32
  }
  func.func @transform_6(%arg0: i32) -> (i32, i32, i32) {
    %c0_i32 = arith.constant 0 : i32
    %c0_i32_0 = arith.constant 0 : i32
    %c0_i32_1 = arith.constant 0 : i32
    %c0_i32_2 = arith.constant 0 : i32
    return %c0_i32, %c0_i32_0, %c0_i32_1 : i32, i32, i32
  }
  func.func @transform_7(%arg0: i32) -> (i32, i32, i32) {
    %c0_i32 = arith.constant 0 : i32
    %c0_i32_0 = arith.constant 0 : i32
    %c0_i32_1 = arith.constant 0 : i32
    %c0_i32_2 = arith.constant 0 : i32
    return %c0_i32, %c0_i32_0, %c0_i32_1 : i32, i32, i32
  }
  func.func @transform_8(%arg0: i32) -> (i32, i32, i32) {
    %c0_i32 = arith.constant 0 : i32
    %c0_i32_0 = arith.constant 0 : i32
    %c0_i32_1 = arith.constant 0 : i32
    %c0_i32_2 = arith.constant 0 : i32
    return %c0_i32, %c0_i32_0, %c0_i32_1 : i32, i32, i32
  }
  func.func @transform_9(%arg0: i32) -> (i32, i32, i32) {
    %c0_i32 = arith.constant 0 : i32
    %c0_i32_0 = arith.constant 0 : i32
    %c0_i32_1 = arith.constant 0 : i32
    %c0_i32_2 = arith.constant 0 : i32
    return %c0_i32, %c0_i32_0, %c0_i32_1 : i32, i32, i32
  }
  func.func @transform_10(%arg0: i32) -> (i32, i32, i32) {
    %c0_i32 = arith.constant 0 : i32
    %c0_i32_0 = arith.constant 0 : i32
    %c0_i32_1 = arith.constant 0 : i32
    %c0_i32_2 = arith.constant 0 : i32
    return %c0_i32, %c0_i32_0, %c0_i32_1 : i32, i32, i32
  }
  func.func @transform_11(%arg0: i32) -> (i32, i32, i32) {
    %c0_i32 = arith.constant 0 : i32
    %c0_i32_0 = arith.constant 0 : i32
    %c0_i32_1 = arith.constant 0 : i32
    %c0_i32_2 = arith.constant 0 : i32
    return %c0_i32, %c0_i32_0, %c0_i32_1 : i32, i32, i32
  }
  func.func @transform_12(%arg0: i32) -> (i32, i32, i32) {
    %c0_i32 = arith.constant 0 : i32
    %c0_i32_0 = arith.constant 0 : i32
    %c0_i32_1 = arith.constant 0 : i32
    %c0_i32_2 = arith.constant 0 : i32
    return %c0_i32, %c0_i32_0, %c0_i32_1 : i32, i32, i32
  }
  func.func @transform_13(%arg0: i32) -> (i32, i32, i32) {
    %c0_i32 = arith.constant 0 : i32
    %c0_i32_0 = arith.constant 0 : i32
    %c0_i32_1 = arith.constant 0 : i32
    %c0_i32_2 = arith.constant 0 : i32
    return %c0_i32, %c0_i32_0, %c0_i32_1 : i32, i32, i32
  }
  func.func @transform_14(%arg0: i32) -> (i32, i32, i32) {
    %c0_i32 = arith.constant 0 : i32
    %c0_i32_0 = arith.constant 0 : i32
    %c0_i32_1 = arith.constant 0 : i32
    %c0_i32_2 = arith.constant 0 : i32
    return %c0_i32, %c0_i32_0, %c0_i32_1 : i32, i32, i32
  }
  func.func @transform_15(%arg0: i32) -> (i32, i32, i32) {
    %c0_i32 = arith.constant 0 : i32
    %c0_i32_0 = arith.constant 0 : i32
    %c0_i32_1 = arith.constant 0 : i32
    %c0_i32_2 = arith.constant 0 : i32
    return %c0_i32, %c0_i32_0, %c0_i32_1 : i32, i32, i32
  }
  func.func @transform_16(%arg0: i32) -> (i32, i32, i32) {
    %c0_i32 = arith.constant 0 : i32
    %c0_i32_0 = arith.constant 0 : i32
    %c0_i32_1 = arith.constant 0 : i32
    %c0_i32_2 = arith.constant 0 : i32
    return %c0_i32, %c0_i32_0, %c0_i32_1 : i32, i32, i32
  }
  func.func @transform_17(%arg0: i32) -> (i32, i32, i32) {
    %c0_i32 = arith.constant 0 : i32
    %c0_i32_0 = arith.constant 0 : i32
    %c0_i32_1 = arith.constant 0 : i32
    %c0_i32_2 = arith.constant 0 : i32
    return %c0_i32, %c0_i32_0, %c0_i32_1 : i32, i32, i32
  }
  func.func @transform_18(%arg0: i32) -> (i32, i32, i32) {
    %c0_i32 = arith.constant 0 : i32
    %c0_i32_0 = arith.constant 0 : i32
    %c0_i32_1 = arith.constant 0 : i32
    %c0_i32_2 = arith.constant 0 : i32
    return %c0_i32, %c0_i32_0, %c0_i32_1 : i32, i32, i32
  }
  func.func @transform_19(%arg0: i32) -> (i32, i32) {
    %c0_i32 = arith.constant 0 : i32
    %c0_i32_0 = arith.constant 0 : i32
    %c0_i32_1 = arith.constant 0 : i32
    return %c0_i32, %c0_i32_0 : i32, i32
  }
  func.func @transform_20(%arg0: i32) -> (i32, i32) {
    %c0_i32 = arith.constant 0 : i32
    %c0_i32_0 = arith.constant 0 : i32
    %c0_i32_1 = arith.constant 0 : i32
    return %c0_i32, %c0_i32_0 : i32, i32
  }
  func.func @transform_21(%arg0: i32) -> (i32, i32) {
    %c0_i32 = arith.constant 0 : i32
    %c0_i32_0 = arith.constant 0 : i32
    %c0_i32_1 = arith.constant 0 : i32
    return %c0_i32, %c0_i32_0 : i32, i32
  }
  func.func @transform_22(%arg0: i32) -> (i32, i32, i32) {
    %c0_i32 = arith.constant 0 : i32
    %c0_i32_0 = arith.constant 0 : i32
    %c0_i32_1 = arith.constant 0 : i32
    return %arg0, %c0_i32, %c0_i32_0 : i32, i32, i32
  }
}

</mosaic_0001>

<bundles_post_ra>
// kernel: _lambda_.1
= control target key start
LH: loop header
LB: loop body
LE: loop exit
PB: predicated region body
PF: predicated region fallthrough
CT: control target
= control target key end

     0   :  { %s21082_s0 = inlined_call_operand.vmem [shape: f32[2,16,384], index: 0, kind: input, shape index: {}]   ;;  %s21083_s1 = inlined_call_operand.vmem [shape: f32[384,32], index: 1, kind: input, shape index: {}]   ;;  %s21084_s2 = inlined_call_operand.vmem [shape: f32[16,32], index: 2, kind: input, shape index: {}]   ;;  %s21085_s3 = inlined_call_operand.vmem [shape: f32[6,32,96], index: 3, kind: input, shape index: {}]   ;;  %s21086_s4 = inlined_call_operand.vmem [shape: f32[6,32,32], index: 4, kind: input, shape index: {}]   ;;  %s21087_s5 = inlined_call_operand.vmem [shape: f32[6,32,128], index: 5, kind: input, shape index: {}]   ;;  %s21088_s6 = inlined_call_operand.vmem [shape: f32[6,128,32], index: 6, kind: input, shape index: {}]   ;;  %s21089_s7 = inlined_call_operand.vmem [shape: f32[6,1,128], index: 7, kind: input, shape index: {}]   ;;  %s21090_s8 = inlined_call_operand.vmem [shape: f32[6,11,32], index: 8, kind: input, shape index: {}]   ;;  %s21091_s9 = inlined_call_operand.vmem [shape: f32[6,32,32], index: 9, kind: input, shape index: {}]   ;;  %s21092_s10 = inlined_call_operand.vmem [shape: f32[6,32,64], index: 10, kind: input, shape index: {}]   ;;  %s21093_s11 = inlined_call_operand.vmem [shape: f32[6,32,32], index: 11, kind: input, shape index: {}]   ;;  %s21094_s12 = inlined_call_operand.vmem [shape: f32[4,32,32], index: 12, kind: input, shape index: {}]   ;;  %s21095_s13 = inlined_call_operand.vmem [shape: f32[2,1,32], index: 13, kind: input, shape index: {}]   ;;  %s21096_s14 = inlined_call_operand.vmem [shape: f32[2,2,32], index: 14, kind: input, shape index: {}]   ;;  %s21097_s15 = inlined_call_operand.vmem [shape: f32[2,32,128], index: 15, kind: input, shape index: {}]   ;;  %s21098_s16 = inlined_call_operand.vmem [shape: f32[2,1,128], index: 16, kind: input, shape index: {}]   ;;  %s21099_s17 = inlined_call_operand.vmem [shape: f32[2,128,4], index: 17, kind: input, shape index: {}]   ;;  %s21100_s18 = inlined_call_operand.vmem [shape: f32[2,1,4], index: 18, kind: input, shape index: {}]   ;;  %s21101_s19 = inlined_call_operand.vmem [shape: f32[2,32], index: 19, kind: input, shape index: {}]   ;;  %s21102_s20 = inlined_call_operand.vmem [shape: f32[32,10], index: 20, kind: input, shape index: {}]   ;;  %s21103_s21 = inlined_call_operand.vmem [shape: f32[1,10], index: 21, kind: input, shape index: {}]   ;;  %s21104_s22 = inlined_call_operand.hbm [shape: f32[2,1,10], index: 22, kind: output, shape index: {}]  }
   0x1   :  { %21151 = sst [smem:[#allocation15_spill]] %s21082_s0 }
   0x2   :  { %21152 = sst [smem:[#allocation16_spill]] %s21083_s1 }
   0x3   :  { %21153 = sst [smem:[#allocation17_spill]] %s21084_s2 }
   0x4   :  { %21154 = sst [smem:[#allocation18_spill]] %s21085_s3 }
   0x5   :  { %21155 = sst [smem:[#allocation19_spill]] %s21086_s4 }
   0x6   :  { %21156 = sst [smem:[#allocation20_spill]] %s21087_s5 }
   0x7   :  { %21157 = sst [smem:[#allocation21_spill]] %s21088_s6 }
   0x8   :  { %21158 = sst [smem:[#allocation22_spill]] %s21095_s13 }
   0x9   :  { %21159 = sst [smem:[#allocation23_spill]] %s21096_s14 }
   0xa   :  { %21160 = sst [smem:[#allocation24_spill]] %s21097_s15 }
   0xb   :  { %21161 = sst [smem:[#allocation25_spill]] %s21098_s16 }
   0xc   :  { %21162 = sst [smem:[#allocation26_spill]] %s21099_s17 }
   0xd   :  { %21163 = sst [smem:[#allocation27_spill]] %s21100_s18 }
   0xe   :  { %21164 = sst [smem:[#allocation28_spill]] %s21101_s19 }
   0xf   :  { %21165 = sst [smem:[#allocation29_spill]] %s21102_s20 }
  0x10   :  { %21166 = sst [smem:[#allocation30_spill]] %s21103_s21 }
  0x11   :  { %21167 = sst [smem:[#allocation31_spill]] %s21104_s22 }
  0x12   :  { %27 = vsyncpa [#allocation4], 0 }
  0x13   :  { %29 = vsyncpa [#allocation4 + $0x1], 0  ;;  %s18469_s3 = smov 0   ;;  %s18471_s28 = smov 0  }
  0x14   :  { %s18473_s29 = smov 0   ;;  %s18475_s30 = smov 0  }
  0x15 LB: > { %21168 = sst [smem:[#allocation6_spill]] %s18325_s3  ;;  %s18490_s4 = sadd.s32 4294967295, %s18337_s30   ;;  %s18337_s30 = sphi %s18475_s30, %s21229_s30   ;;  %s18333_s29 = sphi %s18473_s29, %s21232_s29   ;;  %s18329_s28 = sphi %s18471_s28, %s21231_s28   ;;  %s18325_s3 = sphi %s18469_s3, %s21230_s3  }
  0x16   : > { %21169 = sst [smem:[#allocation7_spill]] %s18329_s28  ;;  %s14944_s0 = sadd.s32 4294967294, %s18337_s30  }
  0x17   : > { %21170 = sst [smem:[#allocation8_spill]] %s18333_s29  ;;  %s18494_s23 = sadd.s32 1, %s18337_s30  }
  0x18   : > { %21171 = sst [smem:[#allocation9_spill]] %s18337_s30  ;;  %s509_s1 = sadd.s32 1, %s18333_s29 }
  0x19   : > { %21172 = sst [smem:[#allocation10_spill]] %s18490_s4  ;;  %s506_s5 = ssub.s32 %s18337_s30, %s18494_s23 }
  0x1a   : > { %21173 = sst [smem:[#allocation11_spill]] %s18494_s23  ;;  %p519_p0 = scmp.ne.s32.totalorder %s18333_s29, %s18329_s28 }
  0x1b   : > { %p507_p1 = scmp.eq.s32.totalorder %s506_s5, 0  ;;  %p520_p2 = scmp.eq.s32.totalorder %s18490_s4, 1 }
  0x1c   : > { %p525_p3 = scmp.ne.s32.totalorder %s18329_s28, %s18325_s3  ;;  %p526_p4 = scmp.eq.s32.totalorder %s14944_s0, 1 }
  0x1d   : > { %s18505_s24 = scalar_select %p507_p1, %s18333_s29, %s509_s1  }
  0x1e   : > { %p18507_p5 = por %p520_p2, %p519_p0  ;;  %p18511_p6 = por %p526_p4, %p525_p3 }
  0x1f   : > { %21174 = sst [smem:[#allocation12_spill]] %s18505_s24  ;;  %p14947_p7 = scmp.ge.s32.totalorder %s18337_s30, 1 }
  0x20   : > { %s21175_s6 = scalar_select %p18507_p5, 1, 0 }
  0x21   : > { %s21177_s25 = scalar_select %p18511_p6, 1, 0 }
  0x22   : > { %21176 = sst [smem:[#allocation13_spill]] %s21175_s6  ;;  %p615_p8 = scmp.lt.s32.totalorder %s18337_s30, 3 }
  0x23   : > { %21178 = sst [smem:[#allocation14_spill]] %s21177_s25 }
  0x24   : > { %p616_p9 = pnand %p14947_p7, %p615_p8 }
  0x25   : > { %s21179_s27 = sld [smem:[#allocation16_spill]] (!%p616_p9)  ;;  %p676_p10 = scmp.lt.s32.totalorder (!%p616_p9), %s18490_s4, 1  ;;  %vm888_vm0 = vcmask (!%p616_p9), 261120   ;;  %vm1025_vm1 = vcmask (!%p616_p9), 64512   ;;  %vm1111_vm3 = vcmask (!%p616_p9), 130048   ;;  %vm18351_vm4 = vmmov (!%p616_p9), 0  }
  0x26   : > { %619 = sbr.rel (%p616_p9) target bundleno = 38787 (0x9783), region = 108  ;;  %s21180_s22 = sld [smem:[#allocation15_spill]] (!%p616_p9)  ;;  %vm18748_vm2 = vmpackc.low (!%p616_p9), %vm1025_vm1, %vm1025_vm1  ;;  %vm3908_vm5 = vcmask (!%p616_p9), 257024   ;;  %vm3996_vm6 = vcmask (!%p616_p9), 261124   ;;  %vm4333_vm7 = vcmask (!%p616_p9), 1043456   ;;  %vm4317_vm8 = vcmask (!%p616_p9), 27648  }
  0x27   : > { %s21182_s30 = sld [smem:[#allocation18_spill]] (!%p616_p9)  ;;  %s21136_s23 = smov (!%p616_p9), 88   ;;  %vm4329_vm9 = vcmask (!%p616_p9), 31744   ;;  %vm14874_vm10 = vcmask (!%p616_p9), 73728  }
  0x28   : > { %s21128_s3 = smov (!%p616_p9), 112   ;;  %s21186_s1 = sld [smem:[#allocation19_spill]] (!%p616_p9) }
  0x29   : > { %s21118_s24 = smov (!%p616_p9), 80   ;;  %s21120_s29 = smov (!%p616_p9), 104  }
  0x2a   : > { %s21130_s2 = smov (!%p616_p9), 56   ;;  %s21194_s0 = smov (!%p616_p9), 112  }
  0x2b   : > { %v703_v0 = vld [vmem:[%s21179_s27 + $0x80] sm:$0xff] (!%p616_p9)  ;;  %v704_v1 = vld [vmem:[%s21179_s27 + $0x88] sm:$0xff] (!%p616_p9)  ;;  %v705_v9 = vld [vmem:[%s21179_s27 + $0x90] sm:$0xff] (!%p616_p9)  ;;  %s21198_s6 = smov (!%p616_p9), 48   ;;  %s21200_s13 = sld [smem:[#allocation22_spill]] (!%p616_p9) }
  0x2c   : > { %v687_v2 = vld [vmem:[%s21179_s27] sm:$0xff] (!%p616_p9)  ;;  %v17325_v3 = vpack.c.bf16 (!%p616_p9), %v704_v1, %v703_v0  ;;  %v688_v4 = vld [vmem:[%s21179_s27 + $0x8] sm:$0xff] (!%p616_p9)  ;;  %v706_v10 = vld [vmem:[%s21179_s27 + $0x98] sm:$0xff] (!%p616_p9)  ;;  %s21201_s15 = sld [smem:[#allocation24_spill]] (!%p616_p9)  ;;  %s21202_s14 = sld [smem:[#allocation23_spill]] (!%p616_p9) }
  0x2d   : > { %v719_v5 = vld [vmem:[%s21179_s27 + $0x100] sm:$0xff]  ;;  %v720_v6 = vld [vmem:[%s21179_s27 + $0x108] sm:$0xff]  ;;  %v17327_v7 = vpack.c.bf16 %v688_v4, %v687_v2  ;;  %v689_v11 = vld [vmem:[%s21179_s27 + $0x10] sm:$0xff]  ;;  %v17329_v12 = vpack.c.bf16 %v706_v10, %v705_v9  ;;  %s18566_s26 = scalar_select %p676_p10, %s18490_s4, 1 }
  0x2e   : > { %v17357_v8 = vpack.c.bf16 %v720_v6, %v719_v5  ;;  %17326 = vmatprep.subr.bf16.mxu0 %v17325_v3  ;;  %v690_v13 = vld [vmem:[%s21179_s27 + $0x18] sm:$0xff]  ;;  %v721_v14 = vld [vmem:[%s21179_s27 + $0x110] sm:$0xff]  ;;  %v707_v18 = vld [vmem:[%s21179_s27 + $0xa0] sm:$0xff]  ;;  %s21183_s25 = smov %s21182_s30  ;;  %s21203_s17 = sld [smem:[#allocation26_spill]] }
  0x2f   : > { %v722_v15 = vld [vmem:[%s21179_s27 + $0x118] sm:$0xff]  ;;  %17328 = vmatpush3.bf16.msra.mxu0 %v17327_v7  ;;  %v17331_v16 = vpack.c.bf16 %v690_v13, %v689_v11  ;;  %v708_v19 = vld [vmem:[%s21179_s27 + $0xa8] sm:$0xff]  ;;  %v691_v20 = vld [vmem:[%s21179_s27 + $0x20] sm:$0xff]  ;;  %s17869_s5 = smul.u32 48, %s18566_s26  ;;  %s21132_s26 = smov 64  }
  0x30   : > { %17358 = vmatprep.subr.bf16.mxu1 %v17357_v8  ;;  %v17361_v17 = vpack.c.bf16 %v722_v15, %v721_v14  ;;  %17330 = vmatprep.subr.bf16.mxu0 %v17329_v12  ;;  %v17333_v21 = vpack.c.bf16 %v708_v19, %v707_v18  ;;  %v692_v22 = vld [vmem:[%s21179_s27 + $0x28] sm:$0xff]  ;;  %v723_v23 = vld [vmem:[%s21179_s27 + $0x120] sm:$0xff]  ;;  %v709_v26 = vld [vmem:[%s21179_s27 + $0xb0] sm:$0xff]  ;;  %s21204_s16 = sld [smem:[#allocation25_spill]]  ;;  %s21205_s18 = sld [smem:[#allocation27_spill]] }
  0x31   : > { %17360 = vmatpush3.bf16.msra.mxu1 %v17357_v8  ;;  %v724_v24 = vld [vmem:[%s21179_s27 + $0x128] sm:$0xff]  ;;  %v710_v27 = vld [vmem:[%s21179_s27 + $0xb8] sm:$0xff]  ;;  %v725_v28 = vld [vmem:[%s21179_s27 + $0x130] sm:$0xff]  ;;  %v17335_v30 = vpack.c.bf16 %v692_v22, %v691_v20  ;;  %s18611_s21 = scalar_lea.vmem %s21180_s22, %s17869_s5  ;;  %s21181_s22 = sld [smem:[#allocation17_spill]] }
  0x32   : > { %17362 = vmatprep.subr.bf16.mxu1 %v17361_v17  ;;  %v17365_v25 = vpack.c.bf16 %v724_v24, %v723_v23  ;;  %v726_v29 = vld [vmem:[%s21179_s27 + $0x138] sm:$0xff]  ;;  %v17337_v31 = vpack.c.bf16 %v710_v27, %v709_v26  ;;  %v693_v32 = vld [vmem:[%s21179_s27 + $0x30] sm:$0xff]  ;;  %v711_v35 = vld [vmem:[%s21179_s27 + $0xc0] sm:$0xff]  ;;  %s21126_s5 = smov 72   ;;  %s21207_s28 = smov 64  }
  0x33   : > { %17332 = vmatpush3.bf16.msra.mxu0 %v17331_v16  ;;  %v694_v33 = vld [vmem:[%s21179_s27 + $0x38] sm:$0xff]  ;;  %v17369_v34 = vpack.c.bf16 %v726_v29, %v725_v28  ;;  %v712_v36 = vld [vmem:[%s21179_s27 + $0xc8] sm:$0xff]  ;;  %v727_v37 = vld [vmem:[%s21179_s27 + $0x140] sm:$0xff]  ;;  %s21210_s4 = smov 56   ;;  %s21211_s20 = smov 48  }
  0x34   : > { %17334 = vmatprep.subr.bf16.mxu0 %v17333_v21  ;;  %v728_v38 = vld [vmem:[%s21179_s27 + $0x148] sm:$0xff]  ;;  %v17339_v39 = vpack.c.bf16 %v694_v33, %v693_v32  ;;  %v17341_v40 = vpack.c.bf16 %v712_v36, %v711_v35  ;;  %v695_v41 = vld [vmem:[%s21179_s27 + $0x40] sm:$0xff]  ;;  %v713_v44 = vld [vmem:[%s21179_s27 + $0xd0] sm:$0xff] }
  0x35   : > { %17364 = vmatpush3.bf16.msra.mxu1 %v17361_v17  ;;  %v696_v42 = vld [vmem:[%s21179_s27 + $0x48] sm:$0xff]  ;;  %v17373_v43 = vpack.c.bf16 %v728_v38, %v727_v37  ;;  %v714_v45 = vld [vmem:[%s21179_s27 + $0xd8] sm:$0xff]  ;;  %v729_v46 = vld [vmem:[%s21179_s27 + $0x150] sm:$0xff] }
  0x36   : > { %17366 = vmatprep.subr.bf16.mxu1 %v17365_v25  ;;  %v730_v47 = vld [vmem:[%s21179_s27 + $0x158] sm:$0xff]  ;;  %v682_v48 = vld [vmem:[%s18611_s21 + $0x8] sm:$0xff]  ;;  %v17343_v49 = vpack.c.bf16 %v696_v42, %v695_v41  ;;  %v683_v50 = vld [vmem:[%s18611_s21 + $0x10] sm:$0xff]  ;;  %v17345_v51 = vpack.c.bf16 %v714_v45, %v713_v44 }
  0x37   : > { %17336 = vmatpush3.bf16.msra.mxu0 %v17335_v30  ;;  %801 = vmatprep.mubr.f32.mxu0 %v682_v48  ;;  %v697_v52 = vld [vmem:[%s21179_s27 + $0x50] sm:$0xff]  ;;  %v698_v53 = vld [vmem:[%s21179_s27 + $0x58] sm:$0xff]  ;;  %v17377_v54 = vpack.c.bf16 %v730_v47, %v729_v46  ;;  %v715_v55 = vld [vmem:[%s21179_s27 + $0xe0] sm:$0xff]  ;;  %v916_v48 = vlaneseq }
  0x38   : > { %17338 = vmatprep.subr.bf16.mxu0 %v17337_v31  ;;  %v716_v56 = vld [vmem:[%s21179_s27 + $0xe8] sm:$0xff]  ;;  %16098 = vmatprep.mubr.f32.mxu1 %v683_v50  ;;  %v731_v57 = vld [vmem:[%s21179_s27 + $0x160] sm:$0xff]  ;;  %v17347_v59 = vpack.c.bf16 %v698_v53, %v697_v52  ;;  %v717_v0 = vld [vmem:[%s21179_s27 + $0xf0] sm:$0xff] }
  0x39   : > { %17368 = vmatpush3.bf16.msra.mxu1 %v17365_v25  ;;  %v732_v58 = vld [vmem:[%s21179_s27 + $0x168] sm:$0xff]  ;;  %v17349_v60 = vpack.c.bf16 %v716_v56, %v715_v55  ;;  %v699_v61 = vld [vmem:[%s21179_s27 + $0x60] sm:$0xff]  ;;  %v718_v1 = vld [vmem:[%s21179_s27 + $0xf8] sm:$0xff]  ;;  %v18709_v52 = vshrl.u32 %v916_v48, 7 }
  0x3a   : > { %17370 = vmatprep.subr.bf16.mxu1 %v17369_v34  ;;  %v700_v62 = vld [vmem:[%s21179_s27 + $0x68] sm:$0xff]  ;;  %v17381_v63 = vpack.c.bf16 %v732_v58, %v731_v57  ;;  %v733_v2 = vld [vmem:[%s21179_s27 + $0x170] sm:$0xff]  ;;  %v734_v3 = vld [vmem:[%s21179_s27 + $0x178] sm:$0xff]  ;;  %v17353_v5 = vpack.c.bf16 %v718_v1, %v717_v0 }
  0x3b   : > { %17340 = vmatpush3.bf16.msra.mxu0 %v17339_v39  ;;  %v17351_v4 = vpack.c.bf16 %v700_v62, %v699_v61  ;;  %v701_v6 = vld [vmem:[%s21179_s27 + $0x70] sm:$0xff]  ;;  %v702_v7 = vld [vmem:[%s21179_s27 + $0x78] sm:$0xff]  ;;  %v17385_v8 = vpack.c.bf16 %v734_v3, %v733_v2  ;;  %v681_v10 = vld [vmem:[%s18611_s21] sm:$0xff]  ;;  %v18720_v56 = vsub.s32 1, %v18709_v52  ;;  %s21195_s27 = smov 72  }
  0x3c   : > { %17342 = vmatprep.subr.bf16.mxu0 %v17341_v40  ;;  %v17355_v9 = vpack.c.bf16 %v702_v7, %v701_v6  ;;  %v685_v11 = vld [vmem:[%s18611_s21 + $0x20] sm:$0xff]  ;;  %v686_v12 = vld [vmem:[%s18611_s21 + $0x28] sm:$0xff]  ;;  %v684_v13 = vld [vmem:[%s18611_s21 + $0x18] sm:$0xff]  ;;  %s21138_s21 = smov 96  }
  0x3d   : > { %17372 = vmatpush3.bf16.msra.mxu1 %v17369_v34  ;;  %v735_v17 = vld [vmem:[%s21181_s22] sm:$0xff]  ;;  %v736_v22 = vld [vmem:[%s21181_s22 + $0x8] sm:$0xff]  ;;  %v931_v44 = vld [vmem:[%s21183_s25 + $0x18] sm:$0xff]  ;;  %s21196_s22 = smov 104  }
  0x3e   : > { %17374 = vmatprep.subr.bf16.mxu1 %v17373_v43  ;;  %v928_v40 = vld [vmem:[%s21182_s30] sm:$0xff]  ;;  %v929_v41 = vld [vmem:[%s21183_s25 + $0x8] sm:$0xff]  ;;  %s21134_s30 = smov 120  }
  0x3f   : > { %17344 = vmatpush3.bf16.msra.mxu0 %v17343_v49  ;;  %v17389_v42 = vpack.c.bf16 %v929_v41, %v928_v40  ;;  %v18717_v55 = vld [vmem:[%s21090_s8] sm:$0xff] }
  0x40   : > { %17346 = vmatprep.subr.bf16.mxu0 %v17345_v51 }
  0x41   : > { %17376 = vmatpush3.bf16.msra.mxu1 %v17373_v43  ;;  %v930_v43 = vld [vmem:[%s21183_s25 + $0x10] sm:$0xff] }
  0x42   : > { %17378 = vmatprep.subr.bf16.mxu1 %v17377_v54  ;;  %v17393_v45 = vpack.c.bf16 %v931_v44, %v930_v43 }
  0x43   : > { %17348 = vmatpush3.bf16.msra.mxu0 %v17347_v59 }
  0x44   : > { %17350 = vmatprep.subr.bf16.mxu0 %v17349_v60  ;;  %v925_v60 = vrot.slane %v18717_v55, %v18720_v56 }
  0x45   : > { %17380 = vmatpush3.bf16.msra.mxu1 %v17377_v54  ;;  %v18712_v54 = vsub.s32 0, %v18709_v52 }
  0x46   : > { %17382 = vmatprep.subr.bf16.mxu1 %v17381_v63 }
  0x47   : > { %17352 = vmatpush3.bf16.msra.mxu0 %v17351_v4  ;;  %v919_v57 = vrot.slane %v18717_v55, %v18712_v54 }
  0x48   : > { %17354 = vmatprep.subr.bf16.mxu0 %v17353_v5 }
  0x49   : > { %17384 = vmatpush3.bf16.msra.mxu1 %v17381_v63 }
  0x4a   : > { %17386 = vmatprep.subr.bf16.mxu1 %v17385_v8 }
  0x4b   : > { %17356 = vmatpush3.bf16.msra.mxu0 %v17355_v9 }
  0x4c   : > { %17390 = vmatprep.subr.bf16.mxu0 %v17389_v42 }
  0x4d   : > { %17388 = vmatpush3.bf16.msra.mxu1 %v17385_v8 }
  0x4e   : > { %802 = vmatmul.mubr.f32.vlgmr.msra.gmra.mrb[0].mxu0 %v681_v10 }
  0x4f   : > { %806 = vmatprep.mubr.f32.mxu0 %v685_v11  ;;  %17392 = vmatpush3.bf16.msra.mxu0 %v17389_v42 }
  0x50   : > { %16099 = vmatmul.mubr.f32.vlgmr.msra.gmra.mrb[0].mxu1 %v686_v12  ;;  %17394 = vmatprep.subr.bf16.mxu0 %v17393_v45 }
  0x52   : > { %807 = vmatmul.mubr.f32.gmra.mrb[2].mxu0 %v684_v13  ;;  %v1013_v13 = vld [vmem:[%s21186_s1] sm:$0xff] }
  0x53   : > { %17396 = vmatpush3.bf16.msra.mxu0 %v17393_v45 }
 0x121   : > { %v15479_v14 = vpop.f32.mrb[0].mxu0 }
 0x122   : > { %v15480_v15 = vpop.f32.mrb[1].mxu0 }
 0x123   : > { %v16100_v16 = vpop.f32.mrb[0].mxu1  ;;  %v15481_v18 = vadd.f32 %v15480_v15, %v15479_v14 }
 0x124   : > { %v878_v19 = vpop.f32.mrb[1].mxu1 }
 0x125   : > { %v15482_v20 = vpop.f32.mrb[2].mxu0  ;;  %v804_v21 = vadd.f32 %v15481_v18, %v735_v17 }
 0x126   : > { %v15483_v23 = vpop.f32.mrb[3].mxu0 }
 0x127   : > { %v18685_v24 = vadd.f32 %v878_v19, %v804_v21  ;;  %v15484_v25 = vadd.f32 %v15483_v23, %v15482_v20 }
 0x129   : > { %v809_v26 = vadd.f32 %v15484_v25, %v736_v22  ;;  %v889_v27 = vsel %vm888_vm0, %v18685_v24, 0.0 }
 0x12a   : > { %890 = vadd.xlane.f32.xlu0 %v889_v27 }
 0x12b   : > { %v18689_v28 = vadd.f32 %v16100_v16, %v809_v26 }
 0x12d   : > { %v892_v29 = vsel %vm888_vm0, %v18689_v28, 0.0 }
 0x12e   : > { %893 = vadd.xlane.f32.xlu0 %v892_v29 }
 0x1b7   : > { %v891_v30 = vpop.xlane.xlu0 %890 }
 0x1b8   : > { %v896_v31 = vmul.f32 0.03125, %v891_v30 }
 0x1ba   : > { %v898_v32 = vsub.f32 %v18685_v24, %v896_v31 }
 0x1bb   : > { %v894_v33 = vpop.xlane.xlu0 %893 }
 0x1bc   : > { %v897_v34 = vmul.f32 0.03125, %v894_v33  ;;  %v900_v35 = vmul.f32 %v898_v32, %v898_v32 }
 0x1be   : > { %v899_v36 = vsub.f32 %v18689_v28, %v897_v34  ;;  %v902_v37 = vsel %vm888_vm0, %v900_v35, 0.0 }
 0x1bf   : > { %903 = vadd.xlane.f32.xlu1 %v902_v37 }
 0x1c0   : > { %v901_v38 = vmul.f32 %v899_v36, %v899_v36 }
 0x1c2   : > { %v905_v39 = vsel %vm888_vm0, %v901_v38, 0.0 }
 0x1c3   : > { %906 = vadd.xlane.f32.xlu1 %v905_v39 }
 0x24c   : > { %v904_v46 = vpop.xlane.xlu1 %903 }
 0x24d   : > { %v908_v47 = vmul.f32 0.03125, %v904_v46 }
 0x24f   : > { %v910_v49 = vadd.f32 1e-05, %v908_v47 }
 0x250   : > { %v907_v50 = vpop.xlane.xlu1 %906 }
 0x251   : > { %18003 = vrsqrt.f32 %v910_v49  ;;  %v909_v51 = vmul.f32 0.03125, %v907_v50 }
 0x253   : > { %v911_v53 = vadd.f32 1e-05, %v909_v51 }
 0x255   : > { %18005 = vrsqrt.f32 %v911_v53 }
 0x25b   : > { %v18004_v58 = vpop.eup %18003 }
 0x25c   : > { %v914_v59 = vmul.f32 %v18004_v58, %v898_v32 }
 0x25e   : > { %v920_v61 = vmul.f32 %v919_v57, %v914_v59 }
 0x25f   : > { %v18006_v62 = vpop.eup %18005 }
 0x260   : > { %v915_v63 = vmul.f32 %v18006_v62, %v899_v36  ;;  %v926_v0 = vadd.f32 %v925_v60, %v920_v61 }
 0x262   : > { %v921_v1 = vmul.f32 %v919_v57, %v915_v63  ;;  %16109 = vmatprep.mubr.msk.f32.mxu0 %vm888_vm0, %v926_v0 }
 0x264   : > { %v927_v2 = vadd.f32 %v925_v60, %v921_v1 }
 0x266   : > { %16110 = vmatmul.mubr.msk.f32.vlgmr.msra.gmra.mrb[4].mxu0 %vm888_vm0, %v927_v2 }
 0x339   : > { %v16111_v3 = vpop.f32.mrb[4].mxu0 }
 0x33a   : > { %v1004_v4 = vpop.f32.mrb[5].mxu0  ;;  %v18740_v7 = vmul.f32 0.35355338, %v16111_v3 }
 0x33b   : > { %v18728_v5 = vpack.i.bf16 %v16111_v3, %v1004_v4  ;;  %v18730_v6 = vmul.f32 0.35355338, %v1004_v4 }
 0x33d   : > { %17924 = vrot.lane.b32.xlu0 %v18728_v5, %s21138_s21  ;;  %16116 = vmatprep.mubr.msk.f32.mxu1 %vm1025_vm1, %v18730_v6  ;;  %s21188_s21 = sld [smem:[#allocation21_spill]] }
 0x341   : > { %17934 = vrot.lane.b32.xlu0 %v18728_v5, %s21136_s23  ;;  %s21197_s23 = smov 80  }
 0x345   : > { %1308 = vrot.lane.b32.xlu0 %v18730_v6, %s21134_s30 }
 0x349   : > { %1310 = vrot.lane.b32.xlu0 %v18740_v7, %s21134_s30  ;;  %s21199_s30 = smov 40  }
 0x34d   : > { %1591 = vrot.lane.b32.xlu0 %v18730_v6, %s21128_s3 }
 0x3af   : > { %v17925_v8 = vpop.permute.xlu0 %17924 }
 0x3b0   : > { %v17927_v9 = vunpack.i.h.bf16 %v17925_v8  ;;  %v17926_v10 = vunpack.i.l.bf16 %v17925_v8 }
 0x3b2   : > { %v17397_v12 = vpack.c.bf16 %v17927_v9, %v17926_v10 }
 0x3b3   : > { %v17935_v14 = vpop.permute.xlu0 %17934 }
 0x3b4   : > { %17399 = vmatprep.subr.msk.bf16.mxu1 %vm18748_vm2, %v17397_v12  ;;  %v17937_v15 = vunpack.i.h.bf16 %v17935_v14  ;;  %v17936_v16 = vunpack.i.l.bf16 %v17935_v14 }
 0x3b5   : > { %17402 = vmatpush3.bf16.xpose.msk.msra.mxu1 %vm18748_vm2, %v17397_v12 }
 0x3b6   : > { %16126 = vmatprep.subr.mxu1 %v1013_v13  ;;  %v17407_v17 = vpack.c.bf16 %v17937_v15, %v17936_v16 }
 0x3b7   : > { %v1309_v36 = vpop.permute.xlu0 %1308 }
 0x3bb   : > { %v1311_v42 = vpop.permute.xlu0 %1310 }
 0x3bc   : > { %16117 = vmatmul.mubr.msk.f32.vlgmr.msra.gmra.mrb[2].mxu1 %vm1025_vm1, %v18740_v7 }
 0x3bd   : > { %16127 = vmatpush3.msra.mxu1 %v1013_v13 }
 0x3be   : > { %17409 = vmatprep.subr.msk.bf16.mxu1 %vm18748_vm2, %v17407_v17 }
 0x3bf   : > { %v1592_v50 = vpop.permute.xlu0 %1591 }
 0x48f   : > { %v16118_v18 = vpop.f32.mrb[2].mxu1 }
 0x490   : > { %v1102_v19 = vpop.f32.mrb[3].mxu1  ;;  %v1115_v21 = vsel %vm1111_vm3, %v16118_v18, -inf }
 0x491   : > { %v1112_v20 = vsel %vm1111_vm3, %v1102_v19, -inf }
 0x492   : > { %1113 = vmax.xlane.f32.xlu1 %v1112_v20 }
 0x496   : > { %1116 = vmax.xlane.f32.xlu1 %v1115_v21 }
 0x51f   : > { %v1114_v22 = vpop.xlane.xlu1 %1113 }
 0x520   : > { %v1118_v23 = vsub.f32 %v1102_v19, %v1114_v22 }
 0x522   : > { %v1120_v27 = vmul.f32 1.442695, %v1118_v23 }
 0x523   : > { %v1117_v25 = vpop.xlane.xlu1 %1116 }
 0x524   : > { %v1119_v26 = vsub.f32 %v16118_v18, %v1117_v25 }
 0x526   : > { %v1122_v29 = vmul.f32 1.442695, %v1119_v26 }
 0x528   : > { %18007 = vpow2.f32 %v1122_v29 }
 0x529   : > { %18009 = vpow2.f32 %v1120_v27 }
 0x532   : > { %v18008_v30 = vpop.eup %18007 }
 0x533   : > { %v1127_v31 = vsel %vm1111_vm3, %v18008_v30, 0.0  ;;  %v18010_v32 = vpop.eup %18009 }
 0x534   : > { %1128 = vadd.xlane.f32.xlu1 %v1127_v31  ;;  %v1124_v33 = vsel %vm1111_vm3, %v18010_v32, 0.0 }
 0x538   : > { %1125 = vadd.xlane.f32.xlu1 %v1124_v33 }
 0x549   : > { %17929 = vrot.lane.b32.xlu1 %v18728_v5, %s21132_s26  ;;  %s21191_s26 = smov 120  }
 0x54d   : > { %17939 = vrot.lane.b32.xlu1 %v18728_v5, %s21118_s24  ;;  %s21124_s24 = smov 40  }
 0x551   : > { %1593 = vrot.lane.b32.xlu1 %v18740_v7, %s21128_s3  ;;  %s21189_s3 = smov 96  }
 0x5c1   : > { %v1129_v34 = vpop.xlane.xlu1 %1128 }
 0x5c2   : > { %18011 = vrcp.f32 %v1129_v34 }
 0x5c5   : > { %v1126_v35 = vpop.xlane.xlu1 %1125 }
 0x5c6   : > { %18013 = vrcp.f32 %v1126_v35 }
 0x5c9   : > { %v17930_v37 = vpop.permute.xlu1 %17929 }
 0x5ca   : > { %v17932_v38 = vunpack.i.h.bf16 %v17930_v37  ;;  %v17931_v39 = vunpack.i.l.bf16 %v17930_v37 }
 0x5cc   : > { %v17403_v40 = vpack.c.bf16 %v17932_v38, %v17931_v39  ;;  %v18012_v45 = vpop.eup %18011 }
 0x5cd   : > { %v17940_v41 = vpop.permute.xlu1 %17939  ;;  %v1133_v49 = vmul.f32 %v18012_v45, %v18008_v30 }
 0x5ce   : > { %v17942_v43 = vunpack.i.h.bf16 %v17940_v41  ;;  %v17941_v44 = vunpack.i.l.bf16 %v17940_v41  ;;  %17404 = vmatprep.subr.bf16.mxu0 %v17403_v40 }
 0x5cf   : > { %17406 = vmatpush3.bf16.msra.mxu0 %v17403_v40 }
 0x5d0   : > { %v18014_v46 = vpop.eup %18013  ;;  %v17417_v47 = vpack.c.bf16 %v17942_v43, %v17941_v44 }
 0x5d1   : > { %v1132_v48 = vmul.f32 %v18014_v46, %v18010_v32  ;;  %v1594_v51 = vpop.permute.xlu1 %1593  ;;  %v1014_v46 = vld [vmem:[%s21186_s1 + $0x8] sm:$0xff] }
 0x5d2   : > { %17419 = vmatprep.subr.msk.bf16.mxu0 %vm18748_vm2, %v17417_v47 }
 0x5d3   : > { %16123 = vmatprep.mubr.msk.f32.mxu0 %vm1111_vm3, %v1132_v48 }
 0x5d4   : > { %16124 = vmatmul.mubr.msk.f32.vlgmr.msra.gmra.mrb[6].mxu0 %vm1111_vm3, %v1133_v49 }
 0x5d5   : > { %16154 = vmatprep.mubr.msk.f32.mxu0 %vm1025_vm1, %v1592_v50 }
 0x5d8   : > { %17422 = vmatpush3.bf16.xpose.msk.msra.mxu0 %vm18748_vm2, %v17417_v47 }
 0x5df   : > { %16155 = vmatmul.mubr.msk.f32.vlgmr.msra.gmra.mrb[8].mxu0 %vm1025_vm1, %v1594_v51 }
 0x6a7   : > { %v16125_v53 = vpop.f32.mrb[6].mxu0 }
 0x6a8   : > { %v1212_v57 = vpop.f32.mrb[7].mxu0 }
 0x6a9   : > { %16128 = vmatprep.mubr.msk.f32.mxu1 %vm1025_vm1, %v1212_v57 }
 0x6aa   : > { %16129 = vmatmul.mubr.msk.f32.vlgmr.msra.gmra.mrb[4].mxu1 %vm1025_vm1, %v16125_v53 }
 0x6ab   : > { %17412 = vmatpush3.bf16.xpose.msk.msra.mxu1 %vm18748_vm2, %v17407_v17  ;;  %16135 = vmatprep.mubr.msk.f32.mxu1 %vm1025_vm1, %v1309_v36 }
 0x6b2   : > { %16136 = vmatmul.mubr.msk.f32.vlgmr.msra.gmra.mrb[6].mxu1 %vm1025_vm1, %v1311_v42  ;;  %v18787_v58 = vpop.f32.mrb[8].mxu0 }
 0x6b3   : > { %v18789_v59 = vpop.f32.mrb[9].mxu0  ;;  %v1685_v0 = vsel %vm1111_vm3, %v18787_v58, -inf }
 0x6b4   : > { %v1682_v19 = vsel %vm1111_vm3, %v18789_v59, -inf }
 0x785   : > { %v16137_v60 = vpop.f32.mrb[6].mxu1 }
 0x786   : > { %v1390_v61 = vpop.f32.mrb[7].mxu1  ;;  %v1402_v62 = vsel %vm1111_vm3, %v16137_v60, -inf }
 0x787   : > { %1403 = vmax.xlane.f32.xlu1 %v1402_v62  ;;  %v1399_v63 = vsel %vm1111_vm3, %v1390_v61, -inf }
 0x788   : > { %1400 = vmax.xlane.f32.xlu0 %v1399_v63 }
 0x798   : > { %17949 = vrot.lane.b32.xlu1 %v18728_v5, %s21126_s5  ;;  %s21190_s5 = smov 88  }
 0x79c   : > { %1874 = vrot.lane.b32.xlu1 %v18730_v6, %s21120_s29 }
 0x7a0   : > { %1876 = vrot.lane.b32.xlu1 %v18740_v7, %s21120_s29  ;;  %s21122_s29 = smov 48  }
 0x7c4   : > { %1686 = vmax.xlane.f32.xlu1 %v1685_v0 }
 0x814   : > { %v1404_v1 = vpop.xlane.xlu1 %1403 }
 0x815   : > { %v1406_v2 = vsub.f32 %v16137_v60, %v1404_v1  ;;  %v1401_v3 = vpop.xlane.xlu0 %1400 }
 0x816   : > { %v1405_v4 = vsub.f32 %v1390_v61, %v1401_v3 }
 0x817   : > { %v1409_v8 = vmul.f32 1.442695, %v1406_v2 }
 0x818   : > { %v1407_v9 = vmul.f32 1.442695, %v1405_v4  ;;  %v17950_v10 = vpop.permute.xlu1 %17949 }
 0x819   : > { %18015 = vpow2.f32 %v1409_v8  ;;  %v17952_v12 = vunpack.i.h.bf16 %v17950_v10  ;;  %v17951_v13 = vunpack.i.l.bf16 %v17950_v10 }
 0x81a   : > { %18017 = vpow2.f32 %v1407_v9 }
 0x81b   : > { %v17427_v14 = vpack.c.bf16 %v17952_v12, %v17951_v13  ;;  %v1015_v13 = vld [vmem:[%s21186_s1 + $0x10] sm:$0xff] }
 0x81c   : > { %v1875_v6 = vpop.permute.xlu1 %1874 }
 0x81d   : > { %17429 = vmatprep.subr.msk.bf16.mxu0 %vm18748_vm2, %v17427_v14  ;;  %16173 = vmatprep.mubr.msk.f32.mxu0 %vm1025_vm1, %v1875_v6 }
 0x81e   : > { %17432 = vmatpush3.bf16.xpose.msk.msra.mxu0 %vm18748_vm2, %v17427_v14 }
 0x820   : > { %v1877_v15 = vpop.permute.xlu1 %1876 }
 0x823   : > { %v18016_v7 = vpop.eup %18015 }
 0x824   : > { %v1414_v16 = vsel %vm1111_vm3, %v18016_v7, 0.0  ;;  %v18018_v17 = vpop.eup %18017 }
 0x825   : > { %16174 = vmatmul.mubr.msk.f32.vlgmr.msra.gmra.mrb[10].mxu0 %vm1025_vm1, %v1877_v15  ;;  %1415 = vadd.xlane.f32.xlu0 %v1414_v16  ;;  %v1411_v18 = vsel %vm1111_vm3, %v18018_v17, 0.0 }
 0x829   : > { %1412 = vadd.xlane.f32.xlu0 %v1411_v18 }
 0x83f   : > { %17944 = vrot.lane.b32.xlu0 %v18728_v5, %s21130_s2  ;;  %s21192_s2 = smov 64  }
 0x851   : > { %v1687_v32 = vpop.xlane.xlu1 %1686 }
 0x852   : > { %v1689_v33 = vsub.f32 %v18787_v58, %v1687_v32 }
 0x854   : > { %v1692_v36 = vmul.f32 1.442695, %v1689_v33 }
 0x85e   : > { %1683 = vmax.xlane.f32.xlu0 %v1682_v19 }
 0x8b2   : > { %v1416_v20 = vpop.xlane.xlu0 %1415 }
 0x8b3   : > { %18019 = vrcp.f32 %v1416_v20 }
 0x8b6   : > { %v1413_v21 = vpop.xlane.xlu0 %1412 }
 0x8b7   : > { %18021 = vrcp.f32 %v1413_v21 }
 0x8ba   : > { %v17945_v22 = vpop.permute.xlu0 %17944 }
 0x8bb   : > { %v17947_v23 = vunpack.i.h.bf16 %v17945_v22  ;;  %v17946_v25 = vunpack.i.l.bf16 %v17945_v22  ;;  %v1016_v22 = vld [vmem:[%s21186_s1 + $0x18] sm:$0xff] }
 0x8bd   : > { %v17413_v26 = vpack.c.bf16 %v17947_v23, %v17946_v25  ;;  %v18020_v27 = vpop.eup %18019 }
 0x8be   : > { %v1420_v31 = vmul.f32 %v18020_v27, %v18016_v7  ;;  %v18847_v27 = vsub.s32 4, %v18709_v52 }
 0x8bf   : > { %17414 = vmatprep.subr.bf16.mxu1 %v17413_v26 }
 0x8c0   : > { %17416 = vmatpush3.bf16.msra.mxu1 %v17413_v26 }
 0x8c1   : > { %v18022_v29 = vpop.eup %18021  ;;  %16145 = vmatprep.subr.mxu1 %v1014_v46 }
 0x8c2   : > { %v1419_v30 = vmul.f32 %v18022_v29, %v18018_v17  ;;  %v1305_v29 = vrot.slane %v18717_v55, %v18847_v27 }
 0x8c4   : > { %16142 = vmatprep.mubr.msk.f32.mxu1 %vm1111_vm3, %v1419_v30 }
 0x8c5   : > { %16143 = vmatmul.mubr.msk.f32.vlgmr.msra.gmra.mrb[8].mxu1 %vm1111_vm3, %v1420_v31 }
 0x8c6   : > { %16146 = vmatpush3.msra.mxu1 %v1014_v46 }
 0x8eb   : > { %v1684_v34 = vpop.xlane.xlu0 %1683 }
 0x8ec   : > { %v1688_v35 = vsub.f32 %v18789_v59, %v1684_v34 }
 0x8ee   : > { %v1690_v37 = vmul.f32 1.442695, %v1688_v35 }
 0x8f0   : > { %18023 = vpow2.f32 %v1690_v37 }
 0x8f1   : > { %18025 = vpow2.f32 %v1692_v36 }
 0x8f8   : > { %v16175_v38 = vpop.f32.mrb[10].mxu0 }
 0x8f9   : > { %v1956_v39 = vpop.f32.mrb[11].mxu0  ;;  %v1968_v44 = vsel %vm1111_vm3, %v16175_v38, -inf }
 0x8fa   : > { %v18024_v40 = vpop.eup %18023  ;;  %v1965_v41 = vsel %vm1111_vm3, %v1956_v39, -inf }
 0x8fb   : > { %1966 = vmax.xlane.f32.xlu1 %v1965_v41  ;;  %v1694_v42 = vsel %vm1111_vm3, %v18024_v40, 0.0  ;;  %v18026_v43 = vpop.eup %18025 }
 0x8fc   : > { %1695 = vadd.xlane.f32.xlu0 %v1694_v42  ;;  %v1697_v45 = vsel %vm1111_vm3, %v18026_v43, 0.0 }
 0x8ff   : > { %1969 = vmax.xlane.f32.xlu1 %v1968_v44 }
 0x900   : > { %1698 = vadd.xlane.f32.xlu0 %v1697_v45 }
 0x916   : > { %17954 = vrot.lane.b32.xlu0 %v18728_v5, %s21122_s29  ;;  %s21193_s29 = smov 56  }
 0x988   : > { %v1967_v47 = vpop.xlane.xlu1 %1966 }
 0x989   : > { %v1971_v48 = vsub.f32 %v1956_v39, %v1967_v47  ;;  %v1696_v49 = vpop.xlane.xlu0 %1695 }
 0x98a   : > { %18027 = vrcp.f32 %v1696_v49 }
 0x98b   : > { %v1973_v50 = vmul.f32 1.442695, %v1971_v48 }
 0x98c   : > { %v1970_v51 = vpop.xlane.xlu1 %1969 }
 0x98d   : > { %18029 = vpow2.f32 %v1973_v50  ;;  %v1972_v53 = vsub.f32 %v16175_v38, %v1970_v51  ;;  %v1699_v57 = vpop.xlane.xlu0 %1698 }
 0x98e   : > { %18031 = vrcp.f32 %v1699_v57  ;;  %v2300_v57 = vld [vmem:[%s21188_s21 + $0x8] sm:$0xff] }
 0x98f   : > { %v1975_v58 = vmul.f32 1.442695, %v1972_v53  ;;  %v2299_v53 = vld [vmem:[%s21188_s21] sm:$0xff] }
 0x991   : > { %18033 = vpow2.f32 %v1975_v58  ;;  %v17955_v59 = vpop.permute.xlu0 %17954  ;;  %v2301_v58 = vld [vmem:[%s21188_s21 + $0x10] sm:$0xff] }
 0x992   : > { %v17957_v60 = vunpack.i.h.bf16 %v17955_v59  ;;  %v17956_v61 = vunpack.i.l.bf16 %v17955_v59  ;;  %v17445_v59 = vpack.c.bf16 %v2300_v57, %v2299_v53  ;;  %v18941_v57 = vsub.s32 5, %v18709_v52 }
 0x994   : > { %v17423_v62 = vpack.c.bf16 %v17957_v60, %v17956_v61  ;;  %v18028_v63 = vpop.eup %18027  ;;  %v2302_v60 = vld [vmem:[%s21188_s21 + $0x18] sm:$0xff] }
 0x995   : > { %v1702_v8 = vmul.f32 %v18028_v63, %v18024_v40  ;;  %v17449_v61 = vpack.c.bf16 %v2302_v60, %v2301_v58  ;;  %v2304_v63 = vld [vmem:[%s21188_s21 + $0x28] sm:$0xff]  ;;  %v2318_v58 = vrot.slane %v18717_v55, %v18941_v57 }
 0x996   : > { %17424 = vmatprep.subr.bf16.mxu1 %v17423_v62 }
 0x997   : > { %v18030_v0 = vpop.eup %18029 }
 0x998   : > { %v16144_v1 = vpop.f32.mrb[8].mxu1  ;;  %v1977_v2 = vsel %vm1111_vm3, %v18030_v0, 0.0  ;;  %v18032_v4 = vpop.eup %18031 }
 0x999   : > { %1978 = vadd.xlane.f32.xlu1 %v1977_v2  ;;  %v1499_v3 = vpop.f32.mrb[9].mxu1  ;;  %v1703_v12 = vmul.f32 %v18032_v4, %v18026_v43 }
 0x99a   : > { %16147 = vmatprep.mubr.msk.f32.mxu1 %vm1025_vm1, %v1499_v3 }
 0x99b   : > { %v18034_v9 = vpop.eup %18033  ;;  %16148 = vmatmul.mubr.msk.f32.vlgmr.msra.gmra.mrb[4].mxu1 %vm1025_vm1, %v16144_v1 }
 0x99c   : > { %17426 = vmatpush3.bf16.msra.mxu1 %v17423_v62  ;;  %16161 = vmatprep.mubr.msk.f32.mxu1 %vm1111_vm3, %v1702_v8  ;;  %v1980_v10 = vsel %vm1111_vm3, %v18034_v9, 0.0  ;;  %v2303_v62 = vld [vmem:[%s21188_s21 + $0x20] sm:$0xff] }
 0x99d   : > { %1981 = vadd.xlane.f32.xlu1 %v1980_v10  ;;  %16164 = vmatprep.subr.mxu1 %v1015_v13  ;;  %v18896_v10 = vsub.s32 2, %v18709_v52 }
 0x99f   : > { %16162 = vmatmul.mubr.msk.f32.vlgmr.msra.gmra.mrb[10].mxu1 %vm1111_vm3, %v1703_v12  ;;  %v18899_v12 = vsub.s32 3, %v18709_v52 }
 0x9a0   : > { %16165 = vmatpush3.msra.mxu1 %v1015_v13  ;;  %v2188_v13 = vrot.slane %v18717_v55, %v18896_v10 }
 0x9ae   : > { %17959 = vrot.lane.b32.xlu1 %v18728_v5, %s21124_s24  ;;  %s21187_s24 = sld [smem:[#allocation20_spill]] }
 0x9b4   : > { %v2197_v46 = vld [vmem:[%s21187_s24] sm:$0xff]  ;;  %v2198_v47 = vld [vmem:[%s21187_s24 + $0x8] sm:$0xff]  ;;  %v2199_v49 = vld [vmem:[%s21187_s24 + $0x10] sm:$0xff] }
 0x9b5   : > { %v17437_v48 = vpack.c.bf16 %v2198_v47, %v2197_v46  ;;  %v2200_v50 = vld [vmem:[%s21187_s24 + $0x18] sm:$0xff] }
 0x9b6   : > { %v17441_v51 = vpack.c.bf16 %v2200_v50, %v2199_v49 }
 0x9b7   : > { %17438 = vmatprep.subr.bf16.mxu0 %v17437_v48 }
 0x9b8   : > { %17440 = vmatpush3.bf16.msra.mxu0 %v17437_v48 }
 0x9b9   : > { %17442 = vmatprep.subr.bf16.mxu0 %v17441_v51 }
 0x9bc   : > { %17444 = vmatpush3.bf16.msra.mxu0 %v17441_v51 }
 0xa26   : > { %v1979_v14 = vpop.xlane.xlu1 %1978 }
 0xa27   : > { %18035 = vrcp.f32 %v1979_v14 }
 0xa2a   : > { %v1982_v6 = vpop.xlane.xlu1 %1981 }
 0xa2b   : > { %18037 = vrcp.f32 %v1982_v6 }
 0xa2e   : > { %v17960_v7 = vpop.permute.xlu1 %17959 }
 0xa2f   : > { %v17962_v15 = vunpack.i.h.bf16 %v17960_v7  ;;  %v17961_v16 = vunpack.i.l.bf16 %v17960_v7  ;;  %v2194_v7 = vrot.slane %v18717_v55, %v18899_v12 }
 0xa31   : > { %v17433_v17 = vpack.c.bf16 %v17962_v15, %v17961_v16  ;;  %v18036_v18 = vpop.eup %18035 }
 0xa32   : > { %v1985_v5 = vmul.f32 %v18036_v18, %v18030_v0  ;;  %v17453_v0 = vpack.c.bf16 %v2304_v63, %v2303_v62 }
 0xa33   : > { %17434 = vmatprep.subr.bf16.mxu1 %v17433_v17 }
 0xa35   : > { %v18038_v21 = vpop.eup %18037 }
 0xa36   : > { %v1986_v23 = vmul.f32 %v18038_v21, %v18034_v9  ;;  %v2305_v21 = vld [vmem:[%s21188_s21 + $0x30] sm:$0xff] }
 0xa72   : > { %v16163_v19 = vpop.f32.mrb[10].mxu1 }
 0xa73   : > { %v1782_v20 = vpop.f32.mrb[11].mxu1 }
 0xa74   : > { %16166 = vmatprep.mubr.msk.f32.mxu1 %vm1025_vm1, %v1782_v20 }
 0xa75   : > { %16167 = vmatmul.mubr.msk.f32.vlgmr.msra.gmra.mrb[4].mxu1 %vm1025_vm1, %v16163_v19 }
 0xa76   : > { %17436 = vmatpush3.bf16.msra.mxu1 %v17433_v17  ;;  %16180 = vmatprep.mubr.msk.f32.mxu1 %vm1111_vm3, %v1985_v5  ;;  %v2306_v5 = vld [vmem:[%s21188_s21 + $0x38] sm:$0xff] }
 0xa77   : > { %16183 = vmatprep.subr.mxu1 %v1016_v22 }
 0xa79   : > { %16181 = vmatmul.mubr.msk.f32.vlgmr.msra.gmra.mrb[12].mxu1 %vm1111_vm3, %v1986_v23  ;;  %v2307_v23 = vld [vmem:[%s21188_s21 + $0x40] sm:$0xff] }
 0xa7a   : > { %16184 = vmatpush3.msra.mxu1 %v1016_v22  ;;  %v17457_v22 = vpack.c.bf16 %v2306_v5, %v2305_v21 }
 0xa7b   : > { %17446 = vmatprep.subr.bf16.mxu1 %v17445_v59 }
 0xb4c   : > { %v16182_v25 = vpop.f32.mrb[12].mxu1 }
 0xb4d   : > { %v2065_v26 = vpop.f32.mrb[13].mxu1 }
 0xb4e   : > { %16185 = vmatprep.mubr.msk.f32.mxu1 %vm1025_vm1, %v2065_v26 }
 0xb4f   : > { %16186 = vmatmul.mubr.msk.f32.vlgmr.msra.gmra.mrb[4].mxu1 %vm1025_vm1, %v16182_v25  ;;  %v2308_v25 = vld [vmem:[%s21188_s21 + $0x48] sm:$0xff] }
 0xb50   : > { %17448 = vmatpush3.bf16.msra.mxu1 %v17445_v59  ;;  %v17461_v26 = vpack.c.bf16 %v2308_v25, %v2307_v23 }
 0xb51   : > { %17450 = vmatprep.subr.bf16.mxu1 %v17449_v61 }
 0xb54   : > { %17452 = vmatpush3.bf16.msra.mxu1 %v17449_v61 }
 0xb55   : > { %17454 = vmatprep.subr.bf16.mxu1 %v17453_v0 }
 0xb58   : > { %17456 = vmatpush3.bf16.msra.mxu1 %v17453_v0 }
 0xb59   : > { %17458 = vmatprep.subr.bf16.mxu1 %v17457_v22 }
 0xb5c   : > { %17460 = vmatpush3.bf16.msra.mxu1 %v17457_v22 }
 0xb5d   : > { %17462 = vmatprep.subr.bf16.mxu1 %v17461_v26 }
 0xb60   : > { %17464 = vmatpush3.bf16.msra.mxu1 %v17461_v26  ;;  %v18974_v26 = vld [vmem:[%s21090_s8 + $0x10] sm:$0xff] }
 0xc22   : > { %v16187_v30 = vpop.f32.mrb[4].mxu1 }
 0xc23   : > { %v17847_v31 = vadd.f32 %v16187_v30, %v1305_v29  ;;  %v2146_v32 = vpop.f32.mrb[5].mxu1  ;;  %v2310_v30 = vld [vmem:[%s21188_s21 + $0x58] sm:$0xff] }
 0xc24   : > { %v17848_v33 = vadd.f32 %v2146_v32, %v1305_v29  ;;  %v2309_v29 = vld [vmem:[%s21188_s21 + $0x50] sm:$0xff]  ;;  %v2311_v32 = vld [vmem:[%s21188_s21 + $0x60] sm:$0xff] }
 0xc25   : > { %v18852_v34 = vadd.f32 %v17847_v31, %v18689_v28  ;;  %v17465_v31 = vpack.c.bf16 %v2310_v30, %v2309_v29  ;;  %v2427_v29 = vrot.slane %v18974_v26, %v18712_v54 }
 0xc26   : > { %v18855_v35 = vadd.f32 %v17848_v33, %v18685_v24  ;;  %v2312_v33 = vld [vmem:[%s21188_s21 + $0x68] sm:$0xff] }
 0xc27   : > { %v2162_v36 = vsel %vm888_vm0, %v18852_v34, 0.0  ;;  %17466 = vmatprep.subr.bf16.mxu1 %v17465_v31 }
 0xc28   : > { %2163 = vadd.xlane.f32.xlu1 %v2162_v36  ;;  %v2159_v37 = vsel %vm888_vm0, %v18855_v35, 0.0  ;;  %17468 = vmatpush3.bf16.msra.mxu1 %v17465_v31  ;;  %v17469_v36 = vpack.c.bf16 %v2312_v33, %v2311_v32  ;;  %v2433_v32 = vrot.slane %v18974_v26, %v18720_v56 }
 0xc29   : > { %2160 = vadd.xlane.f32.xlu0 %v2159_v37  ;;  %v2313_v37 = vld [vmem:[%s21188_s21 + $0x70] sm:$0xff] }
 0xc2a   : > { %17470 = vmatprep.subr.bf16.mxu1 %v17469_v36 }
 0xc2c   : > { %17472 = vmatpush3.bf16.msra.mxu1 %v17469_v36 }
 0xcb5   : > { %v2164_v38 = vpop.xlane.xlu1 %2163 }
 0xcb6   : > { %v2166_v39 = vmul.f32 0.03125, %v2164_v38  ;;  %v2161_v40 = vpop.xlane.xlu0 %2160  ;;  %v2314_v38 = vld [vmem:[%s21188_s21 + $0x78] sm:$0xff] }
 0xcb7   : > { %v2165_v41 = vmul.f32 0.03125, %v2161_v40  ;;  %v14983_v40 = vld [vmem:[%s21089_s7] ss:$0 sm:$0xff] }
 0xcb8   : > { %v2168_v42 = vsub.f32 %v18852_v34, %v2166_v39  ;;  %v17473_v39 = vpack.c.bf16 %v2314_v38, %v2313_v37 }
 0xcb9   : > { %v2167_v28 = vsub.f32 %v18855_v35, %v2165_v41 }
 0xcba   : > { %v2170_v44 = vmul.f32 %v2168_v42, %v2168_v42  ;;  %17474 = vmatprep.subr.bf16.mxu1 %v17473_v39 }
 0xcbb   : > { %v2169_v43 = vmul.f32 %v2167_v28, %v2167_v28  ;;  %17476 = vmatpush3.bf16.msra.mxu1 %v17473_v39 }
 0xcbc   : > { %v2174_v45 = vsel %vm888_vm0, %v2170_v44, 0.0 }
 0xcbd   : > { %v2171_v24 = vsel %vm888_vm0, %v2169_v43, 0.0 }
 0xcbe   : > { %2172 = vadd.xlane.f32.xlu0 %v2171_v24 }
 0xcc2   : > { %2175 = vadd.xlane.f32.xlu0 %v2174_v45 }
 0xd4b   : > { %v2173_v1 = vpop.xlane.xlu0 %2172 }
 0xd4c   : > { %v2177_v2 = vmul.f32 0.03125, %v2173_v1 }
 0xd4e   : > { %v2179_v3 = vadd.f32 1e-05, %v2177_v2 }
 0xd4f   : > { %v2176_v4 = vpop.xlane.xlu0 %2175 }
 0xd50   : > { %18039 = vrsqrt.f32 %v2179_v3  ;;  %v2178_v8 = vmul.f32 0.03125, %v2176_v4 }
 0xd52   : > { %v2180_v9 = vadd.f32 1e-05, %v2178_v8 }
 0xd54   : > { %18041 = vrsqrt.f32 %v2180_v9 }
 0xd5a   : > { %v18040_v14 = vpop.eup %18039 }
 0xd5b   : > { %v2183_v6 = vmul.f32 %v18040_v14, %v2167_v28 }
 0xd5d   : > { %v2189_v15 = vmul.f32 %v2188_v13, %v2183_v6 }
 0xd5e   : > { %v18042_v16 = vpop.eup %18041 }
 0xd5f   : > { %v2184_v17 = vmul.f32 %v18042_v16, %v2168_v42  ;;  %v2195_v18 = vadd.f32 %v2194_v7, %v2189_v15  ;;  %v14988_v15 = vld [vmem:[%s21183_s25 + $0x28] sm:$0xff] }
 0xd61   : > { %v2190_v19 = vmul.f32 %v2188_v13, %v2184_v17  ;;  %16196 = vmatprep.mubr.msk.f32.mxu0 %vm888_vm0, %v2195_v18  ;;  %v14989_v17 = vld [vmem:[%s21183_s25 + $0x30] sm:$0xff]  ;;  %v14990_v18 = vld [vmem:[%s21183_s25 + $0x38] sm:$0xff] }
 0xd63   : > { %v2196_v20 = vadd.f32 %v2194_v7, %v2190_v19  ;;  %v14987_v7 = vld [vmem:[%s21183_s25 + $0x20] sm:$0xff]  ;;  %v17481_v19 = vpack.c.bf16 %v14990_v18, %v14989_v17 }
 0xd64   : > { %v17477_v16 = vpack.c.bf16 %v14988_v15, %v14987_v7 }
 0xd65   : > { %16197 = vmatmul.mubr.msk.f32.vlgmr.msra.gmra.mrb[12].mxu0 %vm888_vm0, %v2196_v20 }
 0xd66   : > { %17478 = vmatprep.subr.bf16.mxu0 %v17477_v16 }
 0xd67   : > { %17480 = vmatpush3.bf16.msra.mxu0 %v17477_v16 }
 0xd68   : > { %17482 = vmatprep.subr.bf16.mxu0 %v17481_v19 }
 0xd6b   : > { %17484 = vmatpush3.bf16.msra.mxu0 %v17481_v19 }
 0xe38   : > { %v16198_v41 = vpop.f32.mrb[12].mxu0 }
 0xe39   : > { %v2286_v42 = vadd.f32 %v16198_v41, %v14983_v40  ;;  %v2280_v28 = vpop.f32.mrb[13].mxu0 }
 0xe3a   : > { %v2281_v43 = vadd.f32 %v14983_v40, %v2280_v28 }
 0xe3b   : > { %v2292_v24 = vmul.f32 0.70710677, %v2286_v42  ;;  %v2290_v50 = vmul.f32 0.5, %v2286_v42 }
 0xe3c   : > { %v2291_v44 = vmul.f32 0.70710677, %v2281_v43  ;;  %v2289_v48 = vmul.f32 0.5, %v2281_v43 }
 0xe3d   : > { %18043 = verf.f32 %v2292_v24 }
 0xe3e   : > { %18045 = verf.f32 %v2291_v44 }
 0xe47   : > { %v18044_v45 = vpop.eup %18043 }
 0xe48   : > { %v18046_v46 = vpop.eup %18045  ;;  %v2296_v47 = vadd.f32 1.0, %v18044_v45 }
 0xe49   : > { %v2295_v49 = vadd.f32 1.0, %v18046_v46 }
 0xe4a   : > { %v2298_v53 = vmul.f32 %v2296_v47, %v2290_v50 }
 0xe4b   : > { %v2297_v51 = vmul.f32 %v2295_v49, %v2289_v48 }
 0xe4d   : > { %16231 = vmatprep.mubr.f32.mxu1 %v2297_v51 }
 0xe4e   : > { %16232 = vmatmul.mubr.f32.vlgmr.msra.gmra.mrb[14].mxu1 %v2298_v53 }
 0xf21   : > { %v16233_v59 = vpop.f32.mrb[14].mxu1 }
 0xf22   : > { %v2385_v60 = vpop.f32.mrb[15].mxu1  ;;  %v2391_v61 = vadd.f32 %v16233_v59, %v2318_v58 }
 0xf23   : > { %v2386_v62 = vadd.f32 %v2385_v60, %v2318_v58 }
 0xf24   : > { %v18949_v0 = vadd.f32 %v2391_v61, %v18852_v34 }
 0xf25   : > { %v18946_v63 = vadd.f32 %v2386_v62, %v18855_v35 }
 0xf26   : > { %v2401_v2 = vsel %vm888_vm0, %v18949_v0, 0.0 }
 0xf27   : > { %v2398_v1 = vsel %vm888_vm0, %v18946_v63, 0.0 }
 0xf28   : > { %2399 = vadd.xlane.f32.xlu0 %v2398_v1 }
 0xf2c   : > { %2402 = vadd.xlane.f32.xlu0 %v2401_v2 }
 0xfb5   : > { %v2400_v3 = vpop.xlane.xlu0 %2399 }
 0xfb6   : > { %v2404_v55 = vmul.f32 0.03125, %v2400_v3 }
 0xfb8   : > { %v2406_v4 = vsub.f32 %v18946_v63, %v2404_v55 }
 0xfb9   : > { %v2403_v8 = vpop.xlane.xlu0 %2402 }
 0xfba   : > { %v2405_v9 = vmul.f32 0.03125, %v2403_v8  ;;  %v2408_v13 = vmul.f32 %v2406_v4, %v2406_v4 }
 0xfbc   : > { %v2407_v35 = vsub.f32 %v18949_v0, %v2405_v9  ;;  %v2410_v34 = vsel %vm888_vm0, %v2408_v13, 0.0 }
 0xfbd   : > { %2411 = vadd.xlane.f32.xlu0 %v2410_v34 }
 0xfbe   : > { %v2409_v14 = vmul.f32 %v2407_v35, %v2407_v35 }
 0xfc0   : > { %v2413_v6 = vsel %vm888_vm0, %v2409_v14, 0.0 }
 0xfc1   : > { %2414 = vadd.xlane.f32.xlu1 %v2413_v6  ;;  %v14993_v6 = vld [vmem:[%s21186_s1 + $0x20] sm:$0xff] }
0x104a   : > { %v2412_v20 = vpop.xlane.xlu0 %2411 }
0x104b   : > { %v2416_v21 = vmul.f32 0.03125, %v2412_v20 }
0x104d   : > { %v2418_v5 = vadd.f32 1e-05, %v2416_v21 }
0x104e   : > { %v2415_v22 = vpop.xlane.xlu1 %2414 }
0x104f   : > { %18047 = vrsqrt.f32 %v2418_v5  ;;  %v2417_v23 = vmul.f32 0.03125, %v2415_v22 }
0x1051   : > { %v2419_v25 = vadd.f32 1e-05, %v2417_v23 }
0x1053   : > { %18049 = vrsqrt.f32 %v2419_v25 }
0x1059   : > { %v18048_v30 = vpop.eup %18047 }
0x105a   : > { %v2422_v31 = vmul.f32 %v18048_v30, %v2406_v4 }
0x105c   : > { %v2428_v33 = vmul.f32 %v2427_v29, %v2422_v31 }
0x105d   : > { %v18050_v36 = vpop.eup %18049 }
0x105e   : > { %v2423_v37 = vmul.f32 %v18050_v36, %v2407_v35  ;;  %v2434_v38 = vadd.f32 %v2433_v32, %v2428_v33 }
0x1060   : > { %v2429_v39 = vmul.f32 %v2427_v29, %v2423_v37  ;;  %16242 = vmatprep.mubr.msk.f32.mxu0 %vm888_vm0, %v2434_v38 }
0x1062   : > { %v2435_v40 = vadd.f32 %v2433_v32, %v2429_v39 }
0x1064   : > { %16243 = vmatmul.mubr.msk.f32.vlgmr.msra.gmra.mrb[14].mxu0 %vm888_vm0, %v2435_v40 }
0x1137   : > { %v16244_v41 = vpop.f32.mrb[14].mxu0 }
0x1138   : > { %v2513_v42 = vpop.f32.mrb[15].mxu0  ;;  %v18994_v24 = vmul.f32 0.35355338, %v16244_v41 }
0x1139   : > { %v18982_v28 = vpack.i.bf16 %v16244_v41, %v2513_v42  ;;  %v18984_v43 = vmul.f32 0.35355338, %v2513_v42 }
0x113b   : > { %17964 = vrot.lane.b32.xlu0 %v18982_v28, %s21189_s3  ;;  %16249 = vmatprep.mubr.msk.f32.mxu0 %vm1025_vm1, %v18984_v43 }
0x113f   : > { %17974 = vrot.lane.b32.xlu0 %v18982_v28, %s21190_s5 }
0x1143   : > { %2816 = vrot.lane.b32.xlu0 %v18984_v43, %s21191_s26 }
0x1147   : > { %2818 = vrot.lane.b32.xlu0 %v18994_v24, %s21191_s26 }
0x11ad   : > { %v17965_v44 = vpop.permute.xlu0 %17964 }
0x11ae   : > { %v17967_v45 = vunpack.i.h.bf16 %v17965_v44  ;;  %v17966_v46 = vunpack.i.l.bf16 %v17965_v44 }
0x11b0   : > { %v17485_v47 = vpack.c.bf16 %v17967_v45, %v17966_v46 }
0x11b1   : > { %v17975_v14 = vpop.permute.xlu0 %17974 }
0x11b2   : > { %17487 = vmatprep.subr.msk.bf16.mxu0 %vm18748_vm2, %v17485_v47  ;;  %v17977_v16 = vunpack.i.h.bf16 %v17975_v14  ;;  %v17976_v17 = vunpack.i.l.bf16 %v17975_v14 }
0x11b3   : > { %17490 = vmatpush3.bf16.xpose.msk.msra.mxu0 %vm18748_vm2, %v17485_v47 }
0x11b4   : > { %v17495_v20 = vpack.c.bf16 %v17977_v16, %v17976_v17 }
0x11b5   : > { %v2817_v22 = vpop.permute.xlu0 %2816 }
0x11b9   : > { %v2819_v23 = vpop.permute.xlu0 %2818 }
0x11ba   : > { %16250 = vmatmul.mubr.msk.f32.vlgmr.msra.gmra.mrb[16].mxu0 %vm1025_vm1, %v18994_v24 }
0x128d   : > { %v16251_v48 = vpop.f32.mrb[16].mxu0 }
0x128e   : > { %v2611_v49 = vpop.f32.mrb[17].mxu0  ;;  %v2623_v51 = vsel %vm1111_vm3, %v16251_v48, -inf }
0x128f   : > { %v2620_v50 = vsel %vm1111_vm3, %v2611_v49, -inf }
0x1290   : > { %2621 = vmax.xlane.f32.xlu1 %v2620_v50 }
0x1294   : > { %2624 = vmax.xlane.f32.xlu1 %v2623_v51 }
0x131d   : > { %v2622_v53 = vpop.xlane.xlu1 %2621 }
0x131e   : > { %v2626_v58 = vsub.f32 %v2611_v49, %v2622_v53 }
0x1320   : > { %v2628_v61 = vmul.f32 1.442695, %v2626_v58 }
0x1321   : > { %v2625_v59 = vpop.xlane.xlu1 %2624 }
0x1322   : > { %v2627_v60 = vsub.f32 %v16251_v48, %v2625_v59 }
0x1324   : > { %v2630_v62 = vmul.f32 1.442695, %v2627_v60 }
0x1326   : > { %18051 = vpow2.f32 %v2630_v62 }
0x1327   : > { %18053 = vpow2.f32 %v2628_v61 }
0x1330   : > { %v18052_v1 = vpop.eup %18051 }
0x1331   : > { %v2635_v2 = vsel %vm1111_vm3, %v18052_v1, 0.0  ;;  %v18054_v3 = vpop.eup %18053 }
0x1332   : > { %2636 = vadd.xlane.f32.xlu1 %v2635_v2  ;;  %v2632_v55 = vsel %vm1111_vm3, %v18054_v3, 0.0 }
0x1336   : > { %2633 = vadd.xlane.f32.xlu1 %v2632_v55 }
0x1347   : > { %17969 = vrot.lane.b32.xlu1 %v18982_v28, %s21192_s2  ;;  %s21216_s2 = sld [smem:[#allocation26_spill]] }
0x13bf   : > { %v2637_v4 = vpop.xlane.xlu1 %2636 }
0x13c0   : > { %18055 = vrcp.f32 %v2637_v4 }
0x13c3   : > { %v2634_v8 = vpop.xlane.xlu1 %2633 }
0x13c4   : > { %18057 = vrcp.f32 %v2634_v8 }
0x13c7   : > { %v17970_v9 = vpop.permute.xlu1 %17969 }
0x13c8   : > { %v17972_v13 = vunpack.i.h.bf16 %v17970_v9  ;;  %v17971_v35 = vunpack.i.l.bf16 %v17970_v9 }
0x13ca   : > { %v17491_v34 = vpack.c.bf16 %v17972_v13, %v17971_v35  ;;  %v18056_v7 = vpop.eup %18055  ;;  %v14994_v13 = vld [vmem:[%s21186_s1 + $0x28] sm:$0xff] }
0x13cb   : > { %v2641_v19 = vmul.f32 %v18056_v7, %v18052_v1 }
0x13cc   : > { %17492 = vmatprep.subr.bf16.mxu0 %v17491_v34 }
0x13cd   : > { %17494 = vmatpush3.bf16.msra.mxu0 %v17491_v34 }
0x13ce   : > { %v18058_v15 = vpop.eup %18057  ;;  %16259 = vmatprep.subr.mxu0 %v14993_v6 }
0x13cf   : > { %v2640_v18 = vmul.f32 %v18058_v15, %v18054_v3 }
0x13d1   : > { %16256 = vmatprep.mubr.msk.f32.mxu0 %vm1111_vm3, %v2640_v18 }
0x13d2   : > { %16257 = vmatmul.mubr.msk.f32.vlgmr.msra.gmra.mrb[18].mxu0 %vm1111_vm3, %v2641_v19 }
0x13d3   : > { %16260 = vmatpush3.msra.mxu0 %v14993_v6 }
0x13d4   : > { %17497 = vmatprep.subr.msk.bf16.mxu0 %vm18748_vm2, %v17495_v20 }
0x14a5   : > { %v16258_v21 = vpop.f32.mrb[18].mxu0 }
0x14a6   : > { %v2720_v5 = vpop.f32.mrb[19].mxu0 }
0x14a7   : > { %16261 = vmatprep.mubr.msk.f32.mxu0 %vm1025_vm1, %v2720_v5 }
0x14a8   : > { %16262 = vmatmul.mubr.msk.f32.vlgmr.msra.gmra.mrb[20].mxu0 %vm1025_vm1, %v16258_v21 }
0x14a9   : > { %17500 = vmatpush3.bf16.xpose.msk.msra.mxu0 %vm18748_vm2, %v17495_v20  ;;  %16268 = vmatprep.mubr.msk.f32.mxu0 %vm1025_vm1, %v2817_v22 }
0x14aa   : > { %16278 = vmatprep.subr.mxu0 %v14994_v13 }
0x14b0   : > { %16269 = vmatmul.mubr.msk.f32.vlgmr.msra.gmra.mrb[22].mxu0 %vm1025_vm1, %v2819_v23 }
0x14b1   : > { %16279 = vmatpush3.msra.mxu0 %v14994_v13 }
0x1583   : > { %v16270_v25 = vpop.f32.mrb[22].mxu0 }
0x1584   : > { %v2898_v29 = vpop.f32.mrb[23].mxu0  ;;  %v2910_v30 = vsel %vm1111_vm3, %v16270_v25, -inf }
0x1585   : > { %2911 = vmax.xlane.f32.xlu0 %v2910_v30  ;;  %v2907_v31 = vsel %vm1111_vm3, %v2898_v29, -inf }
0x1586   : > { %2908 = vmax.xlane.f32.xlu1 %v2907_v31 }
0x1597   : > { %17979 = vrot.lane.b32.xlu1 %v18982_v28, %s21193_s29  ;;  %s21208_s29 = sld [smem:[#allocation19_spill]] }
0x159b   : > { %3099 = vrot.lane.b32.xlu1 %v18984_v43, %s21194_s0 }
0x159d   : > { %s21209_s19 = smov %s21208_s29 }
0x159f   : > { %3101 = vrot.lane.b32.xlu1 %v18994_v24, %s21194_s0 }
0x15a3   : > { %17989 = vrot.lane.b32.xlu1 %v18982_v28, %s21195_s27 }
0x15a7   : > { %3384 = vrot.lane.b32.xlu1 %v18994_v24, %s21196_s22 }
0x1612   : > { %v2912_v32 = vpop.xlane.xlu0 %2911 }
0x1613   : > { %v2914_v33 = vsub.f32 %v16270_v25, %v2912_v32  ;;  %v2909_v36 = vpop.xlane.xlu1 %2908 }
0x1614   : > { %v2913_v37 = vsub.f32 %v2898_v29, %v2909_v36 }
0x1615   : > { %v2917_v38 = vmul.f32 1.442695, %v2914_v33 }
0x1616   : > { %v2915_v39 = vmul.f32 1.442695, %v2913_v37 }
0x1617   : > { %18059 = vpow2.f32 %v2917_v38  ;;  %v17980_v40 = vpop.permute.xlu1 %17979 }
0x1618   : > { %v17982_v41 = vunpack.i.h.bf16 %v17980_v40  ;;  %v17981_v42 = vunpack.i.l.bf16 %v17980_v40  ;;  %18061 = vpow2.f32 %v2915_v39 }
0x161a   : > { %v17501_v44 = vpack.c.bf16 %v17982_v41, %v17981_v42 }
0x161b   : > { %v3100_v48 = vpop.permute.xlu1 %3099 }
0x161c   : > { %17502 = vmatprep.subr.bf16.mxu1 %v17501_v44 }
0x161d   : > { %17504 = vmatpush3.bf16.msra.mxu1 %v17501_v44 }
0x161f   : > { %v3102_v51 = vpop.permute.xlu1 %3101 }
0x1621   : > { %v18060_v45 = vpop.eup %18059 }
0x1622   : > { %v2922_v46 = vsel %vm1111_vm3, %v18060_v45, 0.0  ;;  %v18062_v47 = vpop.eup %18061 }
0x1623   : > { %2923 = vadd.xlane.f32.xlu0 %v2922_v46  ;;  %v2919_v24 = vsel %vm1111_vm3, %v18062_v47, 0.0  ;;  %v17990_v61 = vpop.permute.xlu1 %17989 }
0x1624   : > { %v17992_v2 = vunpack.i.h.bf16 %v17990_v61  ;;  %v17991_v3 = vunpack.i.l.bf16 %v17990_v61 }
0x1626   : > { %v17515_v4 = vpack.c.bf16 %v17992_v2, %v17991_v3 }
0x1627   : > { %2920 = vadd.xlane.f32.xlu0 %v2919_v24  ;;  %v3385_v9 = vpop.permute.xlu1 %3384 }
0x163d   : > { %17984 = vrot.lane.b32.xlu0 %v18982_v28, %s21197_s23 }
0x1641   : > { %3382 = vrot.lane.b32.xlu0 %v18984_v43, %s21196_s22 }
0x16b0   : > { %v2924_v49 = vpop.xlane.xlu0 %2923 }
0x16b1   : > { %18063 = vrcp.f32 %v2924_v49 }
0x16b4   : > { %v2921_v50 = vpop.xlane.xlu0 %2920 }
0x16b5   : > { %18065 = vrcp.f32 %v2921_v50  ;;  %v14995_v50 = vld [vmem:[%s21186_s1 + $0x30] sm:$0xff] }
0x16b8   : > { %v17985_v53 = vpop.permute.xlu0 %17984 }
0x16b9   : > { %v17987_v58 = vunpack.i.h.bf16 %v17985_v53  ;;  %v17986_v59 = vunpack.i.l.bf16 %v17985_v53 }
0x16bb   : > { %v17505_v60 = vpack.c.bf16 %v17987_v58, %v17986_v59  ;;  %v18064_v62 = vpop.eup %18063 }
0x16bc   : > { %v2928_v43 = vmul.f32 %v18064_v62, %v18060_v45  ;;  %v3383_v8 = vpop.permute.xlu0 %3382 }
0x16bd   : > { %17507 = vmatprep.subr.msk.bf16.mxu1 %vm18748_vm2, %v17505_v60 }
0x16bf   : > { %v18066_v1 = vpop.eup %18065 }
0x16c0   : > { %v2927_v55 = vmul.f32 %v18066_v1, %v18062_v47 }
0x16c2   : > { %16275 = vmatprep.mubr.msk.f32.mxu1 %vm1111_vm3, %v2927_v55 }
0x16c3   : > { %16276 = vmatmul.mubr.msk.f32.vlgmr.msra.gmra.mrb[16].mxu1 %vm1111_vm3, %v2928_v43 }
0x16c4   : > { %17510 = vmatpush3.bf16.xpose.msk.msra.mxu1 %vm18748_vm2, %v17505_v60  ;;  %16287 = vmatprep.mubr.msk.f32.mxu1 %vm1025_vm1, %v3100_v48 }
0x16c5   : > { %17517 = vmatprep.subr.msk.bf16.mxu1 %vm18748_vm2, %v17515_v4 }
0x16cb   : > { %16288 = vmatmul.mubr.msk.f32.vlgmr.msra.gmra.mrb[18].mxu1 %vm1025_vm1, %v3102_v51 }
0x16cc   : > { %17520 = vmatpush3.bf16.xpose.msk.msra.mxu1 %vm18748_vm2, %v17515_v4  ;;  %16306 = vmatprep.mubr.msk.f32.mxu1 %vm1025_vm1, %v3383_v8 }
0x16d3   : > { %16307 = vmatmul.mubr.msk.f32.vlgmr.msra.gmra.mrb[20].mxu1 %vm1025_vm1, %v3385_v9  ;;  %v14996_v9 = vld [vmem:[%s21186_s1 + $0x38] sm:$0xff]  ;;  %s21206_s1 = sld [smem:[#allocation18_spill]] }
0x1796   : > { %v16277_v35 = vpop.f32.mrb[16].mxu1 }
0x1797   : > { %v3007_v34 = vpop.f32.mrb[17].mxu1 }
0x1798   : > { %16280 = vmatprep.mubr.msk.f32.mxu0 %vm1025_vm1, %v3007_v34 }
0x1799   : > { %16281 = vmatmul.mubr.msk.f32.vlgmr.msra.gmra.mrb[20].mxu0 %vm1025_vm1, %v16277_v35 }
0x179e   : > { %v16289_v14 = vpop.f32.mrb[18].mxu1 }
0x179f   : > { %v3181_v11 = vpop.f32.mrb[19].mxu1  ;;  %v3193_v6 = vsel %vm1111_vm3, %v16289_v14, -inf }
0x17a0   : > { %3194 = vmax.xlane.f32.xlu1 %v3193_v6  ;;  %v3190_v7 = vsel %vm1111_vm3, %v3181_v11, -inf }
0x17a1   : > { %3191 = vmax.xlane.f32.xlu0 %v3190_v7 }
0x17a6   : > { %v16308_v15 = vpop.f32.mrb[20].mxu1 }
0x17a7   : > { %v3464_v16 = vpop.f32.mrb[21].mxu1  ;;  %v3476_v18 = vsel %vm1111_vm3, %v16308_v15, -inf }
0x17a8   : > { %v3473_v17 = vsel %vm1111_vm3, %v3464_v16, -inf }
0x17a9   : > { %3474 = vmax.xlane.f32.xlu1 %v3473_v17 }
0x17ad   : > { %3477 = vmax.xlane.f32.xlu1 %v3476_v18 }
0x182d   : > { %v3195_v19 = vpop.xlane.xlu1 %3194 }
0x182e   : > { %v3197_v20 = vsub.f32 %v16289_v14, %v3195_v19  ;;  %v3192_v21 = vpop.xlane.xlu0 %3191  ;;  %v2813_v14 = vrot.slane %v18974_v26, %v18847_v27 }
0x182f   : > { %v3196_v5 = vsub.f32 %v3181_v11, %v3192_v21 }
0x1830   : > { %v3200_v22 = vmul.f32 1.442695, %v3197_v20 }
0x1831   : > { %v3198_v23 = vmul.f32 1.442695, %v3196_v5 }
0x1832   : > { %18067 = vpow2.f32 %v3200_v22 }
0x1833   : > { %18069 = vpow2.f32 %v3198_v23 }
0x1836   : > { %v3475_v25 = vpop.xlane.xlu1 %3474 }
0x1837   : > { %v3479_v29 = vsub.f32 %v3464_v16, %v3475_v25 }
0x1839   : > { %v3481_v33 = vmul.f32 1.442695, %v3479_v29 }
0x183a   : > { %v3478_v30 = vpop.xlane.xlu1 %3477 }
0x183b   : > { %v3480_v31 = vsub.f32 %v16308_v15, %v3478_v30 }
0x183c   : > { %v18068_v32 = vpop.eup %18067 }
0x183d   : > { %v3483_v36 = vmul.f32 1.442695, %v3480_v31  ;;  %v3205_v37 = vsel %vm1111_vm3, %v18068_v32, 0.0  ;;  %v18070_v38 = vpop.eup %18069  ;;  %v15029_v31 = vld [vmem:[%s21187_s24 + $0x20] sm:$0xff] }
0x183e   : > { %3206 = vadd.xlane.f32.xlu0 %v3205_v37  ;;  %v3202_v39 = vsel %vm1111_vm3, %v18070_v38, 0.0  ;;  %v15032_v37 = vld [vmem:[%s21187_s24 + $0x38] sm:$0xff] }
0x183f   : > { %18071 = vpow2.f32 %v3483_v36  ;;  %v15031_v36 = vld [vmem:[%s21187_s24 + $0x30] sm:$0xff] }
0x1840   : > { %18073 = vpow2.f32 %v3481_v33 }
0x1842   : > { %3203 = vadd.xlane.f32.xlu0 %v3202_v39  ;;  %v15037_v39 = vld [vmem:[%s21188_s21 + $0x80] sm:$0xff] }
0x1849   : > { %v18072_v40 = vpop.eup %18071 }
0x184a   : > { %v3488_v41 = vsel %vm1111_vm3, %v18072_v40, 0.0  ;;  %v18074_v42 = vpop.eup %18073 }
0x184b   : > { %3489 = vadd.xlane.f32.xlu1 %v3488_v41  ;;  %v3485_v44 = vsel %vm1111_vm3, %v18074_v42, 0.0  ;;  %v15039_v41 = vld [vmem:[%s21188_s21 + $0x90] sm:$0xff] }
0x184f   : > { %3486 = vadd.xlane.f32.xlu1 %v3485_v44  ;;  %v15040_v44 = vld [vmem:[%s21188_s21 + $0x98] sm:$0xff] }
0x1858   : > { %17994 = vrot.lane.b32.xlu0 %v18982_v28, %s21198_s6  ;;  %s21213_s6 = sld [smem:[#allocation22_spill]] }
0x1860   : > { %17999 = vrot.lane.b32.xlu1 %v18982_v28, %s21199_s30  ;;  %s21217_s30 = sld [smem:[#allocation25_spill]] }
0x18cb   : > { %v3207_v45 = vpop.xlane.xlu0 %3206 }
0x18cc   : > { %18075 = vrcp.f32 %v3207_v45  ;;  %v17537_v45 = vpack.c.bf16 %v15040_v44, %v15039_v41  ;;  %v3913_v41 = vld [vmem:[%s21094_s12 + $0x8] sm:$0xff]  ;;  %v3914_v44 = vld [vmem:[%s21094_s12 + $0x10] sm:$0xff] }
0x18cf   : > { %v3204_v46 = vpop.xlane.xlu0 %3203 }
0x18d0   : > { %18077 = vrcp.f32 %v3204_v46  ;;  %v15041_v46 = vld [vmem:[%s21188_s21 + $0xa0] sm:$0xff] }
0x18d3   : > { %v17995_v47 = vpop.permute.xlu0 %17994 }
0x18d4   : > { %v17997_v24 = vunpack.i.h.bf16 %v17995_v47  ;;  %v17996_v48 = vunpack.i.l.bf16 %v17995_v47  ;;  %v15042_v47 = vld [vmem:[%s21188_s21 + $0xa8] sm:$0xff] }
0x18d6   : > { %v17511_v49 = vpack.c.bf16 %v17997_v24, %v17996_v48  ;;  %v18076_v53 = vpop.eup %18075  ;;  %v17541_v24 = vpack.c.bf16 %v15042_v47, %v15041_v46  ;;  %v18350_v46 = vmov 0.0|0.0   ;;  %v18352_v47 = vmov 0.0  }
0x18d7   : > { %v3211_v60 = vmul.f32 %v18076_v53, %v18068_v32  ;;  %v15030_v32 = vld [vmem:[%s21187_s24 + $0x28] sm:$0xff] }
0x18d8   : > { %v3490_v51 = vpop.xlane.xlu1 %3489  ;;  %17512 = vmatprep.subr.bf16.mxu0 %v17511_v49  ;;  %v17525_v33 = vpack.c.bf16 %v15030_v32, %v15029_v31 }
0x18d9   : > { %17514 = vmatpush3.bf16.msra.mxu0 %v17511_v49 }
0x18da   : > { %v18078_v58 = vpop.eup %18077  ;;  %16297 = vmatprep.subr.mxu0 %v14995_v50  ;;  %17526 = vmatprep.subr.bf16.mxu1 %v17525_v33 }
0x18db   : > { %v3210_v59 = vmul.f32 %v18078_v58, %v18070_v38  ;;  %17528 = vmatpush3.bf16.msra.mxu1 %v17525_v33  ;;  %v17529_v38 = vpack.c.bf16 %v15032_v37, %v15031_v36 }
0x18dc   : > { %v3487_v28 = vpop.xlane.xlu1 %3486 }
0x18dd   : > { %16294 = vmatprep.mubr.msk.f32.mxu0 %vm1111_vm3, %v3210_v59  ;;  %18079 = vrcp.f32 %v3487_v28  ;;  %17530 = vmatprep.subr.bf16.mxu1 %v17529_v38  ;;  %v3696_v59 = vrot.slane %v18974_v26, %v18896_v10 }
0x18de   : > { %16295 = vmatmul.mubr.msk.f32.vlgmr.msra.gmra.mrb[24].mxu0 %vm1111_vm3, %v3211_v60  ;;  %18081 = vrcp.f32 %v3490_v51 }
0x18df   : > { %16298 = vmatpush3.msra.mxu0 %v14995_v50  ;;  %17532 = vmatpush3.bf16.msra.mxu1 %v17529_v38 }
0x18e0   : > { %v18000_v61 = vpop.permute.xlu1 %17999  ;;  %17565 = vmatprep.subr.bf16.mxu1 %v18350_v46 }
0x18e1   : > { %v18002_v62 = vunpack.i.h.bf16 %v18000_v61  ;;  %v18001_v1 = vunpack.i.l.bf16 %v18000_v61  ;;  %v3702_v61 = vrot.slane %v18974_v26, %v18899_v12 }
0x18e3   : > { %v17521_v2 = vpack.c.bf16 %v18002_v62, %v18001_v1 }
0x18e5   : > { %17522 = vmatprep.subr.bf16.mxu0 %v17521_v2 }
0x18e7   : > { %v18080_v3 = vpop.eup %18079 }
0x18e8   : > { %v18082_v4 = vpop.eup %18081  ;;  %v3493_v8 = vmul.f32 %v18080_v3, %v18074_v42 }
0x18e9   : > { %v3494_v13 = vmul.f32 %v18082_v4, %v18072_v40  ;;  %v15038_v40 = vld [vmem:[%s21188_s21 + $0x88] sm:$0xff]  ;;  %v15043_v4 = vld [vmem:[%s21188_s21 + $0xb0] sm:$0xff] }
0x18ea   : > { %v17533_v42 = vpack.c.bf16 %v15038_v40, %v15037_v39  ;;  %v3912_v40 = vld [vmem:[%s21094_s12] sm:$0xff] }
0x19b1   : > { %v16296_v55 = vpop.f32.mrb[24].mxu0 }
0x19b2   : > { %v3290_v43 = vpop.f32.mrb[25].mxu0 }
0x19b3   : > { %16299 = vmatprep.mubr.msk.f32.mxu0 %vm1025_vm1, %v3290_v43 }
0x19b4   : > { %16300 = vmatmul.mubr.msk.f32.vlgmr.msra.gmra.mrb[20].mxu0 %vm1025_vm1, %v16296_v55 }
0x19b5   : > { %17524 = vmatpush3.bf16.msra.mxu0 %v17521_v2  ;;  %16313 = vmatprep.mubr.msk.f32.mxu0 %vm1111_vm3, %v3493_v8  ;;  %v15044_v8 = vld [vmem:[%s21188_s21 + $0xb8] sm:$0xff] }
0x19b6   : > { %16316 = vmatprep.subr.mxu0 %v14996_v9 }
0x19b8   : > { %16314 = vmatmul.mubr.msk.f32.vlgmr.msra.gmra.mrb[26].mxu0 %vm1111_vm3, %v3494_v13  ;;  %v15045_v13 = vld [vmem:[%s21188_s21 + $0xc0] sm:$0xff] }
0x19b9   : > { %16317 = vmatpush3.msra.mxu0 %v14996_v9  ;;  %v17545_v9 = vpack.c.bf16 %v15044_v8, %v15043_v4 }
0x19ba   : > { %17534 = vmatprep.subr.bf16.mxu0 %v17533_v42 }
0x1a8b   : > { %v16315_v35 = vpop.f32.mrb[26].mxu0 }
0x1a8c   : > { %v3573_v34 = vpop.f32.mrb[27].mxu0 }
0x1a8d   : > { %16318 = vmatprep.mubr.msk.f32.mxu0 %vm1025_vm1, %v3573_v34 }
0x1a8e   : > { %16319 = vmatmul.mubr.msk.f32.vlgmr.msra.gmra.mrb[20].mxu0 %vm1025_vm1, %v16315_v35  ;;  %v15046_v35 = vld [vmem:[%s21188_s21 + $0xc8] sm:$0xff] }
0x1a8f   : > { %17536 = vmatpush3.bf16.msra.mxu0 %v17533_v42  ;;  %v17549_v34 = vpack.c.bf16 %v15046_v35, %v15045_v13  ;;  %v17566_v42 = vpack.c.bf16 %v3913_v41, %v3912_v40  ;;  %v4198_v41 = vld [vmem:[%s21203_s17 + $0x30] sm:$0xff] }
0x1a90   : > { %17538 = vmatprep.subr.bf16.mxu0 %v17537_v45 }
0x1a93   : > { %17540 = vmatpush3.bf16.msra.mxu0 %v17537_v45  ;;  %v3915_v45 = vld [vmem:[%s21094_s12 + $0x18] sm:$0xff] }
0x1a94   : > { %17542 = vmatprep.subr.bf16.mxu0 %v17541_v24 }
0x1a97   : > { %17544 = vmatpush3.bf16.msra.mxu0 %v17541_v24  ;;  %v17569_v24 = vpack.c.bf16 %v3915_v45, %v3914_v44  ;;  %v4200_v45 = vld [vmem:[%s21203_s17 + $0x40] sm:$0xff] }
0x1a98   : > { %17546 = vmatprep.subr.bf16.mxu0 %v17545_v9 }
0x1a9b   : > { %17548 = vmatpush3.bf16.msra.mxu0 %v17545_v9 }
0x1a9c   : > { %17550 = vmatprep.subr.bf16.mxu0 %v17549_v34 }
0x1a9f   : > { %17552 = vmatpush3.bf16.msra.mxu0 %v17549_v34 }
0x1b61   : > { %v16320_v11 = vpop.f32.mrb[20].mxu0 }
0x1b62   : > { %v17849_v6 = vadd.f32 %v16320_v11, %v2813_v14  ;;  %v3654_v7 = vpop.f32.mrb[21].mxu0  ;;  %v15048_v11 = vld [vmem:[%s21188_s21 + $0xd8] sm:$0xff] }
0x1b63   : > { %v17850_v15 = vadd.f32 %v3654_v7, %v2813_v14  ;;  %v15047_v14 = vld [vmem:[%s21188_s21 + $0xd0] sm:$0xff]  ;;  %v15049_v7 = vld [vmem:[%s21188_s21 + $0xe0] sm:$0xff] }
0x1b64   : > { %v19089_v16 = vadd.f32 %v17849_v6, %v18949_v0  ;;  %v17553_v6 = vpack.c.bf16 %v15048_v11, %v15047_v14  ;;  %v4103_v14 = vld [vmem:[%s21201_s15] sm:$0xff]  ;;  %v4104_v11 = vld [vmem:[%s21201_s15 + $0x8] sm:$0xff] }
0x1b65   : > { %v19092_v17 = vadd.f32 %v17850_v15, %v18946_v63  ;;  %v15050_v15 = vld [vmem:[%s21188_s21 + $0xe8] sm:$0xff] }
0x1b66   : > { %v3670_v18 = vsel %vm888_vm0, %v19089_v16, 0.0  ;;  %17554 = vmatprep.subr.bf16.mxu0 %v17553_v6 }
0x1b67   : > { %3671 = vadd.xlane.f32.xlu1 %v3670_v18  ;;  %v3667_v19 = vsel %vm888_vm0, %v19092_v17, 0.0  ;;  %17556 = vmatpush3.bf16.msra.mxu0 %v17553_v6  ;;  %v17557_v18 = vpack.c.bf16 %v15050_v15, %v15049_v7  ;;  %v17578_v6 = vpack.c.bf16 %v4104_v11, %v4103_v14  ;;  %v4105_v7 = vld [vmem:[%s21201_s15 + $0x10] sm:$0xff]  ;;  %v4106_v15 = vld [vmem:[%s21201_s15 + $0x18] sm:$0xff]  ;;  %s21214_s15 = sld [smem:[#allocation24_spill]] }
0x1b68   : > { %3668 = vadd.xlane.f32.xlu0 %v3667_v19  ;;  %v15051_v19 = vld [vmem:[%s21188_s21 + $0xf0] sm:$0xff] }
0x1b69   : > { %17558 = vmatprep.subr.bf16.mxu0 %v17557_v18 }
0x1b6b   : > { %17560 = vmatpush3.bf16.msra.mxu0 %v17557_v18  ;;  %v17581_v18 = vpack.c.bf16 %v4106_v15, %v4105_v7 }
0x1bf4   : > { %v3672_v20 = vpop.xlane.xlu1 %3671 }
0x1bf5   : > { %v3674_v21 = vmul.f32 0.03125, %v3672_v20  ;;  %v3669_v5 = vpop.xlane.xlu0 %3668  ;;  %v15052_v20 = vld [vmem:[%s21188_s21 + $0xf8] sm:$0xff] }
0x1bf6   : > { %v3673_v22 = vmul.f32 0.03125, %v3669_v5  ;;  %v15034_v5 = vld [vmem:[%s21089_s7 + $0x1] ss:$0 sm:$0xff] }
0x1bf7   : > { %v3676_v23 = vsub.f32 %v19089_v16, %v3674_v21  ;;  %v17561_v21 = vpack.c.bf16 %v15052_v20, %v15051_v19 }
0x1bf8   : > { %v3675_v0 = vsub.f32 %v19092_v17, %v3673_v22 }
0x1bf9   : > { %v3678_v29 = vmul.f32 %v3676_v23, %v3676_v23  ;;  %17562 = vmatprep.subr.bf16.mxu0 %v17561_v21 }
0x1bfa   : > { %v3677_v25 = vmul.f32 %v3675_v0, %v3675_v0  ;;  %17564 = vmatpush3.bf16.msra.mxu0 %v17561_v21 }
0x1bfb   : > { %v3682_v30 = vsel %vm888_vm0, %v3678_v29, 0.0  ;;  %16435 = vmatprep.subr.mxu0 %v18352_v47 }
0x1bfc   : > { %v3679_v63 = vsel %vm888_vm0, %v3677_v25, 0.0 }
0x1bfd   : > { %3680 = vadd.xlane.f32.xlu0 %v3679_v63 }
0x1c01   : > { %3683 = vadd.xlane.f32.xlu0 %v3682_v30 }
0x1c8a   : > { %v3681_v48 = vpop.xlane.xlu0 %3680 }
0x1c8b   : > { %v3685_v49 = vmul.f32 0.03125, %v3681_v48  ;;  %v3829_v48 = vrot.slane %v18974_v26, %v18941_v57  ;;  %v15056_v26 = vld [vmem:[%s21094_s12 + $0x28] sm:$0xff] }
0x1c8d   : > { %v3687_v50 = vadd.f32 1e-05, %v3685_v49 }
0x1c8e   : > { %v3684_v51 = vpop.xlane.xlu0 %3683 }
0x1c8f   : > { %18083 = vrsqrt.f32 %v3687_v50  ;;  %v3686_v53 = vmul.f32 0.03125, %v3684_v51 }
0x1c91   : > { %v3688_v58 = vadd.f32 1e-05, %v3686_v53 }
0x1c93   : > { %18085 = vrsqrt.f32 %v3688_v58 }
0x1c99   : > { %v18084_v28 = vpop.eup %18083 }
0x1c9a   : > { %v3691_v60 = vmul.f32 %v18084_v28, %v3675_v0  ;;  %v15055_v28 = vld [vmem:[%s21094_s12 + $0x20] sm:$0xff] }
0x1c9c   : > { %v3697_v62 = vmul.f32 %v3696_v59, %v3691_v60  ;;  %v17572_v60 = vpack.c.bf16 %v15056_v26, %v15055_v28  ;;  %v4206_v28 = vld [vmem:[%s21203_s17 + $0x70] sm:$0xff]  ;;  %v4207_v26 = vld [vmem:[%s21203_s17 + $0x78] sm:$0xff] }
0x1c9d   : > { %v18086_v1 = vpop.eup %18085 }
0x1c9e   : > { %v3692_v2 = vmul.f32 %v18086_v1, %v3676_v23  ;;  %v3703_v3 = vadd.f32 %v3702_v61, %v3697_v62 }
0x1ca0   : > { %v3698_v55 = vmul.f32 %v3696_v59, %v3692_v2  ;;  %16329 = vmatprep.mubr.msk.f32.mxu1 %vm888_vm0, %v3703_v3  ;;  %v15054_v2 = vld [vmem:[%s21200_s13] ss:$0 sm:$0xff]  ;;  %s21215_s13 = sld [smem:[#allocation23_spill]] }
0x1ca2   : > { %v3704_v43 = vadd.f32 %v3702_v61, %v3698_v55 }
0x1ca4   : > { %16330 = vmatmul.mubr.msk.f32.vlgmr.msra.gmra.mrb[22].mxu1 %vm888_vm0, %v3704_v43 }
0x1ca5   : > { %16375 = vmatprep.mubr.msk.f32.mxu1 %vm18351_vm4, %v18352_v47  ;;  %17567 = vmatpush3.bf16.msra.mxu1 %v17566_v42  ;;  %v4199_v42 = vld [vmem:[%s21203_s17 + $0x38] sm:$0xff] }
0x1ca6   : > { %17568 = vmatprep.subr.bf16.mxu1 %v18350_v46  ;;  %v17593_v44 = vpack.c.bf16 %v4199_v42, %v4198_v41 }
0x1ca9   : > { %17570 = vmatpush3.bf16.msra.mxu1 %v17569_v24  ;;  %v4201_v24 = vld [vmem:[%s21203_s17 + $0x48] sm:$0xff] }
0x1caa   : > { %17571 = vmatprep.subr.bf16.mxu1 %v18350_v46 }
0x1d77   : > { %v16331_v22 = vpop.f32.mrb[22].mxu1 }
0x1d78   : > { %v3796_v23 = vadd.f32 %v16331_v22, %v15034_v5  ;;  %v3790_v0 = vpop.f32.mrb[23].mxu1 }
0x1d79   : > { %v3791_v25 = vadd.f32 %v15034_v5, %v3790_v0  ;;  %v4079_v5 = vld [vmem:[%s21202_s14] sm:$0x3] }
0x1d7a   : > { %v3802_v63 = vmul.f32 0.70710677, %v3796_v23  ;;  %v3800_v37 = vmul.f32 0.5, %v3796_v23  ;;  %v4096_v22 = vrot.slane %v4079_v5, %v18712_v54 }
0x1d7b   : > { %v3801_v29 = vmul.f32 0.70710677, %v3791_v25  ;;  %v3799_v33 = vmul.f32 0.5, %v3791_v25  ;;  %v4101_v25 = vrot.slane %v4079_v5, %v18720_v56 }
0x1d7c   : > { %18087 = verf.f32 %v3802_v63  ;;  %v4192_v63 = vld [vmem:[%s21203_s17] sm:$0xff] }
0x1d7d   : > { %18089 = verf.f32 %v3801_v29  ;;  %v4193_v29 = vld [vmem:[%s21203_s17 + $0x8] sm:$0xff] }
0x1d86   : > { %v18088_v30 = vpop.eup %18087 }
0x1d87   : > { %v18090_v31 = vpop.eup %18089  ;;  %v3806_v32 = vadd.f32 1.0, %v18088_v30 }
0x1d88   : > { %v3805_v36 = vadd.f32 1.0, %v18090_v31  ;;  %v17584_v31 = vpack.c.bf16 %v4193_v29, %v4192_v63 }
0x1d89   : > { %v3808_v39 = vmul.f32 %v3806_v32, %v3800_v37 }
0x1d8a   : > { %v3807_v38 = vmul.f32 %v3805_v36, %v3799_v33  ;;  %v4194_v33 = vld [vmem:[%s21203_s17 + $0x10] sm:$0xff]  ;;  %v4195_v36 = vld [vmem:[%s21203_s17 + $0x18] sm:$0xff] }
0x1d8b   : > { %v17587_v37 = vpack.c.bf16 %v4195_v36, %v4194_v33 }
0x1d8c   : > { %16364 = vmatprep.mubr.f32.mxu0 %v3807_v38  ;;  %v4196_v38 = vld [vmem:[%s21203_s17 + $0x20] sm:$0xff] }
0x1d8d   : > { %16365 = vmatmul.mubr.f32.vlgmr.msra.gmra.mrb[28].mxu0 %v3808_v39  ;;  %v4197_v39 = vld [vmem:[%s21203_s17 + $0x28] sm:$0xff] }
0x1d8e   : > { %16437 = vmatprep.mubr.msk.f32.mxu0 %vm18351_vm4, %v18352_v47  ;;  %v17590_v40 = vpack.c.bf16 %v4197_v39, %v4196_v38 }
0x1e60   : > { %v16366_v49 = vpop.f32.mrb[28].mxu0 }
0x1e61   : > { %v3902_v50 = vadd.f32 %v16366_v49, %v3829_v48  ;;  %v3896_v51 = vpop.f32.mrb[29].mxu0  ;;  %v4202_v49 = vld [vmem:[%s21203_s17 + $0x50] sm:$0xff] }
0x1e62   : > { %v3897_v53 = vadd.f32 %v3896_v51, %v3829_v48  ;;  %v17596_v48 = vpack.c.bf16 %v4201_v24, %v4200_v45 }
0x1e63   : > { %v3906_v58 = vadd.f32 %v3902_v50, %v19089_v16  ;;  %v15057_v16 = vld [vmem:[%s21094_s12 + $0x30] sm:$0xff]  ;;  %v4203_v50 = vld [vmem:[%s21203_s17 + $0x58] sm:$0xff] }
0x1e64   : > { %v3905_v59 = vadd.f32 %v3897_v53, %v19092_v17  ;;  %v15058_v17 = vld [vmem:[%s21094_s12 + $0x38] sm:$0xff]  ;;  %v17599_v51 = vpack.c.bf16 %v4203_v50, %v4202_v49  ;;  %v4204_v53 = vld [vmem:[%s21203_s17 + $0x60] sm:$0xff] }
0x1e65   : > { %3910 = vst.msk [vmem:[#allocation2 + $0x4] sm:$0xf] %vm3908_vm5, %v3906_v58  ;;  %v17575_v62 = vpack.c.bf16 %v15058_v17, %v15057_v16  ;;  %v15060_v16 = vld [vmem:[%s21204_s16] ss:$0 sm:$0xff]  ;;  %s21221_s16 = sld [smem:[#allocation10_spill]] }
0x1e66   : > { %3909 = vst.msk [vmem:[#allocation2] sm:$0xf] %vm3908_vm5, %v3905_v59 }
0x1e6d   : > { %v3911_v61 = vld [vmem:[#allocation2] sm:$0xff] }
0x1e6e   : > { %16376 = vmatmul.mubr.msk.f32.vlgmr.msra.gmra.mrb[24].mxu1 %vm888_vm0, %v3911_v61  ;;  %3997 = vst.msk [vmem:[#allocation2 - $0x4] sm:$0xf0] %vm3996_vm6, %v3905_v59  ;;  %3998 = vst.msk [vmem:[#allocation2] sm:$0xf0] %vm3996_vm6, %v3906_v58  ;;  %v4205_v58 = vld [vmem:[%s21203_s17 + $0x68] sm:$0xff]  ;;  %s21219_s17 = sld [smem:[#allocation29_spill]] }
0x1e6f   : > { %17573 = vmatpush3.bf16.msra.mxu1 %v17572_v60  ;;  %16386 = vmatprep.mubr.msk.f32.mxu1 %vm18351_vm4, %v18352_v47  ;;  %v17602_v59 = vpack.c.bf16 %v4205_v58, %v4204_v53  ;;  %v17605_v60 = vpack.c.bf16 %v4207_v26, %v4206_v28  ;;  %v15070_v53 = vld [vmem:[%s21091_s9 + $0x48] sm:$0xff]  ;;  %v15072_v28 = vld [vmem:[%s21091_s9 + $0x58] sm:$0xff] }
0x1e70   : > { %17574 = vmatprep.subr.bf16.mxu1 %v18350_v46 }
0x1e73   : > { %17576 = vmatpush3.bf16.msra.mxu1 %v17575_v62 }
0x1e74   : > { %17577 = vmatprep.subr.bf16.mxu1 %v18350_v46 }
0x1e75   : > { %v3999_v1 = vld [vmem:[#allocation2] sm:$0xff] }
0x1e76   : > { %16387 = vmatmul.mubr.msk.f32.vlgmr.msra.gmra.mrb[24].mxu1 %vm888_vm0, %v3999_v1 }
0x1e77   : > { %16397 = vmatprep.mubr.msk.f32.mxu1 %vm18351_vm4, %v18352_v47  ;;  %17579 = vmatpush3.bf16.msra.mxu1 %v17578_v6 }
0x1e78   : > { %17580 = vmatprep.subr.bf16.mxu1 %v18350_v46 }
0x1e7b   : > { %17582 = vmatpush3.bf16.msra.mxu1 %v17581_v18 }
0x1e7c   : > { %17583 = vmatprep.subr.bf16.mxu1 %v18350_v46 }
0x1f49   : > { %v4074_v3 = vpop.f32.mrb[24].mxu1 }
0x1f4a   : > { %v19220_v55 = vadd.f32 %v15054_v2, %v4074_v3  ;;  %v16388_v43 = vpop.f32.mrb[25].mxu1 }
0x1f4c   : > { %16436 = vmatpush3.msk.msra.mxu0 %vm4333_vm7, %v19220_v55  ;;  %v4080_v4 = vsel %vm888_vm0, %v19220_v55, 0.0  ;;  %v4453_v36 = vrot.slane %v19220_v55, 4 }
0x1f4d   : > { %4081 = vadd.xlane.f32.xlu0 %v4080_v4  ;;  %16440 = vmatprep.subr.mxu0 %v18352_v47 }
0x1fda   : > { %v4082_v8 = vpop.xlane.xlu0 %4081 }
0x1fdb   : > { %v4083_v9 = vmul.f32 0.03125, %v4082_v8  ;;  %v15062_v8 = vld [vmem:[%s21205_s18] ss:$0 sm:$0xff] }
0x1fdd   : > { %v4084_v13 = vsub.f32 %v19220_v55, %v4083_v9 }
0x1fdf   : > { %v4085_v35 = vmul.f32 %v4084_v13, %v4084_v13 }
0x1fe1   : > { %v4086_v34 = vsel %vm888_vm0, %v4085_v35, 0.0 }
0x1fe2   : > { %4087 = vadd.xlane.f32.xlu0 %v4086_v34 }
0x206f   : > { %v4088_v19 = vpop.xlane.xlu0 %4087 }
0x2070   : > { %v4089_v20 = vmul.f32 0.03125, %v4088_v19 }
0x2072   : > { %v4090_v21 = vadd.f32 1e-05, %v4089_v20 }
0x2074   : > { %18091 = vrsqrt.f32 %v4090_v21 }
0x207e   : > { %v18092_v23 = vpop.eup %18091 }
0x207f   : > { %v19247_v0 = vmul.f32 %v18092_v23, %v4084_v13 }
0x2081   : > { %v4097_v30 = vmul.f32 %v4096_v22, %v19247_v0 }
0x2083   : > { %v4102_v32 = vadd.f32 %v4101_v25, %v4097_v30 }
0x2085   : > { %16398 = vmatmul.mubr.msk.f32.vlgmr.msra.gmra.mrb[26].mxu1 %vm888_vm0, %v4102_v32 }
0x2086   : > { %17585 = vmatpush3.bf16.msra.mxu1 %v17584_v31  ;;  %16432 = vmatprep.mubr.msk.f32.mxu1 %vm18351_vm4, %v18352_v47 }
0x2087   : > { %17586 = vmatprep.subr.bf16.mxu1 %v18350_v46 }
0x208a   : > { %17588 = vmatpush3.bf16.msra.mxu1 %v17587_v37 }
0x208b   : > { %17589 = vmatprep.subr.bf16.mxu1 %v18350_v46 }
0x208e   : > { %17591 = vmatpush3.bf16.msra.mxu1 %v17590_v40 }
0x208f   : > { %17592 = vmatprep.subr.bf16.mxu1 %v18350_v46 }
0x2092   : > { %17594 = vmatpush3.bf16.msra.mxu1 %v17593_v44 }
0x2093   : > { %17595 = vmatprep.subr.bf16.mxu1 %v18350_v46 }
0x2096   : > { %17597 = vmatpush3.bf16.msra.mxu1 %v17596_v48 }
0x2097   : > { %17598 = vmatprep.subr.bf16.mxu1 %v18350_v46 }
0x209a   : > { %17600 = vmatpush3.bf16.msra.mxu1 %v17599_v51  ;;  %v15069_v51 = vld [vmem:[%s21091_s9 + $0x40] sm:$0xff] }
0x209b   : > { %17601 = vmatprep.subr.bf16.mxu1 %v18350_v46  ;;  %v17608_v58 = vpack.c.bf16 %v15070_v53, %v15069_v51 }
0x209e   : > { %17603 = vmatpush3.bf16.msra.mxu1 %v17602_v59  ;;  %v15071_v59 = vld [vmem:[%s21091_s9 + $0x50] sm:$0xff] }
0x209f   : > { %17604 = vmatprep.subr.bf16.mxu1 %v18350_v46  ;;  %v17611_v26 = vpack.c.bf16 %v15072_v28, %v15071_v59 }
0x20a2   : > { %17606 = vmatpush3.bf16.msra.mxu1 %v17605_v60 }
0x20a3   : > { %16472 = vmatprep.subr.mxu1 %v18352_v47 }
0x2158   : > { %v4183_v17 = vpop.f32.mrb[26].mxu1 }
0x2159   : > { %v4184_v61 = vadd.f32 %v15060_v16, %v4183_v17  ;;  %v16399_v62 = vpop.f32.mrb[27].mxu1 }
0x215a   : > { %v19359_v62 = vsub.s32 6, %v18709_v52 }
0x215b   : > { %v4188_v1 = vmul.f32 0.70710677, %v4184_v61  ;;  %v4187_v3 = vmul.f32 0.5, %v4184_v61  ;;  %v19356_v61 = vld [vmem:[%s21090_s8 + $0x20] sm:$0xff] }
0x215d   : > { %18093 = verf.f32 %v4188_v1  ;;  %v4551_v1 = vrot.slane %v19356_v61, %v19359_v62 }
0x2167   : > { %v18094_v2 = vpop.eup %18093 }
0x2168   : > { %v4190_v43 = vadd.f32 1.0, %v18094_v2  ;;  %v19364_v2 = vsub.s32 7, %v18709_v52 }
0x216a   : > { %v4191_v4 = vmul.f32 %v4190_v43, %v4187_v3 }
0x216c   : > { %16433 = vmatmul.mubr.f32.vlgmr.msra.gmra.mrb[28].mxu1 %v4191_v4  ;;  %v4556_v4 = vrot.slane %v19356_v61, %v19364_v2 }
0x216d   : > { %16474 = vmatprep.mubr.msk.f32.mxu1 %vm18351_vm4, %v18352_v47 }
0x223f   : > { %v4281_v9 = vpop.f32.mrb[28].mxu1 }
0x2240   : > { %v4282_v13 = vadd.f32 %v15062_v8, %v4281_v9  ;;  %v16434_v35 = vpop.f32.mrb[29].mxu1  ;;  %v15074_v8 = vld [vmem:[%s21092_s10 + $0x40] sm:$0xff]  ;;  %v15075_v9 = vld [vmem:[%s21092_s10 + $0x48] sm:$0xff] }
0x2241   : > { %v17614_v35 = vpack.c.bf16 %v15075_v9, %v15074_v8  ;;  %v15080_v9 = vld [vmem:[%s21093_s11 + $0x48] sm:$0xff] }
0x2242   : > { %4285 = vxpose.xlu0.b32.start.end [1/1] (short) (narrow) %v4282_v13, 8  ;;  %v4408_v34 = vrot.slane %v4282_v13, 4  ;;  %v19377_v13 = vld [vmem:[%s21090_s8 + $0x28] sm:$0x7] }
0x2244   : > { %4410 = vxpose.xlu1.b32.start.end [1/1] (short) (narrow) %v4408_v34, 8 }
0x22c2   : > { %v4301_v14 = vpop.trf.xlu0 }
0x22c3   : > { %v4318_v11 = vsel %vm4317_vm8, %v4301_v14, -inf }
0x22c4   : > { %4319 = vmax.xlane.f32.xlu0 %v4318_v11  ;;  %v4426_v6 = vpop.trf.xlu1  ;;  %v15077_v11 = vld [vmem:[%s21092_s10 + $0x58] sm:$0xff] }
0x22c5   : > { %v4442_v7 = vsel %vm4317_vm8, %v4426_v6, -inf }
0x22c6   : > { %4443 = vmax.xlane.f32.xlu1 %v4442_v7 }
0x2351   : > { %v4320_v15 = vpop.xlane.xlu0 %4319 }
0x2352   : > { %v4321_v18 = vsub.f32 %v4301_v14, %v4320_v15  ;;  %v15076_v14 = vld [vmem:[%s21092_s10 + $0x50] sm:$0xff] }
0x2353   : > { %v4444_v19 = vpop.xlane.xlu1 %4443  ;;  %v17617_v7 = vpack.c.bf16 %v15077_v11, %v15076_v14 }
0x2354   : > { %v4322_v20 = vmul.f32 1.442695, %v4321_v18  ;;  %v4445_v21 = vsub.f32 %v4426_v6, %v4444_v19  ;;  %v4639_v6 = vrot.slane %v19377_v13, %v18712_v54  ;;  %v4644_v18 = vrot.slane %v19377_v13, %v18720_v56 }
0x2356   : > { %18095 = vpow2.f32 %v4322_v20  ;;  %v4446_v5 = vmul.f32 1.442695, %v4445_v21  ;;  %v4640_v15 = vmul.f32 %v4639_v6, %v19247_v0 }
0x2358   : > { %18097 = vpow2.f32 %v4446_v5  ;;  %v4645_v19 = vadd.f32 %v4644_v18, %v4640_v15 }
0x2360   : > { %v18096_v22 = vpop.eup %18095 }
0x2361   : > { %v4324_v23 = vsel %vm4317_vm8, %v18096_v22, 0.0 }
0x2362   : > { %v18098_v25 = vpop.eup %18097  ;;  %4325 = vadd.xlane.f32.xlu0 %v4324_v23 }
0x2363   : > { %v4448_v63 = vsel %vm4317_vm8, %v18098_v25, 0.0 }
0x2364   : > { %4449 = vadd.xlane.f32.xlu1 %v4448_v63 }
0x23ef   : > { %v4326_v29 = vpop.xlane.xlu0 %4325 }
0x23f0   : > { %18099 = vrcp.f32 %v4326_v29 }
0x23f1   : > { %v4450_v30 = vpop.xlane.xlu1 %4449 }
0x23f2   : > { %18101 = vrcp.f32 %v4450_v30 }
0x23fa   : > { %v18100_v31 = vpop.eup %18099 }
0x23fb   : > { %v4328_v32 = vmul.f32 %v18100_v31, %v18096_v22 }
0x23fc   : > { %v18102_v33 = vpop.eup %18101 }
0x23fd   : > { %16438 = vmatmul.mubr.msk.f32.vlgmr.msra.gmra.mrb[30].mxu0 %vm4329_vm9, %v4328_v32  ;;  %v4452_v37 = vmul.f32 %v18102_v33, %v18098_v25 }
0x23fe   : > { %16441 = vmatpush3.msk.msra.mxu0 %vm4333_vm7, %v4453_v36  ;;  %16442 = vmatprep.mubr.msk.f32.mxu0 %vm18351_vm4, %v18352_v47 }
0x23ff   : > { %17607 = vmatprep.subr.bf16.mxu0 %v18350_v46 }
0x2401   : > { %16443 = vmatmul.mubr.msk.f32.vlgmr.msra.gmra.mrb[32].mxu0 %vm4329_vm9, %v4452_v37 }
0x2402   : > { %16453 = vmatprep.mubr.msk.f32.mxu0 %vm18351_vm4, %v18352_v47  ;;  %17609 = vmatpush3.bf16.msra.mxu0 %v17608_v58 }
0x2403   : > { %17610 = vmatprep.subr.bf16.mxu0 %v18350_v46 }
0x2406   : > { %17612 = vmatpush3.bf16.msra.mxu0 %v17611_v26 }
0x2407   : > { %17613 = vmatprep.subr.bf16.mxu0 %v18350_v46 }
0x24d0   : > { %v4403_v38 = vpop.f32.mrb[30].mxu0 }
0x24d1   : > { %4529 = vst.msk [vmem:[#allocation2] sm:$0xf] %vm3908_vm5, %v4403_v38  ;;  %v16439_v39 = vpop.f32.mrb[31].mxu0 }
0x24d4   : > { %v4525_v40 = vpop.f32.mrb[32].mxu0 }
0x24d5   : > { %4530 = vst.msk [vmem:[#allocation2 + $0x4] sm:$0xf] %vm3908_vm5, %v4525_v40  ;;  %v16444_v41 = vpop.f32.mrb[33].mxu0 }
0x24dc   : > { %v19333_v42 = vld [vmem:[#allocation2] sm:$0xff] }
0x24dd   : > { %v4535_v44 = vsel %vm888_vm0, %v19333_v42, 0.0 }
0x24de   : > { %4536 = vadd.xlane.f32.xlu0 %v4535_v44 }
0x256b   : > { %v4537_v45 = vpop.xlane.xlu0 %4536 }
0x256c   : > { %v4538_v24 = vmul.f32 0.03125, %v4537_v45  ;;  %v15079_v45 = vld [vmem:[%s21093_s11 + $0x40] sm:$0xff] }
0x256e   : > { %v4539_v48 = vsub.f32 %v19333_v42, %v4538_v24 }
0x2570   : > { %v4540_v49 = vmul.f32 %v4539_v48, %v4539_v48 }
0x2572   : > { %v4541_v50 = vsel %vm888_vm0, %v4540_v49, 0.0 }
0x2573   : > { %4542 = vadd.xlane.f32.xlu1 %v4541_v50 }
0x2600   : > { %v4543_v60 = vpop.xlane.xlu1 %4542 }
0x2601   : > { %v4544_v16 = vmul.f32 0.03125, %v4543_v60 }
0x2603   : > { %v4545_v17 = vadd.f32 1e-05, %v4544_v16 }
0x2605   : > { %18103 = vrsqrt.f32 %v4545_v17 }
0x260f   : > { %v18104_v3 = vpop.eup %18103 }
0x2610   : > { %v4547_v43 = vmul.f32 %v18104_v3, %v4539_v48 }
0x2612   : > { %v4552_v52 = vmul.f32 %v4551_v1, %v4547_v43 }
0x2614   : > { %v4557_v34 = vadd.f32 %v4556_v4, %v4552_v52 }
0x2616   : > { %16454 = vmatmul.mubr.msk.f32.vlgmr.msra.gmra.mrb[34].mxu0 %vm888_vm0, %v4557_v34 }
0x2617   : > { %17615 = vmatpush3.bf16.msra.mxu0 %v17614_v35  ;;  %16464 = vmatprep.mubr.msk.f32.mxu0 %vm18351_vm4, %v18352_v47 }
0x2618   : > { %17616 = vmatprep.subr.bf16.mxu0 %v18350_v46 }
0x261b   : > { %17618 = vmatpush3.bf16.msra.mxu0 %v17617_v7 }
0x261c   : > { %16467 = vmatprep.subr.mxu0 %v18352_v47 }
0x261e   : > { %16465 = vmatmul.mubr.msk.f32.vlgmr.msra.gmra.mrb[36].mxu0 %vm888_vm0, %v4645_v19 }
0x261f   : > { %16469 = vmatprep.mubr.msk.f32.mxu0 %vm18351_vm4, %v18352_v47 }
0x26e9   : > { %v4632_v20 = vpop.f32.mrb[34].mxu0 }
0x26ea   : > { %v16455_v21 = vpop.f32.mrb[35].mxu0  ;;  %v19404_v23 = vmul.f32 0.35355338, %v4632_v20 }
0x26eb   : > { %v4969_v21 = vrot.slane %v19377_v13, %v18896_v10  ;;  %v15081_v13 = vld [vmem:[%s21093_s11 + $0x50] sm:$0xff] }
0x26f1   : > { %v19398_v5 = vpop.f32.mrb[36].mxu0 }
0x26f2   : > { %4973 = vrot.lane.b32.xlu1 %v19398_v5, %s21191_s26  ;;  %v16466_v22 = vpop.f32.mrb[37].mxu0  ;;  %16468 = vmatpush3.xpose.msk.msra.mxu0 %vm1025_vm1, %v19398_v5 }
0x26f3   : > { %16477 = vmatprep.subr.mxu0 %v18352_v47 }
0x26f5   : > { %16470 = vmatmul.mubr.msk.f32.vlgmr.msra.gmra.mrb[38].mxu0 %vm1025_vm1, %v19404_v23 }
0x26f6   : > { %16479 = vmatprep.mubr.msk.f32.mxu0 %vm18351_vm4, %v18352_v47  ;;  %16478 = vmatpush3.msra.mxu0 %v15079_v45 }
0x26f7   : > { %16487 = vmatprep.subr.mxu0 %v18352_v47 }
0x2764   : > { %v4974_v38 = vpop.permute.xlu1 %4973 }
0x27c8   : > { %v4802_v25 = vpop.f32.mrb[38].mxu0 }
0x27c9   : > { %v16471_v63 = vpop.f32.mrb[39].mxu0  ;;  %v4806_v29 = vsel %vm1025_vm1, %v4802_v25, -inf }
0x27ca   : > { %4807 = vmax.xlane.f32.xlu0 %v4806_v29 }
0x27e0   : > { %4817 = vrot.lane.b32.xlu0 %v19398_v5, %s21189_s3 }
0x2857   : > { %v4808_v30 = vpop.xlane.xlu0 %4807 }
0x2858   : > { %v4809_v31 = vsub.f32 %v4802_v25, %v4808_v30 }
0x285a   : > { %v4810_v32 = vmul.f32 1.442695, %v4809_v31 }
0x285b   : > { %v4818_v33 = vpop.permute.xlu0 %4817 }
0x285c   : > { %18105 = vpow2.f32 %v4810_v32  ;;  %16473 = vmatpush3.msra.mxu1 %v4818_v33 }
0x285d   : > { %16482 = vmatprep.subr.mxu1 %v18352_v47 }
0x2866   : > { %v18106_v36 = vpop.eup %18105 }
0x2867   : > { %v4812_v37 = vsel %vm1025_vm1, %v18106_v36, 0.0 }
0x2868   : > { %4813 = vadd.xlane.f32.xlu1 %v4812_v37 }
0x2879   : > { %4971 = vrot.lane.b32.xlu1 %v19404_v23, %s21191_s26 }
0x28f5   : > { %v4814_v39 = vpop.xlane.xlu1 %4813 }
0x28f6   : > { %18107 = vrcp.f32 %v4814_v39 }
0x28f9   : > { %v4972_v44 = vpop.permute.xlu1 %4971 }
0x2900   : > { %v18108_v40 = vpop.eup %18107 }
0x2901   : > { %v4816_v41 = vmul.f32 %v18108_v40, %v18106_v36 }
0x2903   : > { %16475 = vmatmul.mubr.msk.f32.vlgmr.msra.gmra.mrb[30].mxu1 %vm1025_vm1, %v4816_v41 }
0x2904   : > { %16483 = vmatpush3.xpose.msk.msra.mxu1 %vm1025_vm1, %v4974_v38  ;;  %16484 = vmatprep.mubr.msk.f32.mxu1 %vm18351_vm4, %v18352_v47 }
0x2905   : > { %16492 = vmatprep.subr.mxu1 %v18352_v47 }
0x2907   : > { %16485 = vmatmul.mubr.msk.f32.vlgmr.msra.gmra.mrb[32].mxu1 %vm1025_vm1, %v4972_v44 }
0x2908   : > { %16494 = vmatprep.mubr.msk.f32.mxu1 %vm18351_vm4, %v18352_v47  ;;  %16493 = vmatpush3.msra.mxu1 %v15080_v9 }
0x2909   : > { %16502 = vmatprep.subr.mxu1 %v18352_v47 }
0x29d6   : > { %v4889_v24 = vpop.f32.mrb[30].mxu1 }
0x29d7   : > { %v16476_v48 = vpop.f32.mrb[31].mxu1  ;;  %16480 = vmatmul.mubr.msk.f32.vlgmr.msra.gmra.mrb[40].mxu0 %vm1025_vm1, %v4889_v24 }
0x29d8   : > { %16489 = vmatprep.mubr.msk.f32.mxu0 %vm18351_vm4, %v18352_v47 }
0x29da   : > { %v5045_v49 = vpop.f32.mrb[32].mxu1 }
0x29db   : > { %v16486_v50 = vpop.f32.mrb[33].mxu1  ;;  %v5049_v51 = vsel %vm1025_vm1, %v5045_v49, -inf }
0x29dc   : > { %5050 = vmax.xlane.f32.xlu1 %v5049_v51 }
0x29ed   : > { %5212 = vrot.lane.b32.xlu1 %v19398_v5, %s21194_s0 }
0x29f1   : > { %5210 = vrot.lane.b32.xlu1 %v19404_v23, %s21194_s0 }
0x2a69   : > { %v5051_v53 = vpop.xlane.xlu1 %5050 }
0x2a6a   : > { %v5052_v58 = vsub.f32 %v5045_v49, %v5051_v53  ;;  %v15082_v49 = vld [vmem:[%s21093_s11 + $0x58] sm:$0xff] }
0x2a6c   : > { %v5053_v59 = vmul.f32 1.442695, %v5052_v58 }
0x2a6d   : > { %v5213_v43 = vpop.permute.xlu1 %5212 }
0x2a6e   : > { %18109 = vpow2.f32 %v5053_v59 }
0x2a71   : > { %v5211_v8 = vpop.permute.xlu1 %5210 }
0x2a78   : > { %v18110_v28 = vpop.eup %18109 }
0x2a79   : > { %v5055_v26 = vsel %vm1025_vm1, %v18110_v28, 0.0 }
0x2a7a   : > { %5056 = vadd.xlane.f32.xlu0 %v5055_v26 }
0x2a90   : > { %5060 = vrot.lane.b32.xlu0 %v19398_v5, %s21190_s5 }
0x2aaa   : > { %v4962_v60 = vpop.f32.mrb[40].mxu0 }
0x2aab   : > { %v16481_v16 = vpop.f32.mrb[41].mxu0  ;;  %v4970_v22 = vadd.f32 %v4969_v21, %v4962_v60 }
0x2b07   : > { %v5057_v17 = vpop.xlane.xlu0 %5056 }
0x2b08   : > { %18111 = vrcp.f32 %v5057_v17 }
0x2b0b   : > { %v5061_v1 = vpop.permute.xlu0 %5060 }
0x2b0c   : > { %16488 = vmatpush3.msra.mxu0 %v5061_v1 }
0x2b0d   : > { %16497 = vmatprep.subr.mxu0 %v18352_v47 }
0x2b12   : > { %v18112_v3 = vpop.eup %18111 }
0x2b13   : > { %v5059_v4 = vmul.f32 %v18112_v3, %v18110_v28 }
0x2b15   : > { %16490 = vmatmul.mubr.msk.f32.vlgmr.msra.gmra.mrb[42].mxu0 %vm1025_vm1, %v5059_v4 }
0x2b16   : > { %16498 = vmatpush3.xpose.msk.msra.mxu0 %vm1025_vm1, %v5213_v43  ;;  %16499 = vmatprep.mubr.msk.f32.mxu0 %vm18351_vm4, %v18352_v47 }
0x2b17   : > { %16507 = vmatprep.subr.mxu0 %v18352_v47 }
0x2b19   : > { %16500 = vmatmul.mubr.msk.f32.vlgmr.msra.gmra.mrb[44].mxu0 %vm1025_vm1, %v5211_v8 }
0x2b1a   : > { %16509 = vmatprep.mubr.msk.f32.mxu0 %vm18351_vm4, %v18352_v47  ;;  %16508 = vmatpush3.msra.mxu0 %v15081_v13 }
0x2b1b   : > { %16517 = vmatprep.subr.mxu0 %v18352_v47 }
0x2be8   : > { %v5132_v52 = vpop.f32.mrb[42].mxu0 }
0x2be9   : > { %v16491_v35 = vpop.f32.mrb[43].mxu0  ;;  %16495 = vmatmul.mubr.msk.f32.vlgmr.msra.gmra.mrb[34].mxu1 %vm1025_vm1, %v5132_v52 }
0x2bea   : > { %16504 = vmatprep.mubr.msk.f32.mxu1 %vm18351_vm4, %v18352_v47 }
0x2bec   : > { %v5284_v34 = vpop.f32.mrb[44].mxu0 }
0x2bed   : > { %v16501_v14 = vpop.f32.mrb[45].mxu0  ;;  %v5288_v11 = vsel %vm1025_vm1, %v5284_v34, -inf }
0x2bee   : > { %5289 = vmax.xlane.f32.xlu0 %v5288_v11  ;;  %v15101_v11 = vld [vmem:[%s21206_s1 + $0x50] sm:$0xff] }
0x2c04   : > { %5299 = vrot.lane.b32.xlu0 %v19398_v5, %s21197_s23 }
0x2c08   : > { %5449 = vrot.lane.b32.xlu0 %v19404_v23, %s21196_s22 }
0x2c7b   : > { %v5290_v6 = vpop.xlane.xlu0 %5289 }
0x2c7c   : > { %v5291_v7 = vsub.f32 %v5284_v34, %v5290_v6  ;;  %v15099_v34 = vld [vmem:[%s21206_s1 + $0x40] sm:$0xff]  ;;  %v15102_v6 = vld [vmem:[%s21206_s1 + $0x58] sm:$0xff] }
0x2c7e   : > { %v5292_v15 = vmul.f32 1.442695, %v5291_v7  ;;  %v17623_v7 = vpack.c.bf16 %v15102_v6, %v15101_v11 }
0x2c7f   : > { %v5300_v18 = vpop.permute.xlu0 %5299 }
0x2c80   : > { %18113 = vpow2.f32 %v5292_v15  ;;  %16503 = vmatpush3.msra.mxu1 %v5300_v18 }
0x2c81   : > { %16512 = vmatprep.subr.mxu1 %v18352_v47 }
0x2c83   : > { %v5450_v33 = vpop.permute.xlu0 %5449 }
0x2c8a   : > { %v18114_v19 = vpop.eup %18113 }
0x2c8b   : > { %v5294_v20 = vsel %vm1025_vm1, %v18114_v19, 0.0 }
0x2c8c   : > { %5295 = vadd.xlane.f32.xlu1 %v5294_v20  ;;  %v5705_v20 = vrot.slane %v19356_v61, %v18712_v54 }
0x2c9d   : > { %5451 = vrot.lane.b32.xlu1 %v19398_v5, %s21196_s22 }
0x2cbc   : > { %v5205_v23 = vpop.f32.mrb[34].mxu1 }
0x2cbd   : > { %v5209_v25 = vadd.f32 %v5205_v23, %v4970_v22  ;;  %v16496_v63 = vpop.f32.mrb[35].mxu1  ;;  %v5710_v23 = vrot.slane %v19356_v61, %v18720_v56 }
0x2d19   : > { %v5296_v29 = vpop.xlane.xlu1 %5295 }
0x2d1a   : > { %18115 = vrcp.f32 %v5296_v29 }
0x2d1d   : > { %v5452_v32 = vpop.permute.xlu1 %5451 }
0x2d24   : > { %v18116_v30 = vpop.eup %18115 }
0x2d25   : > { %v5298_v31 = vmul.f32 %v18116_v30, %v18114_v19 }
0x2d27   : > { %16505 = vmatmul.mubr.msk.f32.vlgmr.msra.gmra.mrb[36].mxu1 %vm1025_vm1, %v5298_v31 }
0x2d28   : > { %16513 = vmatpush3.xpose.msk.msra.mxu1 %vm1025_vm1, %v5452_v32  ;;  %16514 = vmatprep.mubr.msk.f32.mxu1 %vm18351_vm4, %v18352_v47 }
0x2d29   : > { %16522 = vmatprep.subr.mxu1 %v18352_v47 }
0x2d2b   : > { %16515 = vmatmul.mubr.msk.f32.vlgmr.msra.gmra.mrb[38].mxu1 %vm1025_vm1, %v5450_v33 }
0x2d2c   : > { %16524 = vmatprep.mubr.msk.f32.mxu1 %vm18351_vm4, %v18352_v47  ;;  %16523 = vmatpush3.msra.mxu1 %v15082_v49 }
0x2d2d   : > { %16538 = vmatprep.subr.mxu1 %v18352_v47 }
0x2dfa   : > { %v5371_v36 = vpop.f32.mrb[36].mxu1 }
0x2dfb   : > { %v16506_v37 = vpop.f32.mrb[37].mxu1  ;;  %16510 = vmatmul.mubr.msk.f32.vlgmr.msra.gmra.mrb[46].mxu0 %vm1025_vm1, %v5371_v36 }
0x2dfc   : > { %16519 = vmatprep.mubr.msk.f32.mxu0 %vm18351_vm4, %v18352_v47 }
0x2dfe   : > { %v5523_v38 = vpop.f32.mrb[38].mxu1 }
0x2dff   : > { %v16516_v39 = vpop.f32.mrb[39].mxu1  ;;  %v5527_v40 = vsel %vm1025_vm1, %v5523_v38, -inf }
0x2e00   : > { %5528 = vmax.xlane.f32.xlu1 %v5527_v40 }
0x2e8d   : > { %v5529_v41 = vpop.xlane.xlu1 %5528 }
0x2e8e   : > { %v5530_v44 = vsub.f32 %v5523_v38, %v5529_v41 }
0x2e90   : > { %v5531_v45 = vmul.f32 1.442695, %v5530_v44 }
0x2e92   : > { %18117 = vpow2.f32 %v5531_v45 }
0x2e9c   : > { %v18118_v24 = vpop.eup %18117 }
0x2e9d   : > { %v5533_v48 = vsel %vm1025_vm1, %v18118_v24, 0.0 }
0x2e9e   : > { %5534 = vadd.xlane.f32.xlu0 %v5533_v48 }
0x2eb4   : > { %5538 = vrot.lane.b32.xlu0 %v19398_v5, %s21195_s27 }
0x2ece   : > { %v5444_v50 = vpop.f32.mrb[46].mxu0 }
0x2ecf   : > { %v5448_v51 = vadd.f32 %v5444_v50, %v5209_v25  ;;  %v16511_v53 = vpop.f32.mrb[47].mxu0 }
0x2f2b   : > { %v5535_v58 = vpop.xlane.xlu0 %5534 }
0x2f2c   : > { %18119 = vrcp.f32 %v5535_v58 }
0x2f2f   : > { %v5539_v59 = vpop.permute.xlu0 %5538 }
0x2f30   : > { %16518 = vmatpush3.msra.mxu0 %v5539_v59 }
0x2f31   : > { %17619 = vmatprep.subr.bf16.mxu0 %v18350_v46 }
0x2f36   : > { %v18120_v28 = vpop.eup %18119 }
0x2f37   : > { %v5537_v26 = vmul.f32 %v18120_v28, %v18118_v24 }
0x2f39   : > { %16520 = vmatmul.mubr.msk.f32.vlgmr.msra.gmra.mrb[48].mxu0 %vm1025_vm1, %v5537_v26 }
0x2f3a   : > { %16535 = vmatprep.mubr.msk.f32.mxu0 %vm18351_vm4, %v18352_v47 }
0x300c   : > { %v5610_v5 = vpop.f32.mrb[48].mxu0 }
0x300d   : > { %v16521_v60 = vpop.f32.mrb[49].mxu0  ;;  %16525 = vmatmul.mubr.msk.f32.vlgmr.msra.gmra.mrb[40].mxu1 %vm1025_vm1, %v5610_v5 }
0x300e   : > { %16540 = vmatprep.mubr.msk.f32.mxu1 %vm18351_vm4, %v18352_v47 }
0x30e0   : > { %v5683_v16 = vpop.f32.mrb[40].mxu1 }
0x30e1   : > { %v5687_v17 = vadd.f32 %v5683_v16, %v5448_v51  ;;  %v16526_v1 = vpop.f32.mrb[41].mxu1  ;;  %v15104_v51 = vld [vmem:[%s21208_s29 + $0x40] sm:$0xff]  ;;  %s21212_s29 = smov 40  }
0x30e3   : > { %v19499_v3 = vadd.f32 %v5687_v17, %v19333_v42  ;;  %v15100_v42 = vld [vmem:[%s21206_s1 + $0x48] sm:$0xff] }
0x30e4   : > { %v17620_v14 = vpack.c.bf16 %v15100_v42, %v15099_v34 }
0x30e5   : > { %v5689_v43 = vsel %vm888_vm0, %v19499_v3, 0.0 }
0x30e6   : > { %5690 = vadd.xlane.f32.xlu1 %v5689_v43  ;;  %17621 = vmatpush3.bf16.msra.mxu0 %v17620_v14  ;;  %v15105_v14 = vld [vmem:[%s21209_s19 + $0x48] sm:$0xff] }
0x30e7   : > { %17622 = vmatprep.subr.bf16.mxu0 %v18350_v46 }
0x30ea   : > { %17624 = vmatpush3.bf16.msra.mxu0 %v17623_v7 }
0x30eb   : > { %16548 = vmatprep.subr.mxu0 %v18352_v47 }
0x3173   : > { %v5691_v4 = vpop.xlane.xlu1 %5690 }
0x3174   : > { %v5692_v8 = vmul.f32 0.03125, %v5691_v4 }
0x3176   : > { %v5693_v9 = vsub.f32 %v19499_v3, %v5692_v8 }
0x3178   : > { %v5694_v52 = vmul.f32 %v5693_v9, %v5693_v9 }
0x317a   : > { %v5695_v35 = vsel %vm888_vm0, %v5694_v52, 0.0 }
0x317b   : > { %5696 = vadd.xlane.f32.xlu1 %v5695_v35 }
0x3208   : > { %v5697_v15 = vpop.xlane.xlu1 %5696 }
0x3209   : > { %v5698_v18 = vmul.f32 0.03125, %v5697_v15 }
0x320b   : > { %v5699_v19 = vadd.f32 1e-05, %v5698_v18 }
0x320d   : > { %18121 = vrsqrt.f32 %v5699_v19 }
0x3217   : > { %v18122_v21 = vpop.eup %18121 }
0x3218   : > { %v5701_v22 = vmul.f32 %v18122_v21, %v5693_v9 }
0x321a   : > { %v5706_v25 = vmul.f32 %v5705_v20, %v5701_v22 }
0x321c   : > { %v5711_v63 = vadd.f32 %v5710_v23, %v5706_v25  ;;  %v6037_v25 = vrot.slane %v19356_v61, %v18847_v27 }
0x321e   : > { %16536 = vmatmul.mubr.msk.f32.vlgmr.msra.gmra.mrb[50].mxu0 %vm888_vm0, %v5711_v63 }
0x321f   : > { %16550 = vmatprep.mubr.msk.f32.mxu0 %vm18351_vm4, %v18352_v47  ;;  %16549 = vmatpush3.msra.mxu0 %v15104_v51 }
0x3220   : > { %16558 = vmatprep.subr.mxu0 %v18352_v47 }
0x32f1   : > { %v19526_v29 = vpop.f32.mrb[50].mxu0 }
0x32f2   : > { %5797 = vrot.lane.b32.xlu1 %v19526_v29, %s21189_s3  ;;  %v16537_v30 = vpop.f32.mrb[51].mxu0  ;;  %v19532_v32 = vmul.f32 0.35355338, %v19526_v29 }
0x3364   : > { %v5798_v31 = vpop.permute.xlu1 %5797 }
0x3365   : > { %16539 = vmatpush3.xpose.msk.msra.mxu1 %vm1025_vm1, %v5798_v31 }
0x3366   : > { %16543 = vmatprep.subr.mxu1 %v18352_v47 }
0x3368   : > { %16541 = vmatmul.mubr.msk.f32.vlgmr.msra.gmra.mrb[42].mxu1 %vm1025_vm1, %v19532_v32 }
0x3369   : > { %16545 = vmatprep.mubr.msk.f32.mxu1 %vm18351_vm4, %v18352_v47 }
0x343b   : > { %v5870_v33 = vpop.f32.mrb[42].mxu1 }
0x343c   : > { %v16542_v13 = vpop.f32.mrb[43].mxu1  ;;  %v5874_v36 = vsel %vm1025_vm1, %v5870_v33, -inf }
0x343d   : > { %5875 = vmax.xlane.f32.xlu0 %v5874_v36 }
0x3453   : > { %5885 = vrot.lane.b32.xlu0 %v19526_v29, %s21207_s28 }
0x3457   : > { %6039 = vrot.lane.b32.xlu0 %v19532_v32, %s21191_s26 }
0x34ca   : > { %v5876_v37 = vpop.xlane.xlu0 %5875 }
0x34cb   : > { %v5877_v38 = vsub.f32 %v5870_v33, %v5876_v37 }
0x34cd   : > { %v5878_v39 = vmul.f32 1.442695, %v5877_v38 }
0x34ce   : > { %v5886_v40 = vpop.permute.xlu0 %5885 }
0x34cf   : > { %18123 = vpow2.f32 %v5878_v39  ;;  %16544 = vmatpush3.msra.mxu1 %v5886_v40  ;;  %v15106_v40 = vld [vmem:[%s21209_s19 + $0x50] sm:$0xff] }
0x34d0   : > { %16553 = vmatprep.subr.mxu1 %v18352_v47 }
0x34d2   : > { %v6040_v50 = vpop.permute.xlu0 %6039 }
0x34d9   : > { %v18124_v41 = vpop.eup %18123 }
0x34da   : > { %v5880_v44 = vsel %vm1025_vm1, %v18124_v41, 0.0 }
0x34db   : > { %5881 = vadd.xlane.f32.xlu1 %v5880_v44 }
0x34ec   : > { %6041 = vrot.lane.b32.xlu1 %v19526_v29, %s21190_s5 }
0x3568   : > { %v5882_v45 = vpop.xlane.xlu1 %5881 }
0x3569   : > { %18125 = vrcp.f32 %v5882_v45 }
0x356c   : > { %v6042_v49 = vpop.permute.xlu1 %6041 }
0x3573   : > { %v18126_v24 = vpop.eup %18125 }
0x3574   : > { %v5884_v48 = vmul.f32 %v18126_v24, %v18124_v41 }
0x3576   : > { %16546 = vmatmul.mubr.msk.f32.vlgmr.msra.gmra.mrb[44].mxu1 %vm1025_vm1, %v5884_v48 }
0x3577   : > { %16554 = vmatpush3.xpose.msk.msra.mxu1 %vm1025_vm1, %v6042_v49  ;;  %16555 = vmatprep.mubr.msk.f32.mxu1 %vm18351_vm4, %v18352_v47 }
0x3578   : > { %16563 = vmatprep.subr.mxu1 %v18352_v47 }
0x357a   : > { %16556 = vmatmul.mubr.msk.f32.vlgmr.msra.gmra.mrb[46].mxu1 %vm1025_vm1, %v6040_v50 }
0x357b   : > { %16565 = vmatprep.mubr.msk.f32.mxu1 %vm18351_vm4, %v18352_v47  ;;  %16564 = vmatpush3.msra.mxu1 %v15105_v14 }
0x357c   : > { %16573 = vmatprep.subr.mxu1 %v18352_v47 }
0x3649   : > { %v5957_v53 = vpop.f32.mrb[44].mxu1 }
0x364a   : > { %v16547_v58 = vpop.f32.mrb[45].mxu1  ;;  %16551 = vmatmul.mubr.msk.f32.vlgmr.msra.gmra.mrb[52].mxu0 %vm1025_vm1, %v5957_v53 }
0x364b   : > { %16560 = vmatprep.mubr.msk.f32.mxu0 %vm18351_vm4, %v18352_v47 }
0x364d   : > { %v6113_v59 = vpop.f32.mrb[46].mxu1 }
0x364e   : > { %v16557_v28 = vpop.f32.mrb[47].mxu1  ;;  %v6117_v26 = vsel %vm1025_vm1, %v6113_v59, -inf }
0x364f   : > { %6118 = vmax.xlane.f32.xlu0 %v6117_v26  ;;  %v15107_v28 = vld [vmem:[%s21209_s19 + $0x58] sm:$0xff] }
0x3665   : > { %6128 = vrot.lane.b32.xlu0 %v19526_v29, %s21210_s4 }
0x3669   : > { %6278 = vrot.lane.b32.xlu0 %v19532_v32, %s21194_s0 }
0x36dc   : > { %v6119_v5 = vpop.xlane.xlu0 %6118 }
0x36dd   : > { %v6120_v60 = vsub.f32 %v6113_v59, %v6119_v5 }
0x36df   : > { %v6121_v16 = vmul.f32 1.442695, %v6120_v60 }
0x36e0   : > { %v6129_v17 = vpop.permute.xlu0 %6128 }
0x36e1   : > { %18127 = vpow2.f32 %v6121_v16  ;;  %16559 = vmatpush3.msra.mxu0 %v6129_v17 }
0x36e2   : > { %16568 = vmatprep.subr.mxu0 %v18352_v47 }
0x36e4   : > { %v6279_v42 = vpop.permute.xlu0 %6278 }
0x36eb   : > { %v18128_v1 = vpop.eup %18127 }
0x36ec   : > { %v6123_v43 = vsel %vm1025_vm1, %v18128_v1, 0.0 }
0x36ed   : > { %6124 = vadd.xlane.f32.xlu1 %v6123_v43 }
0x36fe   : > { %6280 = vrot.lane.b32.xlu1 %v19526_v29, %s21197_s23 }
0x371d   : > { %v6030_v4 = vpop.f32.mrb[52].mxu0 }
0x371e   : > { %v16552_v8 = vpop.f32.mrb[53].mxu0  ;;  %v6038_v63 = vadd.f32 %v6037_v25, %v6030_v4 }
0x377a   : > { %v6125_v9 = vpop.xlane.xlu1 %6124 }
0x377b   : > { %18129 = vrcp.f32 %v6125_v9 }
0x377e   : > { %v6281_v34 = vpop.permute.xlu1 %6280 }
0x3785   : > { %v18130_v52 = vpop.eup %18129 }
0x3786   : > { %v6127_v35 = vmul.f32 %v18130_v52, %v18128_v1 }
0x3788   : > { %16561 = vmatmul.mubr.msk.f32.vlgmr.msra.gmra.mrb[54].mxu0 %vm1025_vm1, %v6127_v35 }
0x3789   : > { %16569 = vmatpush3.xpose.msk.msra.mxu0 %vm1025_vm1, %v6281_v34  ;;  %16570 = vmatprep.mubr.msk.f32.mxu0 %vm18351_vm4, %v18352_v47 }
0x378a   : > { %16578 = vmatprep.subr.mxu0 %v18352_v47 }
0x378c   : > { %16571 = vmatmul.mubr.msk.f32.vlgmr.msra.gmra.mrb[56].mxu0 %vm1025_vm1, %v6279_v42 }
0x378d   : > { %16580 = vmatprep.mubr.msk.f32.mxu0 %vm18351_vm4, %v18352_v47  ;;  %16579 = vmatpush3.msra.mxu0 %v15106_v40 }
0x378e   : > { %16588 = vmatprep.subr.mxu0 %v18352_v47 }
0x385b   : > { %v6200_v11 = vpop.f32.mrb[54].mxu0 }
0x385c   : > { %v16562_v6 = vpop.f32.mrb[55].mxu0  ;;  %16566 = vmatmul.mubr.msk.f32.vlgmr.msra.gmra.mrb[48].mxu1 %vm1025_vm1, %v6200_v11 }
0x385d   : > { %16575 = vmatprep.mubr.msk.f32.mxu1 %vm18351_vm4, %v18352_v47 }
0x385f   : > { %v6352_v7 = vpop.f32.mrb[56].mxu0 }
0x3860   : > { %v16572_v15 = vpop.f32.mrb[57].mxu0  ;;  %v6356_v18 = vsel %vm1025_vm1, %v6352_v7, -inf }
0x3861   : > { %6357 = vmax.xlane.f32.xlu1 %v6356_v18  ;;  %v15126_v18 = vld [vmem:[%s21187_s24 + $0x50] sm:$0xff] }
0x3872   : > { %6519 = vrot.lane.b32.xlu1 %v19526_v29, %s21195_s27 }
0x3876   : > { %6517 = vrot.lane.b32.xlu1 %v19532_v32, %s21196_s22 }
0x38ee   : > { %v6358_v19 = vpop.xlane.xlu1 %6357 }
0x38ef   : > { %v6359_v20 = vsub.f32 %v6352_v7, %v6358_v19  ;;  %v15124_v7 = vld [vmem:[%s21187_s24 + $0x40] sm:$0xff]  ;;  %v15127_v19 = vld [vmem:[%s21187_s24 + $0x58] sm:$0xff] }
0x38f1   : > { %v6360_v21 = vmul.f32 1.442695, %v6359_v20  ;;  %v17629_v20 = vpack.c.bf16 %v15127_v19, %v15126_v18 }
0x38f2   : > { %v6520_v37 = vpop.permute.xlu1 %6519 }
0x38f3   : > { %18131 = vpow2.f32 %v6360_v21  ;;  %v15131_v21 = vld [vmem:[%s21188_s21 + $0x100] sm:$0xff] }
0x38f6   : > { %v6518_v39 = vpop.permute.xlu1 %6517 }
0x38fd   : > { %v18132_v22 = vpop.eup %18131 }
0x38fe   : > { %v6362_v23 = vsel %vm1025_vm1, %v18132_v22, 0.0 }
0x38ff   : > { %6363 = vadd.xlane.f32.xlu0 %v6362_v23  ;;  %v15133_v23 = vld [vmem:[%s21188_s21 + $0x110] sm:$0xff] }
0x3915   : > { %6367 = vrot.lane.b32.xlu0 %v19526_v29, %s21211_s20 }
0x392f   : > { %v6273_v30 = vpop.f32.mrb[48].mxu1 }
0x3930   : > { %v6277_v31 = vadd.f32 %v6273_v30, %v6038_v63  ;;  %v16567_v33 = vpop.f32.mrb[49].mxu1  ;;  %v15134_v63 = vld [vmem:[%s21188_s21 + $0x118] sm:$0xff] }
0x3931   : > { %v17635_v30 = vpack.c.bf16 %v15134_v63, %v15133_v23  ;;  %v15136_v33 = vld [vmem:[%s21188_s21 + $0x128] sm:$0xff]  ;;  %v6891_v63 = vrot.slane %v19356_v61, %v18941_v57 }
0x398c   : > { %v6364_v13 = vpop.xlane.xlu0 %6363 }
0x398d   : > { %18133 = vrcp.f32 %v6364_v13 }
0x3990   : > { %v6368_v32 = vpop.permute.xlu0 %6367 }
0x3991   : > { %16574 = vmatpush3.msra.mxu1 %v6368_v32 }
0x3992   : > { %16583 = vmatprep.subr.mxu1 %v18352_v47 }
0x3997   : > { %v18134_v36 = vpop.eup %18133 }
0x3998   : > { %v6366_v38 = vmul.f32 %v18134_v36, %v18132_v22  ;;  %v15132_v22 = vld [vmem:[%s21188_s21 + $0x108] sm:$0xff] }
0x3999   : > { %v17632_v25 = vpack.c.bf16 %v15132_v22, %v15131_v21 }
0x399a   : > { %16576 = vmatmul.mubr.msk.f32.vlgmr.msra.gmra.mrb[50].mxu1 %vm1025_vm1, %v6366_v38  ;;  %v6773_v38 = vrot.slane %v19356_v61, %v18896_v10 }
0x399b   : > { %16584 = vmatpush3.xpose.msk.msra.mxu1 %vm1025_vm1, %v6520_v37  ;;  %16585 = vmatprep.mubr.msk.f32.mxu1 %vm18351_vm4, %v18352_v47 }
0x399c   : > { %16593 = vmatprep.subr.mxu1 %v18352_v47 }
0x399e   : > { %16586 = vmatmul.mubr.msk.f32.vlgmr.msra.gmra.mrb[52].mxu1 %vm1025_vm1, %v6518_v39 }
0x399f   : > { %16595 = vmatprep.mubr.msk.f32.mxu1 %vm18351_vm4, %v18352_v47  ;;  %16594 = vmatpush3.msra.mxu1 %v15107_v28 }
0x39a0   : > { %17631 = vmatprep.subr.bf16.mxu1 %v18350_v46 }
0x3a6d   : > { %v6439_v41 = vpop.f32.mrb[50].mxu1 }
0x3a6e   : > { %v16577_v44 = vpop.f32.mrb[51].mxu1  ;;  %16581 = vmatmul.mubr.msk.f32.vlgmr.msra.gmra.mrb[58].mxu0 %vm1025_vm1, %v6439_v41  ;;  %v6778_v41 = vrot.slane %v19356_v61, %v18899_v12  ;;  %v15154_v61 = vld [vmem:[%s21092_s10 + $0x60] sm:$0xff] }
0x3a6f   : > { %16590 = vmatprep.mubr.msk.f32.mxu0 %vm18351_vm4, %v18352_v47  ;;  %v15149_v44 = vld [vmem:[%s21091_s9 + $0x60] sm:$0xff] }
0x3a71   : > { %v6591_v45 = vpop.f32.mrb[52].mxu1 }
0x3a72   : > { %v16587_v24 = vpop.f32.mrb[53].mxu1  ;;  %v6595_v48 = vsel %vm1025_vm1, %v6591_v45, -inf }
0x3a73   : > { %6596 = vmax.xlane.f32.xlu0 %v6595_v48  ;;  %v19683_v24 = vld [vmem:[%s21090_s8 + $0x30] sm:$0xff] }
0x3a89   : > { %6606 = vrot.lane.b32.xlu0 %v19526_v29, %s21212_s29 }
0x3b00   : > { %v6597_v49 = vpop.xlane.xlu0 %6596 }
0x3b01   : > { %v6598_v50 = vsub.f32 %v6591_v45, %v6597_v49  ;;  %v15150_v45 = vld [vmem:[%s21091_s9 + $0x68] sm:$0xff] }
0x3b02   : > { %v17656_v49 = vpack.c.bf16 %v15150_v45, %v15149_v44  ;;  %v15156_v45 = vld [vmem:[%s21092_s10 + $0x70] sm:$0xff] }
0x3b03   : > { %v6599_v51 = vmul.f32 1.442695, %v6598_v50 }
0x3b04   : > { %v6607_v53 = vpop.permute.xlu0 %6606 }
0x3b05   : > { %18135 = vpow2.f32 %v6599_v51  ;;  %16589 = vmatpush3.msra.mxu0 %v6607_v53  ;;  %v15151_v51 = vld [vmem:[%s21091_s9 + $0x70] sm:$0xff]  ;;  %v15152_v53 = vld [vmem:[%s21091_s9 + $0x78] sm:$0xff] }
0x3b06   : > { %17625 = vmatprep.subr.bf16.mxu0 %v18350_v46 }
0x3b0f   : > { %v18136_v58 = vpop.eup %18135 }
0x3b10   : > { %v6601_v59 = vsel %vm1025_vm1, %v18136_v58, 0.0 }
0x3b11   : > { %6602 = vadd.xlane.f32.xlu1 %v6601_v59  ;;  %v17659_v59 = vpack.c.bf16 %v15152_v53, %v15151_v51 }
0x3b41   : > { %v6512_v29 = vpop.f32.mrb[58].mxu0 }
0x3b42   : > { %v6516_v26 = vadd.f32 %v6512_v29, %v6277_v31  ;;  %v16582_v5 = vpop.f32.mrb[59].mxu0  ;;  %v15135_v31 = vld [vmem:[%s21188_s21 + $0x120] sm:$0xff]  ;;  %v6974_v29 = vrot.slane %v19683_v24, %v19364_v2 }
0x3b43   : > { %v17638_v13 = vpack.c.bf16 %v15136_v33, %v15135_v31  ;;  %v15137_v5 = vld [vmem:[%s21188_s21 + $0x130] sm:$0xff] }
0x3b9e   : > { %v6603_v60 = vpop.xlane.xlu1 %6602 }
0x3b9f   : > { %18137 = vrcp.f32 %v6603_v60 }
0x3ba9   : > { %v18138_v16 = vpop.eup %18137 }
0x3baa   : > { %v6605_v17 = vmul.f32 %v18138_v16, %v18136_v58  ;;  %v6969_v58 = vrot.slane %v19683_v24, %v19359_v62  ;;  %v15139_v16 = vld [vmem:[%s21188_s21 + $0x140] sm:$0xff] }
0x3bac   : > { %16591 = vmatmul.mubr.msk.f32.vlgmr.msra.gmra.mrb[60].mxu0 %vm1025_vm1, %v6605_v17  ;;  %v6970_v28 = vmul.f32 %v6969_v58, %v19247_v0  ;;  %v15138_v0 = vld [vmem:[%s21188_s21 + $0x138] sm:$0xff]  ;;  %v15140_v17 = vld [vmem:[%s21188_s21 + $0x148] sm:$0xff] }
0x3bad   : > { %16606 = vmatprep.mubr.msk.f32.mxu0 %vm18351_vm4, %v18352_v47  ;;  %v17641_v60 = vpack.c.bf16 %v15138_v0, %v15137_v5  ;;  %v19770_v58 = vld [vmem:[%s21090_s8 + $0x38] sm:$0x7] }
0x3c7f   : > { %v6678_v1 = vpop.f32.mrb[60].mxu0 }
0x3c80   : > { %v16592_v43 = vpop.f32.mrb[61].mxu0  ;;  %16596 = vmatmul.mubr.msk.f32.vlgmr.msra.gmra.mrb[54].mxu1 %vm1025_vm1, %v6678_v1  ;;  %v17644_v1 = vpack.c.bf16 %v15140_v17, %v15139_v16 }
0x3c81   : > { %16641 = vmatprep.mubr.msk.f32.mxu1 %vm18351_vm4, %v18352_v47  ;;  %17633 = vmatpush3.bf16.msra.mxu1 %v17632_v25  ;;  %v15141_v43 = vld [vmem:[%s21188_s21 + $0x150] sm:$0xff] }
0x3c82   : > { %17634 = vmatprep.subr.bf16.mxu1 %v18350_v46 }
0x3c85   : > { %17636 = vmatpush3.bf16.msra.mxu1 %v17635_v30 }
0x3c86   : > { %17637 = vmatprep.subr.bf16.mxu1 %v18350_v46 }
0x3c89   : > { %17639 = vmatpush3.bf16.msra.mxu1 %v17638_v13 }
0x3c8a   : > { %17640 = vmatprep.subr.bf16.mxu1 %v18350_v46 }
0x3c8d   : > { %17642 = vmatpush3.bf16.msra.mxu1 %v17641_v60 }
0x3c8e   : > { %17643 = vmatprep.subr.bf16.mxu1 %v18350_v46 }
0x3c91   : > { %17645 = vmatpush3.bf16.msra.mxu1 %v17644_v1 }
0x3c92   : > { %17646 = vmatprep.subr.bf16.mxu1 %v18350_v46 }
0x3d53   : > { %v6751_v4 = vpop.f32.mrb[54].mxu1 }
0x3d54   : > { %v6755_v8 = vadd.f32 %v6751_v4, %v6516_v26  ;;  %v16597_v9 = vpop.f32.mrb[55].mxu1  ;;  %v6975_v26 = vadd.f32 %v6974_v29, %v6970_v28  ;;  %v15142_v4 = vld [vmem:[%s21188_s21 + $0x158] sm:$0xff] }
0x3d55   : > { %v15143_v9 = vld [vmem:[%s21188_s21 + $0x160] sm:$0xff] }
0x3d56   : > { %v19629_v52 = vadd.f32 %v6755_v8, %v19499_v3  ;;  %v15125_v3 = vld [vmem:[%s21187_s24 + $0x48] sm:$0xff]  ;;  %v17647_v8 = vpack.c.bf16 %v15142_v4, %v15141_v43 }
0x3d57   : > { %v17626_v15 = vpack.c.bf16 %v15125_v3, %v15124_v7 }
0x3d58   : > { %v6757_v35 = vsel %vm888_vm0, %v19629_v52, 0.0  ;;  %17648 = vmatpush3.bf16.msra.mxu1 %v17647_v8 }
0x3d59   : > { %6758 = vadd.xlane.f32.xlu1 %v6757_v35  ;;  %17627 = vmatpush3.bf16.msra.mxu0 %v17626_v15  ;;  %v15144_v35 = vld [vmem:[%s21188_s21 + $0x168] sm:$0xff] }
0x3d5a   : > { %17628 = vmatprep.subr.bf16.mxu0 %v18350_v46  ;;  %17649 = vmatprep.subr.bf16.mxu1 %v18350_v46 }
0x3d5d   : > { %17630 = vmatpush3.bf16.msra.mxu0 %v17629_v20 }
0x3d5e   : > { %17655 = vmatprep.subr.bf16.mxu0 %v18350_v46 }
0x3de6   : > { %v6759_v34 = vpop.xlane.xlu1 %6758 }
0x3de7   : > { %v6760_v42 = vmul.f32 0.03125, %v6759_v34  ;;  %v17650_v34 = vpack.c.bf16 %v15144_v35, %v15143_v9 }
0x3de9   : > { %v6761_v14 = vsub.f32 %v19629_v52, %v6760_v42  ;;  %17651 = vmatpush3.bf16.msra.mxu1 %v17650_v34  ;;  %v15145_v42 = vld [vmem:[%s21188_s21 + $0x170] sm:$0xff] }
0x3dea   : > { %17652 = vmatprep.subr.bf16.mxu1 %v18350_v46 }
0x3deb   : > { %v6762_v11 = vmul.f32 %v6761_v14, %v6761_v14 }
0x3ded   : > { %v6763_v6 = vsel %vm888_vm0, %v6762_v11, 0.0 }
0x3dee   : > { %6764 = vadd.xlane.f32.xlu1 %v6763_v6  ;;  %v15129_v6 = vld [vmem:[%s21089_s7 + $0x2] ss:$0 sm:$0xff] }
0x3e7b   : > { %v6765_v32 = vpop.xlane.xlu1 %6764 }
0x3e7c   : > { %v6766_v36 = vmul.f32 0.03125, %v6765_v32 }
0x3e7e   : > { %v6767_v37 = vadd.f32 1e-05, %v6766_v36 }
0x3e80   : > { %18139 = vrsqrt.f32 %v6767_v37 }
0x3e8a   : > { %v18140_v39 = vpop.eup %18139 }
0x3e8b   : > { %v6769_v40 = vmul.f32 %v18140_v39, %v6761_v14  ;;  %v15146_v14 = vld [vmem:[%s21188_s21 + $0x178] sm:$0xff] }
0x3e8c   : > { %v17653_v11 = vpack.c.bf16 %v15146_v14, %v15145_v42 }
0x3e8d   : > { %v6774_v48 = vmul.f32 %v6773_v38, %v6769_v40 }
0x3e8e   : > { %17654 = vmatpush3.bf16.msra.mxu1 %v17653_v11 }
0x3e8f   : > { %v6779_v50 = vadd.f32 %v6778_v41, %v6774_v48  ;;  %16681 = vmatprep.subr.mxu1 %v18352_v47  ;;  %v15157_v48 = vld [vmem:[%s21092_s10 + $0x78] sm:$0xff] }
0x3e91   : > { %16607 = vmatmul.mubr.msk.f32.vlgmr.msra.gmra.mrb[62].mxu0 %vm888_vm0, %v6779_v50 }
0x3e92   : > { %17657 = vmatpush3.bf16.msra.mxu0 %v17656_v49  ;;  %16652 = vmatprep.mubr.msk.f32.mxu0 %vm18351_vm4, %v18352_v47  ;;  %v17665_v49 = vpack.c.bf16 %v15157_v48, %v15156_v45 }
0x3e93   : > { %17658 = vmatprep.subr.bf16.mxu0 %v18350_v46 }
0x3e96   : > { %17660 = vmatpush3.bf16.msra.mxu0 %v17659_v59  ;;  %v7070_v59 = vrot.slane %v19770_v58, %v18712_v54 }
0x3e97   : > { %17661 = vmatprep.subr.bf16.mxu0 %v18350_v46 }
0x3e99   : > { %16653 = vmatmul.mubr.msk.f32.vlgmr.msra.gmra.mrb[64].mxu0 %vm888_vm0, %v6975_v26  ;;  %v7075_v26 = vrot.slane %v19770_v58, %v18720_v56 }
0x3e9a   : > { %16663 = vmatprep.mubr.msk.f32.mxu0 %vm18351_vm4, %v18352_v47 }
0x3f64   : > { %v6862_v7 = vpop.f32.mrb[62].mxu0 }
0x3f65   : > { %v6863_v3 = vadd.f32 %v15129_v6, %v6862_v7  ;;  %v16608_v15 = vpop.f32.mrb[63].mxu0 }
0x3f67   : > { %v6867_v18 = vmul.f32 0.70710677, %v6863_v3  ;;  %v6866_v22 = vmul.f32 0.5, %v6863_v3 }
0x3f69   : > { %18141 = verf.f32 %v6867_v18 }
0x3f6c   : > { %v7050_v19 = vpop.f32.mrb[64].mxu0 }
0x3f6d   : > { %v16654_v20 = vpop.f32.mrb[65].mxu0  ;;  %v19749_v41 = vmul.f32 0.35355338, %v7050_v19 }
0x3f73   : > { %v18142_v21 = vpop.eup %18141 }
0x3f74   : > { %v6869_v23 = vadd.f32 1.0, %v18142_v21 }
0x3f76   : > { %v6870_v25 = vmul.f32 %v6869_v23, %v6866_v22 }
0x3f78   : > { %16642 = vmatmul.mubr.f32.vlgmr.msra.gmra.mrb[56].mxu1 %v6870_v25 }
0x3f79   : > { %16683 = vmatprep.mubr.msk.f32.mxu1 %vm18351_vm4, %v18352_v47 }
0x404b   : > { %v6958_v30 = vpop.f32.mrb[56].mxu1 }
0x404c   : > { %v6959_v31 = vadd.f32 %v6958_v30, %v6891_v63  ;;  %v16643_v33 = vpop.f32.mrb[57].mxu1  ;;  %v15159_v63 = vld [vmem:[%s21093_s11 + $0x60] sm:$0xff] }
0x404e   : > { %v6962_v13 = vadd.f32 %v6959_v31, %v19629_v52  ;;  %v15155_v52 = vld [vmem:[%s21092_s10 + $0x68] sm:$0xff] }
0x404f   : > { %v17662_v44 = vpack.c.bf16 %v15155_v52, %v15154_v61 }
0x4050   : > { %v7054_v32 = vsel %vm888_vm0, %v6962_v13, 0.0 }
0x4051   : > { %7055 = vadd.xlane.f32.xlu1 %v7054_v32  ;;  %17663 = vmatpush3.bf16.msra.mxu0 %v17662_v44 }
0x4052   : > { %17664 = vmatprep.subr.bf16.mxu0 %v18350_v46 }
0x4055   : > { %17666 = vmatpush3.bf16.msra.mxu0 %v17665_v49 }
0x4056   : > { %16666 = vmatprep.subr.mxu0 %v18352_v47 }
0x40de   : > { %v7056_v36 = vpop.xlane.xlu1 %7055 }
0x40df   : > { %v7057_v37 = vmul.f32 0.03125, %v7056_v36 }
0x40e1   : > { %v7058_v38 = vsub.f32 %v6962_v13, %v7057_v37 }
0x40e3   : > { %v7059_v39 = vmul.f32 %v7058_v38, %v7058_v38 }
0x40e5   : > { %v7060_v40 = vsel %vm888_vm0, %v7059_v39, 0.0  ;;  %v15160_v39 = vld [vmem:[%s21093_s11 + $0x68] sm:$0xff] }
0x40e6   : > { %7061 = vadd.xlane.f32.xlu1 %v7060_v40 }
0x40f7   : > { %7402 = vrot.lane.b32.xlu1 %v19749_v41, %s21191_s26 }
0x4173   : > { %v7062_v50 = vpop.xlane.xlu1 %7061 }
0x4174   : > { %v7063_v51 = vmul.f32 0.03125, %v7062_v50 }
0x4176   : > { %v7064_v53 = vadd.f32 1e-05, %v7063_v51 }
0x4177   : > { %v7403_v1 = vpop.permute.xlu1 %7402 }
0x4178   : > { %18143 = vrsqrt.f32 %v7064_v53 }
0x4182   : > { %v18144_v28 = vpop.eup %18143 }
0x4183   : > { %v7066_v29 = vmul.f32 %v18144_v28, %v7058_v38 }
0x4185   : > { %v7071_v5 = vmul.f32 %v7070_v59, %v7066_v29 }
0x4187   : > { %v7076_v0 = vadd.f32 %v7075_v26, %v7071_v5  ;;  %v7400_v26 = vrot.slane %v19770_v58, %v18896_v10  ;;  %v15161_v58 = vld [vmem:[%s21093_s11 + $0x70] sm:$0xff] }
0x4189   : > { %16664 = vmatmul.mubr.msk.f32.vlgmr.msra.gmra.mrb[66].mxu0 %vm888_vm0, %v7076_v0 }
0x418a   : > { %16668 = vmatprep.mubr.msk.f32.mxu0 %vm18351_vm4, %v18352_v47 }
0x425c   : > { %v19779_v60 = vpop.f32.mrb[66].mxu0 }
0x425d   : > { %7404 = vrot.lane.b32.xlu0 %v19779_v60, %s21191_s26  ;;  %v16665_v16 = vpop.f32.mrb[67].mxu0  ;;  %16667 = vmatpush3.xpose.msk.msra.mxu0 %vm1025_vm1, %v19779_v60 }
0x425e   : > { %16671 = vmatprep.subr.mxu0 %v18352_v47 }
0x4260   : > { %16669 = vmatmul.mubr.msk.f32.vlgmr.msra.gmra.mrb[68].mxu0 %vm1025_vm1, %v19749_v41 }
0x4261   : > { %16673 = vmatprep.mubr.msk.f32.mxu0 %vm18351_vm4, %v18352_v47 }
0x42cf   : > { %v7405_v17 = vpop.permute.xlu0 %7404 }
0x42d0   : > { %16682 = vmatpush3.xpose.msk.msra.mxu1 %vm1025_vm1, %v7405_v17 }
0x42d1   : > { %16691 = vmatprep.subr.mxu1 %v18352_v47 }
0x42d3   : > { %16684 = vmatmul.mubr.msk.f32.vlgmr.msra.gmra.mrb[58].mxu1 %vm1025_vm1, %v7403_v1 }
0x42d4   : > { %16693 = vmatprep.mubr.msk.f32.mxu1 %vm18351_vm4, %v18352_v47  ;;  %16692 = vmatpush3.msra.mxu1 %v15160_v39 }
0x42d5   : > { %16701 = vmatprep.subr.mxu1 %v18352_v47 }
0x4333   : > { %v7233_v43 = vpop.f32.mrb[68].mxu0 }
0x4334   : > { %v16670_v4 = vpop.f32.mrb[69].mxu0  ;;  %v7237_v8 = vsel %vm1025_vm1, %v7233_v43, -inf }
0x4335   : > { %7238 = vmax.xlane.f32.xlu0 %v7237_v8 }
0x434b   : > { %7248 = vrot.lane.b32.xlu0 %v19779_v60, %s21189_s3 }
0x43a6   : > { %v7476_v9 = vpop.f32.mrb[58].mxu1 }
0x43a7   : > { %v16685_v35 = vpop.f32.mrb[59].mxu1  ;;  %v7480_v3 = vsel %vm1025_vm1, %v7476_v9, -inf }
0x43c2   : > { %v7239_v34 = vpop.xlane.xlu0 %7238 }
0x43c3   : > { %v7240_v42 = vsub.f32 %v7233_v43, %v7239_v34 }
0x43c5   : > { %v7241_v14 = vmul.f32 1.442695, %v7240_v42 }
0x43c6   : > { %v7249_v11 = vpop.permute.xlu0 %7248 }
0x43c7   : > { %18145 = vpow2.f32 %v7241_v14  ;;  %16672 = vmatpush3.msra.mxu0 %v7249_v11 }
0x43c8   : > { %16676 = vmatprep.subr.mxu0 %v18352_v47 }
0x43d1   : > { %v18146_v6 = vpop.eup %18145 }
0x43d2   : > { %v7243_v7 = vsel %vm1025_vm1, %v18146_v6, 0.0 }
0x43d3   : > { %7244 = vadd.xlane.f32.xlu1 %v7243_v7 }
0x43d7   : > { %7481 = vmax.xlane.f32.xlu1 %v7480_v3 }
0x43e8   : > { %7491 = vrot.lane.b32.xlu1 %v19779_v60, %s21190_s5 }
0x43ec   : > { %7643 = vrot.lane.b32.xlu1 %v19779_v60, %s21194_s0 }
0x43f0   : > { %7641 = vrot.lane.b32.xlu1 %v19749_v41, %s21194_s0 }
0x4460   : > { %v7245_v15 = vpop.xlane.xlu1 %7244 }
0x4461   : > { %18147 = vrcp.f32 %v7245_v15 }
0x4464   : > { %v7482_v18 = vpop.xlane.xlu1 %7481 }
0x4465   : > { %v7483_v19 = vsub.f32 %v7476_v9, %v7482_v18 }
0x4467   : > { %v7484_v20 = vmul.f32 1.442695, %v7483_v19  ;;  %v15162_v19 = vld [vmem:[%s21093_s11 + $0x78] sm:$0xff] }
0x4468   : > { %v7492_v31 = vpop.permute.xlu1 %7491 }
0x4469   : > { %18149 = vpow2.f32 %v7484_v20 }
0x446b   : > { %v18148_v21 = vpop.eup %18147 }
0x446c   : > { %v7247_v22 = vmul.f32 %v18148_v21, %v18146_v6  ;;  %v7644_v37 = vpop.permute.xlu1 %7643 }
0x446e   : > { %16674 = vmatmul.mubr.msk.f32.vlgmr.msra.gmra.mrb[70].mxu0 %vm1025_vm1, %v7247_v22 }
0x446f   : > { %16678 = vmatprep.mubr.msk.f32.mxu0 %vm18351_vm4, %v18352_v47  ;;  %16677 = vmatpush3.msra.mxu0 %v15159_v63 }
0x4470   : > { %16686 = vmatprep.subr.mxu0 %v18352_v47  ;;  %v7642_v38 = vpop.permute.xlu1 %7641 }
0x4473   : > { %v18150_v23 = vpop.eup %18149 }
0x4474   : > { %v7486_v25 = vsel %vm1025_vm1, %v18150_v23, 0.0 }
0x4475   : > { %7487 = vadd.xlane.f32.xlu0 %v7486_v25 }
0x448b   : > { %7730 = vrot.lane.b32.xlu0 %v19779_v60, %s21197_s23 }
0x448f   : > { %7882 = vrot.lane.b32.xlu0 %v19779_v60, %s21196_s22 }
0x4502   : > { %v7488_v30 = vpop.xlane.xlu0 %7487 }
0x4503   : > { %18151 = vrcp.f32 %v7488_v30 }
0x4506   : > { %v7731_v44 = vpop.permute.xlu0 %7730 }
0x450a   : > { %v7883_v1 = vpop.permute.xlu0 %7882 }
0x450d   : > { %v18152_v33 = vpop.eup %18151 }
0x450e   : > { %v7490_v36 = vmul.f32 %v18152_v33, %v18150_v23 }
0x4541   : > { %v7320_v13 = vpop.f32.mrb[70].mxu0 }
0x4542   : > { %v16675_v32 = vpop.f32.mrb[71].mxu0  ;;  %16679 = vmatmul.mubr.msk.f32.vlgmr.msra.gmra.mrb[72].mxu0 %vm1025_vm1, %v7320_v13 }
0x4543   : > { %16687 = vmatpush3.msra.mxu0 %v7492_v31  ;;  %16688 = vmatprep.mubr.msk.f32.mxu0 %vm18351_vm4, %v18352_v47 }
0x4544   : > { %16696 = vmatprep.subr.mxu0 %v18352_v47 }
0x4546   : > { %16689 = vmatmul.mubr.msk.f32.vlgmr.msra.gmra.mrb[74].mxu0 %vm1025_vm1, %v7490_v36 }
0x4547   : > { %16698 = vmatprep.mubr.msk.f32.mxu0 %vm18351_vm4, %v18352_v47 }
0x454a   : > { %16697 = vmatpush3.xpose.msk.msra.mxu0 %vm1025_vm1, %v7644_v37 }
0x454b   : > { %16706 = vmatprep.subr.mxu0 %v18352_v47 }
0x454d   : > { %16699 = vmatmul.mubr.msk.f32.vlgmr.msra.gmra.mrb[76].mxu0 %vm1025_vm1, %v7642_v38 }
0x454e   : > { %16708 = vmatprep.mubr.msk.f32.mxu0 %vm18351_vm4, %v18352_v47  ;;  %16707 = vmatpush3.msra.mxu0 %v15161_v58 }
0x454f   : > { %16716 = vmatprep.subr.mxu0 %v18352_v47 }
0x4615   : > { %v7393_v40 = vpop.f32.mrb[72].mxu0 }
0x4616   : > { %v16680_v61 = vpop.f32.mrb[73].mxu0  ;;  %v7401_v5 = vadd.f32 %v7400_v26, %v7393_v40  ;;  %v8141_v26 = vrot.slane %v19683_v24, %v18720_v56 }
0x4619   : > { %v7563_v52 = vpop.f32.mrb[74].mxu0 }
0x461a   : > { %v16690_v45 = vpop.f32.mrb[75].mxu0  ;;  %16694 = vmatmul.mubr.msk.f32.vlgmr.msra.gmra.mrb[60].mxu1 %vm1025_vm1, %v7563_v52  ;;  %v15179_v52 = vld [vmem:[%s21206_s1 + $0x60] sm:$0xff] }
0x461b   : > { %16702 = vmatpush3.msra.mxu1 %v7731_v44  ;;  %16703 = vmatprep.mubr.msk.f32.mxu1 %vm18351_vm4, %v18352_v47  ;;  %v15181_v45 = vld [vmem:[%s21206_s1 + $0x70] sm:$0xff] }
0x461c   : > { %16711 = vmatprep.subr.mxu1 %v18352_v47 }
0x4620   : > { %v7715_v48 = vpop.f32.mrb[76].mxu0 }
0x4621   : > { %v16700_v49 = vpop.f32.mrb[77].mxu0  ;;  %v7719_v50 = vsel %vm1025_vm1, %v7715_v48, -inf }
0x4622   : > { %7720 = vmax.xlane.f32.xlu1 %v7719_v50 }
0x46af   : > { %v7721_v51 = vpop.xlane.xlu1 %7720 }
0x46b0   : > { %v7722_v53 = vsub.f32 %v7715_v48, %v7721_v51  ;;  %v15182_v48 = vld [vmem:[%s21206_s1 + $0x78] sm:$0xff] }
0x46b1   : > { %v17671_v49 = vpack.c.bf16 %v15182_v48, %v15181_v45 }
0x46b2   : > { %v7723_v59 = vmul.f32 1.442695, %v7722_v53 }
0x46b4   : > { %18153 = vpow2.f32 %v7723_v59  ;;  %v8136_v59 = vrot.slane %v19683_v24, %v18712_v54 }
0x46be   : > { %v18154_v28 = vpop.eup %18153 }
0x46bf   : > { %v7725_v29 = vsel %vm1025_vm1, %v18154_v28, 0.0 }
0x46c0   : > { %7726 = vadd.xlane.f32.xlu0 %v7725_v29 }
0x46d6   : > { %7880 = vrot.lane.b32.xlu0 %v19749_v41, %s21196_s22 }
0x46ed   : > { %v7636_v0 = vpop.f32.mrb[60].mxu1 }
0x46ee   : > { %v7640_v16 = vadd.f32 %v7636_v0, %v7401_v5  ;;  %v16695_v17 = vpop.f32.mrb[61].mxu1 }
0x474d   : > { %v7727_v43 = vpop.xlane.xlu0 %7726 }
0x474e   : > { %18155 = vrcp.f32 %v7727_v43 }
0x4751   : > { %v7881_v41 = vpop.permute.xlu0 %7880 }
0x4758   : > { %v18156_v4 = vpop.eup %18155 }
0x4759   : > { %v7729_v8 = vmul.f32 %v18156_v4, %v18154_v28 }
0x475b   : > { %16704 = vmatmul.mubr.msk.f32.vlgmr.msra.gmra.mrb[62].mxu1 %vm1025_vm1, %v7729_v8 }
0x475c   : > { %16712 = vmatpush3.xpose.msk.msra.mxu1 %vm1025_vm1, %v7883_v1  ;;  %16713 = vmatprep.mubr.msk.f32.mxu1 %vm18351_vm4, %v18352_v47 }
0x475d   : > { %16721 = vmatprep.subr.mxu1 %v18352_v47 }
0x475f   : > { %16714 = vmatmul.mubr.msk.f32.vlgmr.msra.gmra.mrb[64].mxu1 %vm1025_vm1, %v7881_v41 }
0x4760   : > { %16723 = vmatprep.mubr.msk.f32.mxu1 %vm18351_vm4, %v18352_v47  ;;  %16722 = vmatpush3.msra.mxu1 %v15162_v19 }
0x4761   : > { %16737 = vmatprep.subr.mxu1 %v18352_v47 }
0x482e   : > { %v7802_v9 = vpop.f32.mrb[62].mxu1 }
0x482f   : > { %v16705_v35 = vpop.f32.mrb[63].mxu1  ;;  %16709 = vmatmul.mubr.msk.f32.vlgmr.msra.gmra.mrb[78].mxu0 %vm1025_vm1, %v7802_v9 }
0x4830   : > { %16718 = vmatprep.mubr.msk.f32.mxu0 %vm18351_vm4, %v18352_v47 }
0x4832   : > { %v7954_v34 = vpop.f32.mrb[64].mxu1 }
0x4833   : > { %v16715_v42 = vpop.f32.mrb[65].mxu1  ;;  %v7958_v14 = vsel %vm1025_vm1, %v7954_v34, -inf }
0x4834   : > { %7959 = vmax.xlane.f32.xlu1 %v7958_v14 }
0x4845   : > { %7969 = vrot.lane.b32.xlu1 %v19779_v60, %s21195_s27 }
0x48c1   : > { %v7960_v11 = vpop.xlane.xlu1 %7959 }
0x48c2   : > { %v7961_v6 = vsub.f32 %v7954_v34, %v7960_v11  ;;  %v15184_v11 = vld [vmem:[%s21209_s19 + $0x60] sm:$0xff] }
0x48c4   : > { %v7962_v7 = vmul.f32 1.442695, %v7961_v6 }
0x48c5   : > { %v7970_v3 = vpop.permute.xlu1 %7969 }
0x48c6   : > { %18157 = vpow2.f32 %v7962_v7  ;;  %16717 = vmatpush3.msra.mxu0 %v7970_v3 }
0x48c7   : > { %17667 = vmatprep.subr.bf16.mxu0 %v18350_v46 }
0x48d0   : > { %v18158_v15 = vpop.eup %18157 }
0x48d1   : > { %v7964_v18 = vsel %vm1025_vm1, %v18158_v15, 0.0 }
0x48d2   : > { %7965 = vadd.xlane.f32.xlu0 %v7964_v18 }
0x4902   : > { %v7875_v60 = vpop.f32.mrb[78].mxu0 }
0x4903   : > { %v7879_v20 = vadd.f32 %v7875_v60, %v7640_v16  ;;  %v16710_v21 = vpop.f32.mrb[79].mxu0 }
0x495f   : > { %v7966_v22 = vpop.xlane.xlu0 %7965 }
0x4960   : > { %18159 = vrcp.f32 %v7966_v22 }
0x496a   : > { %v18160_v23 = vpop.eup %18159 }
0x496b   : > { %v7968_v25 = vmul.f32 %v18160_v23, %v18158_v15 }
0x496d   : > { %16719 = vmatmul.mubr.msk.f32.vlgmr.msra.gmra.mrb[80].mxu0 %vm1025_vm1, %v7968_v25 }
0x496e   : > { %16734 = vmatprep.mubr.msk.f32.mxu0 %vm18351_vm4, %v18352_v47 }
0x4a40   : > { %v8041_v63 = vpop.f32.mrb[80].mxu0 }
0x4a41   : > { %v16720_v30 = vpop.f32.mrb[81].mxu0  ;;  %16724 = vmatmul.mubr.msk.f32.vlgmr.msra.gmra.mrb[66].mxu1 %vm1025_vm1, %v8041_v63 }
0x4a42   : > { %16739 = vmatprep.mubr.msk.f32.mxu1 %vm18351_vm4, %v18352_v47 }
0x4b14   : > { %v8114_v31 = vpop.f32.mrb[66].mxu1 }
0x4b15   : > { %v8118_v33 = vadd.f32 %v8114_v31, %v7879_v20  ;;  %v16725_v13 = vpop.f32.mrb[67].mxu1 }
0x4b17   : > { %v19876_v32 = vadd.f32 %v19220_v55, %v8118_v33  ;;  %v15180_v55 = vld [vmem:[%s21206_s1 + $0x68] sm:$0xff] }
0x4b18   : > { %v17668_v44 = vpack.c.bf16 %v15180_v55, %v15179_v52  ;;  %v15185_v52 = vld [vmem:[%s21209_s19 + $0x68] sm:$0xff] }
0x4b19   : > { %v8120_v36 = vsel %vm888_vm0, %v19876_v32, 0.0 }
0x4b1a   : > { %8121 = vadd.xlane.f32.xlu1 %v8120_v36  ;;  %17669 = vmatpush3.bf16.msra.mxu0 %v17668_v44 }
0x4b1b   : > { %17670 = vmatprep.subr.bf16.mxu0 %v18350_v46 }
0x4b1e   : > { %17672 = vmatpush3.bf16.msra.mxu0 %v17671_v49 }
0x4b1f   : > { %16747 = vmatprep.subr.mxu0 %v18352_v47 }
0x4ba7   : > { %v8122_v37 = vpop.xlane.xlu1 %8121 }
0x4ba8   : > { %v8123_v38 = vmul.f32 0.03125, %v8122_v37 }
0x4baa   : > { %v8124_v39 = vsub.f32 %v19876_v32, %v8123_v38 }
0x4bac   : > { %v8125_v40 = vmul.f32 %v8124_v39, %v8124_v39 }
0x4bae   : > { %v8126_v61 = vsel %vm888_vm0, %v8125_v40, 0.0 }
0x4baf   : > { %8127 = vadd.xlane.f32.xlu0 %v8126_v61 }
0x4c3c   : > { %v8128_v50 = vpop.xlane.xlu0 %8127 }
0x4c3d   : > { %v8129_v51 = vmul.f32 0.03125, %v8128_v50 }
0x4c3f   : > { %v8130_v53 = vadd.f32 1e-05, %v8129_v51 }
0x4c41   : > { %18161 = vrsqrt.f32 %v8130_v53 }
0x4c4b   : > { %v18162_v28 = vpop.eup %18161 }
0x4c4c   : > { %v8132_v29 = vmul.f32 %v18162_v28, %v8124_v39 }
0x4c4e   : > { %v8137_v5 = vmul.f32 %v8136_v59, %v8132_v29 }
0x4c50   : > { %v8142_v0 = vadd.f32 %v8141_v26, %v8137_v5  ;;  %v8468_v26 = vrot.slane %v19683_v24, %v18847_v27 }
0x4c52   : > { %16735 = vmatmul.mubr.msk.f32.vlgmr.msra.gmra.mrb[82].mxu0 %vm888_vm0, %v8142_v0 }
0x4c53   : > { %16749 = vmatprep.mubr.msk.f32.mxu0 %vm18351_vm4, %v18352_v47  ;;  %16748 = vmatpush3.msra.mxu0 %v15184_v11 }
0x4c54   : > { %16757 = vmatprep.subr.mxu0 %v18352_v47 }
0x4d25   : > { %v19903_v16 = vpop.f32.mrb[82].mxu0 }
0x4d26   : > { %8228 = vrot.lane.b32.xlu0 %v19903_v16, %s21189_s3  ;;  %v16736_v17 = vpop.f32.mrb[83].mxu0  ;;  %v19909_v43 = vmul.f32 0.35355338, %v19903_v16 }
0x4d98   : > { %v8229_v1 = vpop.permute.xlu0 %8228 }
0x4d99   : > { %16738 = vmatpush3.xpose.msk.msra.mxu1 %vm1025_vm1, %v8229_v1 }
0x4d9a   : > { %16742 = vmatprep.subr.mxu1 %v18352_v47 }
0x4d9c   : > { %16740 = vmatmul.mubr.msk.f32.vlgmr.msra.gmra.mrb[68].mxu1 %vm1025_vm1, %v19909_v43 }
0x4d9d   : > { %16744 = vmatprep.mubr.msk.f32.mxu1 %vm18351_vm4, %v18352_v47 }
0x4e6f   : > { %v8301_v4 = vpop.f32.mrb[68].mxu1 }
0x4e70   : > { %v16741_v8 = vpop.f32.mrb[69].mxu1  ;;  %v8305_v41 = vsel %vm1025_vm1, %v8301_v4, -inf }
0x4e71   : > { %8306 = vmax.xlane.f32.xlu1 %v8305_v41 }
0x4e82   : > { %8316 = vrot.lane.b32.xlu1 %v19903_v16, %s21207_s28 }
0x4e86   : > { %8472 = vrot.lane.b32.xlu1 %v19903_v16, %s21190_s5 }
0x4e8a   : > { %8470 = vrot.lane.b32.xlu1 %v19909_v43, %s21191_s26 }
0x4efe   : > { %v8307_v58 = vpop.xlane.xlu1 %8306 }
0x4eff   : > { %v8308_v9 = vsub.f32 %v8301_v4, %v8307_v58 }
0x4f01   : > { %v8309_v35 = vmul.f32 1.442695, %v8308_v9  ;;  %v15186_v9 = vld [vmem:[%s21209_s19 + $0x70] sm:$0xff] }
0x4f02   : > { %v8317_v34 = vpop.permute.xlu1 %8316 }
0x4f03   : > { %18163 = vpow2.f32 %v8309_v35  ;;  %16743 = vmatpush3.msra.mxu1 %v8317_v34 }
0x4f04   : > { %16752 = vmatprep.subr.mxu1 %v18352_v47 }
0x4f06   : > { %v8473_v3 = vpop.permute.xlu1 %8472 }
0x4f0a   : > { %v8471_v18 = vpop.permute.xlu1 %8470 }
0x4f0d   : > { %v18164_v42 = vpop.eup %18163 }
0x4f0e   : > { %v8311_v14 = vsel %vm1025_vm1, %v18164_v42, 0.0 }
0x4f0f   : > { %8312 = vadd.xlane.f32.xlu0 %v8311_v14 }
0x4f25   : > { %8559 = vrot.lane.b32.xlu0 %v19903_v16, %s21210_s4 }
0x4f29   : > { %8711 = vrot.lane.b32.xlu0 %v19903_v16, %s21197_s23 }
0x4f9c   : > { %v8313_v6 = vpop.xlane.xlu0 %8312 }
0x4f9d   : > { %18165 = vrcp.f32 %v8313_v6 }
0x4fa0   : > { %v8560_v60 = vpop.permute.xlu0 %8559 }
0x4fa4   : > { %v8712_v37 = vpop.permute.xlu0 %8711 }
0x4fa7   : > { %v18166_v7 = vpop.eup %18165 }
0x4fa8   : > { %v8315_v15 = vmul.f32 %v18166_v7, %v18164_v42 }
0x4faa   : > { %16745 = vmatmul.mubr.msk.f32.vlgmr.msra.gmra.mrb[70].mxu1 %vm1025_vm1, %v8315_v15 }
0x4fab   : > { %16753 = vmatpush3.xpose.msk.msra.mxu1 %vm1025_vm1, %v8473_v3  ;;  %16754 = vmatprep.mubr.msk.f32.mxu1 %vm18351_vm4, %v18352_v47 }
0x4fac   : > { %16762 = vmatprep.subr.mxu1 %v18352_v47 }
0x4fae   : > { %16755 = vmatmul.mubr.msk.f32.vlgmr.msra.gmra.mrb[72].mxu1 %vm1025_vm1, %v8471_v18 }
0x4faf   : > { %16764 = vmatprep.mubr.msk.f32.mxu1 %vm18351_vm4, %v18352_v47  ;;  %16763 = vmatpush3.msra.mxu1 %v15185_v52 }
0x4fb0   : > { %16772 = vmatprep.subr.mxu1 %v18352_v47 }
0x507d   : > { %v8388_v19 = vpop.f32.mrb[70].mxu1 }
0x507e   : > { %v16746_v20 = vpop.f32.mrb[71].mxu1  ;;  %16750 = vmatmul.mubr.msk.f32.vlgmr.msra.gmra.mrb[84].mxu0 %vm1025_vm1, %v8388_v19  ;;  %v15187_v19 = vld [vmem:[%s21209_s19 + $0x78] sm:$0xff] }
0x507f   : > { %16758 = vmatpush3.msra.mxu0 %v8560_v60  ;;  %16759 = vmatprep.mubr.msk.f32.mxu0 %vm18351_vm4, %v18352_v47 }
0x5080   : > { %16767 = vmatprep.subr.mxu0 %v18352_v47 }
0x5081   : > { %v8544_v21 = vpop.f32.mrb[72].mxu1 }
0x5082   : > { %v16756_v22 = vpop.f32.mrb[73].mxu1  ;;  %v8548_v23 = vsel %vm1025_vm1, %v8544_v21, -inf }
0x5083   : > { %8549 = vmax.xlane.f32.xlu1 %v8548_v23 }
0x5110   : > { %v8550_v25 = vpop.xlane.xlu1 %8549 }
0x5111   : > { %v8551_v63 = vsub.f32 %v8544_v21, %v8550_v25 }
0x5113   : > { %v8552_v30 = vmul.f32 1.442695, %v8551_v63 }
0x5115   : > { %18167 = vpow2.f32 %v8552_v30 }
0x511f   : > { %v18168_v31 = vpop.eup %18167 }
0x5120   : > { %v8554_v33 = vsel %vm1025_vm1, %v18168_v31, 0.0 }
0x5121   : > { %8555 = vadd.xlane.f32.xlu0 %v8554_v33 }
0x5137   : > { %8709 = vrot.lane.b32.xlu0 %v19909_v43, %s21194_s0 }
0x5151   : > { %v8461_v13 = vpop.f32.mrb[84].mxu0 }
0x5152   : > { %v16751_v36 = vpop.f32.mrb[85].mxu0  ;;  %v8469_v5 = vadd.f32 %v8468_v26, %v8461_v13  ;;  %v15215_v26 = vld [vmem:[%s21188_s21 + $0x1a0] sm:$0xff] }
0x51ae   : > { %v8556_v38 = vpop.xlane.xlu0 %8555 }
0x51af   : > { %18169 = vrcp.f32 %v8556_v38 }
0x51b2   : > { %v8710_v61 = vpop.permute.xlu0 %8709 }
0x51b9   : > { %v18170_v39 = vpop.eup %18169 }
0x51ba   : > { %v8558_v40 = vmul.f32 %v18170_v39, %v18168_v31 }
0x51bc   : > { %16760 = vmatmul.mubr.msk.f32.vlgmr.msra.gmra.mrb[86].mxu0 %vm1025_vm1, %v8558_v40 }
0x51bd   : > { %16768 = vmatpush3.xpose.msk.msra.mxu0 %vm1025_vm1, %v8712_v37  ;;  %16769 = vmatprep.mubr.msk.f32.mxu0 %vm18351_vm4, %v18352_v47 }
0x51be   : > { %16777 = vmatprep.subr.mxu0 %v18352_v47 }
0x51c0   : > { %16770 = vmatmul.mubr.msk.f32.vlgmr.msra.gmra.mrb[88].mxu0 %vm1025_vm1, %v8710_v61 }
0x51c1   : > { %16779 = vmatprep.mubr.msk.f32.mxu0 %vm18351_vm4, %v18352_v47  ;;  %16778 = vmatpush3.msra.mxu0 %v15186_v9 }
0x51c2   : > { %16787 = vmatprep.subr.mxu0 %v18352_v47 }
0x528f   : > { %v8631_v55 = vpop.f32.mrb[86].mxu0 }
0x5290   : > { %v16761_v44 = vpop.f32.mrb[87].mxu0  ;;  %16765 = vmatmul.mubr.msk.f32.vlgmr.msra.gmra.mrb[74].mxu1 %vm1025_vm1, %v8631_v55  ;;  %v15204_v55 = vld [vmem:[%s21187_s24 + $0x60] sm:$0xff] }
0x5291   : > { %16774 = vmatprep.mubr.msk.f32.mxu1 %vm18351_vm4, %v18352_v47 }
0x5293   : > { %v8783_v45 = vpop.f32.mrb[88].mxu0 }
0x5294   : > { %v16771_v48 = vpop.f32.mrb[89].mxu0  ;;  %v8787_v49 = vsel %vm1025_vm1, %v8783_v45, -inf }
0x5295   : > { %8788 = vmax.xlane.f32.xlu1 %v8787_v49  ;;  %v15207_v48 = vld [vmem:[%s21187_s24 + $0x78] sm:$0xff] }
0x52a6   : > { %8798 = vrot.lane.b32.xlu1 %v19903_v16, %s21211_s20 }
0x52aa   : > { %8950 = vrot.lane.b32.xlu1 %v19903_v16, %s21195_s27 }
0x52ae   : > { %8948 = vrot.lane.b32.xlu1 %v19909_v43, %s21196_s22 }
0x5322   : > { %v8789_v50 = vpop.xlane.xlu1 %8788 }
0x5323   : > { %v8790_v51 = vsub.f32 %v8783_v45, %v8789_v50  ;;  %v15206_v45 = vld [vmem:[%s21187_s24 + $0x70] sm:$0xff]  ;;  %v15211_v50 = vld [vmem:[%s21188_s21 + $0x180] sm:$0xff] }
0x5324   : > { %v17677_v49 = vpack.c.bf16 %v15207_v48, %v15206_v45  ;;  %v15234_v45 = vld [vmem:[%s21094_s12 + $0x60] sm:$0xff]  ;;  %v15235_v48 = vld [vmem:[%s21094_s12 + $0x68] sm:$0xff] }
0x5325   : > { %v8791_v53 = vmul.f32 1.442695, %v8790_v51  ;;  %v15212_v51 = vld [vmem:[%s21188_s21 + $0x188] sm:$0xff] }
0x5326   : > { %v8799_v59 = vpop.permute.xlu1 %8798 }
0x5327   : > { %18171 = vpow2.f32 %v8791_v53  ;;  %16773 = vmatpush3.msra.mxu1 %v8799_v59  ;;  %v15213_v53 = vld [vmem:[%s21188_s21 + $0x190] sm:$0xff]  ;;  %v17680_v59 = vpack.c.bf16 %v15212_v51, %v15211_v50 }
0x5328   : > { %16782 = vmatprep.subr.mxu1 %v18352_v47 }
0x532a   : > { %v8951_v8 = vpop.permute.xlu1 %8950 }
0x532e   : > { %v8949_v58 = vpop.permute.xlu1 %8948 }
0x5331   : > { %v18172_v28 = vpop.eup %18171 }
0x5332   : > { %v8793_v29 = vsel %vm1025_vm1, %v18172_v28, 0.0 }
0x5333   : > { %8794 = vadd.xlane.f32.xlu0 %v8793_v29 }
0x5363   : > { %v8704_v0 = vpop.f32.mrb[74].mxu1 }
0x5364   : > { %v8708_v17 = vadd.f32 %v8704_v0, %v8469_v5  ;;  %v16766_v1 = vpop.f32.mrb[75].mxu1  ;;  %v15216_v5 = vld [vmem:[%s21188_s21 + $0x1a8] sm:$0xff] }
0x5365   : > { %v17686_v0 = vpack.c.bf16 %v15216_v5, %v15215_v26 }
0x53c0   : > { %v8795_v43 = vpop.xlane.xlu0 %8794 }
0x53c1   : > { %18173 = vrcp.f32 %v8795_v43 }
0x53cb   : > { %v18174_v4 = vpop.eup %18173 }
0x53cc   : > { %v8797_v41 = vmul.f32 %v18174_v4, %v18172_v28  ;;  %v15214_v28 = vld [vmem:[%s21188_s21 + $0x198] sm:$0xff]  ;;  %v9204_v4 = vrot.slane %v19683_v24, %v18896_v10 }
0x53cd   : > { %v17683_v29 = vpack.c.bf16 %v15214_v28, %v15213_v53  ;;  %v17710_v53 = vpack.c.bf16 %v15235_v48, %v15234_v45  ;;  %v15236_v28 = vld [vmem:[%s21094_s12 + $0x70] sm:$0xff]  ;;  %v15259_v48 = vld [vmem:[%s21216_s2 + $0xe0] sm:$0xff] }
0x53ce   : > { %16775 = vmatmul.mubr.msk.f32.vlgmr.msra.gmra.mrb[76].mxu1 %vm1025_vm1, %v8797_v41 }
0x53cf   : > { %16783 = vmatpush3.xpose.msk.msra.mxu1 %vm1025_vm1, %v8951_v8  ;;  %16784 = vmatprep.mubr.msk.f32.mxu1 %vm18351_vm4, %v18352_v47 }
0x53d0   : > { %16792 = vmatprep.subr.mxu1 %v18352_v47 }
0x53d2   : > { %16785 = vmatmul.mubr.msk.f32.vlgmr.msra.gmra.mrb[78].mxu1 %vm1025_vm1, %v8949_v58  ;;  %v9209_v58 = vrot.slane %v19683_v24, %v18899_v12  ;;  %v15219_v24 = vld [vmem:[%s21188_s21 + $0x1c0] sm:$0xff] }
0x53d3   : > { %16794 = vmatprep.mubr.msk.f32.mxu1 %vm18351_vm4, %v18352_v47  ;;  %16793 = vmatpush3.msra.mxu1 %v15187_v19  ;;  %v15224_v19 = vld [vmem:[%s21188_s21 + $0x1e8] sm:$0xff] }
0x53d4   : > { %17679 = vmatprep.subr.bf16.mxu1 %v18350_v46 }
0x54a1   : > { %v8870_v35 = vpop.f32.mrb[76].mxu1 }
0x54a2   : > { %v16776_v34 = vpop.f32.mrb[77].mxu1  ;;  %16780 = vmatmul.mubr.msk.f32.vlgmr.msra.gmra.mrb[90].mxu0 %vm1025_vm1, %v8870_v35 }
0x54a3   : > { %16789 = vmatprep.mubr.msk.f32.mxu0 %vm18351_vm4, %v18352_v47  ;;  %v15217_v34 = vld [vmem:[%s21188_s21 + $0x1b0] sm:$0xff] }
0x54a5   : > { %v9022_v42 = vpop.f32.mrb[78].mxu1 }
0x54a6   : > { %v16786_v14 = vpop.f32.mrb[79].mxu1  ;;  %v9026_v11 = vsel %vm1025_vm1, %v9022_v42, -inf }
0x54a7   : > { %9027 = vmax.xlane.f32.xlu1 %v9026_v11  ;;  %v15220_v11 = vld [vmem:[%s21188_s21 + $0x1c8] sm:$0xff] }
0x5534   : > { %v9028_v6 = vpop.xlane.xlu1 %9027 }
0x5535   : > { %v9029_v7 = vsub.f32 %v9022_v42, %v9028_v6  ;;  %v15218_v42 = vld [vmem:[%s21188_s21 + $0x1b8] sm:$0xff]  ;;  %v17692_v6 = vpack.c.bf16 %v15220_v11, %v15219_v24 }
0x5536   : > { %v17689_v14 = vpack.c.bf16 %v15218_v42, %v15217_v34  ;;  %v15241_v34 = vld [vmem:[%s21214_s15 + $0x28] sm:$0xff]  ;;  %v15243_v24 = vld [vmem:[%s21214_s15 + $0x38] sm:$0xff] }
0x5537   : > { %v9030_v3 = vmul.f32 1.442695, %v9029_v7  ;;  %v15221_v7 = vld [vmem:[%s21188_s21 + $0x1d0] sm:$0xff] }
0x5539   : > { %18175 = vpow2.f32 %v9030_v3  ;;  %v15222_v3 = vld [vmem:[%s21188_s21 + $0x1d8] sm:$0xff] }
0x5543   : > { %v18176_v15 = vpop.eup %18175 }
0x5544   : > { %v9032_v18 = vsel %vm1025_vm1, %v18176_v15, 0.0 }
0x5545   : > { %9033 = vadd.xlane.f32.xlu0 %v9032_v18  ;;  %v15223_v18 = vld [vmem:[%s21188_s21 + $0x1e0] sm:$0xff] }
0x555b   : > { %9037 = vrot.lane.b32.xlu0 %v19903_v16, %s21212_s29 }
0x5575   : > { %v8943_v60 = vpop.f32.mrb[90].mxu0 }
0x5576   : > { %v8947_v20 = vadd.f32 %v8943_v60, %v8708_v17  ;;  %v16781_v21 = vpop.f32.mrb[91].mxu0  ;;  %v17698_v60 = vpack.c.bf16 %v15224_v19, %v15223_v18 }
0x5577   : > { %v15226_v21 = vld [vmem:[%s21188_s21 + $0x1f8] sm:$0xff] }
0x55d2   : > { %v9034_v22 = vpop.xlane.xlu0 %9033 }
0x55d3   : > { %18177 = vrcp.f32 %v9034_v22 }
0x55d6   : > { %v9038_v23 = vpop.permute.xlu0 %9037 }
0x55d7   : > { %16788 = vmatpush3.msra.mxu0 %v9038_v23  ;;  %v15228_v23 = vld [vmem:[%s21094_s12 + $0x40] sm:$0xff] }
0x55d8   : > { %17673 = vmatprep.subr.bf16.mxu0 %v18350_v46 }
0x55dd   : > { %v18178_v25 = vpop.eup %18177 }
0x55de   : > { %v9036_v63 = vmul.f32 %v18178_v25, %v18176_v15  ;;  %v17695_v15 = vpack.c.bf16 %v15222_v3, %v15221_v7  ;;  %v15229_v25 = vld [vmem:[%s21094_s12 + $0x48] sm:$0xff] }
0x55e0   : > { %16790 = vmatmul.mubr.msk.f32.vlgmr.msra.gmra.mrb[92].mxu0 %vm1025_vm1, %v9036_v63  ;;  %v17704_v63 = vpack.c.bf16 %v15229_v25, %v15228_v23 }
0x55e1   : > { %16805 = vmatprep.mubr.msk.f32.mxu0 %vm18351_vm4, %v18352_v47 }
0x56b3   : > { %v9109_v16 = vpop.f32.mrb[92].mxu0 }
0x56b4   : > { %v16791_v30 = vpop.f32.mrb[93].mxu0  ;;  %16795 = vmatmul.mubr.msk.f32.vlgmr.msra.gmra.mrb[80].mxu1 %vm1025_vm1, %v9109_v16  ;;  %v15209_v16 = vld [vmem:[%s21089_s7 + $0x3] ss:$0 sm:$0xff] }
0x56b5   : > { %16840 = vmatprep.mubr.msk.f32.mxu1 %vm18351_vm4, %v18352_v47  ;;  %17681 = vmatpush3.bf16.msra.mxu1 %v17680_v59 }
0x56b6   : > { %17682 = vmatprep.subr.bf16.mxu1 %v18350_v46 }
0x56b9   : > { %17684 = vmatpush3.bf16.msra.mxu1 %v17683_v29  ;;  %v15237_v29 = vld [vmem:[%s21094_s12 + $0x78] sm:$0xff] }
0x56ba   : > { %17685 = vmatprep.subr.bf16.mxu1 %v18350_v46  ;;  %v17713_v26 = vpack.c.bf16 %v15237_v29, %v15236_v28  ;;  %v15245_v28 = vld [vmem:[%s21217_s30 + $0x1] ss:$0 sm:$0xff] }
0x56bd   : > { %17687 = vmatpush3.bf16.msra.mxu1 %v17686_v0 }
0x56be   : > { %17688 = vmatprep.subr.bf16.mxu1 %v18350_v46 }
0x56c1   : > { %17690 = vmatpush3.bf16.msra.mxu1 %v17689_v14  ;;  %v15242_v14 = vld [vmem:[%s21214_s15 + $0x30] sm:$0xff] }
0x56c2   : > { %17691 = vmatprep.subr.bf16.mxu1 %v18350_v46  ;;  %v17719_v11 = vpack.c.bf16 %v15243_v24, %v15242_v14 }
0x56c5   : > { %17693 = vmatpush3.bf16.msra.mxu1 %v17692_v6 }
0x56c6   : > { %17694 = vmatprep.subr.bf16.mxu1 %v18350_v46 }
0x56c9   : > { %17696 = vmatpush3.bf16.msra.mxu1 %v17695_v15  ;;  %v15239_v15 = vld [vmem:[%s21215_s13 + $0x2] sm:$0x3]  ;;  %s21220_s13 = sld [smem:[#allocation7_spill]] }
0x56ca   : > { %17697 = vmatprep.subr.bf16.mxu1 %v18350_v46  ;;  %v9578_v18 = vrot.slane %v15239_v15, %v18712_v54 }
0x56cd   : > { %17699 = vmatpush3.bf16.msra.mxu1 %v17698_v60 }
0x56ce   : > { %17700 = vmatprep.subr.bf16.mxu1 %v18350_v46 }
0x5787   : > { %v9182_v31 = vpop.f32.mrb[80].mxu1 }
0x5788   : > { %v9186_v33 = vadd.f32 %v9182_v31, %v8947_v20  ;;  %v16796_v13 = vpop.f32.mrb[81].mxu1  ;;  %v15225_v20 = vld [vmem:[%s21188_s21 + $0x1f0] sm:$0xff] }
0x5789   : > { %v17701_v22 = vpack.c.bf16 %v15226_v21, %v15225_v20  ;;  %v9583_v20 = vrot.slane %v15239_v15, %v18720_v56  ;;  %v15247_v21 = vld [vmem:[%s21216_s2 + $0x80] sm:$0xff] }
0x578a   : > { %v20006_v36 = vadd.f32 %v9186_v33, %v19876_v32  ;;  %v15205_v32 = vld [vmem:[%s21187_s24 + $0x68] sm:$0xff] }
0x578b   : > { %v17674_v44 = vpack.c.bf16 %v15205_v32, %v15204_v55  ;;  %17702 = vmatpush3.bf16.msra.mxu1 %v17701_v22  ;;  %v18273_v32 = vld [vmem:[%s21090_s8 + $0x30] sm:$0xff]  ;;  %v15248_v22 = vld [vmem:[%s21216_s2 + $0x88] sm:$0xff] }
0x578c   : > { %v9188_v37 = vsel %vm888_vm0, %v20006_v36, 0.0  ;;  %16911 = vmatprep.subr.mxu1 %v18352_v47  ;;  %v17722_v25 = vpack.c.bf16 %v15248_v22, %v15247_v21 }
0x578d   : > { %9189 = vadd.xlane.f32.xlu0 %v9188_v37  ;;  %17675 = vmatpush3.bf16.msra.mxu0 %v17674_v44  ;;  %v9322_v44 = vrot.slane %v18273_v32, %v18941_v57  ;;  %v15257_v32 = vld [vmem:[%s21216_s2 + $0xd0] sm:$0xff] }
0x578e   : > { %17676 = vmatprep.subr.bf16.mxu0 %v18350_v46 }
0x5791   : > { %17678 = vmatpush3.bf16.msra.mxu0 %v17677_v49 }
0x5792   : > { %17703 = vmatprep.subr.bf16.mxu0 %v18350_v46 }
0x581a   : > { %v9190_v38 = vpop.xlane.xlu0 %9189 }
0x581b   : > { %v9191_v39 = vmul.f32 0.03125, %v9190_v38 }
0x581d   : > { %v9192_v40 = vsub.f32 %v20006_v36, %v9191_v39 }
0x581f   : > { %v9193_v61 = vmul.f32 %v9192_v40, %v9192_v40 }
0x5821   : > { %v9194_v52 = vsel %vm888_vm0, %v9193_v61, 0.0  ;;  %v15230_v61 = vld [vmem:[%s21094_s12 + $0x50] sm:$0xff] }
0x5822   : > { %9195 = vadd.xlane.f32.xlu1 %v9194_v52  ;;  %v15231_v52 = vld [vmem:[%s21094_s12 + $0x58] sm:$0xff] }
0x5823   : > { %v17707_v55 = vpack.c.bf16 %v15231_v52, %v15230_v61  ;;  %v15255_v61 = vld [vmem:[%s21216_s2 + $0xc0] sm:$0xff]  ;;  %v15256_v52 = vld [vmem:[%s21216_s2 + $0xc8] sm:$0xff] }
0x58af   : > { %v9196_v17 = vpop.xlane.xlu1 %9195 }
0x58b0   : > { %v9197_v1 = vmul.f32 0.03125, %v9196_v17 }
0x58b2   : > { %v9198_v43 = vadd.f32 1e-05, %v9197_v1 }
0x58b4   : > { %18179 = vrsqrt.f32 %v9198_v43 }
0x58be   : > { %v18180_v8 = vpop.eup %18179 }
0x58bf   : > { %v9200_v41 = vmul.f32 %v18180_v8, %v9192_v40 }
0x58c1   : > { %v9205_v9 = vmul.f32 %v9204_v4, %v9200_v41 }
0x58c3   : > { %v9210_v35 = vadd.f32 %v9209_v58, %v9205_v9 }
0x58c5   : > { %16806 = vmatmul.mubr.msk.f32.vlgmr.msra.gmra.mrb[94].mxu0 %vm888_vm0, %v9210_v35  ;;  %v15240_v35 = vld [vmem:[%s21214_s15 + $0x20] sm:$0xff]  ;;  %s21218_s15 = sld [smem:[#allocation27_spill]] }
0x58c6   : > { %16851 = vmatprep.mubr.msk.f32.mxu0 %vm18351_vm4, %v18352_v47  ;;  %17705 = vmatpush3.bf16.msra.mxu0 %v17704_v63  ;;  %v17716_v42 = vpack.c.bf16 %v15241_v34, %v15240_v35 }
0x58c7   : > { %17706 = vmatprep.subr.bf16.mxu0 %v18350_v46 }
0x58ca   : > { %17708 = vmatpush3.bf16.msra.mxu0 %v17707_v55  ;;  %v17734_v55 = vpack.c.bf16 %v15256_v52, %v15255_v61  ;;  %v20262_v61 = vld [vmem:[%s21090_s8 + $0x40] sm:$0xff] }
0x58cb   : > { %17709 = vmatprep.subr.bf16.mxu0 %v18350_v46  ;;  %v9909_v52 = vrot.slane %v20262_v61, %v19359_v62 }
0x5998   : > { %v9293_v30 = vpop.f32.mrb[94].mxu0 }
0x5999   : > { %v9294_v31 = vadd.f32 %v15209_v16, %v9293_v30  ;;  %v16807_v33 = vpop.f32.mrb[95].mxu0  ;;  %v15249_v16 = vld [vmem:[%s21216_s2 + $0x90] sm:$0xff]  ;;  %v15250_v30 = vld [vmem:[%s21216_s2 + $0x98] sm:$0xff] }
0x599a   : > { %v15251_v33 = vld [vmem:[%s21216_s2 + $0xa0] sm:$0xff] }
0x599b   : > { %v9298_v13 = vmul.f32 0.70710677, %v9294_v31  ;;  %v9297_v38 = vmul.f32 0.5, %v9294_v31  ;;  %v17725_v31 = vpack.c.bf16 %v15250_v30, %v15249_v16  ;;  %v15269_v16 = vld [vmem:[%s21091_s9 + $0x80] sm:$0xff]  ;;  %v15270_v30 = vld [vmem:[%s21091_s9 + $0x88] sm:$0xff] }
0x599d   : > { %18181 = verf.f32 %v9298_v13  ;;  %v15252_v13 = vld [vmem:[%s21216_s2 + $0xa8] sm:$0xff] }
0x59a7   : > { %v18182_v37 = vpop.eup %18181 }
0x59a8   : > { %v9300_v39 = vadd.f32 1.0, %v18182_v37  ;;  %v17728_v37 = vpack.c.bf16 %v15252_v13, %v15251_v33  ;;  %v15271_v33 = vld [vmem:[%s21091_s9 + $0x90] sm:$0xff]  ;;  %v15272_v13 = vld [vmem:[%s21091_s9 + $0x98] sm:$0xff] }
0x59aa   : > { %v9301_v40 = vmul.f32 %v9300_v39, %v9297_v38  ;;  %v15253_v38 = vld [vmem:[%s21216_s2 + $0xb0] sm:$0xff]  ;;  %v15254_v39 = vld [vmem:[%s21216_s2 + $0xb8] sm:$0xff] }
0x59ac   : > { %16841 = vmatmul.mubr.f32.vlgmr.msra.gmra.mrb[82].mxu1 %v9301_v40  ;;  %v17731_v40 = vpack.c.bf16 %v15254_v39, %v15253_v38 }
0x59ad   : > { %16913 = vmatprep.mubr.msk.f32.mxu1 %vm18351_vm4, %v18352_v47 }
0x5a7f   : > { %v9389_v49 = vpop.f32.mrb[82].mxu1 }
0x5a80   : > { %v9390_v50 = vadd.f32 %v9389_v49, %v9322_v44  ;;  %v16842_v51 = vpop.f32.mrb[83].mxu1  ;;  %v15258_v44 = vld [vmem:[%s21216_s2 + $0xd8] sm:$0xff]  ;;  %v15260_v49 = vld [vmem:[%s21216_s2 + $0xe8] sm:$0xff] }
0x5a81   : > { %v17737_v45 = vpack.c.bf16 %v15258_v44, %v15257_v32  ;;  %v15261_v51 = vld [vmem:[%s21216_s2 + $0xf0] sm:$0xff]  ;;  %v9914_v44 = vrot.slane %v20262_v61, %v19364_v2 }
0x5a82   : > { %v9393_v59 = vadd.f32 %v9390_v50, %v20006_v36  ;;  %v15233_v36 = vld [vmem:[%s21213_s6 + $0x1] ss:$0 sm:$0xff]  ;;  %v17740_v50 = vpack.c.bf16 %v15260_v49, %v15259_v48  ;;  %v15275_v48 = vld [vmem:[%s21092_s10 + $0x88] sm:$0xff]  ;;  %s21225_s6 = sld [smem:[#allocation31_spill]] }
0x5a83   : > { %v20277_v49 = vld [vmem:[%s21090_s8 + $0x48] sm:$0x7] }
0x5a84   : > { %16852 = vmatmul.mubr.msk.f32.vlgmr.msra.gmra.mrb[96].mxu0 %vm888_vm0, %v9393_v59  ;;  %v9486_v5 = vrot.slane %v9393_v59, 4 }
0x5a85   : > { %17711 = vmatpush3.bf16.msra.mxu0 %v17710_v53  ;;  %16862 = vmatprep.mubr.msk.f32.mxu0 %vm18351_vm4, %v18352_v47  ;;  %v15262_v53 = vld [vmem:[%s21216_s2 + $0xf8] sm:$0xff] }
0x5a86   : > { %17712 = vmatprep.subr.bf16.mxu0 %v18350_v46  ;;  %v17743_v59 = vpack.c.bf16 %v15262_v53, %v15261_v51 }
0x5a89   : > { %17714 = vmatpush3.bf16.msra.mxu0 %v17713_v26 }
0x5a8a   : > { %17715 = vmatprep.subr.bf16.mxu0 %v18350_v46 }
0x5a8c   : > { %16863 = vmatmul.mubr.msk.f32.vlgmr.msra.gmra.mrb[96].mxu0 %vm888_vm0, %v9486_v5 }
0x5a8d   : > { %16873 = vmatprep.mubr.msk.f32.mxu0 %vm18351_vm4, %v18352_v47  ;;  %17717 = vmatpush3.bf16.msra.mxu0 %v17716_v42 }
0x5a8e   : > { %17718 = vmatprep.subr.bf16.mxu0 %v18350_v46 }
0x5a91   : > { %17720 = vmatpush3.bf16.msra.mxu0 %v17719_v11 }
0x5a92   : > { %17721 = vmatprep.subr.bf16.mxu0 %v18350_v46 }
0x5b5f   : > { %v9555_v0 = vpop.f32.mrb[96].mxu0 }
0x5b60   : > { %v20136_v17 = vadd.f32 %v15233_v36, %v9555_v0  ;;  %v16864_v1 = vpop.f32.mrb[97].mxu0 }
0x5b62   : > { %16912 = vmatpush3.msk.msra.mxu1 %vm4333_vm7, %v20136_v17  ;;  %v9562_v43 = vsel %vm3908_vm5, %v20136_v17, 0.0 }
0x5b63   : > { %9563 = vadd.xlane.f32.xlu1 %v9562_v43  ;;  %17745 = vmatprep.subr.bf16.mxu1 %v18350_v46 }
0x5bf0   : > { %v9564_v4 = vpop.xlane.xlu1 %9563 }
0x5bf1   : > { %v9565_v8 = vmul.f32 0.03125, %v9564_v4 }
0x5bf3   : > { %v9566_v41 = vsub.f32 %v20136_v17, %v9565_v8  ;;  %v15264_v8 = vld [vmem:[%s21218_s15 + $0x1] ss:$0 sm:$0xff]  ;;  %s18353_s15 = smov [#allocation3]  }
0x5bf4   : > { %s18279_s25 = sshll.u32 %s18353_s15, 4  ;;  %s18280_s25 = int_to_ptr.vmem [resolvable:$false] %s18279_s25 }
0x5bf5   : > { %v9567_v58 = vmul.f32 %v9566_v41, %v9566_v41 }
0x5bf7   : > { %v9568_v9 = vsel %vm3908_vm5, %v9567_v58, 0.0 }
0x5bf8   : > { %9569 = vadd.xlane.f32.xlu1 %v9568_v9 }
0x5c85   : > { %v9570_v6 = vpop.xlane.xlu1 %9569 }
0x5c86   : > { %v9571_v7 = vmul.f32 0.03125, %v9570_v6 }
0x5c88   : > { %v9572_v3 = vadd.f32 1e-05, %v9571_v7 }
0x5c8a   : > { %18183 = vrsqrt.f32 %v9572_v3 }
0x5c94   : > { %v18184_v19 = vpop.eup %18183 }
0x5c95   : > { %v20163_v60 = vmul.f32 %v18184_v19, %v9566_v41 }
0x5c97   : > { %v9579_v23 = vmul.f32 %v9578_v18, %v20163_v60 }
0x5c99   : > { %v9584_v63 = vadd.f32 %v9583_v20, %v9579_v23 }
0x5c9b   : > { %16874 = vmatmul.mubr.msk.f32.vlgmr.msra.gmra.mrb[98].mxu0 %vm888_vm0, %v9584_v63 }
0x5c9c   : > { %17723 = vmatpush3.bf16.msra.mxu0 %v17722_v25  ;;  %16908 = vmatprep.mubr.msk.f32.mxu0 %vm18351_vm4, %v18352_v47 }
0x5c9d   : > { %17724 = vmatprep.subr.bf16.mxu0 %v18350_v46 }
0x5ca0   : > { %17726 = vmatpush3.bf16.msra.mxu0 %v17725_v31  ;;  %v17746_v31 = vpack.c.bf16 %v15270_v30, %v15269_v16 }
0x5ca1   : > { %17727 = vmatprep.subr.bf16.mxu0 %v18350_v46 }
0x5ca4   : > { %17729 = vmatpush3.bf16.msra.mxu0 %v17728_v37  ;;  %v17749_v37 = vpack.c.bf16 %v15272_v13, %v15271_v33  ;;  %v15279_v33 = vld [vmem:[%s21093_s11 + $0x80] sm:$0xff] }
0x5ca5   : > { %17730 = vmatprep.subr.bf16.mxu0 %v18350_v46 }
0x5ca8   : > { %17732 = vmatpush3.bf16.msra.mxu0 %v17731_v40 }
0x5ca9   : > { %17733 = vmatprep.subr.bf16.mxu0 %v18350_v46 }
0x5cac   : > { %17735 = vmatpush3.bf16.msra.mxu0 %v17734_v55 }
0x5cad   : > { %17736 = vmatprep.subr.bf16.mxu0 %v18350_v46 }
0x5cb0   : > { %17738 = vmatpush3.bf16.msra.mxu0 %v17737_v45  ;;  %v15274_v45 = vld [vmem:[%s21092_s10 + $0x80] sm:$0xff] }
0x5cb1   : > { %17739 = vmatprep.subr.bf16.mxu0 %v18350_v46  ;;  %v17752_v51 = vpack.c.bf16 %v15275_v48, %v15274_v45 }
0x5cb4   : > { %17741 = vmatpush3.bf16.msra.mxu0 %v17740_v50 }
0x5cb5   : > { %17742 = vmatprep.subr.bf16.mxu0 %v18350_v46 }
0x5cb8   : > { %17744 = vmatpush3.bf16.msra.mxu0 %v17743_v59  ;;  %v15276_v59 = vld [vmem:[%s21092_s10 + $0x90] sm:$0xff] }
0x5cb9   : > { %16953 = vmatprep.subr.mxu0 %v18352_v47 }
0x5d6e   : > { %v9667_v29 = vpop.f32.mrb[98].mxu0 }
0x5d6f   : > { %v9668_v26 = vadd.f32 %v15245_v28, %v9667_v29  ;;  %v16875_v5 = vpop.f32.mrb[99].mxu0  ;;  %v15277_v28 = vld [vmem:[%s21092_s10 + $0x98] sm:$0xff]  ;;  %v9997_v29 = vrot.slane %v20277_v49, %v18712_v54 }
0x5d71   : > { %v9672_v36 = vmul.f32 0.70710677, %v9668_v26  ;;  %v9671_v1 = vmul.f32 0.5, %v9668_v26  ;;  %v17755_v26 = vpack.c.bf16 %v15277_v28, %v15276_v59  ;;  %v9998_v5 = vmul.f32 %v9997_v29, %v20163_v60 }
0x5d73   : > { %18185 = verf.f32 %v9672_v36  ;;  %v10002_v36 = vrot.slane %v20277_v49, %v18720_v56 }
0x5d7d   : > { %v18186_v0 = vpop.eup %18185 }
0x5d7e   : > { %v9674_v43 = vadd.f32 1.0, %v18186_v0  ;;  %v10003_v0 = vadd.f32 %v10002_v36, %v9998_v5 }
0x5d80   : > { %v9675_v4 = vmul.f32 %v9674_v43, %v9671_v1 }
0x5d82   : > { %16909 = vmatmul.mubr.f32.vlgmr.msra.gmra.mrb[100].mxu0 %v9675_v4 }
0x5d83   : > { %16955 = vmatprep.mubr.msk.f32.mxu0 %vm18351_vm4, %v18352_v47 }
0x5e55   : > { %v9767_v41 = vpop.f32.mrb[100].mxu0 }
0x5e56   : > { %v9768_v58 = vadd.f32 %v15264_v8, %v9767_v41  ;;  %v16910_v9 = vpop.f32.mrb[101].mxu0 }
0x5e58   : > { %9771 = vxpose.xlu1.b32.start.end [1/1] (short) (narrow) %v9768_v58, 8 }
0x5ed8   : > { %v9787_v35 = vpop.trf.xlu1 }
0x5ed9   : > { %v9803_v34 = vsel %vm4317_vm8, %v9787_v35, -inf }
0x5eda   : > { %9804 = vmax.xlane.f32.xlu0 %v9803_v34 }
0x5f67   : > { %v9805_v42 = vpop.xlane.xlu0 %9804 }
0x5f68   : > { %v9806_v14 = vsub.f32 %v9787_v35, %v9805_v42 }
0x5f6a   : > { %v9807_v24 = vmul.f32 1.442695, %v9806_v14 }
0x5f6c   : > { %18187 = vpow2.f32 %v9807_v24 }
0x5f76   : > { %v18188_v11 = vpop.eup %18187 }
0x5f77   : > { %v9809_v6 = vsel %vm4317_vm8, %v18188_v11, 0.0 }
0x5f78   : > { %9810 = vadd.xlane.f32.xlu0 %v9809_v6 }
0x6005   : > { %v9811_v7 = vpop.xlane.xlu0 %9810 }
0x6006   : > { %18189 = vrcp.f32 %v9811_v7 }
0x6010   : > { %v18190_v3 = vpop.eup %18189 }
0x6011   : > { %v9813_v15 = vmul.f32 %v18190_v3, %v18188_v11 }
0x6013   : > { %16914 = vmatmul.mubr.msk.f32.vlgmr.msra.gmra.mrb[84].mxu1 %vm4329_vm9, %v9813_v15 }
0x6014   : > { %16924 = vmatprep.mubr.msk.f32.mxu1 %vm18351_vm4, %v18352_v47  ;;  %17747 = vmatpush3.bf16.msra.mxu1 %v17746_v31 }
0x6015   : > { %17748 = vmatprep.subr.bf16.mxu1 %v18350_v46 }
0x6018   : > { %17750 = vmatpush3.bf16.msra.mxu1 %v17749_v37 }
0x6019   : > { %17751 = vmatprep.subr.bf16.mxu1 %v18350_v46 }
0x60e6   : > { %v20239_v18 = vpop.f32.mrb[84].mxu1 }
0x60e7   : > { %v16915_v19 = vpop.f32.mrb[85].mxu1  ;;  %v9893_v20 = vsel %vm3908_vm5, %v20239_v18, 0.0 }
0x60e8   : > { %9894 = vadd.xlane.f32.xlu0 %v9893_v20 }
0x6175   : > { %v9895_v21 = vpop.xlane.xlu0 %9894 }
0x6176   : > { %v9896_v22 = vmul.f32 0.03125, %v9895_v21 }
0x6178   : > { %v9897_v23 = vsub.f32 %v20239_v18, %v9896_v22 }
0x617a   : > { %v9898_v25 = vmul.f32 %v9897_v23, %v9897_v23 }
0x617c   : > { %v9899_v63 = vsel %vm3908_vm5, %v9898_v25, 0.0 }
0x617d   : > { %9900 = vadd.xlane.f32.xlu0 %v9899_v63 }
0x620a   : > { %v9901_v38 = vpop.xlane.xlu0 %9900 }
0x620b   : > { %v9902_v39 = vmul.f32 0.03125, %v9901_v38 }
0x620d   : > { %v9903_v40 = vadd.f32 1e-05, %v9902_v39 }
0x620f   : > { %18191 = vrsqrt.f32 %v9903_v40 }
0x6219   : > { %v18192_v55 = vpop.eup %18191 }
0x621a   : > { %v9905_v32 = vmul.f32 %v18192_v55, %v9897_v23 }
0x621c   : > { %v9910_v50 = vmul.f32 %v9909_v52, %v9905_v32 }
0x621e   : > { %v9915_v53 = vadd.f32 %v9914_v44, %v9910_v50  ;;  %v15280_v44 = vld [vmem:[%s21093_s11 + $0x88] sm:$0xff] }
0x6220   : > { %16925 = vmatmul.mubr.msk.f32.vlgmr.msra.gmra.mrb[86].mxu1 %vm888_vm0, %v9915_v53 }
0x6221   : > { %17753 = vmatpush3.bf16.msra.mxu1 %v17752_v51  ;;  %16935 = vmatprep.mubr.msk.f32.mxu1 %vm18351_vm4, %v18352_v47 }
0x6222   : > { %17754 = vmatprep.subr.bf16.mxu1 %v18350_v46 }
0x6225   : > { %17756 = vmatpush3.bf16.msra.mxu1 %v17755_v26 }
0x6226   : > { %16938 = vmatprep.subr.mxu1 %v18352_v47 }
0x6228   : > { %16936 = vmatmul.mubr.msk.f32.vlgmr.msra.gmra.mrb[88].mxu1 %vm888_vm0, %v10003_v0 }
0x6229   : > { %16940 = vmatprep.mubr.msk.f32.mxu1 %vm18351_vm4, %v18352_v47 }
0x62f3   : > { %v9990_v1 = vpop.f32.mrb[86].mxu1 }
0x62f4   : > { %v16926_v43 = vpop.f32.mrb[87].mxu1  ;;  %v20304_v41 = vmul.f32 0.35355338, %v9990_v1  ;;  %v10328_v1 = vrot.slane %v20277_v49, %v18896_v10 }
0x62fb   : > { %v20298_v4 = vpop.f32.mrb[88].mxu1 }
0x62fc   : > { %10332 = vrot.lane.b32.xlu0 %v20298_v4, %s21191_s26  ;;  %v16937_v8 = vpop.f32.mrb[89].mxu1  ;;  %16939 = vmatpush3.xpose.msk.msra.mxu1 %vm1025_vm1, %v20298_v4 }
0x62fd   : > { %16943 = vmatprep.subr.mxu1 %v18352_v47 }
0x62ff   : > { %16941 = vmatmul.mubr.msk.f32.vlgmr.msra.gmra.mrb[90].mxu1 %vm1025_vm1, %v20304_v41 }
0x6300   : > { %10330 = vrot.lane.b32.xlu0 %v20304_v41, %s21191_s26  ;;  %16945 = vmatprep.mubr.msk.f32.mxu1 %vm18351_vm4, %v18352_v47 }
0x636e   : > { %v10333_v58 = vpop.permute.xlu0 %10332 }
0x636f   : > { %16954 = vmatpush3.xpose.msk.msra.mxu0 %vm1025_vm1, %v10333_v58 }
0x6370   : > { %16963 = vmatprep.subr.mxu0 %v18352_v47 }
0x6372   : > { %v10331_v9 = vpop.permute.xlu0 %10330 }
0x6373   : > { %16956 = vmatmul.mubr.msk.f32.vlgmr.msra.gmra.mrb[102].mxu0 %vm1025_vm1, %v10331_v9 }
0x6374   : > { %16965 = vmatprep.mubr.msk.f32.mxu0 %vm18351_vm4, %v18352_v47  ;;  %16964 = vmatpush3.msra.mxu0 %v15280_v44 }
0x6375   : > { %16973 = vmatprep.subr.mxu0 %v18352_v47 }
0x63d2   : > { %v10160_v35 = vpop.f32.mrb[90].mxu1 }
0x63d3   : > { %v16942_v34 = vpop.f32.mrb[91].mxu1  ;;  %v10164_v42 = vsel %vm4317_vm8, %v10160_v35, -inf }
0x63d4   : > { %10165 = vmax.xlane.f32.xlu1 %v10164_v42 }
0x6446   : > { %v10404_v14 = vpop.f32.mrb[102].mxu0 }
0x6447   : > { %v16957_v24 = vpop.f32.mrb[103].mxu0  ;;  %v10408_v11 = vsel %vm4317_vm8, %v10404_v14, -inf }
0x6448   : > { %10409 = vmax.xlane.f32.xlu1 %v10408_v11  ;;  %v15281_v24 = vld [vmem:[%s21093_s11 + $0x90] sm:$0xff] }
0x6461   : > { %v10166_v6 = vpop.xlane.xlu1 %10165 }
0x6462   : > { %v10167_v7 = vsub.f32 %v10160_v35, %v10166_v6 }
0x6464   : > { %v10168_v3 = vmul.f32 1.442695, %v10167_v7 }
0x6466   : > { %18193 = vpow2.f32 %v10168_v3 }
0x6470   : > { %v18194_v15 = vpop.eup %18193 }
0x6471   : > { %v10170_v19 = vsel %vm4317_vm8, %v18194_v15, 0.0 }
0x6472   : > { %10171 = vadd.xlane.f32.xlu0 %v10170_v19 }
0x6488   : > { %10175 = vrot.lane.b32.xlu0 %v20298_v4, %s21189_s3 }
0x648c   : > { %10572 = vrot.lane.b32.xlu0 %v20298_v4, %s21194_s0 }
0x6490   : > { %10570 = vrot.lane.b32.xlu0 %v20304_v41, %s21194_s0 }
0x64d5   : > { %v10410_v20 = vpop.xlane.xlu1 %10409 }
0x64d6   : > { %v10411_v21 = vsub.f32 %v10404_v14, %v10410_v20 }
0x64d8   : > { %v10412_v22 = vmul.f32 1.442695, %v10411_v21 }
0x64da   : > { %18195 = vpow2.f32 %v10412_v22 }
0x64e4   : > { %v18196_v23 = vpop.eup %18195 }
0x64e5   : > { %v10414_v25 = vsel %vm4317_vm8, %v18196_v23, 0.0 }
0x64e6   : > { %10415 = vadd.xlane.f32.xlu1 %v10414_v25 }
0x64f7   : > { %10419 = vrot.lane.b32.xlu1 %v20298_v4, %s21190_s5 }
0x64ff   : > { %v10172_v63 = vpop.xlane.xlu0 %10171 }
0x6500   : > { %18197 = vrcp.f32 %v10172_v63  ;;  %v15282_v63 = vld [vmem:[%s21093_s11 + $0x98] sm:$0xff] }
0x6503   : > { %v10176_v16 = vpop.permute.xlu0 %10175 }
0x6504   : > { %16944 = vmatpush3.msk.msra.mxu1 %vm4333_vm7, %v10176_v16 }
0x6505   : > { %16948 = vmatprep.subr.mxu1 %v18352_v47 }
0x6507   : > { %v10573_v55 = vpop.permute.xlu0 %10572 }
0x650a   : > { %v18198_v30 = vpop.eup %18197 }
0x650b   : > { %v10174_v31 = vmul.f32 %v18198_v30, %v18194_v15  ;;  %v10571_v32 = vpop.permute.xlu0 %10570 }
0x650d   : > { %16946 = vmatmul.mubr.msk.f32.vlgmr.msra.gmra.mrb[92].mxu1 %vm4329_vm9, %v10174_v31 }
0x650e   : > { %16949 = vmatpush3.msra.mxu1 %v15279_v33  ;;  %16950 = vmatprep.mubr.msk.f32.mxu1 %vm18351_vm4, %v18352_v47 }
0x650f   : > { %16958 = vmatprep.subr.mxu1 %v18352_v47 }
0x6573   : > { %v10416_v13 = vpop.xlane.xlu1 %10415 }
0x6574   : > { %18199 = vrcp.f32 %v10416_v13 }
0x6577   : > { %v10420_v39 = vpop.permute.xlu1 %10419 }
0x657e   : > { %v18200_v37 = vpop.eup %18199 }
0x657f   : > { %v10418_v52 = vmul.f32 %v18200_v37, %v18196_v23 }
0x65e0   : > { %v10248_v38 = vpop.f32.mrb[92].mxu1 }
0x65e1   : > { %v16947_v40 = vpop.f32.mrb[93].mxu1  ;;  %16951 = vmatmul.mubr.msk.f32.vlgmr.msra.gmra.mrb[94].mxu1 %vm1025_vm1, %v10248_v38 }
0x65e2   : > { %16959 = vmatpush3.msk.msra.mxu1 %vm4333_vm7, %v10420_v39  ;;  %16960 = vmatprep.mubr.msk.f32.mxu1 %vm18351_vm4, %v18352_v47 }
0x65e3   : > { %16968 = vmatprep.subr.mxu1 %v18352_v47 }
0x65e5   : > { %16961 = vmatmul.mubr.msk.f32.vlgmr.msra.gmra.mrb[96].mxu1 %vm4329_vm9, %v10418_v52 }
0x65e6   : > { %16970 = vmatprep.mubr.msk.f32.mxu1 %vm18351_vm4, %v18352_v47 }
0x65e9   : > { %16969 = vmatpush3.xpose.msk.msra.mxu1 %vm1025_vm1, %v10573_v55 }
0x65ea   : > { %16978 = vmatprep.subr.mxu1 %v18352_v47 }
0x65ec   : > { %16971 = vmatmul.mubr.msk.f32.vlgmr.msra.gmra.mrb[98].mxu1 %vm1025_vm1, %v10571_v32 }
0x65ed   : > { %16980 = vmatprep.mubr.msk.f32.mxu1 %vm18351_vm4, %v18352_v47  ;;  %16979 = vmatpush3.msra.mxu1 %v15281_v24 }
0x65ee   : > { %16988 = vmatprep.subr.mxu1 %v18352_v47 }
0x66b4   : > { %v10321_v45 = vpop.f32.mrb[94].mxu1 }
0x66b5   : > { %v16952_v48 = vpop.f32.mrb[95].mxu1  ;;  %v10329_v43 = vadd.f32 %v10328_v1, %v10321_v45  ;;  %v11067_v1 = vrot.slane %v20262_v61, %v18712_v54 }
0x66b8   : > { %v10492_v50 = vpop.f32.mrb[96].mxu1 }
0x66b9   : > { %v16962_v51 = vpop.f32.mrb[97].mxu1  ;;  %16966 = vmatmul.mubr.msk.f32.vlgmr.msra.gmra.mrb[104].mxu0 %vm1025_vm1, %v10492_v50 }
0x66ba   : > { %16975 = vmatprep.mubr.msk.f32.mxu0 %vm18351_vm4, %v18352_v47 }
0x66bf   : > { %v10644_v53 = vpop.f32.mrb[98].mxu1 }
0x66c0   : > { %v16972_v59 = vpop.f32.mrb[99].mxu1  ;;  %v10648_v28 = vsel %vm4317_vm8, %v10644_v53, -inf }
0x66c1   : > { %10649 = vmax.xlane.f32.xlu1 %v10648_v28  ;;  %v15305_v28 = vld [vmem:[%s21206_s1 + $0x90] sm:$0xff] }
0x66d2   : > { %10812 = vrot.lane.b32.xlu1 %v20298_v4, %s21196_s22 }
0x66d6   : > { %10810 = vrot.lane.b32.xlu1 %v20304_v41, %s21196_s22 }
0x674e   : > { %v10650_v29 = vpop.xlane.xlu1 %10649 }
0x674f   : > { %v10651_v26 = vsub.f32 %v10644_v53, %v10650_v29  ;;  %v15303_v53 = vld [vmem:[%s21206_s1 + $0x80] sm:$0xff]  ;;  %v15306_v29 = vld [vmem:[%s21206_s1 + $0x98] sm:$0xff] }
0x6751   : > { %v10652_v5 = vmul.f32 1.442695, %v10651_v26  ;;  %v17761_v26 = vpack.c.bf16 %v15306_v29, %v15305_v28 }
0x6752   : > { %v10813_v42 = vpop.permute.xlu1 %10812 }
0x6753   : > { %18201 = vpow2.f32 %v10652_v5 }
0x6756   : > { %v10811_v49 = vpop.permute.xlu1 %10810 }
0x675d   : > { %v18202_v36 = vpop.eup %18201 }
0x675e   : > { %v10654_v0 = vsel %vm4317_vm8, %v18202_v36, 0.0 }
0x675f   : > { %10655 = vadd.xlane.f32.xlu0 %v10654_v0 }
0x6775   : > { %10659 = vrot.lane.b32.xlu0 %v20298_v4, %s21197_s23 }
0x678c   : > { %v10565_v8 = vpop.f32.mrb[104].mxu0 }
0x678d   : > { %v10569_v58 = vadd.f32 %v10565_v8, %v10329_v43  ;;  %v16967_v9 = vpop.f32.mrb[105].mxu0 }
0x67ec   : > { %v10656_v35 = vpop.xlane.xlu0 %10655 }
0x67ed   : > { %18203 = vrcp.f32 %v10656_v35 }
0x67f0   : > { %v10660_v41 = vpop.permute.xlu0 %10659 }
0x67f1   : > { %16974 = vmatpush3.msk.msra.mxu0 %vm4333_vm7, %v10660_v41 }
0x67f2   : > { %16983 = vmatprep.subr.mxu0 %v18352_v47 }
0x67f7   : > { %v18204_v34 = vpop.eup %18203 }
0x67f8   : > { %v10658_v14 = vmul.f32 %v18204_v34, %v18202_v36 }
0x67fa   : > { %16976 = vmatmul.mubr.msk.f32.vlgmr.msra.gmra.mrb[106].mxu0 %vm4329_vm9, %v10658_v14 }
0x67fb   : > { %16984 = vmatpush3.xpose.msk.msra.mxu0 %vm1025_vm1, %v10813_v42  ;;  %16985 = vmatprep.mubr.msk.f32.mxu0 %vm18351_vm4, %v18352_v47 }
0x67fc   : > { %16993 = vmatprep.subr.mxu0 %v18352_v47 }
0x67fe   : > { %16986 = vmatmul.mubr.msk.f32.vlgmr.msra.gmra.mrb[108].mxu0 %vm1025_vm1, %v10811_v49 }
0x67ff   : > { %16995 = vmatprep.mubr.msk.f32.mxu0 %vm18351_vm4, %v18352_v47  ;;  %16994 = vmatpush3.msra.mxu0 %v15282_v63 }
0x6800   : > { %17009 = vmatprep.subr.mxu0 %v18352_v47 }
0x68cd   : > { %v10732_v11 = vpop.f32.mrb[106].mxu0 }
0x68ce   : > { %v16977_v6 = vpop.f32.mrb[107].mxu0  ;;  %16981 = vmatmul.mubr.msk.f32.vlgmr.msra.gmra.mrb[100].mxu1 %vm1025_vm1, %v10732_v11 }
0x68cf   : > { %16990 = vmatprep.mubr.msk.f32.mxu1 %vm18351_vm4, %v18352_v47 }
0x68d1   : > { %v10884_v7 = vpop.f32.mrb[108].mxu0 }
0x68d2   : > { %v16987_v3 = vpop.f32.mrb[109].mxu0  ;;  %v10888_v15 = vsel %vm4317_vm8, %v10884_v7, -inf }
0x68d3   : > { %10889 = vmax.xlane.f32.xlu0 %v10888_v15 }
0x68e9   : > { %10899 = vrot.lane.b32.xlu0 %v20298_v4, %s21195_s27 }
0x6960   : > { %v10890_v19 = vpop.xlane.xlu0 %10889 }
0x6961   : > { %v10891_v20 = vsub.f32 %v10884_v7, %v10890_v19 }
0x6963   : > { %v10892_v21 = vmul.f32 1.442695, %v10891_v20 }
0x6964   : > { %v10900_v22 = vpop.permute.xlu0 %10899 }
0x6965   : > { %18205 = vpow2.f32 %v10892_v21  ;;  %16989 = vmatpush3.msk.msra.mxu1 %vm4333_vm7, %v10900_v22 }
0x6966   : > { %17757 = vmatprep.subr.bf16.mxu1 %v18350_v46 }
0x696f   : > { %v18206_v23 = vpop.eup %18205 }
0x6970   : > { %v10894_v25 = vsel %vm4317_vm8, %v18206_v23, 0.0 }
0x6971   : > { %10895 = vadd.xlane.f32.xlu1 %v10894_v25 }
0x69a1   : > { %v10805_v4 = vpop.f32.mrb[100].mxu1 }
0x69a2   : > { %v10809_v16 = vadd.f32 %v10805_v4, %v10569_v58  ;;  %v16982_v30 = vpop.f32.mrb[101].mxu1  ;;  %v11072_v58 = vrot.slane %v20262_v61, %v18720_v56  ;;  %v15308_v4 = vld [vmem:[%s21209_s19 + $0x80] sm:$0xff] }
0x69fe   : > { %v10896_v31 = vpop.xlane.xlu1 %10895 }
0x69ff   : > { %18207 = vrcp.f32 %v10896_v31 }
0x6a09   : > { %v18208_v33 = vpop.eup %18207 }
0x6a0a   : > { %v10898_v13 = vmul.f32 %v18208_v33, %v18206_v23 }
0x6a0c   : > { %16991 = vmatmul.mubr.msk.f32.vlgmr.msra.gmra.mrb[102].mxu1 %vm4329_vm9, %v10898_v13 }
0x6a0d   : > { %17006 = vmatprep.mubr.msk.f32.mxu1 %vm18351_vm4, %v18352_v47 }
0x6adf   : > { %v10972_v37 = vpop.f32.mrb[102].mxu1 }
0x6ae0   : > { %v16992_v38 = vpop.f32.mrb[103].mxu1  ;;  %16996 = vmatmul.mubr.msk.f32.vlgmr.msra.gmra.mrb[110].mxu0 %vm1025_vm1, %v10972_v37 }
0x6ae1   : > { %17011 = vmatprep.mubr.msk.f32.mxu0 %vm18351_vm4, %v18352_v47 }
0x6bb3   : > { %v11045_v39 = vpop.f32.mrb[110].mxu0 }
0x6bb4   : > { %v11049_v40 = vadd.f32 %v11045_v39, %v10809_v16  ;;  %v16997_v52 = vpop.f32.mrb[111].mxu0 }
0x6bb6   : > { %v20403_v55 = vadd.f32 %v11049_v40, %v20239_v18  ;;  %v15304_v18 = vld [vmem:[%s21206_s1 + $0x88] sm:$0xff] }
0x6bb7   : > { %v17758_v59 = vpack.c.bf16 %v15304_v18, %v15303_v53 }
0x6bb8   : > { %v11051_v32 = vsel %vm3908_vm5, %v20403_v55, 0.0 }
0x6bb9   : > { %11052 = vadd.xlane.f32.xlu1 %v11051_v32  ;;  %17759 = vmatpush3.bf16.msra.mxu1 %v17758_v59  ;;  %v15309_v59 = vld [vmem:[%s21209_s19 + $0x88] sm:$0xff] }
0x6bba   : > { %17760 = vmatprep.subr.bf16.mxu1 %v18350_v46 }
0x6bbd   : > { %17762 = vmatpush3.bf16.msra.mxu1 %v17761_v26 }
0x6bbe   : > { %17019 = vmatprep.subr.mxu1 %v18352_v47 }
0x6c46   : > { %v11053_v44 = vpop.xlane.xlu1 %11052 }
0x6c47   : > { %v11054_v45 = vmul.f32 0.03125, %v11053_v44 }
0x6c49   : > { %v11055_v48 = vsub.f32 %v20403_v55, %v11054_v45 }
0x6c4b   : > { %v11056_v50 = vmul.f32 %v11055_v48, %v11055_v48 }
0x6c4d   : > { %v11057_v51 = vsel %vm3908_vm5, %v11056_v50, 0.0 }
0x6c4e   : > { %11058 = vadd.xlane.f32.xlu1 %v11057_v51 }
0x6cdb   : > { %v11059_v5 = vpop.xlane.xlu1 %11058 }
0x6cdc   : > { %v11060_v36 = vmul.f32 0.03125, %v11059_v5 }
0x6cde   : > { %v11061_v0 = vadd.f32 1e-05, %v11060_v36 }
0x6ce0   : > { %18209 = vrsqrt.f32 %v11061_v0 }
0x6cea   : > { %v18210_v43 = vpop.eup %18209 }
0x6ceb   : > { %v11063_v8 = vmul.f32 %v18210_v43, %v11055_v48 }
0x6ced   : > { %v11068_v9 = vmul.f32 %v11067_v1, %v11063_v8 }
0x6cef   : > { %v11073_v35 = vadd.f32 %v11072_v58, %v11068_v9 }
0x6cf1   : > { %17007 = vmatmul.mubr.msk.f32.vlgmr.msra.gmra.mrb[104].mxu1 %vm888_vm0, %v11073_v35  ;;  %v11400_v35 = vrot.slane %v20262_v61, %v18847_v27 }
0x6cf2   : > { %17021 = vmatprep.mubr.msk.f32.mxu1 %vm18351_vm4, %v18352_v47  ;;  %17020 = vmatpush3.msra.mxu1 %v15308_v4 }
0x6cf3   : > { %17029 = vmatprep.subr.mxu1 %v18352_v47 }
0x6dc4   : > { %v20430_v41 = vpop.f32.mrb[104].mxu1 }
0x6dc5   : > { %11159 = vrot.lane.b32.xlu1 %v20430_v41, %s21189_s3  ;;  %v17008_v34 = vpop.f32.mrb[105].mxu1  ;;  %v20436_v14 = vmul.f32 0.35355338, %v20430_v41 }
0x6e37   : > { %v11160_v42 = vpop.permute.xlu1 %11159 }
0x6e38   : > { %17010 = vmatpush3.xpose.msk.msra.mxu0 %vm1025_vm1, %v11160_v42 }
0x6e39   : > { %17014 = vmatprep.subr.mxu0 %v18352_v47 }
0x6e3b   : > { %17012 = vmatmul.mubr.msk.f32.vlgmr.msra.gmra.mrb[112].mxu0 %vm1025_vm1, %v20436_v14 }
0x6e3c   : > { %17016 = vmatprep.mubr.msk.f32.mxu0 %vm18351_vm4, %v18352_v47 }
0x6f0e   : > { %v11232_v49 = vpop.f32.mrb[112].mxu0 }
0x6f0f   : > { %v17013_v24 = vpop.f32.mrb[113].mxu0  ;;  %v11236_v11 = vsel %vm4317_vm8, %v11232_v49, -inf }
0x6f10   : > { %11237 = vmax.xlane.f32.xlu0 %v11236_v11 }
0x6f26   : > { %11247 = vrot.lane.b32.xlu0 %v20430_v41, %s21207_s28 }
0x6f2a   : > { %11402 = vrot.lane.b32.xlu0 %v20436_v14, %s21191_s26 }
0x6f9d   : > { %v11238_v6 = vpop.xlane.xlu0 %11237 }
0x6f9e   : > { %v11239_v7 = vsub.f32 %v11232_v49, %v11238_v6 }
0x6fa0   : > { %v11240_v3 = vmul.f32 1.442695, %v11239_v7 }
0x6fa1   : > { %v11248_v15 = vpop.permute.xlu0 %11247 }
0x6fa2   : > { %18211 = vpow2.f32 %v11240_v3  ;;  %17015 = vmatpush3.msk.msra.mxu0 %vm4333_vm7, %v11248_v15  ;;  %v15310_v15 = vld [vmem:[%s21209_s19 + $0x90] sm:$0xff] }
0x6fa3   : > { %17024 = vmatprep.subr.mxu0 %v18352_v47 }
0x6fa5   : > { %v11403_v63 = vpop.permute.xlu0 %11402 }
0x6fac   : > { %v18212_v19 = vpop.eup %18211 }
0x6fad   : > { %v11242_v20 = vsel %vm4317_vm8, %v18212_v19, 0.0 }
0x6fae   : > { %11243 = vadd.xlane.f32.xlu1 %v11242_v20 }
0x6fbf   : > { %11404 = vrot.lane.b32.xlu1 %v20430_v41, %s21190_s5 }
0x703b   : > { %v11244_v21 = vpop.xlane.xlu1 %11243 }
0x703c   : > { %18213 = vrcp.f32 %v11244_v21 }
0x703f   : > { %v11405_v25 = vpop.permute.xlu1 %11404 }
0x7046   : > { %v18214_v22 = vpop.eup %18213 }
0x7047   : > { %v11246_v23 = vmul.f32 %v18214_v22, %v18212_v19 }
0x7049   : > { %17017 = vmatmul.mubr.msk.f32.vlgmr.msra.gmra.mrb[114].mxu0 %vm4329_vm9, %v11246_v23 }
0x704a   : > { %17025 = vmatpush3.xpose.msk.msra.mxu0 %vm1025_vm1, %v11405_v25  ;;  %17026 = vmatprep.mubr.msk.f32.mxu0 %vm18351_vm4, %v18352_v47 }
0x704b   : > { %17034 = vmatprep.subr.mxu0 %v18352_v47 }
0x704d   : > { %17027 = vmatmul.mubr.msk.f32.vlgmr.msra.gmra.mrb[116].mxu0 %vm1025_vm1, %v11403_v63 }
0x704e   : > { %17036 = vmatprep.mubr.msk.f32.mxu0 %vm18351_vm4, %v18352_v47  ;;  %17035 = vmatpush3.msra.mxu0 %v15309_v59 }
0x704f   : > { %17044 = vmatprep.subr.mxu0 %v18352_v47 }
0x711c   : > { %v11320_v16 = vpop.f32.mrb[114].mxu0 }
0x711d   : > { %v17018_v30 = vpop.f32.mrb[115].mxu0  ;;  %17022 = vmatmul.mubr.msk.f32.vlgmr.msra.gmra.mrb[106].mxu1 %vm1025_vm1, %v11320_v16 }
0x711e   : > { %17031 = vmatprep.mubr.msk.f32.mxu1 %vm18351_vm4, %v18352_v47 }
0x7120   : > { %v11476_v31 = vpop.f32.mrb[116].mxu0 }
0x7121   : > { %v17028_v33 = vpop.f32.mrb[117].mxu0  ;;  %v11480_v13 = vsel %vm4317_vm8, %v11476_v31, -inf }
0x7122   : > { %11481 = vmax.xlane.f32.xlu0 %v11480_v13 }
0x7138   : > { %11491 = vrot.lane.b32.xlu0 %v20430_v41, %s21210_s4 }
0x713c   : > { %11642 = vrot.lane.b32.xlu0 %v20436_v14, %s21194_s0 }
0x71af   : > { %v11482_v37 = vpop.xlane.xlu0 %11481 }
0x71b0   : > { %v11483_v38 = vsub.f32 %v11476_v31, %v11482_v37  ;;  %v15311_v31 = vld [vmem:[%s21209_s19 + $0x98] sm:$0xff] }
0x71b2   : > { %v11484_v39 = vmul.f32 1.442695, %v11483_v38 }
0x71b3   : > { %v11492_v40 = vpop.permute.xlu0 %11491 }
0x71b4   : > { %18215 = vpow2.f32 %v11484_v39  ;;  %17030 = vmatpush3.msk.msra.mxu1 %vm4333_vm7, %v11492_v40 }
0x71b5   : > { %17039 = vmatprep.subr.mxu1 %v18352_v47 }
0x71b7   : > { %v11643_v18 = vpop.permute.xlu0 %11642 }
0x71be   : > { %v18216_v52 = vpop.eup %18215 }
0x71bf   : > { %v11486_v32 = vsel %vm4317_vm8, %v18216_v52, 0.0 }
0x71c0   : > { %11487 = vadd.xlane.f32.xlu1 %v11486_v32 }
0x71d1   : > { %11644 = vrot.lane.b32.xlu1 %v20430_v41, %s21197_s23 }
0x71f0   : > { %v11393_v44 = vpop.f32.mrb[106].mxu1 }
0x71f1   : > { %v17023_v45 = vpop.f32.mrb[107].mxu1  ;;  %v11401_v34 = vadd.f32 %v11400_v35, %v11393_v44  ;;  %v15342_v35 = vld [vmem:[%s21188_s21 + $0x218] sm:$0xff] }
0x724d   : > { %v11488_v48 = vpop.xlane.xlu1 %11487 }
0x724e   : > { %18217 = vrcp.f32 %v11488_v48 }
0x7251   : > { %v11645_v53 = vpop.permute.xlu1 %11644 }
0x7258   : > { %v18218_v50 = vpop.eup %18217 }
0x7259   : > { %v11490_v51 = vmul.f32 %v18218_v50, %v18216_v52 }
0x725b   : > { %17032 = vmatmul.mubr.msk.f32.vlgmr.msra.gmra.mrb[108].mxu1 %vm4329_vm9, %v11490_v51 }
0x725c   : > { %17040 = vmatpush3.xpose.msk.msra.mxu1 %vm1025_vm1, %v11645_v53  ;;  %17041 = vmatprep.mubr.msk.f32.mxu1 %vm18351_vm4, %v18352_v47 }
0x725d   : > { %17049 = vmatprep.subr.mxu1 %v18352_v47 }
0x725f   : > { %17042 = vmatmul.mubr.msk.f32.vlgmr.msra.gmra.mrb[110].mxu1 %vm1025_vm1, %v11643_v18 }
0x7260   : > { %17051 = vmatprep.mubr.msk.f32.mxu1 %vm18351_vm4, %v18352_v47  ;;  %17050 = vmatpush3.msra.mxu1 %v15310_v15 }
0x7261   : > { %17059 = vmatprep.subr.mxu1 %v18352_v47 }
0x732e   : > { %v11564_v28 = vpop.f32.mrb[108].mxu1 }
0x732f   : > { %v17033_v29 = vpop.f32.mrb[109].mxu1  ;;  %17037 = vmatmul.mubr.msk.f32.vlgmr.msra.gmra.mrb[118].mxu0 %vm1025_vm1, %v11564_v28 }
0x7330   : > { %17046 = vmatprep.mubr.msk.f32.mxu0 %vm18351_vm4, %v18352_v47 }
0x7332   : > { %v11716_v26 = vpop.f32.mrb[110].mxu1 }
0x7333   : > { %v17043_v5 = vpop.f32.mrb[111].mxu1  ;;  %v11720_v36 = vsel %vm4317_vm8, %v11716_v26, -inf }
0x7334   : > { %11721 = vmax.xlane.f32.xlu0 %v11720_v36  ;;  %v15334_v36 = vld [vmem:[%s21187_s24 + $0x90] sm:$0xff] }
0x734a   : > { %11731 = vrot.lane.b32.xlu0 %v20430_v41, %s21211_s20 }
0x734e   : > { %11882 = vrot.lane.b32.xlu0 %v20436_v14, %s21196_s22 }
0x73c1   : > { %v11722_v0 = vpop.xlane.xlu0 %11721 }
0x73c2   : > { %v11723_v1 = vsub.f32 %v11716_v26, %v11722_v0  ;;  %v15332_v26 = vld [vmem:[%s21187_s24 + $0x80] sm:$0xff]  ;;  %v15335_v0 = vld [vmem:[%s21187_s24 + $0x98] sm:$0xff] }
0x73c4   : > { %v11724_v43 = vmul.f32 1.442695, %v11723_v1  ;;  %v17767_v1 = vpack.c.bf16 %v15335_v0, %v15334_v36 }
0x73c5   : > { %v11732_v8 = vpop.permute.xlu0 %11731 }
0x73c6   : > { %18219 = vpow2.f32 %v11724_v43  ;;  %17045 = vmatpush3.msk.msra.mxu0 %vm4333_vm7, %v11732_v8  ;;  %v15339_v43 = vld [vmem:[%s21188_s21 + $0x200] sm:$0xff]  ;;  %v15340_v8 = vld [vmem:[%s21188_s21 + $0x208] sm:$0xff] }
0x73c7   : > { %17054 = vmatprep.subr.mxu0 %v18352_v47 }
0x73c9   : > { %v11883_v3 = vpop.permute.xlu0 %11882 }
0x73d0   : > { %v18220_v58 = vpop.eup %18219 }
0x73d1   : > { %v11726_v9 = vsel %vm4317_vm8, %v18220_v58, 0.0 }
0x73d2   : > { %11727 = vadd.xlane.f32.xlu1 %v11726_v9  ;;  %v17770_v9 = vpack.c.bf16 %v15340_v8, %v15339_v43 }
0x73e3   : > { %11884 = vrot.lane.b32.xlu1 %v20430_v41, %s21195_s27 }
0x7402   : > { %v11637_v42 = vpop.f32.mrb[118].mxu0 }
0x7403   : > { %v11641_v14 = vadd.f32 %v11637_v42, %v11401_v34  ;;  %v17038_v49 = vpop.f32.mrb[119].mxu0  ;;  %v15343_v42 = vld [vmem:[%s21188_s21 + $0x220] sm:$0xff] }
0x745f   : > { %v11728_v24 = vpop.xlane.xlu1 %11727 }
0x7460   : > { %18221 = vrcp.f32 %v11728_v24 }
0x7463   : > { %v11885_v7 = vpop.permute.xlu1 %11884 }
0x746a   : > { %v18222_v11 = vpop.eup %18221 }
0x746b   : > { %v11730_v6 = vmul.f32 %v18222_v11, %v18220_v58  ;;  %v15341_v58 = vld [vmem:[%s21188_s21 + $0x210] sm:$0xff] }
0x746c   : > { %v17773_v34 = vpack.c.bf16 %v15342_v35, %v15341_v58 }
0x746d   : > { %17047 = vmatmul.mubr.msk.f32.vlgmr.msra.gmra.mrb[120].mxu0 %vm4329_vm9, %v11730_v6 }
0x746e   : > { %17055 = vmatpush3.xpose.msk.msra.mxu0 %vm1025_vm1, %v11885_v7  ;;  %17056 = vmatprep.mubr.msk.f32.mxu0 %vm18351_vm4, %v18352_v47  ;;  %v12139_v7 = vrot.slane %v20262_v61, %v18896_v10 }
0x746f   : > { %17064 = vmatprep.subr.mxu0 %v18352_v47 }
0x7471   : > { %17057 = vmatmul.mubr.msk.f32.vlgmr.msra.gmra.mrb[122].mxu0 %vm1025_vm1, %v11883_v3 }
0x7472   : > { %17066 = vmatprep.mubr.msk.f32.mxu0 %vm18351_vm4, %v18352_v47  ;;  %17065 = vmatpush3.msra.mxu0 %v15311_v31 }
0x7473   : > { %17769 = vmatprep.subr.bf16.mxu0 %v18350_v46 }
0x7540   : > { %v11804_v19 = vpop.f32.mrb[120].mxu0 }
0x7541   : > { %v17048_v20 = vpop.f32.mrb[121].mxu0  ;;  %17052 = vmatmul.mubr.msk.f32.vlgmr.msra.gmra.mrb[112].mxu1 %vm1025_vm1, %v11804_v19  ;;  %v12144_v19 = vrot.slane %v20262_v61, %v18899_v12 }
0x7542   : > { %17061 = vmatprep.mubr.msk.f32.mxu1 %vm18351_vm4, %v18352_v47  ;;  %v15357_v20 = vld [vmem:[%s21091_s9 + $0xa0] sm:$0xff] }
0x7544   : > { %v11956_v21 = vpop.f32.mrb[122].mxu0 }
0x7545   : > { %v17058_v22 = vpop.f32.mrb[123].mxu0  ;;  %v11960_v23 = vsel %vm4317_vm8, %v11956_v21, -inf }
0x7546   : > { %11961 = vmax.xlane.f32.xlu1 %v11960_v23  ;;  %v20591_v22 = vld [vmem:[%s21090_s8 + $0x50] sm:$0xff] }
0x75d3   : > { %v11962_v25 = vpop.xlane.xlu1 %11961 }
0x75d4   : > { %v11963_v63 = vsub.f32 %v11956_v21, %v11962_v25  ;;  %v15358_v21 = vld [vmem:[%s21091_s9 + $0xa8] sm:$0xff] }
0x75d5   : > { %v17794_v25 = vpack.c.bf16 %v15358_v21, %v15357_v20  ;;  %v15365_v20 = vld [vmem:[%s21092_s10 + $0xb8] sm:$0xff] }
0x75d6   : > { %v11964_v4 = vmul.f32 1.442695, %v11963_v63 }
0x75d8   : > { %18223 = vpow2.f32 %v11964_v4  ;;  %v15359_v4 = vld [vmem:[%s21091_s9 + $0xb0] sm:$0xff] }
0x75e2   : > { %v18224_v16 = vpop.eup %18223 }
0x75e3   : > { %v11966_v30 = vsel %vm4317_vm8, %v18224_v16, 0.0 }
0x75e4   : > { %11967 = vadd.xlane.f32.xlu0 %v11966_v30  ;;  %v12335_v30 = vrot.slane %v20591_v22, %v19359_v62  ;;  %v15345_v62 = vld [vmem:[%s21188_s21 + $0x230] sm:$0xff] }
0x75fa   : > { %11971 = vrot.lane.b32.xlu0 %v20430_v41, %s21212_s29 }
0x7614   : > { %v11877_v33 = vpop.f32.mrb[112].mxu1 }
0x7615   : > { %v11881_v13 = vadd.f32 %v11877_v33, %v11641_v14  ;;  %v17053_v37 = vpop.f32.mrb[113].mxu1  ;;  %v15344_v14 = vld [vmem:[%s21188_s21 + $0x228] sm:$0xff]  ;;  %v12336_v33 = vmul.f32 %v12335_v30, %v20163_v60  ;;  %v15346_v60 = vld [vmem:[%s21188_s21 + $0x238] sm:$0xff] }
0x7616   : > { %v17776_v49 = vpack.c.bf16 %v15344_v14, %v15343_v42 }
0x7671   : > { %v11968_v38 = vpop.xlane.xlu0 %11967 }
0x7672   : > { %18225 = vrcp.f32 %v11968_v38  ;;  %v17779_v38 = vpack.c.bf16 %v15346_v60, %v15345_v62 }
0x7675   : > { %v11972_v39 = vpop.permute.xlu0 %11971 }
0x7676   : > { %17060 = vmatpush3.msk.msra.mxu1 %vm4333_vm7, %v11972_v39  ;;  %v15348_v39 = vld [vmem:[%s21188_s21 + $0x248] sm:$0xff] }
0x7677   : > { %17763 = vmatprep.subr.bf16.mxu1 %v18350_v46 }
0x767c   : > { %v18226_v40 = vpop.eup %18225 }
0x767d   : > { %v11970_v52 = vmul.f32 %v18226_v40, %v18224_v16  ;;  %v15360_v16 = vld [vmem:[%s21091_s9 + $0xb8] sm:$0xff] }
0x767e   : > { %v17797_v31 = vpack.c.bf16 %v15360_v16, %v15359_v4  ;;  %v20678_v4 = vld [vmem:[%s21090_s8 + $0x58] sm:$0x7] }
0x767f   : > { %17062 = vmatmul.mubr.msk.f32.vlgmr.msra.gmra.mrb[114].mxu1 %vm4329_vm9, %v11970_v52  ;;  %v15349_v52 = vld [vmem:[%s21188_s21 + $0x250] sm:$0xff]  ;;  %v12436_v16 = vrot.slane %v20678_v4, %v18712_v54 }
0x7680   : > { %17077 = vmatprep.mubr.msk.f32.mxu1 %vm18351_vm4, %v18352_v47 }
0x7752   : > { %v12044_v41 = vpop.f32.mrb[114].mxu1 }
0x7753   : > { %v17063_v32 = vpop.f32.mrb[115].mxu1  ;;  %17067 = vmatmul.mubr.msk.f32.vlgmr.msra.gmra.mrb[124].mxu0 %vm1025_vm1, %v12044_v41  ;;  %v15350_v41 = vld [vmem:[%s21188_s21 + $0x258] sm:$0xff] }
0x7754   : > { %17112 = vmatprep.mubr.msk.f32.mxu0 %vm18351_vm4, %v18352_v47  ;;  %17771 = vmatpush3.bf16.msra.mxu0 %v17770_v9  ;;  %v17785_v32 = vpack.c.bf16 %v15350_v41, %v15349_v52  ;;  %v12257_v9 = vrot.slane %v20262_v61, %v18941_v57  ;;  %v15363_v61 = vld [vmem:[%s21092_s10 + $0xa8] sm:$0xff] }
0x7755   : > { %17772 = vmatprep.subr.bf16.mxu0 %v18350_v46 }
0x7758   : > { %17774 = vmatpush3.bf16.msra.mxu0 %v17773_v34 }
0x7759   : > { %17775 = vmatprep.subr.bf16.mxu0 %v18350_v46 }
0x775c   : > { %17777 = vmatpush3.bf16.msra.mxu0 %v17776_v49 }
0x775d   : > { %17778 = vmatprep.subr.bf16.mxu0 %v18350_v46 }
0x7760   : > { %17780 = vmatpush3.bf16.msra.mxu0 %v17779_v38 }
0x7761   : > { %17781 = vmatprep.subr.bf16.mxu0 %v18350_v46 }
0x7826   : > { %v12117_v44 = vpop.f32.mrb[124].mxu0 }
0x7827   : > { %v12121_v45 = vadd.f32 %v12117_v44, %v11881_v13  ;;  %v17068_v48 = vpop.f32.mrb[125].mxu0  ;;  %v12340_v13 = vrot.slane %v20591_v22, %v19364_v2  ;;  %v15347_v2 = vld [vmem:[%s21188_s21 + $0x240] sm:$0xff] }
0x7828   : > { %v17782_v40 = vpack.c.bf16 %v15348_v39, %v15347_v2  ;;  %v15351_v44 = vld [vmem:[%s21188_s21 + $0x260] sm:$0xff] }
0x7829   : > { %v20537_v50 = vadd.f32 %v12121_v45, %v20403_v55  ;;  %v15333_v55 = vld [vmem:[%s21187_s24 + $0x88] sm:$0xff]  ;;  %v12341_v37 = vadd.f32 %v12340_v13, %v12336_v33  ;;  %v12441_v33 = vrot.slane %v20678_v4, %v18720_v56 }
0x782a   : > { %v17764_v5 = vpack.c.bf16 %v15333_v55, %v15332_v26  ;;  %17783 = vmatpush3.bf16.msra.mxu0 %v17782_v40  ;;  %v15352_v45 = vld [vmem:[%s21188_s21 + $0x268] sm:$0xff] }
0x782b   : > { %v12123_v51 = vsel %vm3908_vm5, %v20537_v50, 0.0  ;;  %17784 = vmatprep.subr.bf16.mxu0 %v18350_v46  ;;  %v17788_v48 = vpack.c.bf16 %v15352_v45, %v15351_v44 }
0x782c   : > { %12124 = vadd.xlane.f32.xlu1 %v12123_v51  ;;  %17765 = vmatpush3.bf16.msra.mxu1 %v17764_v5  ;;  %v15353_v51 = vld [vmem:[%s21188_s21 + $0x270] sm:$0xff] }
0x782d   : > { %17766 = vmatprep.subr.bf16.mxu1 %v18350_v46 }
0x782e   : > { %17786 = vmatpush3.bf16.msra.mxu0 %v17785_v32 }
0x782f   : > { %17787 = vmatprep.subr.bf16.mxu0 %v18350_v46 }
0x7830   : > { %17768 = vmatpush3.bf16.msra.mxu1 %v17767_v1 }
0x7831   : > { %17793 = vmatprep.subr.bf16.mxu1 %v18350_v46 }
0x7832   : > { %17789 = vmatpush3.bf16.msra.mxu0 %v17788_v48 }
0x7833   : > { %17790 = vmatprep.subr.bf16.mxu0 %v18350_v46 }
0x78b9   : > { %v12125_v53 = vpop.xlane.xlu1 %12124 }
0x78ba   : > { %v12126_v18 = vmul.f32 0.03125, %v12125_v53  ;;  %v15354_v53 = vld [vmem:[%s21188_s21 + $0x278] sm:$0xff] }
0x78bc   : > { %v12127_v59 = vsub.f32 %v20537_v50, %v12126_v18  ;;  %v17791_v18 = vpack.c.bf16 %v15354_v53, %v15353_v51 }
0x78be   : > { %v12128_v28 = vmul.f32 %v12127_v59, %v12127_v59  ;;  %17792 = vmatpush3.bf16.msra.mxu0 %v17791_v18 }
0x78bf   : > { %17152 = vmatprep.subr.mxu0 %v18352_v47 }
0x78c0   : > { %v12129_v29 = vsel %vm3908_vm5, %v12128_v28, 0.0 }
0x78c1   : > { %12130 = vadd.xlane.f32.xlu1 %v12129_v29 }
0x794e   : > { %v12131_v24 = vpop.xlane.xlu1 %12130 }
0x794f   : > { %v12132_v11 = vmul.f32 0.03125, %v12131_v24 }
0x7951   : > { %v12133_v6 = vadd.f32 1e-05, %v12132_v11 }
0x7953   : > { %18227 = vrsqrt.f32 %v12133_v6 }
0x795d   : > { %v18228_v3 = vpop.eup %18227 }
0x795e   : > { %v12135_v15 = vmul.f32 %v18228_v3, %v12127_v59  ;;  %v15337_v59 = vld [vmem:[%s21089_s7 + $0x4] ss:$0 sm:$0xff] }
0x7960   : > { %v12140_v23 = vmul.f32 %v12139_v7, %v12135_v15  ;;  %v15362_v15 = vld [vmem:[%s21092_s10 + $0xa0] sm:$0xff] }
0x7962   : > { %v12145_v63 = vadd.f32 %v12144_v19, %v12140_v23  ;;  %v17800_v19 = vpack.c.bf16 %v15363_v61, %v15362_v15 }
0x7964   : > { %17078 = vmatmul.mubr.msk.f32.vlgmr.msra.gmra.mrb[116].mxu1 %vm888_vm0, %v12145_v63 }
0x7965   : > { %17795 = vmatpush3.bf16.msra.mxu1 %v17794_v25  ;;  %17123 = vmatprep.mubr.msk.f32.mxu1 %vm18351_vm4, %v18352_v47 }
0x7966   : > { %17796 = vmatprep.subr.bf16.mxu1 %v18350_v46 }
0x7969   : > { %17798 = vmatpush3.bf16.msra.mxu1 %v17797_v31 }
0x796a   : > { %17799 = vmatprep.subr.bf16.mxu1 %v18350_v46 }
0x796c   : > { %17124 = vmatmul.mubr.msk.f32.vlgmr.msra.gmra.mrb[118].mxu1 %vm888_vm0, %v12341_v37 }
0x796d   : > { %17134 = vmatprep.mubr.msk.f32.mxu1 %vm18351_vm4, %v18352_v47  ;;  %17801 = vmatpush3.bf16.msra.mxu1 %v17800_v19 }
0x796e   : > { %17802 = vmatprep.subr.bf16.mxu1 %v18350_v46 }
0x7a37   : > { %v12228_v28 = vpop.f32.mrb[116].mxu1 }
0x7a38   : > { %v12229_v29 = vadd.f32 %v15337_v59, %v12228_v28  ;;  %v17079_v26 = vpop.f32.mrb[117].mxu1 }
0x7a3a   : > { %v12233_v55 = vmul.f32 0.70710677, %v12229_v29  ;;  %v12232_v43 = vmul.f32 0.5, %v12229_v29 }
0x7a3c   : > { %18229 = verf.f32 %v12233_v55 }
0x7a3f   : > { %v12416_v5 = vpop.f32.mrb[118].mxu1 }
0x7a40   : > { %v20650_v36 = vmul.f32 0.35355338, %v12416_v5  ;;  %v17125_v0 = vpop.f32.mrb[119].mxu1 }
0x7a42   : > { %12769 = vrot.lane.b32.xlu0 %v20650_v36, %s21191_s26 }
0x7a46   : > { %v18230_v1 = vpop.eup %18229 }
0x7a47   : > { %v12235_v8 = vadd.f32 1.0, %v18230_v1 }
0x7a49   : > { %v12236_v58 = vmul.f32 %v12235_v8, %v12232_v43  ;;  %v15367_v8 = vld [vmem:[%s21093_s11 + $0xa0] sm:$0xff] }
0x7a4b   : > { %17113 = vmatmul.mubr.f32.vlgmr.msra.gmra.mrb[126].mxu0 %v12236_v58 }
0x7a4c   : > { %17154 = vmatprep.mubr.msk.f32.mxu0 %vm18351_vm4, %v18352_v47 }
0x7ab4   : > { %v12770_v2 = vpop.permute.xlu0 %12769 }
0x7b1e   : > { %v12324_v35 = vpop.f32.mrb[126].mxu0 }
0x7b1f   : > { %v12325_v34 = vadd.f32 %v12324_v35, %v12257_v9  ;;  %v17114_v42 = vpop.f32.mrb[127].mxu0 }
0x7b21   : > { %v12328_v14 = vadd.f32 %v12325_v34, %v20537_v50  ;;  %v15364_v50 = vld [vmem:[%s21092_s10 + $0xb0] sm:$0xff] }
0x7b22   : > { %v17803_v21 = vpack.c.bf16 %v15365_v20, %v15364_v50 }
0x7b23   : > { %v12420_v49 = vsel %vm3908_vm5, %v12328_v14, 0.0 }
0x7b24   : > { %12421 = vadd.xlane.f32.xlu1 %v12420_v49  ;;  %17804 = vmatpush3.bf16.msra.mxu1 %v17803_v21 }
0x7b25   : > { %17137 = vmatprep.subr.mxu1 %v18352_v47 }
0x7bb1   : > { %v12422_v24 = vpop.xlane.xlu1 %12421 }
0x7bb2   : > { %v12423_v11 = vmul.f32 0.03125, %v12422_v24 }
0x7bb4   : > { %v12424_v6 = vsub.f32 %v12328_v14, %v12423_v11  ;;  %v15368_v11 = vld [vmem:[%s21093_s11 + $0xa8] sm:$0xff] }
0x7bb6   : > { %v12425_v7 = vmul.f32 %v12424_v6, %v12424_v6 }
0x7bb8   : > { %v12426_v3 = vsel %vm3908_vm5, %v12425_v7, 0.0 }
0x7bb9   : > { %12427 = vadd.xlane.f32.xlu1 %v12426_v3 }
0x7c46   : > { %v12428_v23 = vpop.xlane.xlu1 %12427 }
0x7c47   : > { %v12429_v25 = vmul.f32 0.03125, %v12428_v23 }
0x7c49   : > { %v12430_v63 = vadd.f32 1e-05, %v12429_v25 }
0x7c4b   : > { %18231 = vrsqrt.f32 %v12430_v63 }
0x7c55   : > { %v18232_v30 = vpop.eup %18231 }
0x7c56   : > { %v12432_v31 = vmul.f32 %v18232_v30, %v12424_v6  ;;  %v12767_v30 = vrot.slane %v20678_v4, %v18896_v10  ;;  %v15369_v4 = vld [vmem:[%s21093_s11 + $0xb0] sm:$0xff] }
0x7c58   : > { %v12437_v13 = vmul.f32 %v12436_v16, %v12432_v31 }
0x7c5a   : > { %v12442_v37 = vadd.f32 %v12441_v33, %v12437_v13 }
0x7c5c   : > { %17135 = vmatmul.mubr.msk.f32.vlgmr.msra.gmra.mrb[120].mxu1 %vm888_vm0, %v12442_v37 }
0x7c5d   : > { %17139 = vmatprep.mubr.msk.f32.mxu1 %vm18351_vm4, %v18352_v47 }
0x7d2f   : > { %v20687_v62 = vpop.f32.mrb[120].mxu1 }
0x7d30   : > { %12771 = vrot.lane.b32.xlu1 %v20687_v62, %s21191_s26  ;;  %v17136_v60 = vpop.f32.mrb[121].mxu1  ;;  %17138 = vmatpush3.xpose.msk.msra.mxu1 %vm1025_vm1, %v20687_v62 }
0x7d31   : > { %17142 = vmatprep.subr.mxu1 %v18352_v47 }
0x7d33   : > { %17140 = vmatmul.mubr.msk.f32.vlgmr.msra.gmra.mrb[122].mxu1 %vm1025_vm1, %v20650_v36 }
0x7d34   : > { %17144 = vmatprep.mubr.msk.f32.mxu1 %vm18351_vm4, %v18352_v47 }
0x7da2   : > { %v12772_v38 = vpop.permute.xlu1 %12771 }
0x7da3   : > { %17153 = vmatpush3.xpose.msk.msra.mxu0 %vm1025_vm1, %v12772_v38 }
0x7da4   : > { %17162 = vmatprep.subr.mxu0 %v18352_v47 }
0x7da6   : > { %17155 = vmatmul.mubr.msk.f32.vlgmr.msra.gmra.mrb[128].mxu0 %vm1025_vm1, %v12770_v2 }
0x7da7   : > { %17164 = vmatprep.mubr.msk.f32.mxu0 %vm18351_vm4, %v18352_v47  ;;  %17163 = vmatpush3.msra.mxu0 %v15368_v11 }
0x7da8   : > { %17172 = vmatprep.subr.mxu0 %v18352_v47 }
0x7e06   : > { %v12599_v39 = vpop.f32.mrb[122].mxu1 }
0x7e07   : > { %v17141_v40 = vpop.f32.mrb[123].mxu1  ;;  %v12603_v52 = vsel %vm4317_vm8, %v12599_v39, -inf }
0x7e08   : > { %12604 = vmax.xlane.f32.xlu0 %v12603_v52 }
0x7e1e   : > { %12614 = vrot.lane.b32.xlu0 %v20687_v62, %s21189_s3 }
0x7e22   : > { %12858 = vrot.lane.b32.xlu0 %v20687_v62, %s21190_s5 }
0x7e26   : > { %13009 = vrot.lane.b32.xlu0 %v20650_v36, %s21194_s0 }
0x7e79   : > { %v12843_v41 = vpop.f32.mrb[128].mxu0 }
0x7e7a   : > { %v17156_v32 = vpop.f32.mrb[129].mxu0  ;;  %v12847_v59 = vsel %vm4317_vm8, %v12843_v41, -inf }
0x7e95   : > { %v12605_v44 = vpop.xlane.xlu0 %12604 }
0x7e96   : > { %v12606_v45 = vsub.f32 %v12599_v39, %v12605_v44 }
0x7e98   : > { %v12607_v48 = vmul.f32 1.442695, %v12606_v45 }
0x7e99   : > { %v12615_v51 = vpop.permute.xlu0 %12614 }
0x7e9a   : > { %18233 = vpow2.f32 %v12607_v48  ;;  %17143 = vmatpush3.msk.msra.mxu1 %vm4333_vm7, %v12615_v51 }
0x7e9b   : > { %17147 = vmatprep.subr.mxu1 %v18352_v47 }
0x7e9d   : > { %v12859_v34 = vpop.permute.xlu0 %12858 }
0x7ea1   : > { %v13010_v24 = vpop.permute.xlu0 %13009 }
0x7ea4   : > { %v18234_v53 = vpop.eup %18233 }
0x7ea5   : > { %v12609_v18 = vsel %vm4317_vm8, %v18234_v53, 0.0 }
0x7ea6   : > { %12610 = vadd.xlane.f32.xlu1 %v12609_v18 }
0x7eaa   : > { %12848 = vmax.xlane.f32.xlu1 %v12847_v59 }
0x7f33   : > { %v12611_v28 = vpop.xlane.xlu1 %12610 }
0x7f34   : > { %18235 = vrcp.f32 %v12611_v28  ;;  %v15370_v28 = vld [vmem:[%s21093_s11 + $0xb8] sm:$0xff] }
0x7f37   : > { %v12849_v29 = vpop.xlane.xlu1 %12848 }
0x7f38   : > { %v12850_v26 = vsub.f32 %v12843_v41, %v12849_v29 }
0x7f3a   : > { %v12851_v55 = vmul.f32 1.442695, %v12850_v26 }
0x7f3c   : > { %18237 = vpow2.f32 %v12851_v55 }
0x7f3e   : > { %v18236_v5 = vpop.eup %18235 }
0x7f3f   : > { %v12613_v0 = vmul.f32 %v18236_v5, %v18234_v53 }
0x7f41   : > { %17145 = vmatmul.mubr.msk.f32.vlgmr.msra.gmra.mrb[124].mxu1 %vm4329_vm9, %v12613_v0 }
0x7f42   : > { %17149 = vmatprep.mubr.msk.f32.mxu1 %vm18351_vm4, %v18352_v47  ;;  %17148 = vmatpush3.msra.mxu1 %v15367_v8 }
0x7f43   : > { %17157 = vmatprep.subr.mxu1 %v18352_v47 }
0x7f46   : > { %v18238_v1 = vpop.eup %18237 }
0x7f47   : > { %v12853_v43 = vsel %vm4317_vm8, %v18238_v1, 0.0 }
0x7f48   : > { %12854 = vadd.xlane.f32.xlu1 %v12853_v43 }
0x7f59   : > { %13011 = vrot.lane.b32.xlu1 %v20687_v62, %s21194_s0 }
0x7fd5   : > { %v12855_v58 = vpop.xlane.xlu1 %12854 }
0x7fd6   : > { %18239 = vrcp.f32 %v12855_v58 }
0x7fd9   : > { %v13012_v49 = vpop.permute.xlu1 %13011 }
0x7fe0   : > { %v18240_v9 = vpop.eup %18239 }
0x7fe1   : > { %v12857_v14 = vmul.f32 %v18240_v9, %v18238_v1 }
0x8014   : > { %v12687_v35 = vpop.f32.mrb[124].mxu1 }
0x8015   : > { %v17146_v42 = vpop.f32.mrb[125].mxu1  ;;  %17150 = vmatmul.mubr.msk.f32.vlgmr.msra.gmra.mrb[126].mxu1 %vm1025_vm1, %v12687_v35 }
0x8016   : > { %17158 = vmatpush3.msk.msra.mxu1 %vm4333_vm7, %v12859_v34  ;;  %17159 = vmatprep.mubr.msk.f32.mxu1 %vm18351_vm4, %v18352_v47 }
0x8017   : > { %17167 = vmatprep.subr.mxu1 %v18352_v47 }
0x8019   : > { %17160 = vmatmul.mubr.msk.f32.vlgmr.msra.gmra.mrb[128].mxu1 %vm4329_vm9, %v12857_v14 }
0x801a   : > { %17169 = vmatprep.mubr.msk.f32.mxu1 %vm18351_vm4, %v18352_v47 }
0x801d   : > { %17168 = vmatpush3.xpose.msk.msra.mxu1 %vm1025_vm1, %v13012_v49 }
0x801e   : > { %17177 = vmatprep.subr.mxu1 %v18352_v47 }
0x8020   : > { %17170 = vmatmul.mubr.msk.f32.vlgmr.msra.gmra.mrb[130].mxu1 %vm1025_vm1, %v13010_v24 }
0x8021   : > { %17179 = vmatprep.mubr.msk.f32.mxu1 %vm18351_vm4, %v18352_v47  ;;  %17178 = vmatpush3.msra.mxu1 %v15369_v4 }
0x8022   : > { %17187 = vmatprep.subr.mxu1 %v18352_v47 }
0x80e8   : > { %v12760_v6 = vpop.f32.mrb[126].mxu1 }
0x80e9   : > { %v17151_v7 = vpop.f32.mrb[127].mxu1 }
0x80ec   : > { %v12931_v3 = vpop.f32.mrb[128].mxu1 }
0x80ed   : > { %v17161_v15 = vpop.f32.mrb[129].mxu1  ;;  %17165 = vmatmul.mubr.msk.f32.vlgmr.msra.gmra.mrb[130].mxu0 %vm1025_vm1, %v12931_v3  ;;  %v15393_v3 = vld [vmem:[%s21206_s1 + $0xb0] sm:$0xff] }
0x80ee   : > { %17174 = vmatprep.mubr.msk.f32.mxu0 %vm18351_vm4, %v18352_v47  ;;  %v15394_v15 = vld [vmem:[%s21206_s1 + $0xb8] sm:$0xff] }
0x80f3   : > { %v13083_v61 = vpop.f32.mrb[130].mxu1 }
0x80f4   : > { %v17171_v19 = vpop.f32.mrb[131].mxu1  ;;  %v13087_v50 = vsel %vm4317_vm8, %v13083_v61, -inf }
0x80f5   : > { %13088 = vmax.xlane.f32.xlu0 %v13087_v50 }
0x810b   : > { %13098 = vrot.lane.b32.xlu0 %v20687_v62, %s21197_s23 }
0x810f   : > { %13249 = vrot.lane.b32.xlu0 %v20650_v36, %s21196_s22  ;;  %v12768_v36 = vadd.f32 %v12767_v30, %v12760_v6  ;;  %v15391_v6 = vld [vmem:[%s21206_s1 + $0xa0] sm:$0xff] }
0x8182   : > { %v13089_v20 = vpop.xlane.xlu0 %13088 }
0x8183   : > { %v13090_v21 = vsub.f32 %v13083_v61, %v13089_v20  ;;  %v17809_v61 = vpack.c.bf16 %v15394_v15, %v15393_v3 }
0x8185   : > { %v13091_v23 = vmul.f32 1.442695, %v13090_v21  ;;  %v13506_v21 = vrot.slane %v20591_v22, %v18712_v54 }
0x8186   : > { %v13099_v25 = vpop.permute.xlu0 %13098 }
0x8187   : > { %18241 = vpow2.f32 %v13091_v23  ;;  %17173 = vmatpush3.msk.msra.mxu0 %vm4333_vm7, %v13099_v25 }
0x8188   : > { %17182 = vmatprep.subr.mxu0 %v18352_v47 }
0x818a   : > { %v13250_v39 = vpop.permute.xlu0 %13249 }
0x8191   : > { %v18242_v63 = vpop.eup %18241 }
0x8192   : > { %v13093_v16 = vsel %vm4317_vm8, %v18242_v63, 0.0 }
0x8193   : > { %13094 = vadd.xlane.f32.xlu1 %v13093_v16 }
0x81a4   : > { %13251 = vrot.lane.b32.xlu1 %v20687_v62, %s21196_s22 }
0x81c0   : > { %v13004_v31 = vpop.f32.mrb[130].mxu0 }
0x81c1   : > { %v13008_v33 = vadd.f32 %v13004_v31, %v12768_v36  ;;  %v17166_v13 = vpop.f32.mrb[131].mxu0 }
0x8220   : > { %v13095_v37 = vpop.xlane.xlu1 %13094 }
0x8221   : > { %18243 = vrcp.f32 %v13095_v37 }
0x8224   : > { %v13252_v2 = vpop.permute.xlu1 %13251 }
0x822b   : > { %v18244_v60 = vpop.eup %18243 }
0x822c   : > { %v13097_v38 = vmul.f32 %v18244_v60, %v18242_v63  ;;  %v13511_v63 = vrot.slane %v20591_v22, %v18720_v56 }
0x822e   : > { %17175 = vmatmul.mubr.msk.f32.vlgmr.msra.gmra.mrb[132].mxu0 %vm4329_vm9, %v13097_v38 }
0x822f   : > { %17183 = vmatpush3.xpose.msk.msra.mxu0 %vm1025_vm1, %v13252_v2  ;;  %17184 = vmatprep.mubr.msk.f32.mxu0 %vm18351_vm4, %v18352_v47 }
0x8230   : > { %17192 = vmatprep.subr.mxu0 %v18352_v47 }
0x8232   : > { %17185 = vmatmul.mubr.msk.f32.vlgmr.msra.gmra.mrb[134].mxu0 %vm1025_vm1, %v13250_v39 }
0x8233   : > { %17194 = vmatprep.mubr.msk.f32.mxu0 %vm18351_vm4, %v18352_v47  ;;  %17193 = vmatpush3.msra.mxu0 %v15370_v28 }
0x8234   : > { %17208 = vmatprep.subr.mxu0 %v18352_v47 }
0x8301   : > { %v13171_v40 = vpop.f32.mrb[132].mxu0 }
0x8302   : > { %v17176_v52 = vpop.f32.mrb[133].mxu0  ;;  %17180 = vmatmul.mubr.msk.f32.vlgmr.msra.gmra.mrb[132].mxu1 %vm1025_vm1, %v13171_v40 }
0x8303   : > { %17189 = vmatprep.mubr.msk.f32.mxu1 %vm18351_vm4, %v18352_v47 }
0x8305   : > { %v13323_v41 = vpop.f32.mrb[134].mxu0 }
0x8306   : > { %v17186_v32 = vpop.f32.mrb[135].mxu0  ;;  %v13327_v44 = vsel %vm4317_vm8, %v13323_v41, -inf }
0x8307   : > { %13328 = vmax.xlane.f32.xlu0 %v13327_v44 }
0x831d   : > { %13338 = vrot.lane.b32.xlu0 %v20687_v62, %s21195_s27 }
0x8394   : > { %v13329_v45 = vpop.xlane.xlu0 %13328 }
0x8395   : > { %v13330_v48 = vsub.f32 %v13323_v41, %v13329_v45 }
0x8397   : > { %v13331_v51 = vmul.f32 1.442695, %v13330_v48  ;;  %v15396_v48 = vld [vmem:[%s21209_s19 + $0xa0] sm:$0xff] }
0x8398   : > { %v13339_v53 = vpop.permute.xlu0 %13338 }
0x8399   : > { %18245 = vpow2.f32 %v13331_v51  ;;  %17188 = vmatpush3.msk.msra.mxu1 %vm4333_vm7, %v13339_v53 }
0x839a   : > { %17805 = vmatprep.subr.bf16.mxu1 %v18350_v46 }
0x83a3   : > { %v18246_v18 = vpop.eup %18245 }
0x83a4   : > { %v13333_v59 = vsel %vm4317_vm8, %v18246_v18, 0.0 }
0x83a5   : > { %13334 = vadd.xlane.f32.xlu1 %v13333_v59 }
0x83d5   : > { %v13244_v62 = vpop.f32.mrb[132].mxu1 }
0x83d6   : > { %v13248_v29 = vadd.f32 %v13244_v62, %v13008_v33  ;;  %v17181_v26 = vpop.f32.mrb[133].mxu1 }
0x8432   : > { %v13335_v55 = vpop.xlane.xlu1 %13334 }
0x8433   : > { %18247 = vrcp.f32 %v13335_v55 }
0x843d   : > { %v18248_v5 = vpop.eup %18247 }
0x843e   : > { %v13337_v0 = vmul.f32 %v18248_v5, %v18246_v18 }
0x8440   : > { %17190 = vmatmul.mubr.msk.f32.vlgmr.msra.gmra.mrb[134].mxu1 %vm4329_vm9, %v13337_v0 }
0x8441   : > { %17205 = vmatprep.mubr.msk.f32.mxu1 %vm18351_vm4, %v18352_v47 }
0x8513   : > { %v13411_v1 = vpop.f32.mrb[134].mxu1 }
0x8514   : > { %v17191_v43 = vpop.f32.mrb[135].mxu1  ;;  %17195 = vmatmul.mubr.msk.f32.vlgmr.msra.gmra.mrb[136].mxu0 %vm1025_vm1, %v13411_v1 }
0x8515   : > { %17210 = vmatprep.mubr.msk.f32.mxu0 %vm18351_vm4, %v18352_v47 }
0x85e7   : > { %v13484_v8 = vpop.f32.mrb[136].mxu0 }
0x85e8   : > { %v13488_v58 = vadd.f32 %v13484_v8, %v13248_v29  ;;  %v17196_v9 = vpop.f32.mrb[137].mxu0 }
0x85ea   : > { %v20788_v35 = vadd.f32 %v20136_v17, %v13488_v58  ;;  %v15392_v17 = vld [vmem:[%s21206_s1 + $0xa8] sm:$0xff] }
0x85eb   : > { %v17806_v7 = vpack.c.bf16 %v15392_v17, %v15391_v6 }
0x85ec   : > { %v13490_v34 = vsel %vm3908_vm5, %v20788_v35, 0.0 }
0x85ed   : > { %13491 = vadd.xlane.f32.xlu1 %v13490_v34  ;;  %17807 = vmatpush3.bf16.msra.mxu1 %v17806_v7 }
0x85ee   : > { %17808 = vmatprep.subr.bf16.mxu1 %v18350_v46 }
0x85f1   : > { %17810 = vmatpush3.bf16.msra.mxu1 %v17809_v61 }
0x85f2   : > { %17218 = vmatprep.subr.mxu1 %v18352_v47 }
0x867a   : > { %v13492_v42 = vpop.xlane.xlu1 %13491 }
0x867b   : > { %v13493_v14 = vmul.f32 0.03125, %v13492_v42 }
0x867d   : > { %v13494_v49 = vsub.f32 %v20788_v35, %v13493_v14  ;;  %v15397_v14 = vld [vmem:[%s21209_s19 + $0xa8] sm:$0xff] }
0x867f   : > { %v13495_v24 = vmul.f32 %v13494_v49, %v13494_v49 }
0x8681   : > { %v13496_v11 = vsel %vm3908_vm5, %v13495_v24, 0.0 }
0x8682   : > { %13497 = vadd.xlane.f32.xlu1 %v13496_v11 }
0x870f   : > { %v13498_v19 = vpop.xlane.xlu1 %13497 }
0x8710   : > { %v13499_v50 = vmul.f32 0.03125, %v13498_v19 }
0x8712   : > { %v13500_v20 = vadd.f32 1e-05, %v13499_v50 }
0x8714   : > { %18249 = vrsqrt.f32 %v13500_v20  ;;  %v13839_v20 = vrot.slane %v20591_v22, %v18847_v27  ;;  %v15398_v27 = vld [vmem:[%s21209_s19 + $0xb0] sm:$0xff] }
0x871e   : > { %v18250_v23 = vpop.eup %18249 }
0x871f   : > { %v13502_v25 = vmul.f32 %v18250_v23, %v13494_v49 }
0x8721   : > { %v13507_v16 = vmul.f32 %v13506_v21, %v13502_v25 }
0x8723   : > { %v13512_v30 = vadd.f32 %v13511_v63, %v13507_v16 }
0x8725   : > { %17206 = vmatmul.mubr.msk.f32.vlgmr.msra.gmra.mrb[136].mxu1 %vm888_vm0, %v13512_v30 }
0x8726   : > { %17220 = vmatprep.mubr.msk.f32.mxu1 %vm18351_vm4, %v18352_v47  ;;  %17219 = vmatpush3.msra.mxu1 %v15396_v48 }
0x8727   : > { %17228 = vmatprep.subr.mxu1 %v18352_v47 }
0x87f8   : > { %v20815_v36 = vpop.f32.mrb[136].mxu1 }
0x87f9   : > { %13598 = vrot.lane.b32.xlu1 %v20815_v36, %s21189_s3  ;;  %v17207_v31 = vpop.f32.mrb[137].mxu1  ;;  %v20821_v54 = vmul.f32 0.35355338, %v20815_v36 }
0x886b   : > { %v13599_v33 = vpop.permute.xlu1 %13598 }
0x886c   : > { %17209 = vmatpush3.xpose.msk.msra.mxu0 %vm1025_vm1, %v13599_v33 }
0x886d   : > { %17213 = vmatprep.subr.mxu0 %v18352_v47 }
0x886f   : > { %17211 = vmatmul.mubr.msk.f32.vlgmr.msra.gmra.mrb[138].mxu0 %vm1025_vm1, %v20821_v54 }
0x8870   : > { %17215 = vmatprep.mubr.msk.f32.mxu0 %vm18351_vm4, %v18352_v47 }
0x8942   : > { %v13671_v56 = vpop.f32.mrb[138].mxu0 }
0x8943   : > { %v17212_v13 = vpop.f32.mrb[139].mxu0  ;;  %v13675_v37 = vsel %vm4317_vm8, %v13671_v56, -inf }
0x8944   : > { %13676 = vmax.xlane.f32.xlu0 %v13675_v37 }
0x895a   : > { %13686 = vrot.lane.b32.xlu0 %v20815_v36, %s21207_s28  ;;  %s21224_s28 = sld [smem:[#allocation30_spill]] }
0x895e   : > { %13841 = vrot.lane.b32.xlu0 %v20821_v54, %s21191_s26  ;;  %s21222_s26 = sld [smem:[#allocation28_spill]] }
0x89d1   : > { %v13677_v60 = vpop.xlane.xlu0 %13676 }
0x89d2   : > { %v13678_v38 = vsub.f32 %v13671_v56, %v13677_v60 }
0x89d4   : > { %v13679_v2 = vmul.f32 1.442695, %v13678_v38 }
0x89d5   : > { %v13687_v39 = vpop.permute.xlu0 %13686 }
0x89d6   : > { %18251 = vpow2.f32 %v13679_v2  ;;  %17214 = vmatpush3.msk.msra.mxu0 %vm4333_vm7, %v13687_v39 }
0x89d7   : > { %17223 = vmatprep.subr.mxu0 %v18352_v47 }
0x89d9   : > { %v13842_v45 = vpop.permute.xlu0 %13841 }
0x89e0   : > { %v18252_v4 = vpop.eup %18251 }
0x89e1   : > { %v13681_v40 = vsel %vm4317_vm8, %v18252_v4, 0.0 }
0x89e2   : > { %13682 = vadd.xlane.f32.xlu1 %v13681_v40 }
0x89f3   : > { %13843 = vrot.lane.b32.xlu1 %v20815_v36, %s21190_s5 }
0x8a6f   : > { %v13683_v52 = vpop.xlane.xlu1 %13682 }
0x8a70   : > { %18253 = vrcp.f32 %v13683_v52 }
0x8a73   : > { %v13844_v44 = vpop.permute.xlu1 %13843 }
0x8a7a   : > { %v18254_v41 = vpop.eup %18253 }
0x8a7b   : > { %v13685_v32 = vmul.f32 %v18254_v41, %v18252_v4 }
0x8a7d   : > { %17216 = vmatmul.mubr.msk.f32.vlgmr.msra.gmra.mrb[140].mxu0 %vm4329_vm9, %v13685_v32  ;;  %v15399_v32 = vld [vmem:[%s21209_s19 + $0xb8] sm:$0xff] }
0x8a7e   : > { %17224 = vmatpush3.xpose.msk.msra.mxu0 %vm1025_vm1, %v13844_v44  ;;  %17225 = vmatprep.mubr.msk.f32.mxu0 %vm18351_vm4, %v18352_v47 }
0x8a7f   : > { %17233 = vmatprep.subr.mxu0 %v18352_v47 }
0x8a81   : > { %17226 = vmatmul.mubr.msk.f32.vlgmr.msra.gmra.mrb[142].mxu0 %vm1025_vm1, %v13842_v45 }
0x8a82   : > { %17235 = vmatprep.mubr.msk.f32.mxu0 %vm18351_vm4, %v18352_v47  ;;  %17234 = vmatpush3.msra.mxu0 %v15397_v14 }
0x8a83   : > { %17243 = vmatprep.subr.mxu0 %v18352_v47 }
0x8b50   : > { %v13759_v51 = vpop.f32.mrb[140].mxu0 }
0x8b51   : > { %v17217_v53 = vpop.f32.mrb[141].mxu0  ;;  %17221 = vmatmul.mubr.msk.f32.vlgmr.msra.gmra.mrb[138].mxu1 %vm1025_vm1, %v13759_v51 }
0x8b52   : > { %17230 = vmatprep.mubr.msk.f32.mxu1 %vm18351_vm4, %v18352_v47 }
0x8b54   : > { %v13915_v18 = vpop.f32.mrb[142].mxu0 }
0x8b55   : > { %v17227_v59 = vpop.f32.mrb[143].mxu0  ;;  %v13919_v28 = vsel %vm4317_vm8, %v13915_v18, -inf }
0x8b56   : > { %13920 = vmax.xlane.f32.xlu0 %v13919_v28 }
0x8b6c   : > { %13930 = vrot.lane.b32.xlu0 %v20815_v36, %s21210_s4  ;;  %s15444_s4 = sshll.u32 %s21221_s16, 4  ;;  %s18281_s16 = scalar_lea.vmem %s18280_s25, 32 }
0x8b6d   : > { %s21040_s30 = scalar_lea.hbm %s21225_s6, %s15444_s4 }
0x8b70   : > { %14081 = vrot.lane.b32.xlu0 %v20821_v54, %s21194_s0 }
0x8be3   : > { %v13921_v62 = vpop.xlane.xlu0 %13920 }
0x8be4   : > { %v13922_v29 = vsub.f32 %v13915_v18, %v13921_v62 }
0x8be6   : > { %v13923_v26 = vmul.f32 1.442695, %v13922_v29 }
0x8be7   : > { %v13931_v55 = vpop.permute.xlu0 %13930 }
0x8be8   : > { %18255 = vpow2.f32 %v13923_v26  ;;  %17229 = vmatpush3.msk.msra.mxu1 %vm4333_vm7, %v13931_v55 }
0x8be9   : > { %17238 = vmatprep.subr.mxu1 %v18352_v47 }
0x8beb   : > { %v14082_v42 = vpop.permute.xlu0 %14081 }
0x8bf2   : > { %v18256_v5 = vpop.eup %18255 }
0x8bf3   : > { %v13925_v0 = vsel %vm4317_vm8, %v18256_v5, 0.0 }
0x8bf4   : > { %13926 = vadd.xlane.f32.xlu1 %v13925_v0 }
0x8c05   : > { %14083 = vrot.lane.b32.xlu1 %v20815_v36, %s21197_s23 }
0x8c24   : > { %v13832_v1 = vpop.f32.mrb[138].mxu1 }
0x8c25   : > { %v17222_v43 = vpop.f32.mrb[139].mxu1  ;;  %v13840_v21 = vadd.f32 %v13839_v20, %v13832_v1 }
0x8c81   : > { %v13927_v8 = vpop.xlane.xlu1 %13926 }
0x8c82   : > { %18257 = vrcp.f32 %v13927_v8 }
0x8c85   : > { %v14084_v34 = vpop.permute.xlu1 %14083 }
0x8c8c   : > { %v18258_v58 = vpop.eup %18257 }
0x8c8d   : > { %v13929_v9 = vmul.f32 %v18258_v58, %v18256_v5  ;;  %v15420_v58 = vld [vmem:[%s21187_s24 + $0xa0] sm:$0xff] }
0x8c8f   : > { %17231 = vmatmul.mubr.msk.f32.vlgmr.msra.gmra.mrb[140].mxu1 %vm4329_vm9, %v13929_v9 }
0x8c90   : > { %17239 = vmatpush3.xpose.msk.msra.mxu1 %vm1025_vm1, %v14084_v34  ;;  %17240 = vmatprep.mubr.msk.f32.mxu1 %vm18351_vm4, %v18352_v47  ;;  %v15422_v34 = vld [vmem:[%s21187_s24 + $0xb0] sm:$0xff] }
0x8c91   : > { %17248 = vmatprep.subr.mxu1 %v18352_v47 }
0x8c93   : > { %17241 = vmatmul.mubr.msk.f32.vlgmr.msra.gmra.mrb[142].mxu1 %vm1025_vm1, %v14082_v42  ;;  %v15423_v42 = vld [vmem:[%s21187_s24 + $0xb8] sm:$0xff] }
0x8c94   : > { %17250 = vmatprep.mubr.msk.f32.mxu1 %vm18351_vm4, %v18352_v47  ;;  %17249 = vmatpush3.msra.mxu1 %v15398_v27  ;;  %v17815_v14 = vpack.c.bf16 %v15423_v42, %v15422_v34  ;;  %v15438_v27 = vld [vmem:[%s21188_s21 + $0x2d8] sm:$0xff] }
0x8c95   : > { %17258 = vmatprep.subr.mxu1 %v18352_v47 }
0x8d62   : > { %v14003_v49 = vpop.f32.mrb[140].mxu1 }
0x8d63   : > { %v17232_v24 = vpop.f32.mrb[141].mxu1  ;;  %17236 = vmatmul.mubr.msk.f32.vlgmr.msra.gmra.mrb[144].mxu0 %vm1025_vm1, %v14003_v49  ;;  %v15427_v49 = vld [vmem:[%s21188_s21 + $0x280] sm:$0xff] }
0x8d64   : > { %17245 = vmatprep.mubr.msk.f32.mxu0 %vm18351_vm4, %v18352_v47  ;;  %v15428_v24 = vld [vmem:[%s21188_s21 + $0x288] sm:$0xff] }
0x8d66   : > { %v14155_v11 = vpop.f32.mrb[142].mxu1 }
0x8d67   : > { %v17242_v6 = vpop.f32.mrb[143].mxu1  ;;  %v14159_v17 = vsel %vm4317_vm8, %v14155_v11, -inf }
0x8d68   : > { %14160 = vmax.xlane.f32.xlu0 %v14159_v17  ;;  %v17818_v6 = vpack.c.bf16 %v15428_v24, %v15427_v49  ;;  %v15430_v17 = vld [vmem:[%s21188_s21 + $0x298] sm:$0xff]  ;;  %v14797_v49 = vld [vmem:[%s21219_s17 + $0x8] sm:$0xff] }
0x8d7e   : > { %14170 = vrot.lane.b32.xlu0 %v20815_v36, %s21211_s20 }
0x8d82   : > { %14321 = vrot.lane.b32.xlu0 %v20821_v54, %s21196_s22 }
0x8df5   : > { %v14161_v7 = vpop.xlane.xlu0 %14160 }
0x8df6   : > { %v14162_v3 = vsub.f32 %v14155_v11, %v14161_v7  ;;  %v15429_v11 = vld [vmem:[%s21188_s21 + $0x290] sm:$0xff] }
0x8df7   : > { %v17821_v7 = vpack.c.bf16 %v15430_v17, %v15429_v11  ;;  %v14798_v11 = vld [vmem:[%s21219_s17 + $0x10] sm:$0xff] }
0x8df8   : > { %v14163_v15 = vmul.f32 1.442695, %v14162_v3  ;;  %v15431_v3 = vld [vmem:[%s21188_s21 + $0x2a0] sm:$0xff] }
0x8df9   : > { %v14171_v61 = vpop.permute.xlu0 %14170 }
0x8dfa   : > { %18259 = vpow2.f32 %v14163_v15  ;;  %17244 = vmatpush3.msk.msra.mxu0 %vm4333_vm7, %v14171_v61  ;;  %v15432_v15 = vld [vmem:[%s21188_s21 + $0x2a8] sm:$0xff] }
0x8dfb   : > { %17253 = vmatprep.subr.mxu0 %v18352_v47  ;;  %v17824_v61 = vpack.c.bf16 %v15432_v15, %v15431_v3 }
0x8dfd   : > { %v14322_v54 = vpop.permute.xlu0 %14321 }
0x8e04   : > { %v18260_v19 = vpop.eup %18259 }
0x8e05   : > { %v14165_v50 = vsel %vm4317_vm8, %v18260_v19, 0.0 }
0x8e06   : > { %14166 = vadd.xlane.f32.xlu1 %v14165_v50 }
0x8e17   : > { %14323 = vrot.lane.b32.xlu1 %v20815_v36, %s21195_s27  ;;  %s674_s27 = sand.u32 1, %s21220_s13  }
0x8e18   : > { %s675_s20 = scalar_lea.vmem [#allocation3], %s674_s27  ;;  %s14877_s2 = scalar_lea.sflag [#allocation4], %s674_s27 }
0x8e36   : > { %v14076_v23 = vpop.f32.mrb[144].mxu0 }
0x8e37   : > { %v14080_v25 = vadd.f32 %v14076_v23, %v13840_v21  ;;  %v17237_v63 = vpop.f32.mrb[145].mxu0  ;;  %v14578_v21 = vrot.slane %v20591_v22, %v18896_v10  ;;  %v15434_v10 = vld [vmem:[%s21188_s21 + $0x2b8] sm:$0xff] }
0x8e38   : > { %v14583_v63 = vrot.slane %v20591_v22, %v18899_v12  ;;  %v15435_v12 = vld [vmem:[%s21188_s21 + $0x2c0] sm:$0xff] }
0x8e93   : > { %v14167_v16 = vpop.xlane.xlu1 %14166 }
0x8e94   : > { %18261 = vrcp.f32 %v14167_v16 }
0x8e97   : > { %v14324_v33 = vpop.permute.xlu1 %14323 }
0x8e9e   : > { %v18262_v30 = vpop.eup %18261 }
0x8e9f   : > { %v14169_v31 = vmul.f32 %v18262_v30, %v18260_v19 }
0x8ea1   : > { %17246 = vmatmul.mubr.msk.f32.vlgmr.msra.gmra.mrb[146].mxu0 %vm4329_vm9, %v14169_v31  ;;  %v15433_v31 = vld [vmem:[%s21188_s21 + $0x2b0] sm:$0xff] }
0x8ea2   : > { %17254 = vmatpush3.xpose.msk.msra.mxu0 %vm1025_vm1, %v14324_v33  ;;  %17255 = vmatprep.mubr.msk.f32.mxu0 %vm18351_vm4, %v18352_v47  ;;  %v17827_v33 = vpack.c.bf16 %v15434_v10, %v15433_v31 }
0x8ea3   : > { %17263 = vmatprep.subr.mxu0 %v18352_v47 }
0x8ea5   : > { %17256 = vmatmul.mubr.msk.f32.vlgmr.msra.gmra.mrb[148].mxu0 %vm1025_vm1, %v14322_v54  ;;  %v15437_v54 = vld [vmem:[%s21188_s21 + $0x2d0] sm:$0xff] }
0x8ea6   : > { %17265 = vmatprep.mubr.msk.f32.mxu0 %vm18351_vm4, %v18352_v47  ;;  %17264 = vmatpush3.msra.mxu0 %v15399_v32 }
0x8ea7   : > { %17817 = vmatprep.subr.bf16.mxu0 %v18350_v46 }
0x8f74   : > { %v14243_v56 = vpop.f32.mrb[146].mxu0 }
0x8f75   : > { %v17247_v13 = vpop.f32.mrb[147].mxu0  ;;  %17251 = vmatmul.mubr.msk.f32.vlgmr.msra.gmra.mrb[144].mxu1 %vm1025_vm1, %v14243_v56  ;;  %v17833_v56 = vpack.c.bf16 %v15438_v27, %v15437_v54 }
0x8f76   : > { %17260 = vmatprep.mubr.msk.f32.mxu1 %vm18351_vm4, %v18352_v47  ;;  %v15439_v13 = vld [vmem:[%s21188_s21 + $0x2e0] sm:$0xff] }
0x8f78   : > { %v14395_v37 = vpop.f32.mrb[148].mxu0 }
0x8f79   : > { %v17257_v60 = vpop.f32.mrb[149].mxu0  ;;  %v14399_v38 = vsel %vm4317_vm8, %v14395_v37, -inf }
0x8f7a   : > { %14400 = vmax.xlane.f32.xlu0 %v14399_v38  ;;  %v15441_v38 = vld [vmem:[%s21188_s21 + $0x2f0] sm:$0xff] }
0x8f90   : > { %14410 = vrot.lane.b32.xlu0 %v20815_v36, %s21212_s29  ;;  %s14889_s29 = sshll.u32 %s675_s20, 4  ;;  %s21042_s29 = int_to_ptr.vmem [resolvable:$true] %s14889_s29 }
0x8f91   : > { %s18275_s13 = scalar_lea.vmem %s21042_s29, 16  ;;  %p18282_p0 = scmp.lt.s32.totalorder %s21042_s29, %s18280_s25 }
0x8f92   : > { %p18276_p11 = scmp.ne.s32.totalorder %s21042_s29, %s18275_s13  ;;  %p18283_p1 = scmp.lt.s32.totalorder %s18281_s16, %s18275_s13 }
0x8f94   : > { %p18277_p12 = pnand %p18276_p11, %p18507_p5  ;;  %p18284_p2 = por %p18283_p1, %p18282_p0 }
0x8f96   : > { %p18278_p13 = pneg %p18277_p12 }
0x8f98   : > { %p18285_p3 = pnand %p18284_p2, %p18278_p13 }
0x9007   : > { %v14401_v2 = vpop.xlane.xlu0 %14400 }
0x9008   : > { %v14402_v39 = vsub.f32 %v14395_v37, %v14401_v2  ;;  %v15440_v37 = vld [vmem:[%s21188_s21 + $0x2e8] sm:$0xff]  ;;  %v15442_v2 = vld [vmem:[%s21188_s21 + $0x2f8] sm:$0xff] }
0x9009   : > { %v17836_v60 = vpack.c.bf16 %v15440_v37, %v15439_v13 }
0x900a   : > { %v14403_v4 = vmul.f32 1.442695, %v14402_v39  ;;  %v17839_v39 = vpack.c.bf16 %v15442_v2, %v15441_v38 }
0x900b   : > { %v14411_v40 = vpop.permute.xlu0 %14410 }
0x900c   : > { %18263 = vpow2.f32 %v14403_v4  ;;  %17259 = vmatpush3.msk.msra.mxu1 %vm4333_vm7, %v14411_v40  ;;  %v15425_v4 = vld [vmem:[%s21089_s7 + $0x5] ss:$0 sm:$0xff] }
0x900d   : > { %17811 = vmatprep.subr.bf16.mxu1 %v18350_v46 }
0x9016   : > { %v18264_v52 = vpop.eup %18263 }
0x9017   : > { %v14405_v41 = vsel %vm4317_vm8, %v18264_v52, 0.0 }
0x9018   : > { %14406 = vadd.xlane.f32.xlu1 %v14405_v41 }
0x9048   : > { %v14316_v36 = vpop.f32.mrb[144].mxu1 }
0x9049   : > { %v14320_v44 = vadd.f32 %v14316_v36, %v14080_v25  ;;  %v17252_v45 = vpop.f32.mrb[145].mxu1 }
0x90a5   : > { %v14407_v48 = vpop.xlane.xlu1 %14406 }
0x90a6   : > { %18265 = vrcp.f32 %v14407_v48 }
0x90b0   : > { %v18266_v51 = vpop.eup %18265 }
0x90b1   : > { %v14409_v53 = vmul.f32 %v18266_v51, %v18264_v52  ;;  %v18274_v51 = vld [vmem:[%s21090_s8 + $0x50] sm:$0xff] }
0x90b3   : > { %17261 = vmatmul.mubr.msk.f32.vlgmr.msra.gmra.mrb[146].mxu1 %vm4329_vm9, %v14409_v53  ;;  %v14696_v53 = vrot.slane %v18274_v51, %v18941_v57 }
0x90b4   : > { %17276 = vmatprep.mubr.msk.f32.mxu1 %vm18351_vm4, %v18352_v47 }
0x9186   : > { %v14483_v18 = vpop.f32.mrb[146].mxu1 }
0x9187   : > { %v17262_v59 = vpop.f32.mrb[147].mxu1  ;;  %17266 = vmatmul.mubr.msk.f32.vlgmr.msra.gmra.mrb[150].mxu0 %vm1025_vm1, %v14483_v18 }
0x9188   : > { %17311 = vmatprep.mubr.msk.f32.mxu0 %vm18351_vm4, %v18352_v47  ;;  %17819 = vmatpush3.bf16.msra.mxu0 %v17818_v6  ;;  %v14799_v6 = vld [vmem:[%s21219_s17 + $0x18] sm:$0xff] }
0x9189   : > { %17820 = vmatprep.subr.bf16.mxu0 %v18350_v46  ;;  %v17845_v17 = vpack.c.bf16 %v14799_v6, %v14798_v11 }
0x918c   : > { %17822 = vmatpush3.bf16.msra.mxu0 %v17821_v7 }
0x918d   : > { %17823 = vmatprep.subr.bf16.mxu0 %v18350_v46 }
0x9190   : > { %17825 = vmatpush3.bf16.msra.mxu0 %v17824_v61 }
0x9191   : > { %17826 = vmatprep.subr.bf16.mxu0 %v18350_v46 }
0x9194   : > { %17828 = vmatpush3.bf16.msra.mxu0 %v17827_v33 }
0x9195   : > { %17829 = vmatprep.subr.bf16.mxu0 %v18350_v46 }
0x925a   : > { %v14556_v28 = vpop.f32.mrb[150].mxu0 }
0x925b   : > { %v14560_v62 = vadd.f32 %v14556_v28, %v14320_v44  ;;  %v17267_v29 = vpop.f32.mrb[151].mxu0 }
0x925d   : > { %v20922_v26 = vadd.f32 %v14560_v62, %v20788_v35  ;;  %v15421_v35 = vld [vmem:[%s21187_s24 + $0xa8] sm:$0xff] }
0x925e   : > { %v17812_v9 = vpack.c.bf16 %v15421_v35, %v15420_v58 }
0x925f   : > { %v14562_v55 = vsel %vm3908_vm5, %v20922_v26, 0.0 }
0x9260   : > { %14563 = vadd.xlane.f32.xlu1 %v14562_v55  ;;  %17813 = vmatpush3.bf16.msra.mxu1 %v17812_v9 }
0x9261   : > { %17814 = vmatprep.subr.bf16.mxu1 %v18350_v46 }
0x9264   : > { %17816 = vmatpush3.bf16.msra.mxu1 %v17815_v14 }
0x9265   : > { %17841 = vmatprep.subr.bf16.mxu1 %v18350_v46 }
0x92ed   : > { %v14564_v5 = vpop.xlane.xlu1 %14563 }
0x92ee   : > { %v14565_v0 = vmul.f32 0.03125, %v14564_v5 }
0x92f0   : > { %v14566_v1 = vsub.f32 %v20922_v26, %v14565_v0 }
0x92f2   : > { %v14567_v43 = vmul.f32 %v14566_v1, %v14566_v1 }
0x92f4   : > { %v14568_v8 = vsel %vm3908_vm5, %v14567_v43, 0.0 }
0x92f5   : > { %14569 = vadd.xlane.f32.xlu1 %v14568_v8 }
0x9382   : > { %v14570_v19 = vpop.xlane.xlu1 %14569 }
0x9383   : > { %v14571_v50 = vmul.f32 0.03125, %v14570_v19 }
0x9385   : > { %v14572_v20 = vadd.f32 1e-05, %v14571_v50 }
0x9387   : > { %18267 = vrsqrt.f32 %v14572_v20 }
0x9391   : > { %v18268_v23 = vpop.eup %18267 }
0x9392   : > { %v14574_v25 = vmul.f32 %v18268_v23, %v14566_v1  ;;  %v14800_v23 = vld [vmem:[%s21224_s28] sm:$0x1] }
0x9394   : > { %v14579_v16 = vmul.f32 %v14578_v21, %v14574_v25 }
0x9396   : > { %v14584_v30 = vadd.f32 %v14583_v63, %v14579_v16 }
0x9398   : > { %17277 = vmatmul.mubr.msk.f32.vlgmr.msra.gmra.mrb[148].mxu1 %vm888_vm0, %v14584_v30 }
0x9399   : > { %17322 = vmatprep.mubr.msk.f32.mxu1 %vm18351_vm4, %v18352_v47  ;;  %v15436_v47 = vld [vmem:[%s21188_s21 + $0x2c8] sm:$0xff] }
0x939a   : > { %v17830_v22 = vpack.c.bf16 %v15436_v47, %v15435_v12 }
0x939c   : > { %17831 = vmatpush3.bf16.msra.mxu0 %v17830_v22 }
0x939d   : > { %17832 = vmatprep.subr.bf16.mxu0 %v18350_v46 }
0x93a0   : > { %17834 = vmatpush3.bf16.msra.mxu0 %v17833_v56 }
0x93a1   : > { %17835 = vmatprep.subr.bf16.mxu0 %v18350_v46 }
0x93a4   : > { %17837 = vmatpush3.bf16.msra.mxu0 %v17836_v60 }
0x93a5   : > { %17838 = vmatprep.subr.bf16.mxu0 %v18350_v46 }
0x93a8   : > { %17840 = vmatpush3.bf16.msra.mxu0 %v17839_v39 }
0x946b   : > { %v14667_v40 = vpop.f32.mrb[148].mxu1 }
0x946c   : > { %v14668_v52 = vadd.f32 %v15425_v4, %v14667_v40  ;;  %v17278_v41 = vpop.f32.mrb[149].mxu1 }
0x946e   : > { %v14672_v32 = vmul.f32 0.70710677, %v14668_v52  ;;  %v14671_v44 = vmul.f32 0.5, %v14668_v52 }
0x9470   : > { %18269 = verf.f32 %v14672_v32 }
0x947a   : > { %v18270_v36 = vpop.eup %18269 }
0x947b   : > { %v14674_v45 = vadd.f32 1.0, %v18270_v36 }
0x947d   : > { %v14675_v48 = vmul.f32 %v14674_v45, %v14671_v44 }
0x947f   : > { %17312 = vmatmul.mubr.f32.vlgmr.msra.gmra.mrb[152].mxu0 %v14675_v48 }
0x9552   : > { %v14763_v18 = vpop.f32.mrb[152].mxu0 }
0x9553   : > { %v14764_v59 = vadd.f32 %v14763_v18, %v14696_v53  ;;  %v17313_v28 = vpop.f32.mrb[153].mxu0 }
0x9555   : > { %v14767_v62 = vadd.f32 %v14764_v59, %v20922_v26  ;;  %v14796_v26 = vld [vmem:[%s21219_s17] sm:$0xff] }
0x9556   : > { %v17842_v24 = vpack.c.bf16 %v14797_v49, %v14796_v26 }
0x9557   : > { %v14768_v29 = vsel %vm3908_vm5, %v14767_v62, 0.0 }
0x9558   : > { %v14769_v55 = vrot.slane %v14768_v29, 4  ;;  %17843 = vmatpush3.bf16.msra.mxu1 %v17842_v24 }
0x9559   : > { %17844 = vmatprep.subr.bf16.mxu1 %v18350_v46  ;;  %v14777_v46 = vld [vmem:[%s21222_s26] sm:$0x3] }
0x955a   : > { %v14770_v5 = vadd.f32 %v14769_v55, %v14768_v29  ;;  %v14793_v50 = vrot.slane %v14777_v46, 1 }
0x955c   : > { %v14771_v0 = vrot.slane %v14770_v5, 2  ;;  %17846 = vmatpush3.bf16.msra.mxu1 %v17845_v17 }
0x955e   : > { %v14772_v1 = vadd.f32 %v14771_v0, %v14770_v5 }
0x9560   : > { %v14773_v43 = vrot.slane %v14772_v1, 1 }
0x9562   : > { %v14774_v8 = vadd.f32 %v14773_v43, %v14772_v1 }
0x9564   : > { %v14776_v58 = vmul.f32 0.25, %v14774_v8 }
0x9566   : > { %v14778_v35 = vsel %vm888_vm0, %v14776_v58, 0.0 }
0x9567   : > { %14779 = vadd.xlane.f32.xlu1 %v14778_v35 }
0x95f4   : > { %v14780_v9 = vpop.xlane.xlu1 %14779 }
0x95f5   : > { %v14781_v34 = vmul.f32 0.03125, %v14780_v9 }
0x95f7   : > { %v14782_v57 = vsub.f32 %v14776_v58, %v14781_v34 }
0x95f9   : > { %v14783_v42 = vmul.f32 %v14782_v57, %v14782_v57 }
0x95fb   : > { %v14784_v14 = vsel %vm888_vm0, %v14783_v42, 0.0 }
0x95fc   : > { %14785 = vadd.xlane.f32.xlu1 %v14784_v14 }
0x9689   : > { %v14786_v7 = vpop.xlane.xlu1 %14785 }
0x968a   : > { %v14787_v3 = vmul.f32 0.03125, %v14786_v7 }
0x968c   : > { %v14788_v15 = vadd.f32 1e-05, %v14787_v3 }
0x968e   : > { %18271 = vrsqrt.f32 %v14788_v15 }
0x9698   : > { %v18272_v61 = vpop.eup %18271 }
0x9699   : > { %v14790_v19 = vmul.f32 %v18272_v61, %v14782_v57 }
0x969b   : > { %v14791_v20 = vmul.f32 %v14790_v19, %v14777_v46 }
0x969d   : > { %v14795_v21 = vadd.f32 %v14793_v50, %v14791_v20 }
0x969f   : > { %17323 = vmatmul.mubr.msk.f32.vlgmr.msra.gmra.mrb[150].mxu1 %vm888_vm0, %v14795_v21 }
0x9772   : > { %v14870_v25 = vpop.f32.mrb[150].mxu1 }
0x9773   : > { %v14871_v63 = vadd.f32 %v14870_v25, %v14800_v23  ;;  %v17324_v16 = vpop.f32.mrb[151].mxu1 }
0x9775   : > { %14875 = vst.msk [vmem:[%s675_s20] sm:$0x1] %vm14874_vm10, %v14871_v63 }
0x9776   : > { %18288 = shalt.err (!%p18285_p3)
}
0x9777   : > { %s18289_s3 = scalar_lea.hbm %s21040_s30, 16  ;;  %s18293_s27 = scalar_lea.hbm %s21225_s6, 32 }
0x9778   : > { %p18290_p4 = scmp.ne.s32.totalorder %s21040_s30, %s18289_s3  ;;  %p18294_p9 = scmp.lt.u32.totalorder %s21040_s30, %s21225_s6 }
0x9779   : > { %p18295_p10 = scmp.lt.u32.totalorder %s18293_s27, %s18289_s3  ;;  %p18297_p12 = scmp.lt.u32.totalorder %s18289_s3, %s21040_s30 }
0x977a   : > { %p18291_p7 = pnand %p18290_p4, %p18507_p5 }
0x977b   : > { %p18296_p11 = por %p18295_p10, %p18294_p9 }
0x977c   : > { %p18292_p8 = pneg %p18291_p7 }
0x977d   : > { %p18298_p13 = por %p18297_p12, %p18296_p11 }
0x977f   : > { %p18299_p0 = pnand %p18298_p13, %p18292_p8 }
0x9781   : > { %18302 = shalt.err (!%p18299_p0)
}
0x9782   : > { %17870 = dma.vmem_to_hbm [thread:$0]  (%p18507_p5), %s21042_s29, 16, %s21040_s30, %s14877_s2  }
0x9783 PF: > { %s21226_s28 = sld [smem:[#allocation9_spill]]  ;;  %s21227_s4 = sld [smem:[#allocation6_spill]] }
0x9789   : > { %p17876_p1 = scmp.ge.s32.totalorder %s21226_s28, 2  ;;  %s14901_s14 = sand.u32 1, %s21227_s4  }
0x978a   : > { %s14902_s18 = scalar_lea.sflag [#allocation4], %s14901_s14 }
0x978b   : > { %p17873_p2 = pnand %p17876_p1, %p18511_p6 }
0x978d   : > { %18320 = dma.done.wait (!%p17873_p2), %s14902_s18, 16  }
0x978e   : > { %18322 = vsyncadd (!%p17873_p2), %s14902_s18, 4294967280  ;;  %s21229_s30 = sld [smem:[#allocation11_spill]]  ;;  %s21230_s3 = sld [smem:[#allocation7_spill]] }
0x978f   : > { %s21231_s28 = sld [smem:[#allocation8_spill]]  ;;  %s21232_s29 = sld [smem:[#allocation12_spill]] }
0x9794   : > { %p32_p3 = scmp.ge.s32.totalorder %s21229_s30, 4  }
0x9796   :  { %34 = sbr.rel (!%p32_p3) target bundleno = 21 (0x15), region = 194 }
0x979d   :  { %14906 = vsyncpa [#allocation4], 1 }
0x979e   :  { %14908 = vsyncpa [#allocation4 + $0x1], 1 }

</bundles_post_ra>
